<compile_context>
chip_gen: v7x
topology: tpu7x:2x2x1
jax: 0.10.0
libtpu: 0.0.40
codegen_flags: <defaults>
</compile_context>

<pallas_src>
import functools
import math

import jax
import jax.numpy as jnp
import numpy as np
from jax.experimental import pallas as pl
from jax.experimental.pallas import tpu as pltpu  # noqa: F401  (TPU backend)

# Keep the pure-JAX reference matmuls in full f32 so they match the in-kernel
# f32 MXU accumulation within the stated tolerance.
jax.config.update("jax_default_matmul_precision", "highest")


# ----------------------------------------------------------------------------
# Fused decoder-layer kernel (single invocation, everything stays in VMEM)
# ----------------------------------------------------------------------------
def _decoder_layer_kernel(nhead, eps,
                          tgt_ref, mem_ref, pos_ref, qpos_ref,
                          w_ref, b_ref, out_ref):
    T, B, D = tgt_ref.shape
    S = mem_ref.shape[0]
    H = nhead
    dh = D // H
    f32 = jnp.float32

    # Flatten batch into the matmul M dimension (row index = t*B + b).
    x = tgt_ref[...].astype(f32).reshape(T * B, D)
    qpos = qpos_ref[...].astype(f32).reshape(T * B, D)
    mem = mem_ref[...].astype(f32).reshape(S * B, D)
    pos = pos_ref[...].astype(f32).reshape(S * B, D)
    b_all = b_ref[...].astype(f32)                      # (13, D)

    def bias(i):                                        # (1, D) row slice
        return b_all[i:i + 1, :]

    def proj(inp, wi, bi):
        # inp: (M, D) @ w_all[wi]: (D, D) -> (M, D); batch already folded in M.
        return jnp.dot(inp, w_ref[wi], preferred_element_type=f32) + bias(bi)

    def attention(q, k, v, Lq, Lk, wo_i, bo_i):
        # q: (Lq*B, D), k/v: (Lk*B, D) -> (Lq*B, D)
        qh = q.reshape(Lq, B, H, dh)
        kh = k.reshape(Lk, B, H, dh)
        vh = v.reshape(Lk, B, H, dh)
        outs = []
        for b in range(B):                              # static unroll, B tiny
            # scores: one head-batched contraction, scale pre-folded into W_q.
            s = jnp.einsum('qhd,khd->hqk', qh[:, b], kh[:, b],
                           preferred_element_type=f32)  # (H, Lq, Lk)
            s = s - jnp.max(s, axis=-1, keepdims=True)
            p = jnp.exp(s)
            p = p / jnp.sum(p, axis=-1, keepdims=True)  # exact softmax
            o = jnp.einsum('hqk,khd->qhd', p, vh[:, b],
                           preferred_element_type=f32)  # (Lq, H, dh)
            outs.append(o.reshape(Lq, D))
        o_all = jnp.stack(outs, axis=1).reshape(Lq * B, D)
        # Output projection for all heads & batches in one matmul.
        return jnp.dot(o_all, w_ref[wo_i], preferred_element_type=f32) + bias(bo_i)

    def layer_norm(z, gi, bi):
        m = jnp.mean(z, axis=-1, keepdims=True)
        c = z - m
        var = jnp.mean(c * c, axis=-1, keepdims=True)
        return c * jax.lax.rsqrt(var + eps) * bias(gi) + bias(bi)

    # ----------- self attention (q = k = tgt+qpos, v = tgt) -----------------
    qk_in = x + qpos
    q = proj(qk_in, 0, 0)          # W_q pre-scaled by 1/sqrt(dh)
    k = proj(qk_in, 1, 1)
    v = proj(x, 2, 2)
    sa = attention(q, k, v, T, T, 6, 6)
    x = layer_norm(x + sa, 9, 10)

    # ----------- cross attention (q = tgt+qpos, k = mem+pos, v = mem) -------
    q = proj(x + qpos, 3, 3)       # W_q pre-scaled by 1/sqrt(dh)
    kc = proj(mem + pos, 4, 4)
    vc = proj(mem, 5, 5)
    ca = attention(q, kc, vc, T, S, 7, 7)
    t2 = proj(ca, 8, 8)            # linear1 (d_model -> d_model)
    x = layer_norm(x + t2, 11, 12)

    out_ref[...] = x.reshape(T, B, D).astype(out_ref.dtype)


def fused_decoder_layer_forward(prep, tgt, memory, pos, query_pos, *,
                                nhead, eps=1e-5):
    """Thin decoder layer forward_post. tgt:(T,B,D), memory/pos:(S,B,D)."""
    T, B, D = tgt.shape
    return pl.pallas_call(
        functools.partial(_decoder_layer_kernel, nhead, eps),
        out_shape=jax.ShapeDtypeStruct((T, B, D), tgt.dtype),
        # No grid: single invocation, whole arrays resident in VMEM.
    )(tgt, memory, pos, query_pos, prep["w_all"], prep["b_all"])


# ----------------------------------------------------------------------------
# One-time parameter preparation (done at init, NOT in the traced forward)
# ----------------------------------------------------------------------------
def prepare_params(params, nhead):
    """Repack torch-layout params: pre-transpose, fold the softmax scale into
    the Q projections, and stack everything into two operands."""
    D = params["norm1"]["weight"].shape[0]
    scale = 1.0 / math.sqrt(D // nhead)
    sa_w = params["self_attn"]["in_proj_weight"]        # (3D, D)
    sa_b = params["self_attn"]["in_proj_bias"]          # (3D,)
    ca_w = params["multihead_attn"]["in_proj_weight"]
    ca_b = params["multihead_attn"]["in_proj_bias"]

    def t(w):                                            # torch (out,in)->(in,out)
        return jnp.transpose(w)

    w_all = jnp.stack([
        t(sa_w[:D]) * scale,                             # 0: sa Wq (scaled)
        t(sa_w[D:2 * D]),                                # 1: sa Wk
        t(sa_w[2 * D:]),                                 # 2: sa Wv
        t(ca_w[:D]) * scale,                             # 3: ca Wq (scaled)
        t(ca_w[D:2 * D]),                                # 4: ca Wk
        t(ca_w[2 * D:]),                                 # 5: ca Wv
        t(params["self_attn"]["out_proj_weight"]),       # 6: sa Wo
        t(params["multihead_attn"]["out_proj_weight"]),  # 7: ca Wo
        t(params["linear1_w"]),                          # 8: linear1 W
    ], axis=0)                                           # (9, D, D)

    b_all = jnp.stack([
        sa_b[:D] * scale,                                # 0: sa bq (scaled)
        sa_b[D:2 * D],                                   # 1: sa bk
        sa_b[2 * D:],                                    # 2: sa bv
        ca_b[:D] * scale,                                # 3: ca bq (scaled)
        ca_b[D:2 * D],                                   # 4: ca bk
        ca_b[2 * D:],                                    # 5: ca bv
        params["self_attn"]["out_proj_bias"],            # 6: sa bo
        params["multihead_attn"]["out_proj_bias"],       # 7: ca bo
        params["linear1_b"],                             # 8: linear1 b
        params["norm1"]["weight"],                       # 9: LN1 gamma
        params["norm1"]["bias"],                         # 10: LN1 beta
        params["norm2"]["weight"],                       # 11: LN2 gamma
        params["norm2"]["bias"],                         # 12: LN2 beta
    ], axis=0)                                           # (13, D)

    return {"w_all": w_all, "b_all": b_all}


# ----------------------------------------------------------------------------
# Pure-JAX reference (torch-equivalent math) for the correctness check
# ----------------------------------------------------------------------------
def _ref_mha(query, key, value, p, nhead):
    Lq, B, D = query.shape
    Lk = key.shape[0]
    dh = D // nhead
    w_q, w_k, w_v = jnp.split(p["in_proj_weight"], 3, axis=0)
    b_q, b_k, b_v = jnp.split(p["in_proj_bias"], 3, axis=0)
    q = query.reshape(Lq * B, D) @ w_q.T + b_q
    k = key.reshape(Lk * B, D) @ w_k.T + b_k
    v = value.reshape(Lk * B, D) @ w_v.T + b_v
    q = q.reshape(Lq, B * nhead, dh).transpose(1, 0, 2) / math.sqrt(dh)
    k = k.reshape(Lk, B * nhead, dh).transpose(1, 0, 2)
    v = v.reshape(Lk, B * nhead, dh).transpose(1, 0, 2)
    s = jnp.einsum("bqd,bkd->bqk", q, k)
    a = jax.nn.softmax(s, axis=-1)
    o = jnp.einsum("bqk,bkd->bqd", a, v)
    o = o.transpose(1, 0, 2).reshape(Lq * B, D)
    o = o @ p["out_proj_weight"].T + p["out_proj_bias"]
    return o.reshape(Lq, B, D)


def _ref_ln(x, w, b, eps=1e-5):
    m = jnp.mean(x, -1, keepdims=True)
    v = jnp.mean((x - m) ** 2, -1, keepdims=True)
    return (x - m) * jax.lax.rsqrt(v + eps) * w + b


def _ref_forward(params, tgt, memory, pos, query_pos, nhead):
    qk = tgt + query_pos
    tgt2 = _ref_mha(qk, qk, tgt, params["self_attn"], nhead)
    tgt = _ref_ln(tgt + tgt2, params["norm1"]["weight"], params["norm1"]["bias"])
    tgt2 = _ref_mha(tgt + query_pos, memory + pos, memory,
                    params["multihead_attn"], nhead)
    tgt2 = tgt2 @ params["linear1_w"].T + params["linear1_b"]
    tgt = _ref_ln(tgt + tgt2, params["norm2"]["weight"], params["norm2"]["bias"])
    return tgt


# ----------------------------------------------------------------------------
# Parameter init (deterministic, synthetic, torch layout)
# ----------------------------------------------------------------------------
def init_params(key, d_model):
    ks = jax.random.split(key, 6)
    f32 = jnp.float32

    def mha_params(k):
        k1, k2, k3, k4 = jax.random.split(k, 4)
        return {
            "in_proj_weight": 0.05 * jax.random.normal(k1, (3 * d_model, d_model), f32),
            "in_proj_bias": 0.02 * jax.random.normal(k2, (3 * d_model,), f32),
            "out_proj_weight": 0.05 * jax.random.normal(k3, (d_model, d_model), f32),
            "out_proj_bias": 0.02 * jax.random.normal(k4, (d_model,), f32),
        }

    def ln_params(k):
        k1, k2 = jax.random.split(k)
        return {"weight": 1.0 + 0.05 * jax.random.normal(k1, (d_model,), f32),
                "bias": 0.02 * jax.random.normal(k2, (d_model,), f32)}

    return {
        "self_attn": mha_params(ks[0]),
        "multihead_attn": mha_params(ks[1]),
        "linear1_w": 0.05 * jax.random.normal(ks[2], (d_model, d_model), f32),
        "linear1_b": 0.02 * jax.random.normal(ks[3], (d_model,), f32),
        "norm1": ln_params(ks[4]),
        "norm2": ln_params(ks[5]),
    }


# ----------------------------------------------------------------------------
# Main
# ----------------------------------------------------------------------------
if __name__ == "__main__":
    d_model, nhead = 32, 4
    T, S, B = 8, 16, 2  # tgt len, memory len, batch

    root = jax.random.PRNGKey(0)
    k_param, k_tgt, k_mem, k_pos, k_qpos = jax.random.split(root, 5)

    params = init_params(k_param, d_model)
    tgt = jax.random.normal(k_tgt, (T, B, d_model), jnp.float32)
    memory = jax.random.normal(k_mem, (S, B, d_model), jnp.float32)
    pos = jax.random.normal(k_pos, (S, B, d_model), jnp.float32)
    query_pos = jax.random.normal(k_qpos, (T, B, d_model), jnp.float32)

    prep = prepare_params(params, nhead)  # one-time weight repack (outside jit)
    fwd = jax.jit(functools.partial(fused_decoder_layer_forward, nhead=nhead))
    out = jax.block_until_ready(fwd(prep, tgt, memory, pos, query_pos))

    ref = _ref_forward(params, tgt, memory, pos, query_pos, nhead)
    np.testing.assert_allclose(np.asarray(out), np.asarray(ref),
                               rtol=2e-3, atol=2e-3)

    print("KERNEL_OK")
</pallas_src>

<mosaic_0001>
module attributes {stable_mosaic.version = 11 : i64} {
  func.func @_decoder_layer_kernel(%arg0: memref<8x2x32xf32, #tpu.memory_space<vmem>>, %arg1: memref<16x2x32xf32, #tpu.memory_space<vmem>>, %arg2: memref<16x2x32xf32, #tpu.memory_space<vmem>>, %arg3: memref<8x2x32xf32, #tpu.memory_space<vmem>>, %arg4: memref<9x32x32xf32, #tpu.memory_space<vmem>>, %arg5: memref<13x32xf32, #tpu.memory_space<vmem>>, %arg6: memref<8x2x32xf32, #tpu.memory_space<vmem>>) attributes {dimension_semantics = [], scalar_prefetch = 0 : i64, scratch_operands = 0 : i64, tpu.core_type = #tpu.core_type<tc>} {
    %c0 = arith.constant 0 : index
    %c0_0 = arith.constant 0 : index
    %c0_1 = arith.constant 0 : index
    %0 = vector.load %arg0[%c0, %c0_0, %c0_1] : memref<8x2x32xf32, #tpu.memory_space<vmem>>, vector<8x2x32xf32>
    %1 = vector.shape_cast %0 : vector<8x2x32xf32> to vector<16x32xf32>
    %c0_2 = arith.constant 0 : index
    %c0_3 = arith.constant 0 : index
    %c0_4 = arith.constant 0 : index
    %2 = vector.load %arg3[%c0_2, %c0_3, %c0_4] : memref<8x2x32xf32, #tpu.memory_space<vmem>>, vector<8x2x32xf32>
    %3 = vector.shape_cast %2 : vector<8x2x32xf32> to vector<16x32xf32>
    %c0_5 = arith.constant 0 : index
    %c0_6 = arith.constant 0 : index
    %c0_7 = arith.constant 0 : index
    %4 = vector.load %arg1[%c0_5, %c0_6, %c0_7] : memref<16x2x32xf32, #tpu.memory_space<vmem>>, vector<16x2x32xf32>
    %5 = vector.shape_cast %4 : vector<16x2x32xf32> to vector<32x32xf32>
    %c0_8 = arith.constant 0 : index
    %c0_9 = arith.constant 0 : index
    %c0_10 = arith.constant 0 : index
    %6 = vector.load %arg2[%c0_8, %c0_9, %c0_10] : memref<16x2x32xf32, #tpu.memory_space<vmem>>, vector<16x2x32xf32>
    %7 = vector.shape_cast %6 : vector<16x2x32xf32> to vector<32x32xf32>
    %c0_11 = arith.constant 0 : index
    %c0_12 = arith.constant 0 : index
    %8 = vector.load %arg5[%c0_11, %c0_12] : memref<13x32xf32, #tpu.memory_space<vmem>>, vector<13x32xf32>
    %9 = arith.addf %1, %3 : vector<16x32xf32>
    %c0_13 = arith.constant 0 : index
    %c0_14 = arith.constant 0 : index
    %c0_15 = arith.constant 0 : index
    %10 = vector.load %arg4[%c0_13, %c0_14, %c0_15] : memref<9x32x32xf32, #tpu.memory_space<vmem>>, vector<1x32x32xf32>
    %11 = vector.shape_cast %10 : vector<1x32x32xf32> to vector<32x32xf32>
    %cst = arith.constant dense<0.000000e+00> : vector<16x32xf32>
    %12 = tpu.matmul %9, %11, %cst {dimension_numbers = #tpu.dot_dimension_numbers<[1], [0], [0], [1], [0, 0, 1, 1], [], []>, precision = #tpu.contract_precision<fp32>} : vector<16x32xf32>, vector<32x32xf32>, vector<16x32xf32> -> vector<16x32xf32>
    %13 = vector.extract_strided_slice %8 {offsets = [0, 0], sizes = [1, 32], strides = [1, 1]} : vector<13x32xf32> to vector<1x32xf32>
    %14 = vector.broadcast %13 : vector<1x32xf32> to vector<16x32xf32>
    %15 = arith.addf %12, %14 : vector<16x32xf32>
    %c1 = arith.constant 1 : index
    %c0_16 = arith.constant 0 : index
    %c0_17 = arith.constant 0 : index
    %16 = vector.load %arg4[%c1, %c0_16, %c0_17] : memref<9x32x32xf32, #tpu.memory_space<vmem>>, vector<1x32x32xf32>
    %17 = vector.shape_cast %16 : vector<1x32x32xf32> to vector<32x32xf32>
    %cst_18 = arith.constant dense<0.000000e+00> : vector<16x32xf32>
    %18 = tpu.matmul %9, %17, %cst_18 {dimension_numbers = #tpu.dot_dimension_numbers<[1], [0], [0], [1], [0, 0, 1, 1], [], []>, precision = #tpu.contract_precision<fp32>} : vector<16x32xf32>, vector<32x32xf32>, vector<16x32xf32> -> vector<16x32xf32>
    %19 = vector.extract_strided_slice %8 {offsets = [1, 0], sizes = [1, 32], strides = [1, 1]} : vector<13x32xf32> to vector<1x32xf32>
    %20 = vector.broadcast %19 : vector<1x32xf32> to vector<16x32xf32>
    %21 = arith.addf %18, %20 : vector<16x32xf32>
    %c2 = arith.constant 2 : index
    %c0_19 = arith.constant 0 : index
    %c0_20 = arith.constant 0 : index
    %22 = vector.load %arg4[%c2, %c0_19, %c0_20] : memref<9x32x32xf32, #tpu.memory_space<vmem>>, vector<1x32x32xf32>
    %23 = vector.shape_cast %22 : vector<1x32x32xf32> to vector<32x32xf32>
    %cst_21 = arith.constant dense<0.000000e+00> : vector<16x32xf32>
    %24 = tpu.matmul %1, %23, %cst_21 {dimension_numbers = #tpu.dot_dimension_numbers<[1], [0], [0], [1], [0, 0, 1, 1], [], []>, precision = #tpu.contract_precision<fp32>} : vector<16x32xf32>, vector<32x32xf32>, vector<16x32xf32> -> vector<16x32xf32>
    %25 = vector.extract_strided_slice %8 {offsets = [2, 0], sizes = [1, 32], strides = [1, 1]} : vector<13x32xf32> to vector<1x32xf32>
    %26 = vector.broadcast %25 : vector<1x32xf32> to vector<16x32xf32>
    %27 = arith.addf %24, %26 : vector<16x32xf32>
    %28 = vector.shape_cast %15 : vector<16x32xf32> to vector<8x2x4x8xf32>
    %29 = vector.shape_cast %21 : vector<16x32xf32> to vector<8x2x4x8xf32>
    %30 = vector.shape_cast %27 : vector<16x32xf32> to vector<8x2x4x8xf32>
    %31 = vector.extract_strided_slice %28 {offsets = [0, 0, 0, 0], sizes = [8, 1, 4, 8], strides = [1, 1, 1, 1]} : vector<8x2x4x8xf32> to vector<8x1x4x8xf32>
    %32 = vector.shape_cast %31 : vector<8x1x4x8xf32> to vector<8x4x8xf32>
    %33 = vector.extract_strided_slice %29 {offsets = [0, 0, 0, 0], sizes = [8, 1, 4, 8], strides = [1, 1, 1, 1]} : vector<8x2x4x8xf32> to vector<8x1x4x8xf32>
    %34 = vector.shape_cast %33 : vector<8x1x4x8xf32> to vector<8x4x8xf32>
    "tpu.trace_start"() <{level = 10 : i32, message = "qhd,khd->hqk"}> : () -> ()
    %cst_22 = arith.constant dense<0.000000e+00> : vector<4x8x8xf32>
    %35 = tpu.matmul %32, %34, %cst_22 {dimension_numbers = #tpu.dot_dimension_numbers<[2], [2], [0], [0], [0, 1, 0, 0, 1, 0], [1], [1]>, precision = #tpu.contract_precision<fp32>} : vector<8x4x8xf32>, vector<8x4x8xf32>, vector<4x8x8xf32> -> vector<4x8x8xf32>
    "tpu.trace_stop"() : () -> ()
    %cst_23 = arith.constant dense<0xFF800000> : vector<4x8xf32>
    %36 = vector.multi_reduction <maximumf>, %35, %cst_23 [2] : vector<4x8x8xf32> to vector<4x8xf32>
    %37 = vector.shape_cast %36 : vector<4x8xf32> to vector<4x8x1xf32>
    %38 = vector.broadcast %37 : vector<4x8x1xf32> to vector<4x8x8xf32>
    %39 = arith.subf %35, %38 : vector<4x8x8xf32>
    %40 = math.exp %39 : vector<4x8x8xf32>
    %cst_24 = arith.constant dense<0.000000e+00> : vector<4x8xf32>
    %41 = vector.multi_reduction <add>, %40, %cst_24 [2] : vector<4x8x8xf32> to vector<4x8xf32>
    %42 = vector.shape_cast %41 : vector<4x8xf32> to vector<4x8x1xf32>
    %43 = vector.broadcast %42 : vector<4x8x1xf32> to vector<4x8x8xf32>
    %44 = arith.divf %40, %43 : vector<4x8x8xf32>
    %45 = vector.extract_strided_slice %30 {offsets = [0, 0, 0, 0], sizes = [8, 1, 4, 8], strides = [1, 1, 1, 1]} : vector<8x2x4x8xf32> to vector<8x1x4x8xf32>
    %46 = vector.shape_cast %45 : vector<8x1x4x8xf32> to vector<8x4x8xf32>
    "tpu.trace_start"() <{level = 10 : i32, message = "hqk,khd->qhd"}> : () -> ()
    %cst_25 = arith.constant dense<0.000000e+00> : vector<4x8x8xf32>
    %47 = tpu.matmul %46, %44, %cst_25 {dimension_numbers = #tpu.dot_dimension_numbers<[0], [2], [2], [1], [0, 1, 0, 2, 1, 1], [1], [0]>, precision = #tpu.contract_precision<fp32>} : vector<8x4x8xf32>, vector<4x8x8xf32>, vector<4x8x8xf32> -> vector<4x8x8xf32>
    %48 = tpu.transpose %47, [2, 0, 1] : vector<4x8x8xf32> -> vector<8x4x8xf32>
    "tpu.trace_stop"() : () -> ()
    %49 = vector.shape_cast %48 : vector<8x4x8xf32> to vector<8x32xf32>
    %50 = vector.extract_strided_slice %28 {offsets = [0, 1, 0, 0], sizes = [8, 1, 4, 8], strides = [1, 1, 1, 1]} : vector<8x2x4x8xf32> to vector<8x1x4x8xf32>
    %51 = vector.shape_cast %50 : vector<8x1x4x8xf32> to vector<8x4x8xf32>
    %52 = vector.extract_strided_slice %29 {offsets = [0, 1, 0, 0], sizes = [8, 1, 4, 8], strides = [1, 1, 1, 1]} : vector<8x2x4x8xf32> to vector<8x1x4x8xf32>
    %53 = vector.shape_cast %52 : vector<8x1x4x8xf32> to vector<8x4x8xf32>
    "tpu.trace_start"() <{level = 10 : i32, message = "qhd,khd->hqk"}> : () -> ()
    %cst_26 = arith.constant dense<0.000000e+00> : vector<4x8x8xf32>
    %54 = tpu.matmul %51, %53, %cst_26 {dimension_numbers = #tpu.dot_dimension_numbers<[2], [2], [0], [0], [0, 1, 0, 0, 1, 0], [1], [1]>, precision = #tpu.contract_precision<fp32>} : vector<8x4x8xf32>, vector<8x4x8xf32>, vector<4x8x8xf32> -> vector<4x8x8xf32>
    "tpu.trace_stop"() : () -> ()
    %cst_27 = arith.constant dense<0xFF800000> : vector<4x8xf32>
    %55 = vector.multi_reduction <maximumf>, %54, %cst_27 [2] : vector<4x8x8xf32> to vector<4x8xf32>
    %56 = vector.shape_cast %55 : vector<4x8xf32> to vector<4x8x1xf32>
    %57 = vector.broadcast %56 : vector<4x8x1xf32> to vector<4x8x8xf32>
    %58 = arith.subf %54, %57 : vector<4x8x8xf32>
    %59 = math.exp %58 : vector<4x8x8xf32>
    %cst_28 = arith.constant dense<0.000000e+00> : vector<4x8xf32>
    %60 = vector.multi_reduction <add>, %59, %cst_28 [2] : vector<4x8x8xf32> to vector<4x8xf32>
    %61 = vector.shape_cast %60 : vector<4x8xf32> to vector<4x8x1xf32>
    %62 = vector.broadcast %61 : vector<4x8x1xf32> to vector<4x8x8xf32>
    %63 = arith.divf %59, %62 : vector<4x8x8xf32>
    %64 = vector.extract_strided_slice %30 {offsets = [0, 1, 0, 0], sizes = [8, 1, 4, 8], strides = [1, 1, 1, 1]} : vector<8x2x4x8xf32> to vector<8x1x4x8xf32>
    %65 = vector.shape_cast %64 : vector<8x1x4x8xf32> to vector<8x4x8xf32>
    "tpu.trace_start"() <{level = 10 : i32, message = "hqk,khd->qhd"}> : () -> ()
    %cst_29 = arith.constant dense<0.000000e+00> : vector<4x8x8xf32>
    %66 = tpu.matmul %65, %63, %cst_29 {dimension_numbers = #tpu.dot_dimension_numbers<[0], [2], [2], [1], [0, 1, 0, 2, 1, 1], [1], [0]>, precision = #tpu.contract_precision<fp32>} : vector<8x4x8xf32>, vector<4x8x8xf32>, vector<4x8x8xf32> -> vector<4x8x8xf32>
    %67 = tpu.transpose %66, [2, 0, 1] : vector<4x8x8xf32> -> vector<8x4x8xf32>
    "tpu.trace_stop"() : () -> ()
    %68 = vector.shape_cast %67 : vector<8x4x8xf32> to vector<8x32xf32>
    %69 = vector.shape_cast %49 : vector<8x32xf32> to vector<8x1x32xf32>
    %70 = vector.shape_cast %68 : vector<8x32xf32> to vector<8x1x32xf32>
    %71 = tpu.concatenate %69, %70 in 1 : vector<8x1x32xf32>, vector<8x1x32xf32> -> vector<8x2x32xf32>
    %72 = vector.shape_cast %71 : vector<8x2x32xf32> to vector<16x32xf32>
    %c6 = arith.constant 6 : index
    %c0_30 = arith.constant 0 : index
    %c0_31 = arith.constant 0 : index
    %73 = vector.load %arg4[%c6, %c0_30, %c0_31] : memref<9x32x32xf32, #tpu.memory_space<vmem>>, vector<1x32x32xf32>
    %74 = vector.shape_cast %73 : vector<1x32x32xf32> to vector<32x32xf32>
    %cst_32 = arith.constant dense<0.000000e+00> : vector<16x32xf32>
    %75 = tpu.matmul %72, %74, %cst_32 {dimension_numbers = #tpu.dot_dimension_numbers<[1], [0], [0], [1], [0, 0, 1, 1], [], []>, precision = #tpu.contract_precision<fp32>} : vector<16x32xf32>, vector<32x32xf32>, vector<16x32xf32> -> vector<16x32xf32>
    %76 = vector.extract_strided_slice %8 {offsets = [6, 0], sizes = [1, 32], strides = [1, 1]} : vector<13x32xf32> to vector<1x32xf32>
    %77 = vector.broadcast %76 : vector<1x32xf32> to vector<16x32xf32>
    %78 = arith.addf %75, %77 : vector<16x32xf32>
    %79 = arith.addf %1, %78 : vector<16x32xf32>
    %cst_33 = arith.constant dense<0.000000e+00> : vector<16xf32>
    %80 = vector.multi_reduction <add>, %79, %cst_33 [1] : vector<16x32xf32> to vector<16xf32>
    %81 = vector.shape_cast %80 : vector<16xf32> to vector<16x1xf32>
    %cst_34 = arith.constant 3.200000e+01 : f32
    %82 = vector.broadcast %cst_34 : f32 to vector<16x1xf32>
    %83 = arith.divf %81, %82 : vector<16x1xf32>
    %84 = vector.broadcast %83 : vector<16x1xf32> to vector<16x32xf32>
    %85 = arith.subf %79, %84 : vector<16x32xf32>
    %86 = arith.mulf %85, %85 : vector<16x32xf32>
    %cst_35 = arith.constant dense<0.000000e+00> : vector<16xf32>
    %87 = vector.multi_reduction <add>, %86, %cst_35 [1] : vector<16x32xf32> to vector<16xf32>
    %88 = vector.shape_cast %87 : vector<16xf32> to vector<16x1xf32>
    %cst_36 = arith.constant 3.200000e+01 : f32
    %89 = vector.broadcast %cst_36 : f32 to vector<16x1xf32>
    %90 = arith.divf %88, %89 : vector<16x1xf32>
    %cst_37 = arith.constant 9.99999974E-6 : f32
    %91 = vector.broadcast %cst_37 : f32 to vector<16x1xf32>
    %92 = arith.addf %90, %91 : vector<16x1xf32>
    %93 = math.rsqrt %92 : vector<16x1xf32>
    %94 = vector.broadcast %93 : vector<16x1xf32> to vector<16x32xf32>
    %95 = arith.mulf %85, %94 : vector<16x32xf32>
    %96 = vector.extract_strided_slice %8 {offsets = [9, 0], sizes = [1, 32], strides = [1, 1]} : vector<13x32xf32> to vector<1x32xf32>
    %97 = vector.broadcast %96 : vector<1x32xf32> to vector<16x32xf32>
    %98 = arith.mulf %95, %97 : vector<16x32xf32>
    %99 = vector.extract_strided_slice %8 {offsets = [10, 0], sizes = [1, 32], strides = [1, 1]} : vector<13x32xf32> to vector<1x32xf32>
    %100 = vector.broadcast %99 : vector<1x32xf32> to vector<16x32xf32>
    %101 = arith.addf %98, %100 : vector<16x32xf32>
    %102 = arith.addf %101, %3 : vector<16x32xf32>
    %c3 = arith.constant 3 : index
    %c0_38 = arith.constant 0 : index
    %c0_39 = arith.constant 0 : index
    %103 = vector.load %arg4[%c3, %c0_38, %c0_39] : memref<9x32x32xf32, #tpu.memory_space<vmem>>, vector<1x32x32xf32>
    %104 = vector.shape_cast %103 : vector<1x32x32xf32> to vector<32x32xf32>
    %cst_40 = arith.constant dense<0.000000e+00> : vector<16x32xf32>
    %105 = tpu.matmul %102, %104, %cst_40 {dimension_numbers = #tpu.dot_dimension_numbers<[1], [0], [0], [1], [0, 0, 1, 1], [], []>, precision = #tpu.contract_precision<fp32>} : vector<16x32xf32>, vector<32x32xf32>, vector<16x32xf32> -> vector<16x32xf32>
    %106 = vector.extract_strided_slice %8 {offsets = [3, 0], sizes = [1, 32], strides = [1, 1]} : vector<13x32xf32> to vector<1x32xf32>
    %107 = vector.broadcast %106 : vector<1x32xf32> to vector<16x32xf32>
    %108 = arith.addf %105, %107 : vector<16x32xf32>
    %109 = arith.addf %5, %7 : vector<32x32xf32>
    %c4 = arith.constant 4 : index
    %c0_41 = arith.constant 0 : index
    %c0_42 = arith.constant 0 : index
    %110 = vector.load %arg4[%c4, %c0_41, %c0_42] : memref<9x32x32xf32, #tpu.memory_space<vmem>>, vector<1x32x32xf32>
    %111 = vector.shape_cast %110 : vector<1x32x32xf32> to vector<32x32xf32>
    %cst_43 = arith.constant dense<0.000000e+00> : vector<32x32xf32>
    %112 = tpu.matmul %109, %111, %cst_43 {dimension_numbers = #tpu.dot_dimension_numbers<[1], [0], [0], [1], [0, 0, 1, 1], [], []>, precision = #tpu.contract_precision<fp32>} : vector<32x32xf32>, vector<32x32xf32>, vector<32x32xf32> -> vector<32x32xf32>
    %113 = vector.extract_strided_slice %8 {offsets = [4, 0], sizes = [1, 32], strides = [1, 1]} : vector<13x32xf32> to vector<1x32xf32>
    %114 = vector.broadcast %113 : vector<1x32xf32> to vector<32x32xf32>
    %115 = arith.addf %112, %114 : vector<32x32xf32>
    %c5 = arith.constant 5 : index
    %c0_44 = arith.constant 0 : index
    %c0_45 = arith.constant 0 : index
    %116 = vector.load %arg4[%c5, %c0_44, %c0_45] : memref<9x32x32xf32, #tpu.memory_space<vmem>>, vector<1x32x32xf32>
    %117 = vector.shape_cast %116 : vector<1x32x32xf32> to vector<32x32xf32>
    %cst_46 = arith.constant dense<0.000000e+00> : vector<32x32xf32>
    %118 = tpu.matmul %5, %117, %cst_46 {dimension_numbers = #tpu.dot_dimension_numbers<[1], [0], [0], [1], [0, 0, 1, 1], [], []>, precision = #tpu.contract_precision<fp32>} : vector<32x32xf32>, vector<32x32xf32>, vector<32x32xf32> -> vector<32x32xf32>
    %119 = vector.extract_strided_slice %8 {offsets = [5, 0], sizes = [1, 32], strides = [1, 1]} : vector<13x32xf32> to vector<1x32xf32>
    %120 = vector.broadcast %119 : vector<1x32xf32> to vector<32x32xf32>
    %121 = arith.addf %118, %120 : vector<32x32xf32>
    %122 = vector.shape_cast %108 : vector<16x32xf32> to vector<8x2x4x8xf32>
    %123 = vector.shape_cast %115 : vector<32x32xf32> to vector<16x2x4x8xf32>
    %124 = vector.shape_cast %121 : vector<32x32xf32> to vector<16x2x4x8xf32>
    %125 = vector.extract_strided_slice %122 {offsets = [0, 0, 0, 0], sizes = [8, 1, 4, 8], strides = [1, 1, 1, 1]} : vector<8x2x4x8xf32> to vector<8x1x4x8xf32>
    %126 = vector.shape_cast %125 : vector<8x1x4x8xf32> to vector<8x4x8xf32>
    %127 = vector.extract_strided_slice %123 {offsets = [0, 0, 0, 0], sizes = [16, 1, 4, 8], strides = [1, 1, 1, 1]} : vector<16x2x4x8xf32> to vector<16x1x4x8xf32>
    %128 = vector.shape_cast %127 : vector<16x1x4x8xf32> to vector<16x4x8xf32>
    "tpu.trace_start"() <{level = 10 : i32, message = "qhd,khd->hqk"}> : () -> ()
    %cst_47 = arith.constant dense<0.000000e+00> : vector<4x8x16xf32>
    %129 = tpu.matmul %126, %128, %cst_47 {dimension_numbers = #tpu.dot_dimension_numbers<[2], [2], [0], [0], [0, 1, 0, 0, 1, 0], [1], [1]>, precision = #tpu.contract_precision<fp32>} : vector<8x4x8xf32>, vector<16x4x8xf32>, vector<4x8x16xf32> -> vector<4x8x16xf32>
    "tpu.trace_stop"() : () -> ()
    %cst_48 = arith.constant dense<0xFF800000> : vector<4x8xf32>
    %130 = vector.multi_reduction <maximumf>, %129, %cst_48 [2] : vector<4x8x16xf32> to vector<4x8xf32>
    %131 = vector.shape_cast %130 : vector<4x8xf32> to vector<4x8x1xf32>
    %132 = vector.broadcast %131 : vector<4x8x1xf32> to vector<4x8x16xf32>
    %133 = arith.subf %129, %132 : vector<4x8x16xf32>
    %134 = math.exp %133 : vector<4x8x16xf32>
    %cst_49 = arith.constant dense<0.000000e+00> : vector<4x8xf32>
    %135 = vector.multi_reduction <add>, %134, %cst_49 [2] : vector<4x8x16xf32> to vector<4x8xf32>
    %136 = vector.shape_cast %135 : vector<4x8xf32> to vector<4x8x1xf32>
    %137 = vector.broadcast %136 : vector<4x8x1xf32> to vector<4x8x16xf32>
    %138 = arith.divf %134, %137 : vector<4x8x16xf32>
    %139 = vector.extract_strided_slice %124 {offsets = [0, 0, 0, 0], sizes = [16, 1, 4, 8], strides = [1, 1, 1, 1]} : vector<16x2x4x8xf32> to vector<16x1x4x8xf32>
    %140 = vector.shape_cast %139 : vector<16x1x4x8xf32> to vector<16x4x8xf32>
    "tpu.trace_start"() <{level = 10 : i32, message = "hqk,khd->qhd"}> : () -> ()
    %cst_50 = arith.constant dense<0.000000e+00> : vector<4x8x8xf32>
    %141 = tpu.matmul %140, %138, %cst_50 {dimension_numbers = #tpu.dot_dimension_numbers<[0], [2], [2], [1], [0, 1, 0, 2, 1, 1], [1], [0]>, precision = #tpu.contract_precision<fp32>} : vector<16x4x8xf32>, vector<4x8x16xf32>, vector<4x8x8xf32> -> vector<4x8x8xf32>
    %142 = tpu.transpose %141, [2, 0, 1] : vector<4x8x8xf32> -> vector<8x4x8xf32>
    "tpu.trace_stop"() : () -> ()
    %143 = vector.shape_cast %142 : vector<8x4x8xf32> to vector<8x32xf32>
    %144 = vector.extract_strided_slice %122 {offsets = [0, 1, 0, 0], sizes = [8, 1, 4, 8], strides = [1, 1, 1, 1]} : vector<8x2x4x8xf32> to vector<8x1x4x8xf32>
    %145 = vector.shape_cast %144 : vector<8x1x4x8xf32> to vector<8x4x8xf32>
    %146 = vector.extract_strided_slice %123 {offsets = [0, 1, 0, 0], sizes = [16, 1, 4, 8], strides = [1, 1, 1, 1]} : vector<16x2x4x8xf32> to vector<16x1x4x8xf32>
    %147 = vector.shape_cast %146 : vector<16x1x4x8xf32> to vector<16x4x8xf32>
    "tpu.trace_start"() <{level = 10 : i32, message = "qhd,khd->hqk"}> : () -> ()
    %cst_51 = arith.constant dense<0.000000e+00> : vector<4x8x16xf32>
    %148 = tpu.matmul %145, %147, %cst_51 {dimension_numbers = #tpu.dot_dimension_numbers<[2], [2], [0], [0], [0, 1, 0, 0, 1, 0], [1], [1]>, precision = #tpu.contract_precision<fp32>} : vector<8x4x8xf32>, vector<16x4x8xf32>, vector<4x8x16xf32> -> vector<4x8x16xf32>
    "tpu.trace_stop"() : () -> ()
    %cst_52 = arith.constant dense<0xFF800000> : vector<4x8xf32>
    %149 = vector.multi_reduction <maximumf>, %148, %cst_52 [2] : vector<4x8x16xf32> to vector<4x8xf32>
    %150 = vector.shape_cast %149 : vector<4x8xf32> to vector<4x8x1xf32>
    %151 = vector.broadcast %150 : vector<4x8x1xf32> to vector<4x8x16xf32>
    %152 = arith.subf %148, %151 : vector<4x8x16xf32>
    %153 = math.exp %152 : vector<4x8x16xf32>
    %cst_53 = arith.constant dense<0.000000e+00> : vector<4x8xf32>
    %154 = vector.multi_reduction <add>, %153, %cst_53 [2] : vector<4x8x16xf32> to vector<4x8xf32>
    %155 = vector.shape_cast %154 : vector<4x8xf32> to vector<4x8x1xf32>
    %156 = vector.broadcast %155 : vector<4x8x1xf32> to vector<4x8x16xf32>
    %157 = arith.divf %153, %156 : vector<4x8x16xf32>
    %158 = vector.extract_strided_slice %124 {offsets = [0, 1, 0, 0], sizes = [16, 1, 4, 8], strides = [1, 1, 1, 1]} : vector<16x2x4x8xf32> to vector<16x1x4x8xf32>
    %159 = vector.shape_cast %158 : vector<16x1x4x8xf32> to vector<16x4x8xf32>
    "tpu.trace_start"() <{level = 10 : i32, message = "hqk,khd->qhd"}> : () -> ()
    %cst_54 = arith.constant dense<0.000000e+00> : vector<4x8x8xf32>
    %160 = tpu.matmul %159, %157, %cst_54 {dimension_numbers = #tpu.dot_dimension_numbers<[0], [2], [2], [1], [0, 1, 0, 2, 1, 1], [1], [0]>, precision = #tpu.contract_precision<fp32>} : vector<16x4x8xf32>, vector<4x8x16xf32>, vector<4x8x8xf32> -> vector<4x8x8xf32>
    %161 = tpu.transpose %160, [2, 0, 1] : vector<4x8x8xf32> -> vector<8x4x8xf32>
    "tpu.trace_stop"() : () -> ()
    %162 = vector.shape_cast %161 : vector<8x4x8xf32> to vector<8x32xf32>
    %163 = vector.shape_cast %143 : vector<8x32xf32> to vector<8x1x32xf32>
    %164 = vector.shape_cast %162 : vector<8x32xf32> to vector<8x1x32xf32>
    %165 = tpu.concatenate %163, %164 in 1 : vector<8x1x32xf32>, vector<8x1x32xf32> -> vector<8x2x32xf32>
    %166 = vector.shape_cast %165 : vector<8x2x32xf32> to vector<16x32xf32>
    %c7 = arith.constant 7 : index
    %c0_55 = arith.constant 0 : index
    %c0_56 = arith.constant 0 : index
    %167 = vector.load %arg4[%c7, %c0_55, %c0_56] : memref<9x32x32xf32, #tpu.memory_space<vmem>>, vector<1x32x32xf32>
    %168 = vector.shape_cast %167 : vector<1x32x32xf32> to vector<32x32xf32>
    %cst_57 = arith.constant dense<0.000000e+00> : vector<16x32xf32>
    %169 = tpu.matmul %166, %168, %cst_57 {dimension_numbers = #tpu.dot_dimension_numbers<[1], [0], [0], [1], [0, 0, 1, 1], [], []>, precision = #tpu.contract_precision<fp32>} : vector<16x32xf32>, vector<32x32xf32>, vector<16x32xf32> -> vector<16x32xf32>
    %170 = vector.extract_strided_slice %8 {offsets = [7, 0], sizes = [1, 32], strides = [1, 1]} : vector<13x32xf32> to vector<1x32xf32>
    %171 = vector.broadcast %170 : vector<1x32xf32> to vector<16x32xf32>
    %172 = arith.addf %169, %171 : vector<16x32xf32>
    %c8 = arith.constant 8 : index
    %c0_58 = arith.constant 0 : index
    %c0_59 = arith.constant 0 : index
    %173 = vector.load %arg4[%c8, %c0_58, %c0_59] : memref<9x32x32xf32, #tpu.memory_space<vmem>>, vector<1x32x32xf32>
    %174 = vector.shape_cast %173 : vector<1x32x32xf32> to vector<32x32xf32>
    %cst_60 = arith.constant dense<0.000000e+00> : vector<16x32xf32>
    %175 = tpu.matmul %172, %174, %cst_60 {dimension_numbers = #tpu.dot_dimension_numbers<[1], [0], [0], [1], [0, 0, 1, 1], [], []>, precision = #tpu.contract_precision<fp32>} : vector<16x32xf32>, vector<32x32xf32>, vector<16x32xf32> -> vector<16x32xf32>
    %176 = vector.extract_strided_slice %8 {offsets = [8, 0], sizes = [1, 32], strides = [1, 1]} : vector<13x32xf32> to vector<1x32xf32>
    %177 = vector.broadcast %176 : vector<1x32xf32> to vector<16x32xf32>
    %178 = arith.addf %175, %177 : vector<16x32xf32>
    %179 = arith.addf %101, %178 : vector<16x32xf32>
    %cst_61 = arith.constant dense<0.000000e+00> : vector<16xf32>
    %180 = vector.multi_reduction <add>, %179, %cst_61 [1] : vector<16x32xf32> to vector<16xf32>
    %181 = vector.shape_cast %180 : vector<16xf32> to vector<16x1xf32>
    %cst_62 = arith.constant 3.200000e+01 : f32
    %182 = vector.broadcast %cst_62 : f32 to vector<16x1xf32>
    %183 = arith.divf %181, %182 : vector<16x1xf32>
    %184 = vector.broadcast %183 : vector<16x1xf32> to vector<16x32xf32>
    %185 = arith.subf %179, %184 : vector<16x32xf32>
    %186 = arith.mulf %185, %185 : vector<16x32xf32>
    %cst_63 = arith.constant dense<0.000000e+00> : vector<16xf32>
    %187 = vector.multi_reduction <add>, %186, %cst_63 [1] : vector<16x32xf32> to vector<16xf32>
    %188 = vector.shape_cast %187 : vector<16xf32> to vector<16x1xf32>
    %cst_64 = arith.constant 3.200000e+01 : f32
    %189 = vector.broadcast %cst_64 : f32 to vector<16x1xf32>
    %190 = arith.divf %188, %189 : vector<16x1xf32>
    %cst_65 = arith.constant 9.99999974E-6 : f32
    %191 = vector.broadcast %cst_65 : f32 to vector<16x1xf32>
    %192 = arith.addf %190, %191 : vector<16x1xf32>
    %193 = math.rsqrt %192 : vector<16x1xf32>
    %194 = vector.broadcast %193 : vector<16x1xf32> to vector<16x32xf32>
    %195 = arith.mulf %185, %194 : vector<16x32xf32>
    %196 = vector.extract_strided_slice %8 {offsets = [11, 0], sizes = [1, 32], strides = [1, 1]} : vector<13x32xf32> to vector<1x32xf32>
    %197 = vector.broadcast %196 : vector<1x32xf32> to vector<16x32xf32>
    %198 = arith.mulf %195, %197 : vector<16x32xf32>
    %199 = vector.extract_strided_slice %8 {offsets = [12, 0], sizes = [1, 32], strides = [1, 1]} : vector<13x32xf32> to vector<1x32xf32>
    %200 = vector.broadcast %199 : vector<1x32xf32> to vector<16x32xf32>
    %201 = arith.addf %198, %200 : vector<16x32xf32>
    %202 = vector.shape_cast %201 : vector<16x32xf32> to vector<8x2x32xf32>
    %c0_66 = arith.constant 0 : index
    %c0_67 = arith.constant 0 : index
    %c0_68 = arith.constant 0 : index
    %203 = vector.load %arg6[%c0_66, %c0_67, %c0_68] : memref<8x2x32xf32, #tpu.memory_space<vmem>>, vector<8x2x32xf32>
    tpu.vector_store %arg6[%c0_66, %c0_67, %c0_68], %202 {strides = array<i32>} : memref<8x2x32xf32, #tpu.memory_space<vmem>>, vector<8x2x32xf32>,
    return
  }
}

</mosaic_0001>

<bundles_post_ra>
// kernel: fused_decoder_layer_forward.1
= control target key start
LH: loop header
LB: loop body
LE: loop exit
PB: predicated region body
PF: predicated region fallthrough
CT: control target
= control target key end

     0   :  { %11 = vsyncpa [#allocation3], 0  ;;  %s39834_s0 = inlined_call_operand.hbm [shape: f32[8,2,32], index: 0, kind: input, shape index: {}]   ;;  %s39835_s1 = inlined_call_operand.hbm [shape: f32[16,2,32], index: 1, kind: input, shape index: {}]   ;;  %s39836_s2 = inlined_call_operand.hbm [shape: f32[16,2,32], index: 2, kind: input, shape index: {}]   ;;  %s39837_s3 = inlined_call_operand.vmem [shape: f32[8,2,32], index: 3, kind: input, shape index: {}]   ;;  %s39838_s4 = inlined_call_operand.hbm [shape: f32[9,32,32], index: 4, kind: input, shape index: {}]   ;;  %s39839_s5 = inlined_call_operand.hbm [shape: f32[13,32], index: 5, kind: input, shape index: {}]   ;;  %s39840_s6 = inlined_call_operand.hbm [shape: f32[8,2,32], index: 6, kind: output, shape index: {}]  }
   0x1   :  { %12 = vsyncpa [#allocation6], 0 }
   0x2   :  { %13 = vsyncpa [#allocation9], 0 }
   0x3   :  { %14 = vsyncpa [#allocation4], 0  ;;  %s35389_s21 = smov [#allocation5]   ;;  %s35390_s23 = smov [#allocation8]  }
   0x4   :  { %s32_s22 = sshll.u32 %s35389_s21, 4  ;;  %s58_s24 = sshll.u32 %s35390_s23, 4  ;;  %s33_s22 = int_to_ptr.vmem [resolvable:$true] %s32_s22  ;;  %s35447_s24 = int_to_ptr.vmem [resolvable:$true] %s58_s24 }
   0x5   :  { %s35249_s27 = scalar_lea.hbm %s39835_s1, 512 }
   0x6   :  { %p35250_p0 = scmp.ne.s32.totalorder %s39835_s1, %s35249_s27  ;;  %p35253_p1 = scmp.lt.u32.totalorder %s35249_s27, %s39835_s1 }
   0x8   :  { %p35255_p2 = pnand %p35253_p1, %p35250_p0 }
   0xa   :  { %35258 = shalt.err (!%p35255_p2)
}
   0xb   :  { %s35259_s8 = scalar_lea.vmem %s33_s22, 512  ;;  %p35264_p4 = scmp.lt.s32.totalorder %s33_s22, %s33_s22 }
   0xc   :  { %p35260_p3 = scmp.ne.s32.totalorder %s33_s22, %s35259_s8  ;;  %p35265_p5 = scmp.lt.s32.totalorder %s35259_s8, %s35259_s8 }
   0xe   :  { %p35266_p6 = por %p35265_p5, %p35264_p4 }
  0x10   :  { %p35267_p7 = pnand %p35266_p6, %p35260_p3 }
  0x12   :  { %35270 = shalt.err (!%p35267_p7)
}
  0x13   :  { %s35391_s9 = smov 32   ;;  %s35392_s10 = smov 2  }
  0x14   :  { %38 = dma.hbm_to_vmem [thread:$0]  %s39835_s1, 512, %s33_s22, [#allocation6], %s35391_s9, %s35391_s9, %s35392_s10  }
  0x15   :  { %s35271_s15 = scalar_lea.hbm %s39838_s4, 4608 }
  0x16   :  { %p35272_p8 = scmp.ne.s32.totalorder %s39838_s4, %s35271_s15  ;;  %p35275_p9 = scmp.lt.u32.totalorder %s35271_s15, %s39838_s4 }
  0x18   :  { %p35277_p10 = pnand %p35275_p9, %p35272_p8 }
  0x1a   :  { %35280 = shalt.err (!%p35277_p10)
}
  0x1b   :  { %s35281_s20 = scalar_lea.vmem %s35447_s24, 4608  ;;  %p35286_p12 = scmp.lt.s32.totalorder %s35447_s24, %s35447_s24 }
  0x1c   :  { %p35282_p11 = scmp.ne.s32.totalorder %s35447_s24, %s35281_s20  ;;  %p35287_p13 = scmp.lt.s32.totalorder %s35281_s20, %s35281_s20 }
  0x1e   :  { %p35288_p0 = por %p35287_p13, %p35286_p12 }
  0x20   :  { %p35289_p1 = pnand %p35288_p0, %p35282_p11 }
  0x22   :  { %35292 = shalt.err (!%p35289_p1)
}
  0x23   :  { %s35393_s1 = smov 128   ;;  %s35394_s21 = smov 8  }
  0x24   :  { %64 = dma.hbm_to_vmem [thread:$0]  %s39838_s4, 4608, %s35447_s24, [#allocation9], %s35393_s1, %s35393_s1, %s35394_s21  }
  0x25   :  { %s35395_s25 = smov [#allocation2]   ;;  %s35396_s27 = smov [#allocation7]  }
  0x26   :  { %s20_s26 = sshll.u32 %s35395_s25, 4  ;;  %s44_s28 = sshll.u32 %s35396_s27, 4  ;;  %s21_s26 = int_to_ptr.vmem [resolvable:$true] %s20_s26  ;;  %s35484_s28 = int_to_ptr.vmem [resolvable:$true] %s44_s28 }
  0x27   :  { %s35293_s7 = scalar_lea.hbm %s39834_s0, 256 }
  0x28   :  { %p35294_p2 = scmp.ne.s32.totalorder %s39834_s0, %s35293_s7  ;;  %p35297_p3 = scmp.lt.u32.totalorder %s35293_s7, %s39834_s0 }
  0x2a   :  { %p35299_p4 = pnand %p35297_p3, %p35294_p2 }
  0x2c   :  { %35302 = shalt.err (!%p35299_p4)
}
  0x2d   :  { %s35303_s4 = scalar_lea.vmem %s21_s26, 256  ;;  %p35308_p6 = scmp.lt.s32.totalorder %s21_s26, %s21_s26 }
  0x2e   :  { %p35304_p5 = scmp.ne.s32.totalorder %s21_s26, %s35303_s4  ;;  %p35309_p7 = scmp.lt.s32.totalorder %s35303_s4, %s35303_s4 }
  0x30   :  { %p35310_p8 = por %p35309_p7, %p35308_p6 }
  0x32   :  { %p35311_p9 = pnand %p35310_p8, %p35304_p5 }
  0x34   :  { %35314 = shalt.err (!%p35311_p9)
}
  0x35   :  { %26 = dma.hbm_to_vmem [thread:$0]  %s39834_s0, 256, %s21_s26, [#allocation3], %s35391_s9, %s35391_s9, %s35392_s10  }
  0x36   :  { %s35315_s17 = scalar_lea.hbm %s39836_s2, 512 }
  0x37   :  { %p35316_p10 = scmp.ne.s32.totalorder %s39836_s2, %s35315_s17  ;;  %p35319_p11 = scmp.lt.u32.totalorder %s35315_s17, %s39836_s2 }
  0x39   :  { %p35321_p12 = pnand %p35319_p11, %p35316_p10 }
  0x3b   :  { %35324 = shalt.err (!%p35321_p12)
}
  0x3c   :  { %s35325_s23 = scalar_lea.vmem %s35484_s28, 512  ;;  %p35330_p0 = scmp.lt.s32.totalorder %s35484_s28, %s35484_s28 }
  0x3d   :  { %p35326_p13 = scmp.ne.s32.totalorder %s35484_s28, %s35325_s23  ;;  %p35331_p1 = scmp.lt.s32.totalorder %s35325_s23, %s35325_s23 }
  0x3f   :  { %p35332_p2 = por %p35331_p1, %p35330_p0 }
  0x41   :  { %p35333_p3 = pnand %p35332_p2, %p35326_p13 }
  0x43   :  { %35336 = shalt.err (!%p35333_p3)
}
  0x44   :  { %50 = dma.hbm_to_vmem [thread:$0]  %s39836_s2, 512, %s35484_s28, [#allocation6], %s35391_s9, %s35391_s9, %s35392_s10  }
  0x45   :  { %s35397_s26 = smov [#allocation10]   ;;  %s35337_s7 = scalar_lea.hbm %s39839_s5, 256 }
  0x46   :  { %s70_s27 = sshll.u32 %s35397_s26, 4  ;;  %p35338_p4 = scmp.ne.s32.totalorder %s39839_s5, %s35337_s7  ;;  %s71_s27 = int_to_ptr.vmem [resolvable:$true] %s70_s27 }
  0x47   :  { %p35341_p5 = scmp.lt.u32.totalorder %s35337_s7, %s39839_s5 }
  0x49   :  { %p35343_p6 = pnand %p35341_p5, %p35338_p4 }
  0x4b   :  { %35346 = shalt.err (!%p35343_p6)
}
  0x4c   :  { %s35347_s4 = scalar_lea.vmem %s71_s27, 256  ;;  %p35352_p8 = scmp.lt.s32.totalorder %s71_s27, %s71_s27 }
  0x4d   :  { %p35348_p7 = scmp.ne.s32.totalorder %s71_s27, %s35347_s4  ;;  %p35353_p9 = scmp.lt.s32.totalorder %s35347_s4, %s35347_s4 }
  0x4f   :  { %p35354_p10 = por %p35353_p9, %p35352_p8 }
  0x51   :  { %p35355_p11 = pnand %p35354_p10, %p35348_p7 }
  0x53   :  { %35358 = shalt.err (!%p35355_p11)
}
  0x54   :  { %76 = dma.hbm_to_vmem [thread:$0]  %s39839_s5, 256, %s71_s27, [#allocation9], %s35393_s1, %s35393_s1, %s35394_s21  }
  0x55   :  { %35381 = dma.done.wait [#allocation3], 256  }
  0x56   :  { %35382 = vsyncadd [#allocation3], 4294967040 }
  0x57   :  { %35383 = dma.done.wait [#allocation6], 1024  }
  0x58   :  { %35384 = vsyncadd [#allocation6], 4294966272 }
  0x59   :  { %35385 = dma.done.wait [#allocation9], 4864  }
  0x5a   :  { %35386 = vsyncadd [#allocation9], 4294962432  ;;  %v154_v0 = vlaneseq  ;;  %v35398_v1 = vmov 1983009808   ;;  %v150_v5 = vld [vmem:[#allocation8] sm:$0xff]  ;;  %v151_v6 = vld [vmem:[#allocation8 + $0x8] sm:$0xff] }
  0x5b   :  { %v169_v2 = vunpack.c.l.s4 %v35398_v1  ;;  %v734_v7 = vld [vmem:[#allocation8 + $0x20] sm:$0xff]  ;;  %v206_v8 = vand.u32 4294901760, %v150_v5  ;;  %v209_v9 = vand.u32 4294901760, %v151_v6  ;;  %v735_v10 = vld [vmem:[#allocation8 + $0x28] sm:$0xff]  ;;  %v152_v12 = vld [vmem:[#allocation8 + $0x10] sm:$0xff]  ;;  %vm200_vm0 = vcmask 261120  }
  0x5c   :  { %v35536_v3 = vshrl.u32 %v154_v0, 7  ;;  %v743_v11 = vand.u32 4294901760, %v734_v7  ;;  %v153_v13 = vld [vmem:[#allocation8 + $0x18] sm:$0xff]  ;;  %v746_v14 = vand.u32 4294901760, %v735_v10  ;;  %v212_v15 = vand.u32 4294901760, %v152_v12  ;;  %v736_v17 = vld [vmem:[#allocation8 + $0x30] sm:$0xff] }
  0x5d   :  { %v170_v4 = vunpack.c.0.s8 %v169_v2  ;;  %v215_v16 = vand.u32 4294901760, %v153_v13  ;;  %v737_v18 = vld [vmem:[#allocation8 + $0x38] sm:$0xff]  ;;  %v35541_v20 = vpack.c.bf16 %v209_v9, %v206_v8  ;;  %v749_v21 = vand.u32 4294901760, %v736_v17  ;;  %v35543_v23 = vld [vmem:[#allocation2] sm:$0x3]  ;;  %s35400_s29 = smov 112  }
  0x5e   :  { %39910 = vst [vmem:[#allocation16_spill] sm:$0xff] %v35536_v3  ;;  %v752_v22 = vand.u32 4294901760, %v737_v18  ;;  %v35545_v24 = vld [vmem:[#allocation2 + $0x2] sm:$0x3]  ;;  %v35547_v25 = vsub.f32 %v150_v5, %v206_v8  ;;  %v35549_v26 = vpack.c.bf16 %v746_v14, %v743_v11  ;;  %v35553_v28 = vld [vmem:[#allocation2 + $0x4] sm:$0x3]  ;;  %v35560_v31 = vsub.f32 %v151_v6, %v209_v9 }
  0x5f   :  { %v35539_v19 = vsub.s32 %v170_v4, %v35536_v3  ;;  %v35551_v27 = vpack.c.bf16 %v215_v16, %v212_v15  ;;  %v35555_v29 = vld [vmem:[#allocation2 + $0x6] sm:$0x3]  ;;  %v100_v30 = vld [vmem:[%s39837_s3] sm:$0x3]  ;;  %v35562_v32 = vsub.f32 %v734_v7, %v743_v11  ;;  %34235 = vmatprep.subr.bf16.mxu0 %v35541_v20  ;;  %v101_v34 = vld [vmem:[%s39837_s3 + $0x2] sm:$0x3]  ;;  %v35577_v38 = vsub.f32 %v735_v10, %v746_v14 }
  0x60   :  { %v35565_v33 = vpack.c.bf16 %v752_v22, %v749_v21  ;;  %v102_v35 = vld [vmem:[%s39837_s3 + $0x4] sm:$0x3]  ;;  %v103_v36 = vld [vmem:[%s39837_s3 + $0x6] sm:$0x3]  ;;  %v142_v37 = vadd.f32 %v100_v30, %v35543_v23  ;;  %v35579_v39 = vsub.f32 %v152_v12, %v212_v15  ;;  %34283 = vmatprep.subr.bf16.mxu1 %v35549_v26  ;;  %34237 = vmatpush3.bf16.msra.mxu0 %v35541_v20  ;;  %v35586_v43 = vld [vmem:[#allocation2 + $0x8] sm:$0x3] }
  0x61   :  { %v143_v40 = vadd.f32 %v101_v34, %v35545_v24  ;;  %v144_v41 = vadd.f32 %v102_v35, %v35553_v28  ;;  %v145_v42 = vadd.f32 %v103_v36, %v35555_v29  ;;  %v35588_v44 = vld [vmem:[#allocation2 + $0xa] sm:$0x3]  ;;  %v35590_v45 = vld [vmem:[#allocation2 + $0xc] sm:$0x3]  ;;  %34285 = vmatpush3.bf16.msra.mxu1 %v35549_v26  ;;  %34239 = vmatprep.subr.bf16.mxu0 %v35551_v27  ;;  %v35594_v46 = vld [vmem:[#allocation2 + $0xe] sm:$0x3] }
  0x62   :  { %v104_v47 = vld [vmem:[%s39837_s3 + $0x8] sm:$0x3]  ;;  %v105_v48 = vld [vmem:[%s39837_s3 + $0xa] sm:$0x3]  ;;  %v35602_v49 = vsub.f32 %v153_v13, %v215_v16  ;;  %v35604_v50 = vsub.f32 %v736_v17, %v749_v21  ;;  %v35606_v51 = vsub.f32 %v737_v18, %v752_v22  ;;  %34287 = vmatprep.subr.bf16.mxu1 %v35565_v33  ;;  %v106_v54 = vld [vmem:[%s39837_s3 + $0xc] sm:$0x3] }
  0x63   :  { %v166_v52 = vcombine.low %v142_v37, %v143_v40  ;;  %v167_v53 = vcombine.low %v144_v41, %v145_v42  ;;  %v107_v55 = vld [vmem:[%s39837_s3 + $0xe] sm:$0x3]  ;;  %v146_v56 = vadd.f32 %v104_v47, %v35586_v43  ;;  %v147_v57 = vadd.f32 %v105_v48, %v35588_v44  ;;  %s35401_s30 = smov 120   ;;  %s35402_s7 = smov 104  }
  0x64   :  { %v148_v58 = vadd.f32 %v106_v54, %v35590_v45  ;;  %v149_v59 = vadd.f32 %v107_v55, %v35594_v46  ;;  %v297_v60 = vand.u32 4294901760, %v35547_v25  ;;  %v304_v61 = vand.u32 4294901760, %v35560_v31  ;;  %34241 = vmatpush3.bf16.msra.mxu0 %v35551_v27  ;;  %s35405_s8 = smov 16   ;;  %s35406_s11 = smov 24  }
  0x65   :  { %v174_v62 = vrot.slane %v166_v52, %v35539_v19  ;;  %v181_v63 = vrot.slane %v167_v53, %v35539_v19  ;;  %v183_v0 = vcombine.low %v146_v56, %v147_v57  ;;  %v834_v1 = vand.u32 4294901760, %v35562_v32  ;;  %34289 = vmatpush3.bf16.msra.mxu1 %v35565_v33 }
  0x66   :  { %v184_v2 = vcombine.low %v148_v58, %v149_v59  ;;  %v298_v4 = vsub.f32 %v35547_v25, %v297_v60  ;;  %v305_v5 = vsub.f32 %v35560_v31, %v304_v61  ;;  %v841_v6 = vand.u32 4294901760, %v35577_v38 }
  0x67   :  { %v182_v7 = vcombine.low %v174_v62, %v181_v63  ;;  %v191_v8 = vrot.slane %v183_v0, %v35539_v19  ;;  %v835_v9 = vsub.f32 %v35562_v32, %v834_v1  ;;  %v311_v10 = vand.u32 4294901760, %v35579_v39 }
  0x68   :  { %v198_v11 = vrot.slane %v184_v2, %v35539_v19  ;;  %v299_v12 = vand.u32 4294901760, %v298_v4  ;;  %v306_v13 = vand.u32 4294901760, %v305_v5  ;;  %v842_v14 = vsub.f32 %v35577_v38, %v841_v6 }
  0x69   :  { %v201_v15 = vsel %vm200_vm0, %v182_v7, 0  ;;  %v836_v16 = vand.u32 4294901760, %v835_v9  ;;  %v318_v17 = vand.u32 4294901760, %v35602_v49  ;;  %v848_v34 = vand.u32 4294901760, %v35604_v50 }
  0x6a   :  { %v35644_v18 = vand.u32 4294901760, %v201_v15  ;;  %v199_v21 = vcombine.low %v191_v8, %v198_v11  ;;  %v34242_v22 = vpack.c.bf16 %v306_v13, %v299_v12  ;;  %v843_v30 = vand.u32 4294901760, %v842_v14 }
  0x6b   :  { %v855_v35 = vand.u32 4294901760, %v35606_v51  ;;  %v312_v41 = vsub.f32 %v35579_v39, %v311_v10  ;;  %v319_v47 = vsub.f32 %v35602_v49, %v318_v17  ;;  %v849_v48 = vsub.f32 %v35604_v50, %v848_v34 }
  0x6c   :  { %v275_v36 = vsub.f32 %v201_v15, %v35644_v18  ;;  %v203_v37 = vsel %vm200_vm0, %v199_v21, 0  ;;  %34243 = vmatprep.subr.bf16.mxu0 %v34242_v22  ;;  %v34290_v40 = vpack.c.bf16 %v843_v30, %v836_v16  ;;  %v34250_v7 = vpack.c.bf16 %v35560_v31, %v35547_v25 }
  0x6d   :  { %v35653_v42 = vand.u32 4294901760, %v203_v37  ;;  %v856_v52 = vsub.f32 %v35606_v51, %v855_v35  ;;  %v313_v56 = vand.u32 4294901760, %v312_v41  ;;  %v320_v58 = vand.u32 4294901760, %v319_v47 }
  0x6e   :  { %v276_v53 = vand.u32 4294901760, %v275_v36  ;;  %34291 = vmatprep.subr.bf16.mxu1 %v34290_v40  ;;  %v850_v59 = vand.u32 4294901760, %v849_v48  ;;  %v34298_v8 = vpack.c.bf16 %v35577_v38, %v35562_v32  ;;  %v34254_v9 = vpack.c.bf16 %v35602_v49, %v35579_v39  ;;  %v1271_v32 = vld [vmem:[#allocation8 + $0x40] sm:$0xff]  ;;  %v1273_v38 = vld [vmem:[#allocation8 + $0x50] sm:$0xff] }
  0x6f   :  { %v285_v54 = vsub.f32 %v203_v37, %v35653_v42  ;;  %v857_v62 = vand.u32 4294901760, %v856_v52  ;;  %v34246_v4 = vpack.c.bf16 %v320_v58, %v313_v56  ;;  %v34302_v11 = vpack.c.bf16 %v35606_v51, %v35604_v50  ;;  %v1274_v51 = vld [vmem:[#allocation8 + $0x58] sm:$0xff] }
  0x70   :  { %v277_v55 = vsub.f32 %v275_v36, %v276_v53  ;;  %v34266_v12 = vpack.c.bf16 %v304_v61, %v297_v60  ;;  %v34314_v13 = vpack.c.bf16 %v841_v6, %v834_v1  ;;  %v34270_v25 = vpack.c.bf16 %v318_v17, %v311_v10 }
  0x71   :  { %v286_v57 = vand.u32 4294901760, %v285_v54  ;;  %v34294_v5 = vpack.c.bf16 %v857_v62, %v850_v59  ;;  %v34318_v31 = vpack.c.bf16 %v855_v35, %v848_v34  ;;  %v1288_v39 = vcombine.low %v35553_v28, %v35555_v29 }
  0x72   :  { %v278_v63 = vand.u32 4294901760, %v277_v55  ;;  %v1304_v49 = vcombine.low %v35586_v43, %v35588_v44  ;;  %v1332_v60 = vand.u32 4294901760, %v1273_v38  ;;  %v1335_v61 = vand.u32 4294901760, %v1274_v51 }
  0x73   :  { %v287_v0 = vsub.f32 %v285_v54, %v286_v57  ;;  %v1302_v6 = vrot.slane %v1288_v39, %v35539_v19  ;;  %vm35404_vm1 = vmmov 0   ;;  %vm3105_vm2 = vcmask 64512  }
  0x74   :  { %32652 = vmatprep.mubr.f32.mxu0 %v278_v63  ;;  %32718 = vmatprep.mubr.f32.mxu1 %v278_v63  ;;  %v35731_v44 = vpack.c.bf16 %v1335_v61, %v1332_v60  ;;  %v1437_v10 = vsub.f32 %v1274_v51, %v1335_v61  ;;  %vm13302_vm3 = vcmask 130048   ;;  %vm13311_vm4 = vcmask 195584  }
  0x75   :  { %v288_v2 = vand.u32 4294901760, %v287_v0  ;;  %vm13660_vm5 = vcmask 1040384   ;;  %vm31876_vm6 = vcmask 254976  }
  0x76   :  { %v1438_v21 = vand.u32 4294901760, %v1437_v10 }
  0x77   :  { %32653 = vmatmul.mubr.f32.vlgmr.msra.gmra.mrb[0].mxu0 %v288_v2  ;;  %32719 = vmatmul.mubr.f32.vlgmr.msra.gmra.mrb[0].mxu1 %v288_v2 }
  0x78   :  { %34245 = vmatpush3.bf16.msra.mxu0 %v34242_v22  ;;  %34293 = vmatpush3.bf16.msra.mxu1 %v34290_v40  ;;  %v1439_v40 = vsub.f32 %v1437_v10, %v1438_v21 }
  0x79   :  { %34247 = vmatprep.subr.bf16.mxu0 %v34246_v4  ;;  %34295 = vmatprep.subr.bf16.mxu1 %v34294_v5 }
  0x7a   :  { %32663 = vmatprep.mubr.f32.mxu0 %v35644_v18  ;;  %32729 = vmatprep.mubr.f32.mxu1 %v35644_v18  ;;  %v1440_v56 = vand.u32 4294901760, %v1439_v40 }
  0x7c   :  { %34249 = vmatpush3.bf16.msra.mxu0 %v34246_v4  ;;  %34297 = vmatpush3.bf16.msra.mxu1 %v34294_v5 }
  0x7d   :  { %34251 = vmatprep.subr.bf16.mxu0 %v34250_v7  ;;  %34299 = vmatprep.subr.bf16.mxu1 %v34298_v8 }
  0x7f   :  { %32664 = vmatmul.mubr.f32.vlgmr.msra.gmra.mrb[0].mxu0 %v35653_v42  ;;  %32730 = vmatmul.mubr.f32.vlgmr.msra.gmra.mrb[0].mxu1 %v35653_v42 }
  0x80   :  { %34253 = vmatpush3.bf16.msra.mxu0 %v34250_v7  ;;  %34301 = vmatpush3.bf16.msra.mxu1 %v34298_v8  ;;  %v39843_v7 = vsub.s32 1, %v35536_v3  ;;  %v35748_v8 = vld [vmem:[#allocation10] sm:$0xff] }
  0x81   :  { %34255 = vmatprep.subr.bf16.mxu0 %v34254_v9  ;;  %34303 = vmatprep.subr.bf16.mxu1 %v34302_v11 }
  0x82   :  { %32674 = vmatprep.mubr.f32.mxu0 %v275_v36  ;;  %32740 = vmatprep.mubr.f32.mxu1 %v275_v36 }
  0x84   :  { %34257 = vmatpush3.bf16.msra.mxu0 %v34254_v9  ;;  %34305 = vmatpush3.bf16.msra.mxu1 %v34302_v11  ;;  %v741_v9 = vrot.slane %v35748_v8, %v39843_v7 }
  0x85   :  { %34259 = vmatprep.subr.bf16.mxu0 %v35541_v20  ;;  %34307 = vmatprep.subr.bf16.mxu1 %v35549_v26 }
  0x87   :  { %32675 = vmatmul.mubr.f32.vlgmr.msra.gmra.mrb[0].mxu0 %v285_v54  ;;  %32741 = vmatmul.mubr.f32.vlgmr.msra.gmra.mrb[0].mxu1 %v285_v54 }
  0x88   :  { %34261 = vmatpush3.bf16.msra.mxu0 %v35541_v20  ;;  %34309 = vmatpush3.bf16.msra.mxu1 %v35549_v26 }
  0x89   :  { %34263 = vmatprep.subr.bf16.mxu0 %v35551_v27  ;;  %34311 = vmatprep.subr.bf16.mxu1 %v35565_v33 }
  0x8a   :  { %32685 = vmatprep.mubr.f32.mxu0 %v276_v53  ;;  %32751 = vmatprep.mubr.f32.mxu1 %v276_v53 }
  0x8c   :  { %34265 = vmatpush3.bf16.msra.mxu0 %v35551_v27  ;;  %34313 = vmatpush3.bf16.msra.mxu1 %v35565_v33 }
  0x8d   :  { %34267 = vmatprep.subr.bf16.mxu0 %v34266_v12  ;;  %34315 = vmatprep.subr.bf16.mxu1 %v34314_v13 }
  0x8f   :  { %32686 = vmatmul.mubr.f32.vlgmr.msra.gmra.mrb[0].mxu0 %v286_v57  ;;  %32752 = vmatmul.mubr.f32.vlgmr.msra.gmra.mrb[0].mxu1 %v286_v57 }
  0x90   :  { %34269 = vmatpush3.bf16.msra.mxu0 %v34266_v12  ;;  %34317 = vmatpush3.bf16.msra.mxu1 %v34314_v13  ;;  %v39841_v13 = vsub.s32 0, %v35536_v3 }
  0x91   :  { %34271 = vmatprep.subr.bf16.mxu0 %v34270_v25  ;;  %34319 = vmatprep.subr.bf16.mxu1 %v34318_v31 }
  0x92   :  { %32696 = vmatprep.mubr.f32.mxu0 %v35644_v18  ;;  %32762 = vmatprep.mubr.f32.mxu1 %v35644_v18 }
  0x94   :  { %34273 = vmatpush3.bf16.msra.mxu0 %v34270_v25  ;;  %34321 = vmatpush3.bf16.msra.mxu1 %v34318_v31 }
  0x95   :  { %34275 = vmatprep.subr.bf16.mxu0 %v35541_v20  ;;  %34323 = vmatprep.subr.bf16.mxu1 %v35549_v26 }
  0x97   :  { %32697 = vmatmul.mubr.f32.vlgmr.msra.gmra.mrb[0].mxu0 %v35653_v42  ;;  %32763 = vmatmul.mubr.f32.vlgmr.msra.gmra.mrb[0].mxu1 %v35653_v42 }
  0x98   :  { %34277 = vmatpush3.bf16.msra.mxu0 %v35541_v20  ;;  %34325 = vmatpush3.bf16.msra.mxu1 %v35549_v26  ;;  %v1272_v20 = vld [vmem:[#allocation8 + $0x48] sm:$0xff]  ;;  %v1287_v26 = vcombine.low %v35543_v23, %v35545_v24  ;;  %v1312_v23 = vrot.slane %v1304_v49, %v35539_v19 }
  0x99   :  { %34279 = vmatprep.subr.bf16.mxu0 %v35551_v27  ;;  %34327 = vmatprep.subr.bf16.mxu1 %v35565_v33  ;;  %v1329_v50 = vand.u32 4294901760, %v1272_v20 }
  0x9a   :  { %32707 = vmatprep.mubr.f32.mxu0 %v35644_v18  ;;  %32773 = vmatprep.mubr.f32.mxu1 %v35644_v18  ;;  %v1295_v1 = vrot.slane %v1287_v26, %v35539_v19 }
  0x9b   :  { %v1423_v43 = vsub.f32 %v1272_v20, %v1329_v50  ;;  %v39844_v20 = vmov 0.0  }
  0x9c   :  { %34281 = vmatpush3.bf16.msra.mxu0 %v35551_v27  ;;  %34329 = vmatpush3.bf16.msra.mxu1 %v35565_v33  ;;  %v1305_v27 = vcombine.low %v35590_v45, %v35594_v46  ;;  %v1326_v33 = vand.u32 4294901760, %v1271_v32  ;;  %v1303_v45 = vcombine.low %v1295_v1, %v1302_v6  ;;  %v1430_v46 = vsub.f32 %v1273_v38, %v1332_v60 }
  0x9d   :  { %v1424_v16 = vand.u32 4294901760, %v1423_v43  ;;  %32842 = vmatprep.subr.mxu1 %v39844_v20  ;;  %v157_v38 = vrot.slane %v35748_v8, %v39841_v13 }
  0x9e   :  { %v35728_v24 = vpack.c.bf16 %v1329_v50, %v1326_v33  ;;  %v1319_v28 = vrot.slane %v1305_v27, %v35539_v19  ;;  %v1416_v29 = vsub.f32 %v1271_v32, %v1326_v33  ;;  %v1321_v17 = vsel %vm200_vm0, %v1303_v45, 0 }
  0x9f   :  { %32708 = vmatmul.mubr.f32.vlgmr.msra.gmra.mrb[0].mxu0 %v35653_v42  ;;  %32774 = vmatmul.mubr.f32.vlgmr.msra.gmra.mrb[0].mxu1 %v35653_v42  ;;  %v1431_v18 = vand.u32 4294901760, %v1430_v46  ;;  %v1394_v22 = vand.u32 4294901760, %v1321_v17  ;;  %v1425_v35 = vsub.f32 %v1423_v43, %v1424_v16  ;;  %v34350_v2 = vpack.c.bf16 %v1437_v10, %v1430_v46 }
  0xa0   :  { %34331 = vmatprep.subr.bf16.mxu0 %v35728_v24  ;;  %v1320_v14 = vcombine.low %v1312_v23, %v1319_v28  ;;  %v1417_v15 = vand.u32 4294901760, %v1416_v29  ;;  %v34346_v0 = vpack.c.bf16 %v1423_v43, %v1416_v29  ;;  %v35403_v27 = vmov 1934713408   ;;  %32844 = vmatprep.mubr.msk.f32.mxu1 %vm35404_vm1, %v39844_v20 }
  0xa1   :  { %34333 = vmatpush3.bf16.msra.mxu0 %v35728_v24  ;;  %v1432_v37 = vsub.f32 %v1430_v46, %v1431_v18  ;;  %v1395_v41 = vsub.f32 %v1321_v17, %v1394_v22  ;;  %v1426_v47 = vand.u32 4294901760, %v1425_v35  ;;  %v34366_v5 = vpack.c.bf16 %v1438_v21, %v1431_v18 }
  0xa2   :  { %34335 = vmatprep.subr.bf16.mxu0 %v35731_v44  ;;  %v1323_v30 = vsel %vm200_vm0, %v1320_v14, 0  ;;  %v1418_v34 = vsub.f32 %v1416_v29, %v1417_v15  ;;  %v34362_v4 = vpack.c.bf16 %v1424_v16, %v1417_v15  ;;  %v1908_v33 = vunpack.c.l.s4 %v35403_v27 }
  0xa3   :  { %v1404_v36 = vand.u32 4294901760, %v1323_v30  ;;  %v1396_v52 = vand.u32 4294901760, %v1395_v41  ;;  %v1433_v55 = vand.u32 4294901760, %v1432_v37 }
  0xa4   :  { %v1419_v42 = vand.u32 4294901760, %v1418_v34  ;;  %v1909_v61 = vunpack.c.0.s8 %v1908_v33 }
  0xa5   :  { %34337 = vmatpush3.bf16.msra.mxu0 %v35731_v44  ;;  %v1405_v48 = vsub.f32 %v1323_v30, %v1404_v36  ;;  %v1397_v57 = vsub.f32 %v1395_v41, %v1396_v52  ;;  %v34342_v63 = vpack.c.bf16 %v1440_v56, %v1433_v55 }
  0xa6   :  { %v34338_v53 = vpack.c.bf16 %v1426_v47, %v1419_v42  ;;  %v35778_v29 = vsub.s32 %v1909_v61, %v35536_v3 }
  0xa7   :  { %v1406_v54 = vand.u32 4294901760, %v1405_v48  ;;  %v1398_v59 = vand.u32 4294901760, %v1397_v57 }
  0xa8   :  { %34339 = vmatprep.subr.bf16.mxu0 %v34338_v53  ;;  %39911 = vst [vmem:[#allocation17_spill] sm:$0xff] %v35778_v29 }
  0xa9   :  { %v1407_v58 = vsub.f32 %v1405_v48, %v1406_v54  ;;  %32784 = vmatprep.mubr.f32.mxu0 %v1398_v59 }
  0xab   :  { %v1408_v62 = vand.u32 4294901760, %v1407_v58 }
  0xad   :  { %32785 = vmatmul.mubr.f32.vlgmr.msra.gmra.mrb[2].mxu0 %v1408_v62 }
  0xae   :  { %34341 = vmatpush3.bf16.msra.mxu0 %v34338_v53  ;;  %32795 = vmatprep.mubr.f32.mxu0 %v1394_v22 }
  0xaf   :  { %34343 = vmatprep.subr.bf16.mxu0 %v34342_v63 }
  0xb2   :  { %34345 = vmatpush3.bf16.msra.mxu0 %v34342_v63 }
  0xb3   :  { %34347 = vmatprep.subr.bf16.mxu0 %v34346_v0 }
  0xb5   :  { %32796 = vmatmul.mubr.f32.vlgmr.msra.gmra.mrb[2].mxu0 %v1404_v36 }
  0xb6   :  { %34349 = vmatpush3.bf16.msra.mxu0 %v34346_v0  ;;  %32806 = vmatprep.mubr.f32.mxu0 %v1395_v41 }
  0xb7   :  { %34351 = vmatprep.subr.bf16.mxu0 %v34350_v2 }
  0xba   :  { %34353 = vmatpush3.bf16.msra.mxu0 %v34350_v2 }
  0xbb   :  { %34355 = vmatprep.subr.bf16.mxu0 %v35728_v24 }
  0xbd   :  { %32807 = vmatmul.mubr.f32.vlgmr.msra.gmra.mrb[2].mxu0 %v1405_v48 }
  0xbe   :  { %34357 = vmatpush3.bf16.msra.mxu0 %v35728_v24  ;;  %32817 = vmatprep.mubr.f32.mxu0 %v1396_v52 }
  0xbf   :  { %34359 = vmatprep.subr.bf16.mxu0 %v35731_v44 }
  0xc2   :  { %34361 = vmatpush3.bf16.msra.mxu0 %v35731_v44 }
  0xc3   :  { %34363 = vmatprep.subr.bf16.mxu0 %v34362_v4 }
  0xc5   :  { %32818 = vmatmul.mubr.f32.vlgmr.msra.gmra.mrb[2].mxu0 %v1406_v54 }
  0xc6   :  { %34365 = vmatpush3.bf16.msra.mxu0 %v34362_v4  ;;  %32828 = vmatprep.mubr.f32.mxu0 %v1394_v22 }
  0xc7   :  { %34367 = vmatprep.subr.bf16.mxu0 %v34366_v5 }
  0xca   :  { %34369 = vmatpush3.bf16.msra.mxu0 %v34366_v5 }
  0xcb   :  { %34371 = vmatprep.subr.bf16.mxu0 %v35728_v24 }
  0xcd   :  { %32829 = vmatmul.mubr.f32.vlgmr.msra.gmra.mrb[2].mxu0 %v1404_v36 }
  0xce   :  { %34373 = vmatpush3.bf16.msra.mxu0 %v35728_v24  ;;  %32839 = vmatprep.mubr.f32.mxu0 %v1394_v22 }
  0xcf   :  { %34375 = vmatprep.subr.bf16.mxu0 %v35731_v44 }
  0xd2   :  { %34377 = vmatpush3.bf16.msra.mxu0 %v35731_v44 }
  0xd3   :  { %32902 = vmatprep.subr.mxu0 %v39844_v20 }
  0xd5   :  { %32840 = vmatmul.mubr.f32.vlgmr.msra.gmra.mrb[2].mxu0 %v1404_v36 }
  0xd6   :  { %32904 = vmatprep.mubr.msk.f32.mxu0 %vm35404_vm1, %v39844_v20 }
 0x172   :  { %v32709_v11 = vpop.f32.mrb[0].mxu0  ;;  %v32775_v12 = vpop.f32.mrb[0].mxu1 }
 0x173   :  { %v34668_v25 = vadd.f32 %v32775_v12, %v741_v9  ;;  %v723_v31 = vpop.f32.mrb[1].mxu0  ;;  %v1260_v32 = vpop.f32.mrb[1].mxu1  ;;  %v35763_v39 = vadd.f32 %v32709_v11, %v157_v38 }
 0x174   :  { %v34669_v26 = vadd.f32 %v1260_v32, %v741_v9  ;;  %v35768_v49 = vadd.f32 %v723_v31, %v157_v38 }
 0x175   :  { %2019 = vrot.lane.b32.xlu1 %v34668_v25, %s35400_s29  ;;  %2013 = vrot.lane.b32.xlu0 %v34668_v25, %s35401_s30 }
 0x179   :  { %2025 = vrot.lane.b32.xlu1 %v34668_v25, %s35402_s7  ;;  %2011 = vrot.lane.b32.xlu0 %v34669_v26, %s35401_s30 }
 0x17d   :  { %2023 = vrot.lane.b32.xlu0 %v34669_v26, %s35402_s7  ;;  %1857 = vrot.lane.b32.xlu1 %v35763_v39, %s35401_s30 }
 0x181   :  { %1863 = vrot.lane.b32.xlu1 %v35763_v39, %s35400_s29  ;;  %1855 = vrot.lane.b32.xlu0 %v35768_v49, %s35401_s30 }
 0x185   :  { %2017 = vrot.lane.b32.xlu1 %v34669_v26, %s35400_s29 }
 0x189   :  { %1861 = vrot.lane.b32.xlu1 %v35768_v49, %s35400_s29 }
 0x1a8   :  { %v35826_v0 = vpop.f32.mrb[2].mxu0 }
 0x1a9   :  { %v35830_v2 = vpop.f32.mrb[3].mxu0 }
 0x1e7   :  { %v2020_v50 = vpop.permute.xlu1 %2019  ;;  %v2014_v51 = vpop.permute.xlu0 %2013 }
 0x1e8   :  { %v2097_v60 = vcombine.low %v34668_v25, %v2020_v50  ;;  %v2098_v6 = vcombine.high %v34668_v25, %v2020_v50 }
 0x1ea   :  { %v2105_v43 = vrot.slane %v2097_v60, %v35539_v19  ;;  %v2112_v15 = vrot.slane %v2098_v6, %v35539_v19 }
 0x1eb   :  { %v2026_v1 = vpop.permute.xlu1 %2025  ;;  %v2012_v28 = vpop.permute.xlu0 %2011 }
 0x1ec   :  { %v2113_v23 = vcombine.low %v2014_v51, %v2026_v1  ;;  %v2114_v24 = vcombine.high %v2014_v51, %v2026_v1 }
 0x1ee   :  { %v2121_v44 = vrot.slane %v2113_v23, %v35539_v19  ;;  %v2128_v45 = vrot.slane %v2114_v24, %v35539_v19 }
 0x1ef   :  { %v35783_v46 = vpop.permute.xlu1 %1857  ;;  %v2024_v21 = vpop.permute.xlu0 %2023 }
 0x1f0   :  { %v2130_v10 = vcombine.high %v2105_v43, %v2121_v44  ;;  %v2129_v14 = vcombine.low %v2105_v43, %v2121_v44  ;;  %v2146_v18 = vcombine.high %v2112_v15, %v2128_v45  ;;  %v2145_v30 = vcombine.low %v2112_v15, %v2128_v45 }
 0x1f1   :  { %v2045_v34 = vcombine.low %v2012_v28, %v2024_v21  ;;  %v2046_v40 = vcombine.high %v2012_v28, %v2024_v21 }
 0x1f2   :  { %v35787_v16 = vrot.slane %v2130_v10, %v35778_v29  ;;  %v35790_v17 = vrot.slane %v2129_v14, %v35778_v29  ;;  %v35797_v35 = vrot.slane %v2146_v18, %v35778_v29  ;;  %v35800_v37 = vrot.slane %v2145_v30, %v35778_v29 }
 0x1f3   :  { %v35792_v22 = vpop.permute.xlu1 %1863  ;;  %v2053_v48 = vrot.slane %v2045_v34, %v35539_v19  ;;  %v2060_v55 = vrot.slane %v2046_v40, %v35539_v19  ;;  %v35832_v4 = vpop.permute.xlu0 %1855 }
 0x1f4   :  { %2549 = vxpose.xlu1.b32.start.end [1/1] (short) (narrow) %v35787_v16, 8  ;;  %2517 = vxpose.xlu0.b32.start.end [1/1] (short) (narrow) %v35790_v17, 8  ;;  %v1941_v30 = vcombine.low %v35763_v39, %v35792_v22  ;;  %v1942_v40 = vcombine.high %v35763_v39, %v35792_v22 }
 0x1f7   :  { %v2018_v36 = vpop.permute.xlu1 %2017 }
 0x1f8   :  { %v2029_v41 = vcombine.low %v34669_v26, %v2018_v36  ;;  %v2030_v42 = vcombine.high %v34669_v26, %v2018_v36  ;;  %2613 = vxpose.xlu1.b32.start.end [1/1] (short) (narrow) %v35797_v35, 8  ;;  %2581 = vxpose.xlu0.b32.start.end [1/1] (short) (narrow) %v35800_v37, 8 }
 0x1fa   :  { %v2037_v47 = vrot.slane %v2029_v41, %v35539_v19  ;;  %v2044_v52 = vrot.slane %v2030_v42, %v35539_v19 }
 0x1fb   :  { %v35834_v5 = vpop.permute.xlu1 %1861 }
 0x1fc   :  { %v2062_v53 = vcombine.high %v2037_v47, %v2053_v48  ;;  %v2061_v54 = vcombine.low %v2037_v47, %v2053_v48  ;;  %v2077_v58 = vcombine.low %v2044_v52, %v2060_v55  ;;  %v2078_v62 = vcombine.high %v2044_v52, %v2060_v55 }
 0x1fe   :  { %v35809_v56 = vrot.slane %v2062_v53, %v35778_v29  ;;  %v35812_v57 = vrot.slane %v2061_v54, %v35778_v29  ;;  %v35817_v59 = vrot.slane %v2077_v58, %v35778_v29  ;;  %v35821_v63 = vrot.slane %v2078_v62, %v35778_v29 }
 0x200   :  { %2421 = vxpose.xlu1.b32.start.end [1/1] (short) (narrow) %v35809_v56, 8  ;;  %2389 = vxpose.xlu0.b32.start.end [1/1] (short) (narrow) %v35812_v57, 8 }
 0x204   :  { %2453 = vxpose.xlu0.b32.start.end [1/1] (short) (narrow) %v35817_v59, 8 }
 0x208   :  { %2485 = vxpose.xlu0.b32.start.end [1/1] (short) (narrow) %v35821_v63, 8 }
 0x21e   :  { %1869 = vrot.lane.b32.xlu1 %v35763_v39, %s35402_s7 }
 0x231   :  { %1867 = vrot.lane.b32.xlu0 %v35768_v49, %s35402_s7 }
 0x274   :  { %v2533_v9 = vpop.trf.xlu0  ;;  %v2565_v11 = vpop.trf.xlu1 }
 0x278   :  { %v2597_v12 = vpop.trf.xlu0  ;;  %v2629_v25 = vpop.trf.xlu1 }
 0x279   :  { %v2693_v32 = vcombine.low %v2565_v11, %v2629_v25  ;;  %v2677_v38 = vcombine.low %v2533_v9, %v2597_v12  ;;  %v2694_v27 = vcombine.high %v2565_v11, %v2629_v25  ;;  %v2678_v50 = vcombine.high %v2533_v9, %v2597_v12 }
 0x27a   :  { %v1949_v9 = vrot.slane %v1941_v30, %v35539_v19  ;;  %v1956_v12 = vrot.slane %v1942_v40, %v35539_v19  ;;  %v1874_v30 = vcombine.high %v35768_v49, %v35834_v5 }
 0x27b   :  { %v2701_v33 = vrot.slane %v2693_v32, %v35539_v19  ;;  %v2685_v51 = vrot.slane %v2677_v38, %v35539_v19  ;;  %v2708_v28 = vrot.slane %v2694_v27, %v35539_v19  ;;  %v2692_v43 = vrot.slane %v2678_v50, %v35539_v19 }
 0x27d   :  { %v2741_v44 = vcombine.low %v2685_v51, %v2701_v33  ;;  %v2757_v34 = vcombine.low %v2692_v43, %v2708_v28  ;;  %v2742_v52 = vcombine.high %v2685_v51, %v2701_v33  ;;  %v2758_v22 = vcombine.high %v2692_v43, %v2708_v28 }
 0x27f   :  { %v2749_v42 = vrot.slane %v2741_v44, %v35778_v29  ;;  %v2765_v11 = vrot.slane %v2757_v34, %v35778_v29 }
 0x280   :  { %v2405_v31 = vpop.trf.xlu0  ;;  %v2437_v60 = vpop.trf.xlu1 }
 0x284   :  { %v2469_v26 = vpop.trf.xlu0 }
 0x285   :  { %v2645_v61 = vcombine.low %v2405_v31, %v2469_v26  ;;  %v2646_v1 = vcombine.high %v2405_v31, %v2469_v26 }
 0x287   :  { %v2653_v45 = vrot.slane %v2645_v61, %v35539_v19  ;;  %v2660_v10 = vrot.slane %v2646_v1, %v35539_v19 }
 0x288   :  { %v2501_v6 = vpop.trf.xlu0 }
 0x289   :  { %v2661_v23 = vcombine.low %v2437_v60, %v2501_v6  ;;  %v2662_v24 = vcombine.high %v2437_v60, %v2501_v6  ;;  %v2772_v60 = vrot.slane %v2758_v22, %v35778_v29 }
 0x28b   :  { %v2669_v14 = vrot.slane %v2661_v23, %v35539_v19  ;;  %v2676_v15 = vrot.slane %v2662_v24, %v35539_v19 }
 0x28d   :  { %v2709_v18 = vcombine.low %v2653_v45, %v2669_v14  ;;  %v2725_v21 = vcombine.low %v2660_v10, %v2676_v15  ;;  %v2710_v36 = vcombine.high %v2653_v45, %v2669_v14  ;;  %v2726_v53 = vcombine.high %v2660_v10, %v2676_v15 }
 0x28f   :  { %v2717_v41 = vrot.slane %v2709_v18, %v35778_v29  ;;  %v2733_v48 = vrot.slane %v2725_v21, %v35778_v29  ;;  %v2724_v39 = vrot.slane %v2710_v36, %v35778_v29  ;;  %v2740_v38 = vrot.slane %v2726_v53, %v35778_v29 }
 0x290   :  { %v1870_v47 = vpop.permute.xlu1 %1869  ;;  %v1873_v21 = vcombine.low %v35768_v49, %v35834_v5 }
 0x291   :  { %v1957_v54 = vcombine.low %v35783_v46, %v1870_v47  ;;  %v1958_v55 = vcombine.high %v35783_v46, %v1870_v47  ;;  %v2774_v58 = vcombine.high %v2717_v41, %v2749_v42  ;;  %v2773_v62 = vcombine.low %v2717_v41, %v2749_v42 }
 0x292   :  { %v2778_v32 = vcombine.high %v2733_v48, %v2765_v11  ;;  %v2756_v46 = vrot.slane %v2742_v52, %v35778_v29  ;;  %v2780_v43 = vcombine.high %v2740_v38, %v2772_v60  ;;  %v2777_v18 = vcombine.low %v2733_v48, %v2765_v11 }
 0x293   :  { %v1965_v25 = vrot.slane %v1957_v54, %v35539_v19  ;;  %v1972_v31 = vrot.slane %v1958_v55, %v35539_v19  ;;  %2813 = vxpose.xlu1.b32.start.end [1/1] (short) (narrow) %v2774_v58, 8  ;;  %2781 = vxpose.xlu0.b32.start.end [1/1] (short) (narrow) %v2773_v62, 8  ;;  %v2779_v34 = vcombine.low %v2740_v38, %v2772_v60 }
 0x294   :  { %v2775_v51 = vcombine.low %v2724_v39, %v2756_v46  ;;  %v2776_v44 = vcombine.high %v2724_v39, %v2756_v46  ;;  %v1881_v52 = vrot.slane %v1873_v21, %v35539_v19  ;;  %v1888_v48 = vrot.slane %v1874_v30, %v35539_v19 }
 0x295   :  { %v1973_v26 = vcombine.low %v1949_v9, %v1965_v25  ;;  %v1974_v27 = vcombine.high %v1949_v9, %v1965_v25  ;;  %v1989_v33 = vcombine.low %v1956_v12, %v1972_v31  ;;  %v1990_v50 = vcombine.high %v1956_v12, %v1972_v31 }
 0x296   :  { %v39842_v12 = vsub.s32 2, %v35536_v3 }
 0x297   :  { %v1981_v61 = vrot.slane %v1973_v26, %v35778_v29  ;;  %v1988_v1 = vrot.slane %v1974_v27, %v35778_v29  ;;  %v1997_v6 = vrot.slane %v1989_v33, %v35778_v29  ;;  %v2004_v23 = vrot.slane %v1990_v50, %v35778_v29  ;;  %2941 = vxpose.xlu1.b32.start.end [1/1] (short) (narrow) %v2778_v32, 8 }
 0x298   :  { %2845 = vxpose.xlu0.b32.start.end [1/1] (short) (narrow) %v2775_v51, 8 }
 0x299   :  { %v31906_v24 = vcombine.high %v1981_v61, %v1997_v6  ;;  %v31907_v28 = vcombine.high %v1988_v1, %v2004_v23  ;;  %v2337_v42 = vcombine.low %v1981_v61, %v1997_v6  ;;  %v2345_v47 = vcombine.low %v1988_v1, %v2004_v23 }
 0x29a   :  { %v1278_v1 = vrot.slane %v35748_v8, %v39842_v12 }
 0x29b   :  { %v7685_v45 = vrot.slane %v31906_v24, %v35539_v19  ;;  %v7693_v10 = vrot.slane %v31907_v28, %v35539_v19  ;;  %3005 = vxpose.xlu1.b32.start.end [1/1] (short) (narrow) %v2780_v43, 8  ;;  %v2344_v62 = vrot.slane %v2337_v42, %v35539_v19  ;;  %v2352_v9 = vrot.slane %v2345_v47, %v35539_v19 }
 0x29c   :  { %2877 = vxpose.xlu0.b32.start.end [1/1] (short) (narrow) %v2776_v44, 8  ;;  %v35915_v44 = vadd.f32 %v35830_v2, %v1278_v1  ;;  %v35930_v2 = vadd.f32 %v35826_v0, %v1278_v1 }
 0x29d   :  { %v7710_v14 = vcombine.low %v7685_v45, %v7693_v10  ;;  %v7711_v15 = vcombine.high %v7685_v45, %v7693_v10  ;;  %v2370_v38 = vcombine.high %v2344_v62, %v2352_v9  ;;  %v2369_v30 = vcombine.low %v2344_v62, %v2352_v9 }
 0x29f   :  { %v35896_v23 = vrot.slane %v2370_v38, %v35778_v29  ;;  %v35906_v28 = vrot.slane %v7710_v14, %v35778_v29  ;;  %v35912_v43 = vrot.slane %v7711_v15, %v35778_v29 }
 0x2a0   :  { %2909 = vxpose.xlu0.b32.start.end [1/1] (short) (narrow) %v2777_v18, 8 }
 0x2a3   :  { %v1868_v36 = vpop.permute.xlu0 %1867 }
 0x2a4   :  { %2973 = vxpose.xlu0.b32.start.end [1/1] (short) (narrow) %v2779_v34, 8  ;;  %v1889_v40 = vcombine.low %v35832_v4, %v1868_v36  ;;  %v1890_v41 = vcombine.high %v35832_v4, %v1868_v36 }
 0x2a6   :  { %v1897_v53 = vrot.slane %v1889_v40, %v35539_v19  ;;  %v1904_v54 = vrot.slane %v1890_v41, %v35539_v19  ;;  %v35946_v40 = vrot.slane %v2369_v30, %v35778_v29 }
 0x2a8   :  { %v1905_v55 = vcombine.low %v1881_v52, %v1897_v53  ;;  %v1906_v58 = vcombine.high %v1881_v52, %v1897_v53  ;;  %v1921_v49 = vcombine.low %v1888_v48, %v1904_v54  ;;  %v1922_v5 = vcombine.high %v1888_v48, %v1904_v54 }
 0x2aa   :  { %v1913_v4 = vrot.slane %v1905_v55, %v35778_v29  ;;  %v1920_v11 = vrot.slane %v1906_v58, %v35778_v29  ;;  %v1929_v39 = vrot.slane %v1921_v49, %v35778_v29  ;;  %v1936_v22 = vrot.slane %v1922_v5, %v35778_v29 }
 0x2ac   :  { %v2321_v25 = vcombine.low %v1913_v4, %v1929_v39  ;;  %v2329_v31 = vcombine.low %v1920_v11, %v1936_v22  ;;  %v31904_v32 = vcombine.high %v1913_v4, %v1929_v39  ;;  %v31905_v46 = vcombine.high %v1920_v11, %v1936_v22 }
 0x2ae   :  { %v2328_v26 = vrot.slane %v2321_v25, %v35539_v19  ;;  %v2336_v27 = vrot.slane %v2329_v31, %v35539_v19  ;;  %v7669_v33 = vrot.slane %v31904_v32, %v35539_v19  ;;  %v7677_v50 = vrot.slane %v31905_v46, %v35539_v19 }
 0x2b0   :  { %v2354_v51 = vcombine.high %v2328_v26, %v2336_v27  ;;  %v7694_v60 = vcombine.low %v7669_v33, %v7677_v50  ;;  %v7695_v61 = vcombine.high %v7669_v33, %v7677_v50  ;;  %v2353_v15 = vcombine.low %v2328_v26, %v2336_v27 }
 0x2b2   :  { %v35893_v6 = vrot.slane %v2354_v51, %v35778_v29  ;;  %v35899_v24 = vrot.slane %v7694_v60, %v35778_v29  ;;  %v35909_v8 = vrot.slane %v7695_v61, %v35778_v29  ;;  %v35943_v36 = vrot.slane %v2353_v15, %v35778_v29 }
 0x2b4   :  { %v2388_v45 = vcombine.high %v35893_v6, %v35896_v23  ;;  %v7726_v10 = vcombine.low %v35899_v24, %v35906_v28  ;;  %v7727_v18 = vcombine.high %v35899_v24, %v35906_v28  ;;  %v7728_v14 = vcombine.low %v35909_v8, %v35912_v43 }
 0x2b5   :  { %v7729_v21 = vcombine.high %v35909_v8, %v35912_v43  ;;  %v2385_v42 = vcombine.low %v35943_v36, %v35946_v40  ;;  %v2387_v47 = vcombine.low %v35893_v6, %v35896_v23 }
 0x2b7   :  { %v3107_v53 = vsel %vm3105_vm2, %v2385_v42, 0  ;;  %v4005_v54 = vsel %vm3105_vm2, %v2387_v47, 0 }
 0x2b8   :  { %v35954_v5 = vand.u32 4294901760, %v3107_v53  ;;  %v35956_v62 = vand.u32 4294901760, %v4005_v54 }
 0x2b9   :  { %2167 = vrot.lane.b32.xlu1 %v35915_v44, %s35401_s30 }
 0x2ba   :  { %v35960_v22 = vsub.f32 %v3107_v53, %v35954_v5  ;;  %v35963_v25 = vsub.f32 %v4005_v54, %v35956_v62 }
 0x2bc   :  { %v3177_v33 = vand.u32 4294901760, %v35960_v22  ;;  %v4075_v50 = vand.u32 4294901760, %v35963_v25 }
 0x2bd   :  { %2173 = vrot.lane.b32.xlu1 %v35915_v44, %s35400_s29 }
 0x2c1   :  { %2175 = vrot.lane.b32.xlu1 %v35930_v2, %s35400_s29 }
 0x2c5   :  { %2181 = vrot.lane.b32.xlu1 %v35930_v2, %s35402_s7 }
 0x2cd   :  { %2169 = vrot.lane.b32.xlu0 %v35930_v2, %s35401_s30 }
 0x2d1   :  { %2179 = vrot.lane.b32.xlu0 %v35915_v44, %s35402_s7 }
 0x313   :  { %v2797_v34 = vpop.trf.xlu0  ;;  %v2829_v0 = vpop.trf.xlu1 }
 0x317   :  { %v2957_v52 = vpop.trf.xlu1 }
 0x318   :  { %v2861_v41 = vpop.trf.xlu0 }
 0x319   :  { %v3037_v9 = vcombine.low %v2797_v34, %v2861_v41  ;;  %v3178_v34 = vsub.f32 %v35960_v22, %v3177_v33 }
 0x31b   :  { %v3021_v58 = vpop.trf.xlu1  ;;  %v3044_v31 = vrot.slane %v3037_v9, %v35539_v19  ;;  %v3179_v54 = vand.u32 4294901760, %v3178_v34 }
 0x31c   :  { %v2893_v48 = vpop.trf.xlu0  ;;  %v3061_v11 = vcombine.low %v2957_v52, %v3021_v58 }
 0x31d   :  { %v3045_v55 = vcombine.low %v2829_v0, %v2893_v48  ;;  %v4076_v0 = vsub.f32 %v35963_v25, %v4075_v50 }
 0x31e   :  { %v3068_v26 = vrot.slane %v3061_v11, %v35539_v19 }
 0x31f   :  { %v3052_v4 = vrot.slane %v3045_v55, %v35539_v19  ;;  %v4077_v55 = vand.u32 4294901760, %v4076_v0 }
 0x320   :  { %v2925_v49 = vpop.trf.xlu0 }
 0x321   :  { %v3069_v46 = vcombine.low %v3044_v31, %v3052_v4  ;;  %v3070_v38 = vcombine.high %v3044_v31, %v3052_v4 }
 0x323   :  { %v35971_v61 = vrot.slane %v3069_v46, %v35778_v29  ;;  %v3084_v1 = vrot.slane %v3070_v38, %v35778_v29 }
 0x324   :  { %v2989_v39 = vpop.trf.xlu0 }
 0x325   :  { %v3053_v32 = vcombine.low %v2925_v49, %v2989_v39 }
 0x327   :  { %v3060_v27 = vrot.slane %v3053_v32, %v35539_v19 }
 0x329   :  { %v3085_v51 = vcombine.low %v3060_v27, %v3068_v26  ;;  %v3086_v60 = vcombine.high %v3060_v27, %v3068_v26 }
 0x32b   :  { %v35975_v15 = vrot.slane %v3085_v51, %v35778_v29  ;;  %v3100_v30 = vrot.slane %v3086_v60, %v35778_v29  ;;  %v2168_v52 = vpop.permute.xlu1 %2167 }
 0x32d   :  { %v3101_v41 = vcombine.low %v35971_v61, %v35975_v15  ;;  %v3103_v42 = vcombine.low %v3084_v1, %v3100_v30  ;;  %v35986_v47 = vcombine.high %v3084_v1, %v3100_v30 }
 0x32f   :  { %v35988_v48 = vand.u32 4294901760, %v3101_v41  ;;  %v35990_v53 = vand.u32 4294901760, %v3103_v42  ;;  %v2174_v11 = vpop.permute.xlu1 %2173 }
 0x330   :  { %v2185_v51 = vcombine.low %v35915_v44, %v2174_v11 }
 0x331   :  { %32843 = vmatpush3.msra.mxu1 %v35988_v48  ;;  %v35994_v58 = vsub.f32 %v3101_v41, %v35988_v48  ;;  %32903 = vmatpush3.msra.mxu0 %v35990_v53  ;;  %v35998_v49 = vsub.f32 %v3103_v42, %v35990_v53  ;;  %v2186_v41 = vcombine.high %v35915_v44, %v2174_v11 }
 0x332   :  { %32845 = vmatmul.mubr.f32.vlgmr.msra.gmra.mrb[2].mxu1 %v3179_v54  ;;  %32905 = vmatmul.mubr.f32.vlgmr.msra.gmra.mrb[4].mxu0 %v4077_v55  ;;  %v2386_v42 = vcombine.high %v35943_v36, %v35946_v40  ;;  %v2193_v54 = vrot.slane %v2185_v51, %v35539_v19  ;;  %v3102_v36 = vcombine.high %v35971_v61, %v35975_v15 }
 0x333   :  { %32847 = vmatprep.subr.mxu1 %v39844_v20  ;;  %32907 = vmatprep.subr.mxu0 %v39844_v20  ;;  %v3188_v9 = vand.u32 4294901760, %v35994_v58  ;;  %v4086_v4 = vand.u32 4294901760, %v35998_v49  ;;  %v2176_v38 = vpop.permute.xlu1 %2175 }
 0x334   :  { %32849 = vmatprep.mubr.msk.f32.mxu1 %vm35404_vm1, %v39844_v20  ;;  %32909 = vmatprep.mubr.msk.f32.mxu0 %vm35404_vm1, %v39844_v20  ;;  %v2253_v30 = vcombine.low %v35930_v2, %v2176_v38  ;;  %v2254_v44 = vcombine.high %v35930_v2, %v2176_v38  ;;  %v3556_v40 = vsel %vm3105_vm2, %v2386_v42, 0  ;;  %v36065_v61 = vand.u32 4294901760, %v3102_v36 }
 0x335   :  { %v3189_v39 = vsub.f32 %v35994_v58, %v3188_v9  ;;  %v4087_v31 = vsub.f32 %v35998_v49, %v4086_v4 }
 0x336   :  { %v3636_v51 = vsub.f32 %v3102_v36, %v36065_v61 }
 0x337   :  { %v3190_v32 = vand.u32 4294901760, %v3189_v39  ;;  %v4088_v46 = vand.u32 4294901760, %v4087_v31  ;;  %v2182_v26 = vpop.permute.xlu1 %2181  ;;  %v2261_v31 = vrot.slane %v2253_v30, %v35539_v19 }
 0x339   :  { %32848 = vmatpush3.msra.mxu1 %v3190_v32  ;;  %32908 = vmatpush3.msra.mxu0 %v4088_v46  ;;  %v2200_v32 = vrot.slane %v2186_v41, %v35539_v19 }
 0x33a   :  { %32850 = vmatmul.mubr.f32.vlgmr.msra.gmra.mrb[2].mxu1 %v35954_v5  ;;  %32852 = vmatprep.subr.mxu1 %v39844_v20 }
 0x33b   :  { %32910 = vmatmul.mubr.f32.vlgmr.msra.gmra.mrb[4].mxu0 %v35956_v62  ;;  %32912 = vmatprep.subr.mxu0 %v39844_v20 }
 0x33c   :  { %32853 = vmatpush3.msra.mxu1 %v35994_v58  ;;  %32913 = vmatpush3.msra.mxu0 %v35998_v49 }
 0x33d   :  { %32854 = vmatprep.mubr.msk.f32.mxu1 %vm35404_vm1, %v39844_v20  ;;  %32857 = vmatprep.subr.mxu1 %v39844_v20 }
 0x33e   :  { %32914 = vmatprep.mubr.msk.f32.mxu0 %vm35404_vm1, %v39844_v20  ;;  %32917 = vmatprep.subr.mxu0 %v39844_v20 }
 0x33f   :  { %v2170_v27 = vpop.permute.xlu0 %2169 }
 0x340   :  { %v2269_v60 = vcombine.low %v2170_v27, %v2182_v26  ;;  %v2270_v55 = vcombine.high %v2170_v27, %v2182_v26 }
 0x342   :  { %32855 = vmatmul.mubr.f32.vlgmr.msra.gmra.mrb[2].mxu1 %v35960_v22  ;;  %v2284_v38 = vrot.slane %v2270_v55, %v35539_v19  ;;  %v2268_v22 = vrot.slane %v2254_v44, %v35539_v19 }
 0x343   :  { %32858 = vmatpush3.msra.mxu1 %v35988_v48  ;;  %32915 = vmatmul.mubr.f32.vlgmr.msra.gmra.mrb[4].mxu0 %v35963_v25  ;;  %v2180_v1 = vpop.permute.xlu0 %2179 }
 0x344   :  { %32918 = vmatpush3.msra.mxu0 %v35990_v53  ;;  %v2201_v34 = vcombine.low %v2168_v52, %v2180_v1  ;;  %v2202_v0 = vcombine.high %v2168_v52, %v2180_v1  ;;  %32859 = vmatprep.mubr.msk.f32.mxu1 %vm35404_vm1, %v39844_v20  ;;  %v2277_v52 = vrot.slane %v2269_v60, %v35539_v19 }
 0x345   :  { %32862 = vmatprep.subr.mxu1 %v39844_v20  ;;  %32919 = vmatprep.mubr.msk.f32.mxu0 %vm35404_vm1, %v39844_v20  ;;  %v2302_v25 = vcombine.high %v2268_v22, %v2284_v38 }
 0x346   :  { %v2209_v58 = vrot.slane %v2201_v34, %v35539_v19  ;;  %32922 = vmatprep.subr.mxu0 %v39844_v20  ;;  %v2216_v49 = vrot.slane %v2202_v0, %v35539_v19  ;;  %v2286_v2 = vcombine.high %v2261_v31, %v2277_v52  ;;  %v2285_v30 = vcombine.low %v2261_v31, %v2277_v52 }
 0x347   :  { %v36083_v60 = vrot.slane %v2302_v25, %v35778_v29  ;;  %v3637_v0 = vand.u32 4294901760, %v3636_v51  ;;  %v4457_v52 = vand.u32 4294901760, %v35986_v47 }
 0x348   :  { %v2218_v11 = vcombine.high %v2193_v54, %v2209_v58  ;;  %v2217_v39 = vcombine.low %v2193_v54, %v2209_v58  ;;  %v2233_v27 = vcombine.low %v2200_v32, %v2216_v49  ;;  %v36068_v15 = vrot.slane %v2286_v2, %v35778_v29 }
 0x349   :  { %v36101_v41 = vrot.slane %v2285_v30, %v35778_v29  ;;  %v3638_v54 = vsub.f32 %v3636_v51, %v3637_v0  ;;  %v4534_v44 = vsub.f32 %v35986_v47, %v4457_v52 }
 0x34a   :  { %32860 = vmatmul.mubr.f32.vlgmr.msra.gmra.mrb[2].mxu1 %v3177_v33  ;;  %v36050_v46 = vrot.slane %v2218_v11, %v35778_v29  ;;  %v36053_v26 = vrot.slane %v2217_v39, %v35778_v29  ;;  %v36060_v33 = vand.u32 4294901760, %v3556_v40 }
 0x34b   :  { %32863 = vmatpush3.msra.mxu1 %v3188_v9  ;;  %32920 = vmatmul.mubr.f32.vlgmr.msra.gmra.mrb[4].mxu0 %v4075_v50  ;;  %v36074_v50 = vrot.slane %v2233_v27, %v35778_v29  ;;  %v2234_v9 = vcombine.high %v2200_v32, %v2216_v49  ;;  %v3639_v58 = vand.u32 4294901760, %v3638_v54  ;;  %v4535_v23 = vand.u32 4294901760, %v4534_v44 }
 0x34c   :  { %32923 = vmatpush3.msra.mxu0 %v4086_v4  ;;  %4978 = vxpose.xlu1.b32.start.end [1/1] (short) (narrow) %v36050_v46, 8  ;;  %v3625_v4 = vsub.f32 %v3556_v40, %v36060_v33 }
 0x34d   :  { %4946 = vxpose.xlu0.b32.start.end [1/1] (short) (narrow) %v36053_v26, 8  ;;  %32864 = vmatprep.mubr.msk.f32.mxu1 %vm35404_vm1, %v39844_v20  ;;  %v36088_v1 = vrot.slane %v2234_v9, %v35778_v29  ;;  %v4536_v11 = vsub.f32 %v4534_v44, %v4535_v23 }
 0x34e   :  { %32867 = vmatprep.subr.mxu1 %v39844_v20  ;;  %32924 = vmatprep.mubr.msk.f32.mxu0 %vm35404_vm1, %v39844_v20  ;;  %v3626_v34 = vand.u32 4294901760, %v3625_v4 }
 0x34f   :  { %32927 = vmatprep.subr.mxu0 %v39844_v20  ;;  %v4537_v39 = vand.u32 4294901760, %v4536_v11 }
 0x350   :  { %5106 = vxpose.xlu1.b32.start.end [1/1] (short) (narrow) %v36068_v15, 8  ;;  %v3627_v42 = vsub.f32 %v3625_v4, %v3626_v34 }
 0x351   :  { %5010 = vxpose.xlu0.b32.start.end [1/1] (short) (narrow) %v36074_v50, 8 }
 0x352   :  { %32865 = vmatmul.mubr.f32.vlgmr.msra.gmra.mrb[2].mxu1 %v35954_v5  ;;  %v3628_v55 = vand.u32 4294901760, %v3627_v42 }
 0x353   :  { %32868 = vmatpush3.msra.mxu1 %v35988_v48  ;;  %32925 = vmatmul.mubr.f32.vlgmr.msra.gmra.mrb[4].mxu0 %v35956_v62  ;;  %v2093_v48 = vcombine.high %v35812_v57, %v39844_v20 }
 0x354   :  { %32928 = vmatpush3.msra.mxu0 %v35990_v53  ;;  %5170 = vxpose.xlu1.b32.start.end [1/1] (short) (narrow) %v36083_v60, 8  ;;  %v2301_v53 = vcombine.low %v2268_v22, %v2284_v38 }
 0x355   :  { %5042 = vxpose.xlu0.b32.start.end [1/1] (short) (narrow) %v36088_v1, 8  ;;  %32869 = vmatprep.mubr.msk.f32.mxu1 %vm35404_vm1, %v39844_v20 }
 0x356   :  { %32872 = vmatprep.subr.mxu1 %v39844_v20  ;;  %32929 = vmatprep.mubr.msk.f32.mxu0 %vm35404_vm1, %v39844_v20  ;;  %v36109_v57 = vrot.slane %v2301_v53, %v35778_v29 }
 0x357   :  { %32962 = vmatprep.subr.mxu0 %v39844_v20 }
 0x358   :  { %7730 = vxpose.xlu1.b32.start.end [1/1] (short) (narrow) %v2093_v48, 8 }
 0x359   :  { %5074 = vxpose.xlu0.b32.start.end [1/1] (short) (narrow) %v36101_v41, 8 }
 0x35a   :  { %32870 = vmatmul.mubr.f32.vlgmr.msra.gmra.mrb[2].mxu1 %v35954_v5  ;;  %v2094_v5 = vcombine.high %v35809_v56, %v39844_v20  ;;  %v4454_v56 = vsel %vm3105_vm2, %v2388_v45, 0 }
 0x35b   :  { %32873 = vmatpush3.msra.mxu1 %v36065_v61  ;;  %32930 = vmatmul.mubr.f32.vlgmr.msra.gmra.mrb[4].mxu0 %v35956_v62  ;;  %v4522_v62 = vand.u32 4294901760, %v4454_v56 }
 0x35c   :  { %32874 = vmatprep.mubr.msk.f32.mxu1 %vm35404_vm1, %v39844_v20  ;;  %32877 = vmatprep.subr.mxu1 %v39844_v20 }
 0x35d   :  { %5138 = vxpose.xlu0.b32.start.end [1/1] (short) (narrow) %v36109_v57, 8  ;;  %32964 = vmatprep.mubr.msk.f32.mxu0 %vm35404_vm1, %v39844_v20  ;;  %v4523_v49 = vsub.f32 %v4454_v56, %v4522_v62 }
 0x35e   :  { %32875 = vmatmul.mubr.f32.vlgmr.msra.gmra.mrb[4].mxu1 %v3628_v55 }
 0x35f   :  { %32878 = vmatpush3.msra.mxu1 %v3639_v58  ;;  %32879 = vmatprep.mubr.msk.f32.mxu1 %vm35404_vm1, %v39844_v20  ;;  %v4524_v6 = vand.u32 4294901760, %v4523_v49 }
 0x360   :  { %32882 = vmatprep.subr.mxu1 %v39844_v20 }
 0x361   :  { %7762 = vxpose.xlu0.b32.start.end [1/1] (short) (narrow) %v2094_v5, 8  ;;  %v4525_v45 = vsub.f32 %v4523_v49, %v4524_v6 }
 0x363   :  { %v4526_v47 = vand.u32 4294901760, %v4525_v45 }
 0x366   :  { %32880 = vmatmul.mubr.f32.vlgmr.msra.gmra.mrb[4].mxu1 %v36060_v33 }
 0x367   :  { %32883 = vmatpush3.msra.mxu1 %v3636_v51  ;;  %32884 = vmatprep.mubr.msk.f32.mxu1 %vm35404_vm1, %v39844_v20 }
 0x368   :  { %32887 = vmatprep.subr.mxu1 %v39844_v20 }
 0x36e   :  { %32885 = vmatmul.mubr.f32.vlgmr.msra.gmra.mrb[4].mxu1 %v3625_v4 }
 0x36f   :  { %32888 = vmatpush3.msra.mxu1 %v36065_v61  ;;  %32889 = vmatprep.mubr.msk.f32.mxu1 %vm35404_vm1, %v39844_v20 }
 0x370   :  { %32892 = vmatprep.subr.mxu1 %v39844_v20 }
 0x376   :  { %32890 = vmatmul.mubr.f32.vlgmr.msra.gmra.mrb[4].mxu1 %v3626_v34 }
 0x377   :  { %32893 = vmatpush3.msra.mxu1 %v3637_v0  ;;  %32894 = vmatprep.mubr.msk.f32.mxu1 %vm35404_vm1, %v39844_v20 }
 0x378   :  { %32897 = vmatprep.subr.mxu1 %v39844_v20 }
 0x37e   :  { %32895 = vmatmul.mubr.f32.vlgmr.msra.gmra.mrb[4].mxu1 %v36060_v33 }
 0x37f   :  { %32898 = vmatpush3.msra.mxu1 %v36065_v61  ;;  %32899 = vmatprep.mubr.msk.f32.mxu1 %vm35404_vm1, %v39844_v20 }
 0x380   :  { %32932 = vmatprep.subr.mxu1 %v39844_v20 }
 0x386   :  { %32900 = vmatmul.mubr.f32.vlgmr.msra.gmra.mrb[4].mxu1 %v36060_v33 }
 0x387   :  { %32933 = vmatpush3.msra.mxu1 %v4457_v52  ;;  %32934 = vmatprep.mubr.msk.f32.mxu1 %vm35404_vm1, %v39844_v20 }
 0x388   :  { %32937 = vmatprep.subr.mxu1 %v39844_v20 }
 0x38a   :  { %32935 = vmatmul.mubr.f32.vlgmr.msra.gmra.mrb[6].mxu1 %v4526_v47 }
 0x38b   :  { %32938 = vmatpush3.msra.mxu1 %v4537_v39  ;;  %32939 = vmatprep.mubr.msk.f32.mxu1 %vm35404_vm1, %v39844_v20 }
 0x38c   :  { %32942 = vmatprep.subr.mxu1 %v39844_v20 }
 0x392   :  { %32940 = vmatmul.mubr.f32.vlgmr.msra.gmra.mrb[6].mxu1 %v4522_v62 }
 0x393   :  { %32943 = vmatpush3.msra.mxu1 %v4534_v44  ;;  %32944 = vmatprep.mubr.msk.f32.mxu1 %vm35404_vm1, %v39844_v20 }
 0x394   :  { %32947 = vmatprep.subr.mxu1 %v39844_v20 }
 0x39a   :  { %32945 = vmatmul.mubr.f32.vlgmr.msra.gmra.mrb[6].mxu1 %v4523_v49 }
 0x39b   :  { %32948 = vmatpush3.msra.mxu1 %v4457_v52  ;;  %32949 = vmatprep.mubr.msk.f32.mxu1 %vm35404_vm1, %v39844_v20 }
 0x39c   :  { %32952 = vmatprep.subr.mxu1 %v39844_v20 }
 0x3a2   :  { %32950 = vmatmul.mubr.f32.vlgmr.msra.gmra.mrb[6].mxu1 %v4524_v6 }
 0x3a3   :  { %32953 = vmatpush3.msra.mxu1 %v4535_v23  ;;  %32954 = vmatprep.mubr.msk.f32.mxu1 %vm35404_vm1, %v39844_v20 }
 0x3a4   :  { %32957 = vmatprep.subr.mxu1 %v39844_v20 }
 0x3aa   :  { %32955 = vmatmul.mubr.f32.vlgmr.msra.gmra.mrb[6].mxu1 %v4522_v62 }
 0x3ab   :  { %32958 = vmatpush3.msra.mxu1 %v4457_v52  ;;  %32959 = vmatprep.mubr.msk.f32.mxu1 %vm35404_vm1, %v39844_v20 }
 0x3ac   :  { %32992 = vmatprep.subr.mxu1 %v39844_v20 }
 0x3b2   :  { %32960 = vmatmul.mubr.f32.vlgmr.msra.gmra.mrb[6].mxu1 %v4522_v62 }
 0x3b3   :  { %32994 = vmatprep.mubr.msk.f32.mxu1 %vm35404_vm1, %v39844_v20 }
 0x3cc   :  { %v4994_v31 = vpop.trf.xlu1 }
 0x3cd   :  { %v4962_v32 = vpop.trf.xlu0 }
 0x3d0   :  { %v5122_v40 = vpop.trf.xlu1 }
 0x3d1   :  { %v5026_v36 = vpop.trf.xlu0 }
 0x3d2   :  { %v5202_v38 = vcombine.low %v4962_v32, %v5026_v36  ;;  %v5203_v4 = vcombine.high %v4962_v32, %v5026_v36 }
 0x3d4   :  { %v5186_v22 = vpop.trf.xlu1  ;;  %v5210_v61 = vrot.slane %v5202_v38, %v35539_v19  ;;  %v5217_v54 = vrot.slane %v5203_v4, %v35539_v19 }
 0x3d5   :  { %v5058_v2 = vpop.trf.xlu0  ;;  %v5250_v9 = vcombine.low %v5122_v40, %v5186_v22  ;;  %v5251_v30 = vcombine.high %v5122_v40, %v5186_v22 }
 0x3d6   :  { %v5218_v27 = vcombine.low %v4994_v31, %v5058_v2  ;;  %v5219_v51 = vcombine.high %v4994_v31, %v5058_v2 }
 0x3d7   :  { %v5258_v0 = vrot.slane %v5250_v9, %v35539_v19  ;;  %v5265_v58 = vrot.slane %v5251_v30, %v35539_v19 }
 0x3d8   :  { %v5226_v25 = vrot.slane %v5218_v27, %v35539_v19  ;;  %v5233_v55 = vrot.slane %v5219_v51, %v35539_v19 }
 0x3d9   :  { %v5090_v33 = vpop.trf.xlu0 }
 0x3da   :  { %v5266_v42 = vcombine.low %v5210_v61, %v5226_v25  ;;  %v5267_v62 = vcombine.high %v5210_v61, %v5226_v25  ;;  %v5282_v6 = vcombine.low %v5217_v54, %v5233_v55  ;;  %v5283_v31 = vcombine.high %v5217_v54, %v5233_v55 }
 0x3dc   :  { %v5274_v52 = vrot.slane %v5266_v42, %v35778_v29  ;;  %v5281_v45 = vrot.slane %v5267_v62, %v35778_v29  ;;  %v5290_v40 = vrot.slane %v5282_v6, %v35778_v29  ;;  %v2095_v42 = vcombine.high %v35817_v59, %v39844_v20 }
 0x3dd   :  { %v5154_v34 = vpop.trf.xlu0 }
 0x3de   :  { %v5234_v48 = vcombine.low %v5090_v33, %v5154_v34  ;;  %v5235_v53 = vcombine.high %v5090_v33, %v5154_v34  ;;  %v5297_v33 = vrot.slane %v5283_v31, %v35778_v29 }
 0x3e0   :  { %v5242_v5 = vrot.slane %v5234_v48, %v35539_v19  ;;  %v5249_v56 = vrot.slane %v5235_v53, %v35539_v19 }
 0x3e2   :  { %v5298_v49 = vcombine.low %v5242_v5, %v5258_v0  ;;  %v5299_v44 = vcombine.high %v5242_v5, %v5258_v0  ;;  %v5314_v47 = vcombine.low %v5249_v56, %v5265_v58  ;;  %v5315_v38 = vcombine.high %v5249_v56, %v5265_v58  ;;  %v36185_v58 = vpop.trf.xlu0  ;;  %v36187_v5 = vpop.trf.xlu1 }
 0x3e4   :  { %v5306_v23 = vrot.slane %v5298_v49, %v35778_v29  ;;  %v5313_v11 = vrot.slane %v5299_v44, %v35778_v29  ;;  %v5322_v2 = vrot.slane %v5314_v47, %v35778_v29  ;;  %v5329_v61 = vrot.slane %v5315_v38, %v35778_v29 }
 0x3e6   :  { %v5331_v39 = vcombine.high %v5274_v52, %v5306_v23  ;;  %v5330_v32 = vcombine.low %v5274_v52, %v5306_v23  ;;  %v5332_v36 = vcombine.low %v5281_v45, %v5313_v11  ;;  %v5333_v27 = vcombine.high %v5281_v45, %v5313_v11 }
 0x3e7   :  { %v5334_v22 = vcombine.low %v5290_v40, %v5322_v2  ;;  %v5335_v25 = vcombine.high %v5290_v40, %v5322_v2  ;;  %v5336_v9 = vcombine.low %v5297_v33, %v5329_v61  ;;  %v5337_v4 = vcombine.high %v5297_v33, %v5329_v61 }
 0x3e8   :  { %5370 = vxpose.xlu0.b32.start.end [1/1] (short) (narrow) %v5331_v39, 8  ;;  %5338 = vxpose.xlu1.b32.start.end [1/1] (short) (narrow) %v5330_v32, 8 }
 0x3ec   :  { %5402 = vxpose.xlu0.b32.start.end [1/1] (short) (narrow) %v5332_v36, 8  ;;  %5434 = vxpose.xlu1.b32.start.end [1/1] (short) (narrow) %v5333_v27, 8 }
 0x3f0   :  { %5466 = vxpose.xlu0.b32.start.end [1/1] (short) (narrow) %v5334_v22, 8  ;;  %5498 = vxpose.xlu1.b32.start.end [1/1] (short) (narrow) %v5335_v25, 8 }
 0x3f4   :  { %5530 = vxpose.xlu0.b32.start.end [1/1] (short) (narrow) %v5336_v9, 8  ;;  %5562 = vxpose.xlu1.b32.start.end [1/1] (short) (narrow) %v5337_v4, 8 }
 0x42d   :  { %v3551_v51 = vpop.f32.mrb[2].mxu1 }
 0x42e   :  { %v4449_v30 = vpop.f32.mrb[4].mxu0  ;;  %v32871_v34 = vpop.f32.mrb[3].mxu1  ;;  %v4902_v0 = vsel %vm3105_vm2, %v3551_v51, -inf }
 0x42f   :  { %v32931_v48 = vpop.f32.mrb[5].mxu0  ;;  %4903 = vmax.xlane.f32.xlu0 %v4902_v0  ;;  %v4908_v4 = vsel %vm3105_vm2, %v4449_v30, -inf  ;;  %v2096_v34 = vcombine.high %v35821_v63, %v39844_v20  ;;  %v2161_v63 = vcombine.high %v35790_v17, %v39844_v20  ;;  %v2162_v17 = vcombine.high %v35787_v16, %v39844_v20 }
 0x459   :  { %v4000_v53 = vpop.f32.mrb[4].mxu1 }
 0x45a   :  { %v32901_v54 = vpop.f32.mrb[5].mxu1  ;;  %v4905_v55 = vsel %vm3105_vm2, %v4000_v53, -inf }
 0x45b   :  { %4906 = vmax.xlane.f32.xlu1 %v4905_v55 }
 0x45c   :  { %7794 = vxpose.xlu0.b32.start.end [1/1] (short) (narrow) %v2095_v42, 8 }
 0x468   :  { %v5386_v56 = vpop.trf.xlu0  ;;  %v5354_v62 = vpop.trf.xlu1 }
 0x46c   :  { %v5418_v52 = vpop.trf.xlu0  ;;  %v5450_v44 = vpop.trf.xlu1 }
 0x46d   :  { %v5594_v49 = vcombine.low %v5354_v62, %v5418_v52  ;;  %v5602_v6 = vcombine.low %v5386_v56, %v5450_v44 }
 0x46f   :  { %v5601_v23 = vrot.slane %v5594_v49, %v35539_v19  ;;  %v5609_v59 = vrot.slane %v5602_v6, %v35539_v19 }
 0x470   :  { %v5482_v45 = vpop.trf.xlu0  ;;  %v5514_v11 = vpop.trf.xlu1 }
 0x471   :  { %v5627_v47 = vcombine.high %v5601_v23, %v5609_v59 }
 0x473   :  { %v36194_v38 = vrot.slane %v5627_v47, %v35778_v29 }
 0x474   :  { %v5546_v39 = vpop.trf.xlu0  ;;  %v5578_v32 = vpop.trf.xlu1 }
 0x475   :  { %v5610_v31 = vcombine.low %v5482_v45, %v5546_v39  ;;  %v5618_v36 = vcombine.low %v5514_v11, %v5578_v32 }
 0x477   :  { %v5617_v40 = vrot.slane %v5610_v31, %v35539_v19  ;;  %v5625_v2 = vrot.slane %v5618_v36, %v35539_v19 }
 0x479   :  { %v5643_v27 = vcombine.high %v5617_v40, %v5625_v2 }
 0x47b   :  { %v36197_v22 = vrot.slane %v5643_v27, %v35778_v29 }
 0x47d   :  { %v5660_v33 = vcombine.low %v36194_v38, %v36197_v22  ;;  %v5661_v61 = vcombine.high %v36194_v38, %v36197_v22 }
 0x485   :  { %v4898_v25 = vpop.f32.mrb[6].mxu1 }
 0x486   :  { %v32961_v9 = vpop.f32.mrb[7].mxu1  ;;  %v4911_v0 = vsel %vm3105_vm2, %v4898_v25, -inf }
 0x487   :  { %v5626_v9 = vcombine.low %v5601_v23, %v5609_v59 }
 0x489   :  { %4909 = vmax.xlane.f32.xlu0 %v4908_v4 }
 0x48e   :  { %7826 = vxpose.xlu1.b32.start.end [1/1] (short) (narrow) %v2096_v34, 8  ;;  %v5634_v34 = vrot.slane %v5626_v9, %v35778_v29 }
 0x4b5   :  { %4912 = vmax.xlane.f32.xlu1 %v4911_v0 }
 0x4bc   :  { %v4904_v48 = vpop.xlane.xlu0 %4903 }
 0x4bd   :  { %v4914_v42 = vsub.f32 %v3551_v51, %v4904_v48  ;;  %v2163_v48 = vcombine.high %v35800_v37, %v39844_v20 }
 0x4bf   :  { %v4918_v54 = vmul.f32 1.442695, %v4914_v42 }
 0x4c1   :  { %35141 = vpow2.f32 %v4918_v54 }
 0x4cb   :  { %v35142_v55 = vpop.eup %35141 }
 0x4cc   :  { %v4926_v56 = vsel %vm3105_vm2, %v35142_v55, 0.0 }
 0x4cd   :  { %4927 = vadd.xlane.f32.xlu0 %v4926_v56 }
 0x4dc   :  { %v36214_v51 = vpop.trf.xlu0 }
 0x4e8   :  { %v4907_v62 = vpop.xlane.xlu1 %4906 }
 0x4e9   :  { %v4915_v52 = vsub.f32 %v4000_v53, %v4907_v62 }
 0x4eb   :  { %v4920_v49 = vmul.f32 1.442695, %v4915_v52 }
 0x4ed   :  { %35143 = vpow2.f32 %v4920_v49 }
 0x4f7   :  { %v36208_v44 = vpop.eup %35143 }
 0x4f8   :  { %v4929_v6 = vsel %vm3105_vm2, %v36208_v44, 0.0 }
 0x4f9   :  { %4930 = vadd.xlane.f32.xlu1 %v4929_v6 }
 0x4fa   :  { %7858 = vxpose.xlu0.b32.start.end [1/1] (short) (narrow) %v2161_v63, 8 }
 0x50e   :  { %v36222_v31 = vpop.trf.xlu1 }
 0x516   :  { %v4910_v45 = vpop.xlane.xlu0 %4909 }
 0x517   :  { %v4916_v11 = vsub.f32 %v4449_v30, %v4910_v45  ;;  %v5642_v30 = vcombine.low %v5617_v40, %v5625_v2 }
 0x519   :  { %v4922_v47 = vmul.f32 1.442695, %v4916_v11  ;;  %v5650_v0 = vrot.slane %v5642_v30, %v35778_v29 }
 0x51b   :  { %35145 = vpow2.f32 %v4922_v47  ;;  %v5658_v42 = vcombine.low %v5634_v34, %v5650_v0  ;;  %v2164_v47 = vcombine.high %v35797_v35, %v39844_v20 }
 0x525   :  { %v36216_v39 = vpop.eup %35145 }
 0x526   :  { %v4932_v53 = vsel %vm3105_vm2, %v36216_v39, 0.0 }
 0x527   :  { %4933 = vadd.xlane.f32.xlu0 %v4932_v53 }
 0x52c   :  { %7890 = vxpose.xlu1.b32.start.end [1/1] (short) (narrow) %v2162_v17, 8 }
 0x542   :  { %v4913_v32 = vpop.xlane.xlu1 %4912 }
 0x543   :  { %v4917_v36 = vsub.f32 %v4898_v25, %v4913_v32  ;;  %v5663_v25 = vsel %vm3105_vm2, %v5658_v42, 0 }
 0x544   :  { %v5734_v23 = vand.u32 4294901760, %v5663_v25 }
 0x545   :  { %v4924_v27 = vmul.f32 1.442695, %v4917_v36 }
 0x546   :  { %v5735_v59 = vsub.f32 %v5663_v25, %v5734_v23 }
 0x547   :  { %35147 = vpow2.f32 %v4924_v27 }
 0x548   :  { %v5736_v40 = vand.u32 4294901760, %v5735_v59 }
 0x54a   :  { %v5737_v52 = vsub.f32 %v5735_v59, %v5736_v40 }
 0x54c   :  { %v5738_v63 = vand.u32 4294901760, %v5737_v52 }
 0x551   :  { %v36224_v4 = vpop.eup %35147 }
 0x552   :  { %v4935_v16 = vsel %vm3105_vm2, %v36224_v4, 0.0 }
 0x553   :  { %4936 = vadd.xlane.f32.xlu1 %v4935_v16 }
 0x554   :  { %7922 = vxpose.xlu0.b32.start.end [1/1] (short) (narrow) %v2163_v48, 8 }
 0x55a   :  { %v4928_v54 = vpop.xlane.xlu0 %4927 }
 0x55b   :  { %35149 = vrcp.f32 %v4928_v54 }
 0x565   :  { %v35150_v2 = vpop.eup %35149 }
 0x566   :  { %v4939_v56 = vmul.f32 %v35150_v2, %v35142_v55  ;;  %v5659_v55 = vcombine.high %v5634_v34, %v5650_v0 }
 0x568   :  { %v5666_v62 = vsel %vm3105_vm2, %v4939_v56, 0  ;;  %v6115_v53 = vsel %vm3105_vm2, %v5659_v55, 0 }
 0x569   :  { %v5669_v49 = vand.u32 4294901760, %v5666_v62  ;;  %v6186_v32 = vand.u32 4294901760, %v6115_v53 }
 0x56b   :  { %32963 = vmatpush3.xpose.msra.mxu0 %v5669_v49  ;;  %v5746_v37 = vsub.f32 %v5666_v62, %v5669_v49  ;;  %v6187_v36 = vsub.f32 %v6115_v53, %v6186_v32 }
 0x56c   :  { %32967 = vmatprep.subr.mxu0 %v39844_v20 }
 0x56d   :  { %v5747_v6 = vand.u32 4294901760, %v5746_v37  ;;  %v6188_v35 = vand.u32 4294901760, %v6187_v36 }
 0x56e   :  { %32965 = vmatmul.mubr.f32.vlgmr.msra.gmra.mrb[6].mxu0 %v5738_v63 }
 0x56f   :  { %v5748_v45 = vsub.f32 %v5746_v37, %v5747_v6  ;;  %32969 = vmatprep.mubr.msk.f32.mxu0 %vm35404_vm1, %v39844_v20  ;;  %v6189_v34 = vsub.f32 %v6187_v36, %v6188_v35 }
 0x571   :  { %v5749_v11 = vand.u32 4294901760, %v5748_v45  ;;  %v6190_v16 = vand.u32 4294901760, %v6189_v34 }
 0x573   :  { %32968 = vmatpush3.xpose.msra.mxu0 %v5749_v11 }
 0x574   :  { %32972 = vmatprep.subr.mxu0 %v39844_v20 }
 0x576   :  { %32970 = vmatmul.mubr.f32.vlgmr.msra.gmra.mrb[6].mxu0 %v5734_v23 }
 0x577   :  { %32973 = vmatpush3.xpose.msra.mxu0 %v5746_v37  ;;  %32974 = vmatprep.mubr.msk.f32.mxu0 %vm35404_vm1, %v39844_v20 }
 0x578   :  { %32977 = vmatprep.subr.mxu0 %v39844_v20 }
 0x57a   :  { %v36267_v54 = vpop.trf.xlu0 }
 0x57e   :  { %32975 = vmatmul.mubr.f32.vlgmr.msra.gmra.mrb[6].mxu0 %v5735_v59 }
 0x57f   :  { %32978 = vmatpush3.xpose.msra.mxu0 %v5669_v49  ;;  %32979 = vmatprep.mubr.msk.f32.mxu0 %vm35404_vm1, %v39844_v20 }
 0x580   :  { %32982 = vmatprep.subr.mxu0 %v39844_v20 }
 0x586   :  { %7954 = vxpose.xlu1.b32.start.end [1/1] (short) (narrow) %v2164_v47, 8  ;;  %v4931_v17 = vpop.xlane.xlu1 %4930  ;;  %32980 = vmatmul.mubr.f32.vlgmr.msra.gmra.mrb[6].mxu0 %v5736_v40  ;;  %v7019_v47 = vsel %vm3105_vm2, %v5661_v61, 0 }
 0x587   :  { %35151 = vrcp.f32 %v4931_v17  ;;  %32983 = vmatpush3.xpose.msra.mxu0 %v5747_v6  ;;  %32984 = vmatprep.mubr.msk.f32.mxu0 %vm35404_vm1, %v39844_v20  ;;  %v36299_v17 = vand.u32 4294901760, %v7019_v47 }
 0x588   :  { %32987 = vmatprep.subr.mxu0 %v39844_v20 }
 0x58e   :  { %32985 = vmatmul.mubr.f32.vlgmr.msra.gmra.mrb[6].mxu0 %v5734_v23 }
 0x58f   :  { %32988 = vmatpush3.xpose.msra.mxu0 %v5669_v49  ;;  %32989 = vmatprep.mubr.msk.f32.mxu0 %vm35404_vm1, %v39844_v20 }
 0x590   :  { %33022 = vmatprep.subr.mxu0 %v39844_v20 }
 0x591   :  { %v35152_v27 = vpop.eup %35151 }
 0x592   :  { %v4941_v9 = vmul.f32 %v35152_v27, %v36208_v44 }
 0x594   :  { %v6118_v30 = vsel %vm3105_vm2, %v4941_v9, 0 }
 0x595   :  { %v6121_v0 = vand.u32 4294901760, %v6118_v30 }
 0x596   :  { %32990 = vmatmul.mubr.f32.vlgmr.msra.gmra.mrb[6].mxu0 %v5734_v23  ;;  %v6567_v23 = vsel %vm3105_vm2, %v5660_v33, 0 }
 0x597   :  { %32993 = vmatpush3.xpose.msra.mxu1 %v6121_v0  ;;  %v6198_v48 = vsub.f32 %v6118_v30, %v6121_v0  ;;  %33024 = vmatprep.mubr.msk.f32.mxu0 %vm35404_vm1, %v39844_v20  ;;  %v6638_v40 = vand.u32 4294901760, %v6567_v23 }
 0x598   :  { %32997 = vmatprep.subr.mxu1 %v39844_v20 }
 0x599   :  { %v6199_v42 = vand.u32 4294901760, %v6198_v48  ;;  %v6639_v2 = vsub.f32 %v6567_v23, %v6638_v40 }
 0x59a   :  { %32995 = vmatmul.mubr.f32.vlgmr.msra.gmra.mrb[8].mxu1 %v6190_v16 }
 0x59b   :  { %v6200_v25 = vsub.f32 %v6198_v48, %v6199_v42  ;;  %32999 = vmatprep.mubr.msk.f32.mxu1 %vm35404_vm1, %v39844_v20  ;;  %v6640_v56 = vand.u32 4294901760, %v6639_v2 }
 0x59d   :  { %v6201_v44 = vand.u32 4294901760, %v6200_v25  ;;  %v6641_v49 = vsub.f32 %v6639_v2, %v6640_v56 }
 0x59f   :  { %32998 = vmatpush3.xpose.msra.mxu1 %v6201_v44  ;;  %v6642_v6 = vand.u32 4294901760, %v6641_v49 }
 0x5a0   :  { %33002 = vmatprep.subr.mxu1 %v39844_v20 }
 0x5a2   :  { %33000 = vmatmul.mubr.f32.vlgmr.msra.gmra.mrb[8].mxu1 %v6186_v32 }
 0x5a3   :  { %33003 = vmatpush3.xpose.msra.mxu1 %v6198_v48  ;;  %33004 = vmatprep.mubr.msk.f32.mxu1 %vm35404_vm1, %v39844_v20  ;;  %v8002_v48 = vcombine.low %v36185_v58, %v36222_v31 }
 0x5a4   :  { %33007 = vmatprep.subr.mxu1 %v39844_v20 }
 0x5a5   :  { %v8010_v25 = vrot.slane %v8002_v48, %v35539_v19 }
 0x5aa   :  { %33005 = vmatmul.mubr.f32.vlgmr.msra.gmra.mrb[8].mxu1 %v6187_v36 }
 0x5ab   :  { %33008 = vmatpush3.xpose.msra.mxu1 %v6121_v0  ;;  %33009 = vmatprep.mubr.msk.f32.mxu1 %vm35404_vm1, %v39844_v20 }
 0x5ac   :  { %33012 = vmatprep.subr.mxu1 %v39844_v20  ;;  %v7906_v55 = vpop.trf.xlu1 }
 0x5b2   :  { %33010 = vmatmul.mubr.f32.vlgmr.msra.gmra.mrb[8].mxu1 %v6188_v35 }
 0x5b3   :  { %33013 = vmatpush3.xpose.msra.mxu1 %v6199_v42  ;;  %33014 = vmatprep.mubr.msk.f32.mxu1 %vm35404_vm1, %v39844_v20  ;;  %v7986_v42 = vcombine.low %v36187_v5, %v36214_v51 }
 0x5b4   :  { %v4934_v59 = vpop.xlane.xlu0 %4933  ;;  %33017 = vmatprep.subr.mxu1 %v39844_v20 }
 0x5b5   :  { %35153 = vrcp.f32 %v4934_v59  ;;  %v7994_v59 = vrot.slane %v7986_v42, %v35539_v19  ;;  %v2249_v42 = vcombine.high %v36053_v26, %v39844_v20  ;;  %v2319_v26 = vcombine.high %v36109_v57, %v39844_v20 }
 0x5b6   :  { %v8896_v57 = vsel %vm3105_vm2, %v7727_v18, 0 }
 0x5b7   :  { %v8050_v49 = vcombine.low %v7994_v59, %v8010_v25 }
 0x5ba   :  { %33015 = vmatmul.mubr.f32.vlgmr.msra.gmra.mrb[8].mxu1 %v6186_v32 }
 0x5bb   :  { %33018 = vmatpush3.xpose.msra.mxu1 %v6121_v0  ;;  %33019 = vmatprep.mubr.msk.f32.mxu1 %vm35404_vm1, %v39844_v20 }
 0x5bc   :  { %33052 = vmatprep.subr.mxu1 %v39844_v20 }
 0x5bf   :  { %v35154_v62 = vpop.eup %35153 }
 0x5c0   :  { %v4943_v33 = vmul.f32 %v35154_v62, %v36216_v39 }
 0x5c2   :  { %33020 = vmatmul.mubr.f32.vlgmr.msra.gmra.mrb[8].mxu1 %v6186_v32  ;;  %v6570_v52 = vsel %vm3105_vm2, %v4943_v33, 0  ;;  %v7091_v32 = vsub.f32 %v7019_v47, %v36299_v17 }
 0x5c3   :  { %v6573_v37 = vand.u32 4294901760, %v6570_v52  ;;  %33054 = vmatprep.mubr.msk.f32.mxu1 %vm35404_vm1, %v39844_v20 }
 0x5c4   :  { %v7092_v38 = vand.u32 4294901760, %v7091_v32 }
 0x5c5   :  { %33023 = vmatpush3.xpose.msra.mxu0 %v6573_v37  ;;  %v6650_v63 = vsub.f32 %v6570_v52, %v6573_v37 }
 0x5c6   :  { %33027 = vmatprep.subr.mxu0 %v39844_v20  ;;  %v7093_v35 = vsub.f32 %v7091_v32, %v7092_v38 }
 0x5c7   :  { %v6651_v45 = vand.u32 4294901760, %v6650_v63 }
 0x5c8   :  { %33025 = vmatmul.mubr.f32.vlgmr.msra.gmra.mrb[8].mxu0 %v6642_v6  ;;  %v7094_v30 = vand.u32 4294901760, %v7093_v35 }
 0x5c9   :  { %v6652_v11 = vsub.f32 %v6650_v63, %v6651_v45  ;;  %33029 = vmatprep.mubr.msk.f32.mxu0 %vm35404_vm1, %v39844_v20 }
 0x5cb   :  { %v6653_v39 = vand.u32 4294901760, %v6652_v11 }
 0x5cd   :  { %33028 = vmatpush3.xpose.msra.mxu0 %v6653_v39  ;;  %v8051_v39 = vcombine.high %v7994_v59, %v8010_v25  ;;  %v2250_v25 = vcombine.high %v36050_v46, %v39844_v20  ;;  %v2317_v59 = vcombine.high %v36101_v41, %v39844_v20  ;;  %v2320_v46 = vcombine.high %v36083_v60, %v39844_v20 }
 0x5ce   :  { %33032 = vmatprep.subr.mxu0 %v39844_v20  ;;  %v8447_v60 = vsel %vm3105_vm2, %v7726_v10, 0 }
 0x5d0   :  { %33030 = vmatmul.mubr.f32.vlgmr.msra.gmra.mrb[8].mxu0 %v6638_v40 }
 0x5d1   :  { %33033 = vmatpush3.xpose.msra.mxu0 %v6650_v63  ;;  %33034 = vmatprep.mubr.msk.f32.mxu0 %vm35404_vm1, %v39844_v20 }
 0x5d2   :  { %33037 = vmatprep.subr.mxu0 %v39844_v20 }
 0x5d4   :  { %v7938_v16 = vpop.trf.xlu0 }
 0x5d5   :  { %v8018_v44 = vcombine.low %v36267_v54, %v7938_v16  ;;  %v8019_v62 = vcombine.high %v36267_v54, %v7938_v16 }
 0x5d7   :  { %v8026_v33 = vrot.slane %v8018_v44, %v35539_v19  ;;  %v2252_v44 = vcombine.high %v36088_v1, %v39844_v20 }
 0x5d8   :  { %33035 = vmatmul.mubr.f32.vlgmr.msra.gmra.mrb[8].mxu0 %v6639_v2 }
 0x5d9   :  { %33038 = vmatpush3.xpose.msra.mxu0 %v6573_v37  ;;  %33039 = vmatprep.mubr.msk.f32.mxu0 %vm35404_vm1, %v39844_v20 }
 0x5da   :  { %33042 = vmatprep.subr.mxu0 %v39844_v20 }
 0x5e0   :  { %v4937_v53 = vpop.xlane.xlu1 %4936  ;;  %33040 = vmatmul.mubr.f32.vlgmr.msra.gmra.mrb[8].mxu0 %v6640_v56  ;;  %v8003_v56 = vcombine.high %v36185_v58, %v36222_v31  ;;  %v8033_v58 = vrot.slane %v8019_v62, %v35539_v19  ;;  %v8058_v31 = vrot.slane %v8050_v49, %v35778_v29 }
 0x5e1   :  { %35155 = vrcp.f32 %v4937_v53  ;;  %33043 = vmatpush3.xpose.msra.mxu0 %v6651_v45  ;;  %33044 = vmatprep.mubr.msk.f32.mxu0 %vm35404_vm1, %v39844_v20 }
 0x5e2   :  { %33047 = vmatprep.subr.mxu0 %v39844_v20  ;;  %v8017_v11 = vrot.slane %v8003_v56, %v35539_v19 }
 0x5e8   :  { %33045 = vmatmul.mubr.f32.vlgmr.msra.gmra.mrb[8].mxu0 %v6638_v40 }
 0x5e9   :  { %33048 = vmatpush3.xpose.msra.mxu0 %v6573_v37  ;;  %33049 = vmatprep.mubr.msk.f32.mxu0 %vm35404_vm1, %v39844_v20  ;;  %v7987_v37 = vcombine.high %v36187_v5, %v36214_v51 }
 0x5ea   :  { %33082 = vmatprep.subr.mxu0 %v39844_v20 }
 0x5eb   :  { %v35156_v22 = vpop.eup %35155  ;;  %v8001_v5 = vrot.slane %v7987_v37, %v35539_v19 }
 0x5ec   :  { %v4945_v61 = vmul.f32 %v35156_v22, %v36224_v4 }
 0x5ee   :  { %v7022_v36 = vsel %vm3105_vm2, %v4945_v61, 0 }
 0x5ef   :  { %v36308_v27 = vand.u32 4294901760, %v7022_v36 }
 0x5f0   :  { %33050 = vmatmul.mubr.f32.vlgmr.msra.gmra.mrb[8].mxu0 %v6638_v40 }
 0x5f1   :  { %33053 = vmatpush3.xpose.msra.mxu1 %v36308_v27  ;;  %v7102_v9 = vsub.f32 %v7022_v36, %v36308_v27  ;;  %33084 = vmatprep.mubr.msk.f32.mxu0 %vm35404_vm1, %v39844_v20 }
 0x5f2   :  { %33057 = vmatprep.subr.mxu1 %v39844_v20 }
 0x5f3   :  { %v7103_v34 = vand.u32 4294901760, %v7102_v9 }
 0x5f4   :  { %33055 = vmatmul.mubr.f32.vlgmr.msra.gmra.mrb[10].mxu1 %v7094_v30  ;;  %v8067_v30 = vcombine.high %v8001_v5, %v8017_v11 }
 0x5f5   :  { %v7104_v0 = vsub.f32 %v7102_v9, %v7103_v34  ;;  %33059 = vmatprep.mubr.msk.f32.mxu1 %vm35404_vm1, %v39844_v20 }
 0x5f6   :  { %v8081_v48 = vrot.slane %v8067_v30, %v35778_v29 }
 0x5f7   :  { %v7105_v4 = vand.u32 4294901760, %v7104_v0 }
 0x5f9   :  { %33058 = vmatpush3.xpose.msra.mxu1 %v7105_v4 }
 0x5fa   :  { %33062 = vmatprep.subr.mxu1 %v39844_v20 }
 0x5fc   :  { %33060 = vmatmul.mubr.f32.vlgmr.msra.gmra.mrb[10].mxu1 %v36299_v17 }
 0x5fd   :  { %33063 = vmatpush3.xpose.msra.mxu1 %v7102_v9  ;;  %33064 = vmatprep.mubr.msk.f32.mxu1 %vm35404_vm1, %v39844_v20 }
 0x5fe   :  { %33067 = vmatprep.subr.mxu1 %v39844_v20 }
 0x604   :  { %33065 = vmatmul.mubr.f32.vlgmr.msra.gmra.mrb[10].mxu1 %v7091_v32  ;;  %v8065_v32 = vrot.slane %v8051_v39, %v35778_v29 }
 0x605   :  { %33068 = vmatpush3.xpose.msra.mxu1 %v36308_v27  ;;  %33069 = vmatprep.mubr.msk.f32.mxu1 %vm35404_vm1, %v39844_v20 }
 0x606   :  { %v7970_v23 = vpop.trf.xlu1  ;;  %33072 = vmatprep.subr.mxu1 %v39844_v20 }
 0x607   :  { %v8034_v40 = vcombine.low %v7906_v55, %v7970_v23  ;;  %v8035_v2 = vcombine.high %v7906_v55, %v7970_v23  ;;  %v2318_v23 = vcombine.high %v36068_v15, %v39844_v20 }
 0x609   :  { %v8042_v52 = vrot.slane %v8034_v40, %v35539_v19  ;;  %v8049_v63 = vrot.slane %v8035_v2, %v35539_v19 }
 0x60b   :  { %v8082_v6 = vcombine.low %v8026_v33, %v8042_v52  ;;  %v8083_v45 = vcombine.high %v8026_v33, %v8042_v52  ;;  %v8098_v53 = vcombine.low %v8033_v58, %v8049_v63  ;;  %v8099_v36 = vcombine.high %v8033_v58, %v8049_v63 }
 0x60c   :  { %33070 = vmatmul.mubr.f32.vlgmr.msra.gmra.mrb[10].mxu1 %v7092_v38  ;;  %v8066_v38 = vcombine.low %v8001_v5, %v8017_v11  ;;  %v36391_v63 = vand.u32 4294901760, %v8447_v60 }
 0x60d   :  { %33073 = vmatpush3.xpose.msra.mxu1 %v7103_v34  ;;  %v8090_v54 = vrot.slane %v8082_v6, %v35778_v29  ;;  %33074 = vmatprep.mubr.msk.f32.mxu1 %vm35404_vm1, %v39844_v20  ;;  %v8097_v47 = vrot.slane %v8083_v45, %v35778_v29  ;;  %v8106_v61 = vrot.slane %v8098_v53, %v35778_v29  ;;  %v36393_v6 = vand.u32 4294901760, %v8896_v57 }
 0x60e   :  { %33077 = vmatprep.subr.mxu1 %v39844_v20  ;;  %v8074_v9 = vrot.slane %v8066_v38, %v35778_v29  ;;  %v8113_v0 = vrot.slane %v8099_v36, %v35778_v29  ;;  %v36402_v24 = vsub.f32 %v8447_v60, %v36391_v63 }
 0x60f   :  { %v8115_v51 = vcombine.high %v8058_v31, %v8090_v54  ;;  %v8114_v55 = vcombine.low %v8058_v31, %v8090_v54  ;;  %v8117_v22 = vcombine.high %v8065_v32, %v8097_v47  ;;  %v8116_v35 = vcombine.low %v8065_v32, %v8097_v47 }
 0x610   :  { %v8119_v34 = vcombine.high %v8074_v9, %v8106_v61  ;;  %v8118_v4 = vcombine.low %v8074_v9, %v8106_v61  ;;  %v8121_v16 = vcombine.high %v8081_v48, %v8113_v0  ;;  %v36405_v28 = vsub.f32 %v8896_v57, %v36393_v6 }
 0x611   :  { %8154 = vxpose.xlu1.b32.start.end [1/1] (short) (narrow) %v8115_v51, 8  ;;  %8122 = vxpose.xlu0.b32.start.end [1/1] (short) (narrow) %v8114_v55, 8  ;;  %v8517_v55 = vand.u32 4294901760, %v36402_v24 }
 0x612   :  { %v8966_v47 = vand.u32 4294901760, %v36405_v28 }
 0x613   :  { %v8518_v36 = vsub.f32 %v36402_v24, %v8517_v55 }
 0x614   :  { %33075 = vmatmul.mubr.f32.vlgmr.msra.gmra.mrb[10].mxu1 %v36299_v17 }
 0x615   :  { %33078 = vmatpush3.xpose.msra.mxu1 %v36308_v27  ;;  %8218 = vxpose.xlu1.b32.start.end [1/1] (short) (narrow) %v8117_v22, 8  ;;  %v8120_v27 = vcombine.low %v8081_v48, %v8113_v0 }
 0x616   :  { %8186 = vxpose.xlu0.b32.start.end [1/1] (short) (narrow) %v8116_v35, 8  ;;  %33079 = vmatprep.mubr.msk.f32.mxu1 %vm35404_vm1, %v39844_v20  ;;  %v8967_v35 = vsub.f32 %v36405_v28, %v8966_v47 }
 0x617   :  { %33112 = vmatprep.subr.mxu1 %v39844_v20 }
 0x619   :  { %8282 = vxpose.xlu1.b32.start.end [1/1] (short) (narrow) %v8119_v34, 8 }
 0x61a   :  { %8250 = vxpose.xlu0.b32.start.end [1/1] (short) (narrow) %v8118_v4, 8 }
 0x61c   :  { %33080 = vmatmul.mubr.f32.vlgmr.msra.gmra.mrb[10].mxu1 %v36299_v17  ;;  %v2251_v17 = vcombine.high %v36074_v50, %v39844_v20 }
 0x61d   :  { %8346 = vxpose.xlu1.b32.start.end [1/1] (short) (narrow) %v8121_v16, 8  ;;  %33114 = vmatprep.mubr.msk.f32.mxu1 %vm35404_vm1, %v39844_v20 }
 0x61e   :  { %8314 = vxpose.xlu0.b32.start.end [1/1] (short) (narrow) %v8120_v27, 8 }
 0x621   :  { %10286 = vxpose.xlu1.b32.start.end [1/1] (short) (narrow) %v2249_v42, 8 }
 0x622   :  { %10318 = vxpose.xlu0.b32.start.end [1/1] (short) (narrow) %v2250_v25, 8 }
 0x625   :  { %10382 = vxpose.xlu1.b32.start.end [1/1] (short) (narrow) %v2252_v44, 8 }
 0x626   :  { %10350 = vxpose.xlu0.b32.start.end [1/1] (short) (narrow) %v2251_v17, 8  ;;  %v8519_v17 = vand.u32 4294901760, %v8518_v36 }
 0x629   :  { %10446 = vxpose.xlu1.b32.start.end [1/1] (short) (narrow) %v2318_v23, 8  ;;  %v8968_v23 = vand.u32 4294901760, %v8967_v35 }
 0x62a   :  { %10414 = vxpose.xlu0.b32.start.end [1/1] (short) (narrow) %v2317_v59, 8 }
 0x62d   :  { %10510 = vxpose.xlu1.b32.start.end [1/1] (short) (narrow) %v2320_v46, 8 }
 0x62e   :  { %10478 = vxpose.xlu0.b32.start.end [1/1] (short) (narrow) %v2319_v26, 8 }
 0x669   :  { %v36379_v1 = vpop.f32.mrb[6].mxu0 }
 0x66a   :  { %v32991_v50 = vpop.f32.mrb[7].mxu0 }
 0x691   :  { %v8170_v40 = vpop.trf.xlu1  ;;  %v8138_v2 = vpop.trf.xlu0 }
 0x695   :  { %v36381_v56 = vpop.f32.mrb[8].mxu1  ;;  %v8234_v15 = vpop.trf.xlu1 }
 0x696   :  { %v8202_v62 = vpop.trf.xlu0  ;;  %v33021_v41 = vpop.f32.mrb[9].mxu1  ;;  %v8386_v33 = vcombine.low %v8170_v40, %v8234_v15 }
 0x697   :  { %v8378_v52 = vcombine.low %v8138_v2, %v8202_v62 }
 0x698   :  { %v36396_v45 = vrot.slane %v8386_v33, %v35539_v19 }
 0x699   :  { %v8298_v49 = vpop.trf.xlu1  ;;  %v36399_v11 = vrot.slane %v8378_v52, %v35539_v19 }
 0x69a   :  { %v8266_v37 = vpop.trf.xlu0 }
 0x69b   :  { %v8410_v54 = vcombine.low %v36399_v11, %v36396_v45 }
 0x69d   :  { %v8362_v10 = vpop.trf.xlu1  ;;  %v8418_v38 = vrot.slane %v8410_v54, %v35778_v29 }
 0x69e   :  { %v8402_v39 = vcombine.low %v8298_v49, %v8362_v10  ;;  %v8330_v58 = vpop.trf.xlu0 }
 0x69f   :  { %v8394_v18 = vcombine.low %v8266_v37, %v8330_v58 }
 0x6a0   :  { %v36408_v31 = vrot.slane %v8402_v39, %v35539_v19 }
 0x6a1   :  { %v36413_v5 = vrot.slane %v8394_v18, %v35539_v19  ;;  %v10302_v51 = vpop.trf.xlu1 }
 0x6a2   :  { %v10334_v53 = vpop.trf.xlu0 }
 0x6a3   :  { %v8426_v32 = vcombine.low %v36413_v5, %v36408_v31 }
 0x6a5   :  { %v8434_v22 = vrot.slane %v8426_v32, %v35778_v29  ;;  %v10398_v61 = vpop.trf.xlu1 }
 0x6a6   :  { %v10366_v9 = vpop.trf.xlu0  ;;  %v10558_v30 = vcombine.low %v10334_v53, %v10398_v61  ;;  %v10559_v34 = vcombine.high %v10334_v53, %v10398_v61 }
 0x6a7   :  { %v8442_v0 = vcombine.low %v8418_v38, %v8434_v22  ;;  %v8443_v4 = vcombine.high %v8418_v38, %v8434_v22  ;;  %v10542_v48 = vcombine.low %v10302_v51, %v10366_v9  ;;  %v10543_v16 = vcombine.high %v10302_v51, %v10366_v9 }
 0x6a8   :  { %v36428_v27 = vrot.slane %v10559_v34, %v35539_v19  ;;  %v10566_v46 = vrot.slane %v10558_v30, %v35539_v19 }
 0x6a9   :  { %v36430_v42 = vand.u32 4294901760, %v8442_v0  ;;  %v36432_v25 = vand.u32 4294901760, %v8443_v4  ;;  %v10462_v44 = vpop.trf.xlu1  ;;  %v36435_v59 = vrot.slane %v10543_v16, %v35539_v19  ;;  %v10550_v2 = vrot.slane %v10542_v48, %v35539_v19 }
 0x6aa   :  { %v10430_v26 = vpop.trf.xlu0  ;;  %v8427_v16 = vcombine.high %v36413_v5, %v36408_v31  ;;  %v9345_v5 = vsel %vm3105_vm2, %v7728_v14, 0 }
 0x6ab   :  { %33083 = vmatpush3.msra.mxu0 %v36430_v42  ;;  %v36440_v50 = vsub.f32 %v8442_v0, %v36430_v42  ;;  %33113 = vmatpush3.msra.mxu1 %v36432_v25  ;;  %v36444_v40 = vsub.f32 %v8443_v4, %v36432_v25  ;;  %v10623_v15 = vcombine.high %v36435_v59, %v36428_v27  ;;  %v36525_v14 = vand.u32 4294901760, %v9345_v5 }
 0x6ac   :  { %33085 = vmatmul.mubr.f32.vlgmr.msra.gmra.mrb[10].mxu0 %v8519_v17  ;;  %33115 = vmatmul.mubr.f32.vlgmr.msra.gmra.mrb[12].mxu1 %v8968_v23  ;;  %v10606_v39 = vcombine.low %v10550_v2, %v10566_v46  ;;  %v10607_v35 = vcombine.high %v10550_v2, %v10566_v46  ;;  %v8411_v17 = vcombine.high %v36399_v11, %v36396_v45 }
 0x6ad   :  { %33087 = vmatprep.subr.mxu0 %v39844_v20  ;;  %33117 = vmatprep.subr.mxu1 %v39844_v20  ;;  %v8528_v62 = vand.u32 4294901760, %v36440_v50  ;;  %v8977_v41 = vand.u32 4294901760, %v36444_v40  ;;  %v10526_v60 = vpop.trf.xlu1  ;;  %v8441_v46 = vrot.slane %v8427_v16, %v35778_v29 }
 0x6ae   :  { %33089 = vmatprep.mubr.msk.f32.mxu0 %vm35404_vm1, %v39844_v20  ;;  %33119 = vmatprep.mubr.msk.f32.mxu1 %vm35404_vm1, %v39844_v20  ;;  %v10494_v57 = vpop.trf.xlu0  ;;  %v10590_v33 = vcombine.low %v10462_v44, %v10526_v60  ;;  %v10591_v52 = vcombine.high %v10462_v44, %v10526_v60  ;;  %v10614_v22 = vrot.slane %v10606_v39, %v35778_v29  ;;  %v9794_v60 = vsel %vm3105_vm2, %v7729_v21, 0 }
 0x6af   :  { %v8529_v49 = vsub.f32 %v36440_v50, %v8528_v62  ;;  %v8978_v37 = vsub.f32 %v36444_v40, %v8977_v41  ;;  %v10574_v10 = vcombine.low %v10430_v26, %v10494_v57  ;;  %v10575_v58 = vcombine.high %v10430_v26, %v10494_v57 }
 0x6b0   :  { %v10598_v18 = vrot.slane %v10590_v33, %v35539_v19  ;;  %v36465_v54 = vrot.slane %v10591_v52, %v35539_v19  ;;  %v10621_v4 = vrot.slane %v10607_v35, %v35778_v29  ;;  %v8425_v45 = vrot.slane %v8411_v17, %v35778_v29 }
 0x6b1   :  { %v8530_v51 = vand.u32 4294901760, %v8529_v49  ;;  %v8979_v53 = vand.u32 4294901760, %v8978_v37  ;;  %v10582_v32 = vrot.slane %v10574_v10, %v35539_v19  ;;  %v36469_v38 = vrot.slane %v10575_v58, %v35539_v19 }
 0x6b2   :  { %v8444_v31 = vcombine.low %v8425_v45, %v8441_v46  ;;  %v8445_v2 = vcombine.high %v8425_v45, %v8441_v46  ;;  %v36532_v43 = vand.u32 4294901760, %v9794_v60  ;;  %v10622_v35 = vcombine.low %v36435_v59, %v36428_v27 }
 0x6b3   :  { %33088 = vmatpush3.msra.mxu0 %v8530_v51  ;;  %33118 = vmatpush3.msra.mxu1 %v8979_v53  ;;  %v10638_v61 = vcombine.low %v10582_v32, %v10598_v18  ;;  %v10655_v36 = vcombine.high %v36469_v38, %v36465_v54  ;;  %v10639_v9 = vcombine.high %v10582_v32, %v10598_v18 }
 0x6b4   :  { %33090 = vmatmul.mubr.f32.vlgmr.msra.gmra.mrb[10].mxu0 %v36391_v63  ;;  %33092 = vmatprep.subr.mxu0 %v39844_v20  ;;  %v36530_v8 = vand.u32 4294901760, %v8444_v31  ;;  %v36535_v21 = vand.u32 4294901760, %v8445_v2 }
 0x6b5   :  { %33120 = vmatmul.mubr.f32.vlgmr.msra.gmra.mrb[12].mxu1 %v36393_v6  ;;  %33122 = vmatprep.subr.mxu1 %v39844_v20  ;;  %v10646_v30 = vrot.slane %v10638_v61, %v35778_v29  ;;  %v10653_v48 = vrot.slane %v10639_v9, %v35778_v29  ;;  %v36592_v10 = vrot.slane %v10655_v36, %v35778_v29 }
 0x6b6   :  { %33093 = vmatpush3.msra.mxu0 %v36440_v50  ;;  %33123 = vmatpush3.msra.mxu1 %v36444_v40  ;;  %v10654_v9 = vcombine.low %v36469_v38, %v36465_v54 }
 0x6b7   :  { %33094 = vmatprep.mubr.msk.f32.mxu0 %vm35404_vm1, %v39844_v20  ;;  %33097 = vmatprep.subr.mxu0 %v39844_v20  ;;  %v10671_v34 = vcombine.high %v10614_v22, %v10646_v30  ;;  %v10670_v0 = vcombine.low %v10614_v22, %v10646_v30  ;;  %v10672_v44 = vcombine.low %v10621_v4, %v10653_v48 }
 0x6b8   :  { %33124 = vmatprep.mubr.msk.f32.mxu1 %vm35404_vm1, %v39844_v20  ;;  %33127 = vmatprep.subr.mxu1 %v39844_v20  ;;  %v10673_v23 = vcombine.high %v10621_v4, %v10653_v48  ;;  %v10630_v30 = vrot.slane %v10622_v35, %v35778_v29 }
 0x6b9   :  { %10710 = vxpose.xlu0.b32.start.end [1/1] (short) (narrow) %v10671_v34, 8  ;;  %10678 = vxpose.xlu1.b32.start.end [1/1] (short) (narrow) %v10670_v0, 8  ;;  %v10662_v34 = vrot.slane %v10654_v9, %v35778_v29 }
 0x6bb   :  { %v10674_v16 = vcombine.low %v10630_v30, %v10662_v34  ;;  %v10675_v17 = vcombine.high %v10630_v30, %v10662_v34 }
 0x6bc   :  { %33095 = vmatmul.mubr.f32.vlgmr.msra.gmra.mrb[10].mxu0 %v36402_v24  ;;  %v9414_v24 = vsub.f32 %v9345_v5, %v36525_v14 }
 0x6bd   :  { %33098 = vmatpush3.msra.mxu0 %v36430_v42  ;;  %33125 = vmatmul.mubr.f32.vlgmr.msra.gmra.mrb[12].mxu1 %v36405_v28  ;;  %v9425_v28 = vsub.f32 %v8444_v31, %v36530_v8 }
 0x6be   :  { %33128 = vmatpush3.msra.mxu1 %v36432_v25  ;;  %33099 = vmatprep.mubr.msk.f32.mxu0 %vm35404_vm1, %v39844_v20  ;;  %v9415_v50 = vand.u32 4294901760, %v9414_v24 }
 0x6bf   :  { %33102 = vmatprep.subr.mxu0 %v39844_v20  ;;  %33129 = vmatprep.mubr.msk.f32.mxu1 %vm35404_vm1, %v39844_v20  ;;  %v9426_v40 = vand.u32 4294901760, %v9425_v28 }
 0x6c0   :  { %33132 = vmatprep.subr.mxu1 %v39844_v20  ;;  %10742 = vxpose.xlu0.b32.start.end [1/1] (short) (narrow) %v10672_v44, 8  ;;  %v9416_v57 = vsub.f32 %v9414_v24, %v9415_v50 }
 0x6c1   :  { %10774 = vxpose.xlu1.b32.start.end [1/1] (short) (narrow) %v10673_v23, 8 }
 0x6c2   :  { %v9417_v52 = vand.u32 4294901760, %v9416_v57 }
 0x6c3   :  { %v36505_v11 = vpop.f32.mrb[8].mxu0 }
 0x6c4   :  { %33100 = vmatmul.mubr.f32.vlgmr.msra.gmra.mrb[10].mxu0 %v8517_v55  ;;  %v33051_v26 = vpop.f32.mrb[9].mxu0  ;;  %v9863_v55 = vsub.f32 %v9794_v60, %v36532_v43 }
 0x6c5   :  { %33103 = vmatpush3.msra.mxu0 %v8528_v62  ;;  %33130 = vmatmul.mubr.f32.vlgmr.msra.gmra.mrb[12].mxu1 %v8966_v47  ;;  %v9874_v47 = vsub.f32 %v8445_v2, %v36535_v21 }
 0x6c6   :  { %33133 = vmatpush3.msra.mxu1 %v8977_v41  ;;  %33104 = vmatprep.mubr.msk.f32.mxu0 %vm35404_vm1, %v39844_v20  ;;  %v9864_v62 = vand.u32 4294901760, %v9863_v55 }
 0x6c7   :  { %33107 = vmatprep.subr.mxu0 %v39844_v20  ;;  %33134 = vmatprep.mubr.msk.f32.mxu1 %vm35404_vm1, %v39844_v20  ;;  %v9875_v41 = vand.u32 4294901760, %v9874_v47 }
 0x6c8   :  { %33137 = vmatprep.subr.mxu1 %v39844_v20  ;;  %v9865_v33 = vsub.f32 %v9863_v55, %v9864_v62 }
 0x6ca   :  { %v9866_v37 = vand.u32 4294901760, %v9865_v33 }
 0x6cc   :  { %33105 = vmatmul.mubr.f32.vlgmr.msra.gmra.mrb[10].mxu0 %v36391_v63 }
 0x6cd   :  { %33108 = vmatpush3.msra.mxu0 %v36430_v42  ;;  %33135 = vmatmul.mubr.f32.vlgmr.msra.gmra.mrb[12].mxu1 %v36393_v6  ;;  %v9427_v42 = vsub.f32 %v9425_v28, %v9426_v40 }
 0x6ce   :  { %33138 = vmatpush3.msra.mxu1 %v36432_v25  ;;  %33109 = vmatprep.mubr.msk.f32.mxu0 %vm35404_vm1, %v39844_v20  ;;  %v9876_v25 = vsub.f32 %v9874_v47, %v9875_v41 }
 0x6cf   :  { %33139 = vmatprep.mubr.msk.f32.mxu1 %vm35404_vm1, %v39844_v20  ;;  %33142 = vmatprep.subr.mxu0 %v39844_v20  ;;  %v9428_v49 = vand.u32 4294901760, %v9427_v42 }
 0x6d0   :  { %33172 = vmatprep.subr.mxu1 %v39844_v20 }
 0x6d4   :  { %33110 = vmatmul.mubr.f32.vlgmr.msra.gmra.mrb[10].mxu0 %v36391_v63  ;;  %v9877_v63 = vand.u32 4294901760, %v9876_v25 }
 0x6d5   :  { %33140 = vmatmul.mubr.f32.vlgmr.msra.gmra.mrb[12].mxu1 %v36393_v6  ;;  %33143 = vmatpush3.msra.mxu0 %v36530_v8  ;;  %v36583_v6 = vrot.slane %v10623_v15, %v35778_v29 }
 0x6d6   :  { %33173 = vmatpush3.msra.mxu1 %v36535_v21  ;;  %33144 = vmatprep.mubr.msk.f32.mxu0 %vm35404_vm1, %v39844_v20 }
 0x6d7   :  { %33147 = vmatprep.subr.mxu0 %v39844_v20  ;;  %33174 = vmatprep.mubr.msk.f32.mxu1 %vm35404_vm1, %v39844_v20  ;;  %v10676_v39 = vcombine.low %v36583_v6, %v36592_v10  ;;  %v10677_v15 = vcombine.high %v36583_v6, %v36592_v10 }
 0x6d8   :  { %33177 = vmatprep.subr.mxu1 %v39844_v20  ;;  %33145 = vmatmul.mubr.f32.vlgmr.msra.gmra.mrb[12].mxu0 %v9417_v52 }
 0x6d9   :  { %33148 = vmatpush3.msra.mxu0 %v9428_v49  ;;  %33175 = vmatmul.mubr.f32.vlgmr.msra.gmra.mrb[14].mxu1 %v9866_v37 }
 0x6da   :  { %33178 = vmatpush3.msra.mxu1 %v9877_v63  ;;  %33149 = vmatprep.mubr.msk.f32.mxu0 %vm35404_vm1, %v39844_v20 }
 0x6db   :  { %33152 = vmatprep.subr.mxu0 %v39844_v20  ;;  %33179 = vmatprep.mubr.msk.f32.mxu1 %vm35404_vm1, %v39844_v20 }
 0x6dc   :  { %33182 = vmatprep.subr.mxu1 %v39844_v20 }
 0x6e0   :  { %33150 = vmatmul.mubr.f32.vlgmr.msra.gmra.mrb[12].mxu0 %v36525_v14 }
 0x6e1   :  { %33153 = vmatpush3.msra.mxu0 %v9425_v28  ;;  %33180 = vmatmul.mubr.f32.vlgmr.msra.gmra.mrb[14].mxu1 %v36532_v43 }
 0x6e2   :  { %33183 = vmatpush3.msra.mxu1 %v9874_v47  ;;  %33154 = vmatprep.mubr.msk.f32.mxu0 %vm35404_vm1, %v39844_v20 }
 0x6e3   :  { %33157 = vmatprep.subr.mxu0 %v39844_v20  ;;  %33184 = vmatprep.mubr.msk.f32.mxu1 %vm35404_vm1, %v39844_v20 }
 0x6e4   :  { %33187 = vmatprep.subr.mxu1 %v39844_v20 }
 0x6e8   :  { %33155 = vmatmul.mubr.f32.vlgmr.msra.gmra.mrb[12].mxu0 %v9414_v24 }
 0x6e9   :  { %33158 = vmatpush3.msra.mxu0 %v36530_v8  ;;  %33185 = vmatmul.mubr.f32.vlgmr.msra.gmra.mrb[14].mxu1 %v9863_v55 }
 0x6ea   :  { %33188 = vmatpush3.msra.mxu1 %v36535_v21  ;;  %33159 = vmatprep.mubr.msk.f32.mxu0 %vm35404_vm1, %v39844_v20 }
 0x6eb   :  { %33162 = vmatprep.subr.mxu0 %v39844_v20  ;;  %33189 = vmatprep.mubr.msk.f32.mxu1 %vm35404_vm1, %v39844_v20 }
 0x6ec   :  { %33192 = vmatprep.subr.mxu1 %v39844_v20 }
 0x6ef   :  { %v36599_v58 = vpop.f32.mrb[10].mxu1 }
 0x6f0   :  { %33160 = vmatmul.mubr.f32.vlgmr.msra.gmra.mrb[12].mxu0 %v9415_v50  ;;  %v33081_v18 = vpop.f32.mrb[11].mxu1 }
 0x6f1   :  { %33163 = vmatpush3.msra.mxu0 %v9426_v40  ;;  %33190 = vmatmul.mubr.f32.vlgmr.msra.gmra.mrb[14].mxu1 %v9864_v62 }
 0x6f2   :  { %33193 = vmatpush3.msra.mxu1 %v9875_v41  ;;  %33164 = vmatprep.mubr.msk.f32.mxu0 %vm35404_vm1, %v39844_v20 }
 0x6f3   :  { %33167 = vmatprep.subr.mxu0 %v39844_v20  ;;  %33194 = vmatprep.mubr.msk.f32.mxu1 %vm35404_vm1, %v39844_v20 }
 0x6f4   :  { %33197 = vmatprep.subr.mxu1 %v39844_v20 }
 0x6f8   :  { %33165 = vmatmul.mubr.f32.vlgmr.msra.gmra.mrb[12].mxu0 %v36525_v14 }
 0x6f9   :  { %33168 = vmatpush3.msra.mxu0 %v36530_v8  ;;  %33195 = vmatmul.mubr.f32.vlgmr.msra.gmra.mrb[14].mxu1 %v36532_v43 }
 0x6fa   :  { %33198 = vmatpush3.msra.mxu1 %v36535_v21  ;;  %33169 = vmatprep.mubr.msk.f32.mxu0 %vm35404_vm1, %v39844_v20 }
 0x6fb   :  { %33199 = vmatprep.mubr.msk.f32.mxu1 %vm35404_vm1, %v39844_v20  ;;  %33202 = vmatprep.subr.mxu0 %v39844_v20 }
 0x6fc   :  { %33232 = vmatprep.subr.mxu1 %v39844_v20 }
 0x700   :  { %33170 = vmatmul.mubr.f32.vlgmr.msra.gmra.mrb[12].mxu0 %v36525_v14 }
 0x701   :  { %33200 = vmatmul.mubr.f32.vlgmr.msra.gmra.mrb[14].mxu1 %v36532_v43  ;;  %33204 = vmatprep.mubr.msk.f32.mxu0 %vm35404_vm1, %v39844_v20 }
 0x702   :  { %33234 = vmatprep.mubr.msk.f32.mxu1 %vm35404_vm1, %v39844_v20 }
 0x739   :  { %v10726_v59 = vpop.trf.xlu0  ;;  %v10694_v54 = vpop.trf.xlu1 }
 0x740   :  { %v10758_v38 = vpop.trf.xlu0 }
 0x741   :  { %v10790_v46 = vpop.trf.xlu1 }
 0x7a7   :  { %v8891_v51 = vpop.f32.mrb[10].mxu0 }
 0x7a8   :  { %v9340_v53 = vpop.f32.mrb[12].mxu1  ;;  %v33111_v32 = vpop.f32.mrb[11].mxu0  ;;  %v10242_v22 = vsel %vm3105_vm2, %v8891_v51, -inf }
 0x7a9   :  { %v33141_v61 = vpop.f32.mrb[13].mxu1  ;;  %10243 = vmax.xlane.f32.xlu0 %v10242_v22  ;;  %v10245_v36 = vsel %vm3105_vm2, %v9340_v53, -inf }
 0x7aa   :  { %10246 = vmax.xlane.f32.xlu1 %v10245_v36 }
 0x7d3   :  { %v9789_v0 = vpop.f32.mrb[12].mxu0 }
 0x7d4   :  { %v10238_v4 = vpop.f32.mrb[14].mxu1  ;;  %v33171_v48 = vpop.f32.mrb[13].mxu0  ;;  %v10248_v27 = vsel %vm3105_vm2, %v9789_v0, -inf }
 0x7d5   :  { %v33201_v44 = vpop.f32.mrb[15].mxu1  ;;  %v10251_v23 = vsel %vm3105_vm2, %v10238_v4, -inf }
 0x7d6   :  { %10806 = vxpose.xlu0.b32.start.end [1/1] (short) (narrow) %v10674_v16, 8 }
 0x7dd   :  { %10838 = vxpose.xlu1.b32.start.end [1/1] (short) (narrow) %v10675_v17, 8 }
 0x803   :  { %10252 = vmax.xlane.f32.xlu0 %v10251_v23 }
 0x804   :  { %10249 = vmax.xlane.f32.xlu1 %v10248_v27 }
 0x836   :  { %v10244_v45 = vpop.xlane.xlu0 %10243 }
 0x837   :  { %v10254_v31 = vsub.f32 %v8891_v51, %v10244_v45  ;;  %v10247_v5 = vpop.xlane.xlu1 %10246 }
 0x838   :  { %v10255_v26 = vsub.f32 %v9340_v53, %v10247_v5 }
 0x839   :  { %v10258_v2 = vmul.f32 1.442695, %v10254_v31 }
 0x83a   :  { %v10260_v60 = vmul.f32 1.442695, %v10255_v26 }
 0x83b   :  { %35157 = vpow2.f32 %v10258_v2 }
 0x83c   :  { %35159 = vpow2.f32 %v10260_v60 }
 0x845   :  { %v35158_v14 = vpop.eup %35157 }
 0x846   :  { %v35160_v8 = vpop.eup %35159  ;;  %v10266_v43 = vsel %vm3105_vm2, %v35158_v14, 0.0 }
 0x847   :  { %10267 = vadd.xlane.f32.xlu0 %v10266_v43  ;;  %v10269_v21 = vsel %vm3105_vm2, %v35160_v8, 0.0 }
 0x848   :  { %10270 = vadd.xlane.f32.xlu1 %v10269_v21 }
 0x856   :  { %v10822_v24 = vpop.trf.xlu0 }
 0x85d   :  { %v10854_v28 = vpop.trf.xlu1 }
 0x874   :  { %10870 = vxpose.xlu0.b32.start.end [1/1] (short) (narrow) %v10676_v39, 8 }
 0x87b   :  { %10902 = vxpose.xlu1.b32.start.end [1/1] (short) (narrow) %v10677_v15, 8 }
 0x890   :  { %v10253_v55 = vpop.xlane.xlu0 %10252 }
 0x891   :  { %v10257_v47 = vsub.f32 %v10238_v4, %v10253_v55  ;;  %v10250_v50 = vpop.xlane.xlu1 %10249 }
 0x892   :  { %v10256_v40 = vsub.f32 %v9789_v0, %v10250_v50 }
 0x893   :  { %v10264_v62 = vmul.f32 1.442695, %v10257_v47 }
 0x894   :  { %v10262_v41 = vmul.f32 1.442695, %v10256_v40 }
 0x895   :  { %35161 = vpow2.f32 %v10264_v62 }
 0x896   :  { %35163 = vpow2.f32 %v10262_v41 }
 0x89f   :  { %v36641_v57 = vpop.eup %35161 }
 0x8a0   :  { %v36643_v42 = vpop.eup %35163  ;;  %v10275_v33 = vsel %vm3105_vm2, %v36641_v57, 0.0 }
 0x8a1   :  { %v10272_v25 = vsel %vm3105_vm2, %v36643_v42, 0.0 }
 0x8a2   :  { %10276 = vadd.xlane.f32.xlu1 %v10275_v33  ;;  %10273 = vadd.xlane.f32.xlu0 %v10272_v25 }
 0x8cf   :  { %7470 = vxpose.xlu0.b32.start.end [1/1] (short) (narrow) %v36379_v1, 8 }
 0x8d3   :  { %7534 = vxpose.xlu0.b32.start.end [1/1] (short) (narrow) %v36505_v11, 8  ;;  %v10942_v11 = vcombine.low %v10726_v59, %v10790_v46 }
 0x8d4   :  { %v10268_v52 = vpop.xlane.xlu0 %10267 }
 0x8d5   :  { %35165 = vrcp.f32 %v10268_v52  ;;  %7502 = vxpose.xlu1.b32.start.end [1/1] (short) (narrow) %v36381_v56, 8  ;;  %v10271_v49 = vpop.xlane.xlu1 %10270  ;;  %v10934_v56 = vcombine.low %v10694_v54, %v10758_v38  ;;  %v10949_v53 = vrot.slane %v10942_v11, %v35539_v19 }
 0x8d6   :  { %35167 = vrcp.f32 %v10271_v49 }
 0x8d7   :  { %v10941_v51 = vrot.slane %v10934_v56, %v35539_v19 }
 0x8d9   :  { %7566 = vxpose.xlu1.b32.start.end [1/1] (short) (narrow) %v36599_v58, 8  ;;  %v10966_v36 = vcombine.low %v10941_v51, %v10949_v53  ;;  %v10967_v55 = vcombine.high %v10941_v51, %v10949_v53 }
 0x8db   :  { %v10974_v34 = vrot.slane %v10966_v36, %v35778_v29  ;;  %v10981_v50 = vrot.slane %v10967_v55, %v35778_v29 }
 0x8df   :  { %v35166_v37 = vpop.eup %35165 }
 0x8e0   :  { %v35168_v63 = vpop.eup %35167  ;;  %v10279_v6 = vmul.f32 %v35166_v37, %v35158_v14 }
 0x8e1   :  { %v10281_v10 = vmul.f32 %v35168_v63, %v35160_v8 }
 0x8e2   :  { %v11006_v39 = vsel %vm3105_vm2, %v10279_v6, 0 }
 0x8e3   :  { %v36654_v15 = vand.u32 4294901760, %v11006_v39  ;;  %v11458_v1 = vsel %vm3105_vm2, %v10281_v10, 0 }
 0x8e4   :  { %v36657_v18 = vand.u32 4294901760, %v11458_v1 }
 0x8e5   :  { %33203 = vmatpush3.xpose.msra.mxu0 %v36654_v15  ;;  %v11086_v4 = vsub.f32 %v11006_v39, %v36654_v15 }
 0x8e6   :  { %33233 = vmatpush3.xpose.msra.mxu1 %v36657_v18  ;;  %33207 = vmatprep.subr.mxu0 %v39844_v20  ;;  %v11538_v48 = vsub.f32 %v11458_v1, %v36657_v18 }
 0x8e7   :  { %33237 = vmatprep.subr.mxu1 %v39844_v20  ;;  %v11087_v54 = vand.u32 4294901760, %v11086_v4 }
 0x8e8   :  { %v11539_v38 = vand.u32 4294901760, %v11538_v48 }
 0x8e9   :  { %v11088_v26 = vsub.f32 %v11086_v4, %v11087_v54 }
 0x8ea   :  { %v11540_v2 = vsub.f32 %v11538_v48, %v11539_v38 }
 0x8eb   :  { %v11089_v21 = vand.u32 4294901760, %v11088_v26 }
 0x8f4   :  { %v10886_v58 = vpop.trf.xlu0 }
 0x8f5   :  { %v10950_v32 = vcombine.low %v10822_v24, %v10886_v58  ;;  %v11541_v24 = vand.u32 4294901760, %v11540_v2 }
 0x8f7   :  { %v10957_v35 = vrot.slane %v10950_v32, %v35539_v19 }
 0x8fb   :  { %v10918_v22 = vpop.trf.xlu1 }
 0x8fc   :  { %v10958_v61 = vcombine.low %v10854_v28, %v10918_v22 }
 0x8fe   :  { %v10965_v9 = vrot.slane %v10958_v61, %v35539_v19 }
 0x900   :  { %v10982_v30 = vcombine.low %v10957_v35, %v10965_v9  ;;  %v10983_v28 = vcombine.high %v10957_v35, %v10965_v9 }
 0x902   :  { %v10990_v0 = vrot.slane %v10982_v30, %v35778_v29  ;;  %v10997_v47 = vrot.slane %v10983_v28, %v35778_v29 }
 0x904   :  { %v10998_v16 = vcombine.low %v10974_v34, %v10990_v0  ;;  %v10999_v44 = vcombine.high %v10974_v34, %v10990_v0  ;;  %v11000_v40 = vcombine.low %v10981_v50, %v10997_v47  ;;  %v11001_v62 = vcombine.high %v10981_v50, %v10997_v47 }
 0x906   :  { %v11003_v17 = vsel %vm3105_vm2, %v10998_v16, 0  ;;  %v11455_v23 = vsel %vm3105_vm2, %v10999_v44, 0  ;;  %v11907_v41 = vsel %vm3105_vm2, %v11000_v40, 0  ;;  %v12359_v33 = vsel %vm3105_vm2, %v11001_v62, 0 }
 0x907   :  { %v36673_v27 = vand.u32 4294901760, %v11003_v17  ;;  %v36675_v59 = vand.u32 4294901760, %v11455_v23  ;;  %v36711_v49 = vand.u32 4294901760, %v11907_v41  ;;  %v36715_v37 = vand.u32 4294901760, %v12359_v33 }
 0x909   :  { %v11075_v46 = vsub.f32 %v11003_v17, %v36673_v27  ;;  %v11527_v45 = vsub.f32 %v11455_v23, %v36675_v59  ;;  %v36726_v63 = vsub.f32 %v11907_v41, %v36711_v49  ;;  %v36729_v6 = vsub.f32 %v12359_v33, %v36715_v37 }
 0x90b   :  { %v11076_v31 = vand.u32 4294901760, %v11075_v46  ;;  %v11528_v5 = vand.u32 4294901760, %v11527_v45  ;;  %v11980_v10 = vand.u32 4294901760, %v36726_v63 }
 0x90d   :  { %v11077_v60 = vsub.f32 %v11075_v46, %v11076_v31  ;;  %v11529_v14 = vsub.f32 %v11527_v45, %v11528_v5  ;;  %v11981_v58 = vsub.f32 %v36726_v63, %v11980_v10 }
 0x90f   :  { %v11078_v8 = vand.u32 4294901760, %v11077_v60  ;;  %v11530_v43 = vand.u32 4294901760, %v11529_v14 }
 0x911   :  { %33205 = vmatmul.mubr.f32.vlgmr.msra.gmra.mrb[14].mxu0 %v11078_v8  ;;  %33235 = vmatmul.mubr.f32.vlgmr.msra.gmra.mrb[16].mxu1 %v11530_v43 }
 0x912   :  { %33208 = vmatpush3.xpose.msra.mxu0 %v11089_v21  ;;  %33238 = vmatpush3.xpose.msra.mxu1 %v11541_v24 }
 0x913   :  { %33209 = vmatprep.mubr.msk.f32.mxu0 %vm35404_vm1, %v39844_v20  ;;  %33212 = vmatprep.subr.mxu0 %v39844_v20 }
 0x914   :  { %33239 = vmatprep.mubr.msk.f32.mxu1 %vm35404_vm1, %v39844_v20  ;;  %33242 = vmatprep.subr.mxu1 %v39844_v20 }
 0x919   :  { %33210 = vmatmul.mubr.f32.vlgmr.msra.gmra.mrb[14].mxu0 %v36673_v27  ;;  %33240 = vmatmul.mubr.f32.vlgmr.msra.gmra.mrb[16].mxu1 %v36675_v59 }
 0x91a   :  { %33213 = vmatpush3.xpose.msra.mxu0 %v11086_v4  ;;  %33243 = vmatpush3.xpose.msra.mxu1 %v11538_v48 }
 0x91b   :  { %33214 = vmatprep.mubr.msk.f32.mxu0 %vm35404_vm1, %v39844_v20  ;;  %33217 = vmatprep.subr.mxu0 %v39844_v20 }
 0x91c   :  { %33244 = vmatprep.mubr.msk.f32.mxu1 %vm35404_vm1, %v39844_v20  ;;  %33247 = vmatprep.subr.mxu1 %v39844_v20 }
 0x921   :  { %33215 = vmatmul.mubr.f32.vlgmr.msra.gmra.mrb[14].mxu0 %v11075_v46  ;;  %33245 = vmatmul.mubr.f32.vlgmr.msra.gmra.mrb[16].mxu1 %v11527_v45 }
 0x922   :  { %33218 = vmatpush3.xpose.msra.mxu0 %v36654_v15  ;;  %33248 = vmatpush3.xpose.msra.mxu1 %v36657_v18 }
 0x923   :  { %33219 = vmatprep.mubr.msk.f32.mxu0 %vm35404_vm1, %v39844_v20  ;;  %33222 = vmatprep.subr.mxu0 %v39844_v20 }
 0x924   :  { %33249 = vmatprep.mubr.msk.f32.mxu1 %vm35404_vm1, %v39844_v20  ;;  %33252 = vmatprep.subr.mxu1 %v39844_v20 }
 0x929   :  { %33220 = vmatmul.mubr.f32.vlgmr.msra.gmra.mrb[14].mxu0 %v11076_v31  ;;  %33250 = vmatmul.mubr.f32.vlgmr.msra.gmra.mrb[16].mxu1 %v11528_v5 }
 0x92a   :  { %33223 = vmatpush3.xpose.msra.mxu0 %v11087_v54  ;;  %33253 = vmatpush3.xpose.msra.mxu1 %v11539_v38 }
 0x92b   :  { %33224 = vmatprep.mubr.msk.f32.mxu0 %vm35404_vm1, %v39844_v20  ;;  %33227 = vmatprep.subr.mxu0 %v39844_v20 }
 0x92c   :  { %33254 = vmatprep.mubr.msk.f32.mxu1 %vm35404_vm1, %v39844_v20  ;;  %33257 = vmatprep.subr.mxu1 %v39844_v20 }
 0x92f   :  { %v10274_v25 = vpop.xlane.xlu0 %10273  ;;  %v10277_v52 = vpop.xlane.xlu1 %10276 }
 0x930   :  { %35169 = vrcp.f32 %v10274_v25 }
 0x931   :  { %35171 = vrcp.f32 %v10277_v52  ;;  %33225 = vmatmul.mubr.f32.vlgmr.msra.gmra.mrb[14].mxu0 %v36673_v27  ;;  %33255 = vmatmul.mubr.f32.vlgmr.msra.gmra.mrb[16].mxu1 %v36675_v59 }
 0x932   :  { %33228 = vmatpush3.xpose.msra.mxu0 %v36654_v15  ;;  %33258 = vmatpush3.xpose.msra.mxu1 %v36657_v18  ;;  %v12432_v15 = vand.u32 4294901760, %v36729_v6 }
 0x933   :  { %33229 = vmatprep.mubr.msk.f32.mxu0 %vm35404_vm1, %v39844_v20  ;;  %33259 = vmatprep.mubr.msk.f32.mxu1 %vm35404_vm1, %v39844_v20 }
 0x934   :  { %33262 = vmatprep.subr.mxu0 %v39844_v20  ;;  %33292 = vmatprep.subr.mxu1 %v39844_v20  ;;  %v12433_v32 = vsub.f32 %v36729_v6, %v12432_v15 }
 0x936   :  { %v12434_v36 = vand.u32 4294901760, %v12433_v32 }
 0x939   :  { %33230 = vmatmul.mubr.f32.vlgmr.msra.gmra.mrb[14].mxu0 %v36673_v27  ;;  %33260 = vmatmul.mubr.f32.vlgmr.msra.gmra.mrb[16].mxu1 %v36675_v59 }
 0x93a   :  { %v35170_v39 = vpop.eup %35169  ;;  %33264 = vmatprep.mubr.msk.f32.mxu0 %vm35404_vm1, %v39844_v20  ;;  %33294 = vmatprep.mubr.msk.f32.mxu1 %vm35404_vm1, %v39844_v20 }
 0x93b   :  { %v35172_v1 = vpop.eup %35171  ;;  %v10283_v18 = vmul.f32 %v35170_v39, %v36643_v42  ;;  %v11982_v42 = vand.u32 4294901760, %v11981_v58 }
 0x93c   :  { %v10285_v56 = vmul.f32 %v35172_v1, %v36641_v57 }
 0x93d   :  { %v11910_v11 = vsel %vm3105_vm2, %v10283_v18, 0 }
 0x93e   :  { %v36743_v51 = vand.u32 4294901760, %v11910_v11  ;;  %v12362_v53 = vsel %vm3105_vm2, %v10285_v56, 0 }
 0x93f   :  { %v36747_v22 = vand.u32 4294901760, %v12362_v53 }
 0x940   :  { %33263 = vmatpush3.xpose.msra.mxu0 %v36743_v51  ;;  %v11990_v61 = vsub.f32 %v11910_v11, %v36743_v51 }
 0x941   :  { %33293 = vmatpush3.xpose.msra.mxu1 %v36747_v22  ;;  %v12442_v57 = vsub.f32 %v12362_v53, %v36747_v22  ;;  %33267 = vmatprep.subr.mxu0 %v39844_v20 }
 0x942   :  { %33297 = vmatprep.subr.mxu1 %v39844_v20  ;;  %v11991_v35 = vand.u32 4294901760, %v11990_v61 }
 0x943   :  { %33265 = vmatmul.mubr.f32.vlgmr.msra.gmra.mrb[16].mxu0 %v11982_v42  ;;  %v12443_v9 = vand.u32 4294901760, %v12442_v57 }
 0x944   :  { %33295 = vmatmul.mubr.f32.vlgmr.msra.gmra.mrb[18].mxu1 %v12434_v36  ;;  %v11992_v30 = vsub.f32 %v11990_v61, %v11991_v35  ;;  %33269 = vmatprep.mubr.msk.f32.mxu0 %vm35404_vm1, %v39844_v20 }
 0x945   :  { %v12444_v34 = vsub.f32 %v12442_v57, %v12443_v9  ;;  %33299 = vmatprep.mubr.msk.f32.mxu1 %vm35404_vm1, %v39844_v20 }
 0x946   :  { %v11993_v0 = vand.u32 4294901760, %v11992_v30 }
 0x947   :  { %v12445_v4 = vand.u32 4294901760, %v12444_v34 }
 0x948   :  { %33268 = vmatpush3.xpose.msra.mxu0 %v11993_v0 }
 0x949   :  { %33298 = vmatpush3.xpose.msra.mxu1 %v12445_v4  ;;  %33272 = vmatprep.subr.mxu0 %v39844_v20 }
 0x94a   :  { %33302 = vmatprep.subr.mxu1 %v39844_v20 }
 0x94b   :  { %33270 = vmatmul.mubr.f32.vlgmr.msra.gmra.mrb[16].mxu0 %v36711_v49 }
 0x94c   :  { %33300 = vmatmul.mubr.f32.vlgmr.msra.gmra.mrb[18].mxu1 %v36715_v37  ;;  %33273 = vmatpush3.xpose.msra.mxu0 %v11990_v61 }
 0x94d   :  { %33303 = vmatpush3.xpose.msra.mxu1 %v12442_v57  ;;  %33274 = vmatprep.mubr.msk.f32.mxu0 %vm35404_vm1, %v39844_v20 }
 0x94e   :  { %33277 = vmatprep.subr.mxu0 %v39844_v20  ;;  %33304 = vmatprep.mubr.msk.f32.mxu1 %vm35404_vm1, %v39844_v20 }
 0x94f   :  { %33307 = vmatprep.subr.mxu1 %v39844_v20  ;;  %v7486_v48 = vpop.trf.xlu0 }
 0x953   :  { %33275 = vmatmul.mubr.f32.vlgmr.msra.gmra.mrb[16].mxu0 %v36726_v63  ;;  %v7550_v16 = vpop.trf.xlu0 }
 0x954   :  { %33278 = vmatpush3.xpose.msra.mxu0 %v36743_v51  ;;  %33305 = vmatmul.mubr.f32.vlgmr.msra.gmra.mrb[18].mxu1 %v36729_v6  ;;  %v7598_v17 = vcombine.low %v7486_v48, %v7550_v16  ;;  %v7599_v23 = vcombine.high %v7486_v48, %v7550_v16 }
 0x955   :  { %33308 = vmatpush3.xpose.msra.mxu1 %v36747_v22  ;;  %v7518_v44 = vpop.trf.xlu1  ;;  %33279 = vmatprep.mubr.msk.f32.mxu0 %vm35404_vm1, %v39844_v20 }
 0x956   :  { %33282 = vmatprep.subr.mxu0 %v39844_v20  ;;  %33309 = vmatprep.mubr.msk.f32.mxu1 %vm35404_vm1, %v39844_v20  ;;  %v7606_v59 = vrot.slane %v7598_v17, %v35539_v19  ;;  %v7613_v54 = vrot.slane %v7599_v23, %v35539_v19 }
 0x957   :  { %33312 = vmatprep.subr.mxu1 %v39844_v20 }
 0x959   :  { %v7582_v27 = vpop.trf.xlu1 }
 0x95a   :  { %v7614_v38 = vcombine.low %v7518_v44, %v7582_v27  ;;  %v7615_v46 = vcombine.high %v7518_v44, %v7582_v27 }
 0x95b   :  { %33280 = vmatmul.mubr.f32.vlgmr.msra.gmra.mrb[16].mxu0 %v11980_v10 }
 0x95c   :  { %v7622_v45 = vrot.slane %v7614_v38, %v35539_v19  ;;  %v7629_v31 = vrot.slane %v7615_v46, %v35539_v19  ;;  %33283 = vmatpush3.xpose.msra.mxu0 %v11991_v35  ;;  %33310 = vmatmul.mubr.f32.vlgmr.msra.gmra.mrb[18].mxu1 %v12432_v15 }
 0x95d   :  { %33313 = vmatpush3.xpose.msra.mxu1 %v12443_v9  ;;  %33284 = vmatprep.mubr.msk.f32.mxu0 %vm35404_vm1, %v39844_v20 }
 0x95e   :  { %v7630_v5 = vcombine.low %v7606_v59, %v7622_v45  ;;  %v7631_v26 = vcombine.high %v7606_v59, %v7622_v45  ;;  %v7646_v2 = vcombine.low %v7613_v54, %v7629_v31  ;;  %v7647_v60 = vcombine.high %v7613_v54, %v7629_v31  ;;  %33287 = vmatprep.subr.mxu0 %v39844_v20 }
 0x95f   :  { %33314 = vmatprep.mubr.msk.f32.mxu1 %vm35404_vm1, %v39844_v20  ;;  %33317 = vmatprep.subr.mxu1 %v39844_v20 }
 0x960   :  { %v7638_v14 = vrot.slane %v7630_v5, %v35778_v29  ;;  %v7645_v8 = vrot.slane %v7631_v26, %v35778_v29  ;;  %v7654_v43 = vrot.slane %v7646_v2, %v35778_v29  ;;  %v7661_v21 = vrot.slane %v7647_v60, %v35778_v29 }
 0x962   :  { %v13008_v24 = vrot.slane %v7638_v14, %v35539_v19  ;;  %v13026_v28 = vcombine.high %v7638_v14, %v39844_v20  ;;  %v13057_v55 = vrot.slane %v7645_v8, %v35539_v19  ;;  %v13075_v47 = vcombine.high %v7645_v8, %v39844_v20 }
 0x963   :  { %33285 = vmatmul.mubr.f32.vlgmr.msra.gmra.mrb[16].mxu0 %v36711_v49  ;;  %v13106_v50 = vrot.slane %v7654_v43, %v35539_v19  ;;  %v13124_v40 = vcombine.high %v7654_v43, %v39844_v20  ;;  %v13173_v10 = vcombine.high %v7661_v21, %v39844_v20  ;;  %v13155_v56 = vrot.slane %v7661_v21, %v35539_v19 }
 0x964   :  { %33288 = vmatpush3.xpose.msra.mxu0 %v36743_v51  ;;  %33315 = vmatmul.mubr.f32.vlgmr.msra.gmra.mrb[18].mxu1 %v36715_v37  ;;  %v36803_v62 = vrot.slane %v13008_v24, %v35778_v29  ;;  %v13033_v41 = vrot.slane %v13026_v28, %v35539_v19  ;;  %v36807_v33 = vrot.slane %v13057_v55, %v35778_v29 }
 0x965   :  { %33318 = vmatpush3.xpose.msra.mxu1 %v36747_v22  ;;  %33289 = vmatprep.mubr.msk.f32.mxu0 %vm35404_vm1, %v39844_v20  ;;  %v13082_v25 = vrot.slane %v13075_v47, %v35539_v19  ;;  %v13131_v6 = vrot.slane %v13124_v40, %v35539_v19  ;;  %v36831_v18 = vrot.slane %v13106_v50, %v35778_v29 }
 0x966   :  { %v13024_v52 = vcombine.high %v36803_v62, %v39844_v20  ;;  %33319 = vmatprep.mubr.msk.f32.mxu1 %vm35404_vm1, %v39844_v20  ;;  %v36818_v63 = vrot.slane %v13033_v41, %v35778_v29  ;;  %v13073_v1 = vcombine.high %v36807_v33, %v39844_v20  ;;  %v13180_v51 = vrot.slane %v13173_v10, %v35539_v19 }
 0x967   :  { %v36823_v39 = vrot.slane %v13082_v25, %v35778_v29  ;;  %v36838_v58 = vrot.slane %v13131_v6, %v35778_v29  ;;  %v13122_v53 = vcombine.high %v36831_v18, %v39844_v20  ;;  %v36847_v32 = vrot.slane %v13155_v56, %v35778_v29 }
 0x968   :  { %13206 = vrot.lane.b32.xlu0 %v13024_v52, %s35394_s21  ;;  %v13049_v15 = vcombine.high %v36818_v63, %v39844_v20  ;;  %v36853_v61 = vrot.slane %v13180_v51, %v35778_v29  ;;  %v13034_v42 = vcombine.high %v13033_v41, %v39844_v20  ;;  %v13058_v35 = vcombine.high %v13057_v55, %v39844_v20 }
 0x969   :  { %v13098_v11 = vcombine.high %v36823_v39, %v39844_v20  ;;  %v13147_v22 = vcombine.high %v36838_v58, %v39844_v20  ;;  %v13083_v30 = vcombine.high %v13082_v25, %v39844_v20  ;;  %v13107_v0 = vcombine.high %v13106_v50, %v39844_v20 }
 0x96a   :  { %13208 = vrot.lane.b32.xlu1 %v13049_v15, %s35394_s21  ;;  %v13196_v57 = vcombine.high %v36853_v61, %v39844_v20  ;;  %v13048_v9 = vrot.slane %v13034_v42, %v35778_v29  ;;  %v13072_v34 = vrot.slane %v13058_v35, %v35778_v29  ;;  %v13132_v48 = vcombine.high %v13131_v6, %v39844_v20 }
 0x96b   :  { %33290 = vmatmul.mubr.f32.vlgmr.msra.gmra.mrb[16].mxu0 %v36711_v49  ;;  %v13171_v49 = vcombine.high %v36847_v32, %v39844_v20  ;;  %v13097_v4 = vrot.slane %v13083_v30, %v35778_v29  ;;  %v13121_v16 = vrot.slane %v13107_v0, %v35778_v29  ;;  %v13156_v44 = vcombine.high %v13155_v56, %v39844_v20 }
 0x96c   :  { %33320 = vmatmul.mubr.f32.vlgmr.msra.gmra.mrb[18].mxu1 %v36715_v37  ;;  %13210 = vrot.lane.b32.xlu0 %v13073_v1, %s35394_s21  ;;  %v13009_v37 = vcombine.high %v13008_v24, %v39844_v20  ;;  %v13146_v17 = vrot.slane %v13132_v48, %v35778_v29  ;;  %v13181_v23 = vcombine.high %v13180_v51, %v39844_v20 }
 0x96d   :  { %v36883_v27 = vrot.slane %v13156_v44, %v35778_v29  ;;  %v13050_v38 = vcombine.high %v13048_v9, %v39844_v20  ;;  %v13074_v46 = vcombine.high %v13072_v34, %v39844_v20  ;;  %v13099_v45 = vcombine.high %v13097_v4, %v39844_v20 }
 0x96e   :  { %13212 = vrot.lane.b32.xlu1 %v13098_v11, %s35394_s21  ;;  %v13023_v36 = vrot.slane %v13009_v37, %v35778_v29  ;;  %v36887_v59 = vrot.slane %v13181_v23, %v35778_v29  ;;  %v13123_v31 = vcombine.high %v13121_v16, %v39844_v20  ;;  %v13148_v5 = vcombine.high %v13146_v17, %v39844_v20 }
 0x970   :  { %13214 = vrot.lane.b32.xlu0 %v13122_v53, %s35394_s21  ;;  %v13025_v54 = vcombine.high %v13023_v36, %v39844_v20 }
 0x972   :  { %13216 = vrot.lane.b32.xlu1 %v13147_v22, %s35394_s21 }
 0x974   :  { %13218 = vrot.lane.b32.xlu0 %v13171_v49, %s35394_s21 }
 0x976   :  { %13220 = vrot.lane.b32.xlu1 %v13196_v57, %s35394_s21 }
 0x978   :  { %13238 = vrot.lane.b32.xlu0 %v13023_v36, %s35405_s8 }
 0x97a   :  { %13240 = vrot.lane.b32.xlu1 %v13048_v9, %s35405_s8 }
 0x97c   :  { %13242 = vrot.lane.b32.xlu0 %v13072_v34, %s35405_s8 }
 0x97e   :  { %13244 = vrot.lane.b32.xlu1 %v13097_v4, %s35405_s8 }
 0x980   :  { %13246 = vrot.lane.b32.xlu0 %v13121_v16, %s35405_s8 }
 0x982   :  { %13248 = vrot.lane.b32.xlu1 %v13146_v17, %s35405_s8 }
 0x984   :  { %13250 = vrot.lane.b32.xlu0 %v36883_v27, %s35405_s8 }
 0x986   :  { %13252 = vrot.lane.b32.xlu1 %v36887_v59, %s35405_s8 }
 0x988   :  { %13270 = vrot.lane.b32.xlu0 %v13025_v54, %s35406_s11 }
 0x98a   :  { %13272 = vrot.lane.b32.xlu1 %v13050_v38, %s35406_s11 }
 0x98c   :  { %13274 = vrot.lane.b32.xlu0 %v13074_v46, %s35406_s11 }
 0x98e   :  { %13276 = vrot.lane.b32.xlu1 %v13099_v45, %s35406_s11 }
 0x990   :  { %13278 = vrot.lane.b32.xlu0 %v13123_v31, %s35406_s11 }
 0x992   :  { %13280 = vrot.lane.b32.xlu1 %v13148_v5, %s35406_s11 }
 0x9da   :  { %v36905_v28 = vpop.permute.xlu0 %13206 }
 0x9dc   :  { %v36907_v55 = vpop.permute.xlu1 %13208 }
 0x9de   :  { %v36909_v47 = vpop.permute.xlu0 %13210 }
 0x9e0   :  { %v36911_v50 = vpop.permute.xlu1 %13212 }
 0x9e2   :  { %v36913_v40 = vpop.permute.xlu0 %13214 }
 0x9e4   :  { %v36915_v41 = vpop.permute.xlu1 %13216 }
 0x9e6   :  { %v36917_v25 = vpop.permute.xlu0 %13218 }
 0x9e8   :  { %v36919_v52 = vpop.permute.xlu1 %13220 }
 0x9ea   :  { %v36921_v6 = vpop.permute.xlu0 %13238 }
 0x9ec   :  { %v36923_v10 = vpop.permute.xlu1 %13240 }
 0x9ee   :  { %v36925_v15 = vpop.permute.xlu0 %13242 }
 0x9f0   :  { %v36927_v1 = vpop.permute.xlu1 %13244 }
 0x9f2   :  { %v36929_v56 = vpop.permute.xlu0 %13246 }
 0x9f4   :  { %v36931_v11 = vpop.permute.xlu1 %13248 }
 0x9f6   :  { %v36933_v51 = vpop.permute.xlu0 %13250 }
 0x9f8   :  { %v36935_v53 = vpop.permute.xlu1 %13252 }
 0x9f9   :  { %39912 = vst [vmem:[#allocation18_spill] sm:$0xff] %v36935_v53 }
 0x9fa   :  { %v36937_v22 = vpop.permute.xlu0 %13270 }
 0x9fc   :  { %v36939_v49 = vpop.permute.xlu1 %13272 }
 0x9fe   :  { %v36941_v37 = vpop.permute.xlu0 %13274 }
 0xa00   :  { %v36943_v57 = vpop.permute.xlu1 %13276 }
 0xa02   :  { %v36945_v42 = vpop.permute.xlu0 %13278 }
 0xa03   :  { %39913 = vst [vmem:[#allocation19_spill] sm:$0xff] %v36945_v42 }
 0xa04   :  { %v36947_v36 = vpop.permute.xlu1 %13280 }
 0xa0c   :  { %v11450_v26 = vpop.f32.mrb[14].mxu0  ;;  %v11902_v2 = vpop.f32.mrb[16].mxu1 }
 0xa0d   :  { %v33231_v60 = vpop.f32.mrb[15].mxu0  ;;  %v33261_v14 = vpop.f32.mrb[17].mxu1  ;;  %12810 = vxpose.xlu1.b32.start.end [1/1] (short) (narrow) %v11450_v26, 8  ;;  %12842 = vxpose.xlu0.b32.start.end [1/1] (short) (narrow) %v11902_v2, 8 }
 0xa3e   :  { %v12354_v8 = vpop.f32.mrb[16].mxu0 }
 0xa3f   :  { %v12806_v43 = vpop.f32.mrb[18].mxu1  ;;  %v33291_v21 = vpop.f32.mrb[17].mxu0  ;;  %12874 = vxpose.xlu0.b32.start.end [1/1] (short) (narrow) %v12354_v8, 8 }
 0xa40   :  { %v33321_v24 = vpop.f32.mrb[19].mxu1  ;;  %12906 = vxpose.xlu1.b32.start.end [1/1] (short) (narrow) %v12806_v43, 8 }
 0xa8d   :  { %v12858_v35 = vpop.trf.xlu0  ;;  %v12826_v9 = vpop.trf.xlu1 }
 0xabf   :  { %v12890_v30 = vpop.trf.xlu0 }
 0xac0   :  { %v12922_v34 = vpop.trf.xlu1  ;;  %v12938_v0 = vcombine.low %v12826_v9, %v12890_v30  ;;  %v12939_v4 = vcombine.high %v12826_v9, %v12890_v30 }
 0xac1   :  { %v12954_v48 = vcombine.low %v12858_v35, %v12922_v34  ;;  %v12955_v16 = vcombine.high %v12858_v35, %v12922_v34 }
 0xac2   :  { %v12946_v44 = vrot.slane %v12938_v0, %v35539_v19  ;;  %v12953_v17 = vrot.slane %v12939_v4, %v35539_v19 }
 0xac3   :  { %v12962_v23 = vrot.slane %v12954_v48, %v35539_v19  ;;  %v12969_v54 = vrot.slane %v12955_v16, %v35539_v19 }
 0xac5   :  { %v12970_v38 = vcombine.low %v12946_v44, %v12962_v23  ;;  %v12971_v46 = vcombine.high %v12946_v44, %v12962_v23  ;;  %v12986_v45 = vcombine.low %v12953_v17, %v12969_v54  ;;  %v12987_v31 = vcombine.high %v12953_v17, %v12969_v54 }
 0xac7   :  { %v12978_v5 = vrot.slane %v12970_v38, %v35778_v29  ;;  %v12985_v26 = vrot.slane %v12971_v46, %v35778_v29  ;;  %v12994_v2 = vrot.slane %v12986_v45, %v35778_v29  ;;  %v13001_v60 = vrot.slane %v12987_v31, %v35778_v29 }
 0xac9   :  { %v13375_v14 = vrot.slane %v12985_v26, %v35539_v19  ;;  %v13326_v8 = vrot.slane %v12978_v5, %v35539_v19  ;;  %v13344_v43 = vcombine.high %v12978_v5, %v39844_v20  ;;  %v13424_v21 = vrot.slane %v12994_v2, %v35539_v19 }
 0xaca   :  { %v13393_v24 = vcombine.high %v12985_v26, %v39844_v20  ;;  %v13473_v0 = vrot.slane %v13001_v60, %v35539_v19  ;;  %v13442_v4 = vcombine.high %v12994_v2, %v39844_v20  ;;  %v13491_v54 = vcombine.high %v13001_v60, %v39844_v20 }
 0xacb   :  { %v36963_v35 = vrot.slane %v13375_v14, %v35778_v29  ;;  %v36966_v9 = vrot.slane %v13326_v8, %v35778_v29  ;;  %v13351_v30 = vrot.slane %v13344_v43, %v35539_v19  ;;  %v36970_v34 = vrot.slane %v13424_v21, %v35778_v29 }
 0xacc   :  { %v13400_v17 = vrot.slane %v13393_v24, %v35539_v19  ;;  %v36985_v23 = vrot.slane %v13473_v0, %v35778_v29  ;;  %v13449_v31 = vrot.slane %v13442_v4, %v35539_v19  ;;  %v13327_v5 = vcombine.high %v13326_v8, %v39844_v20 }
 0xacd   :  { %v13391_v48 = vcombine.high %v36963_v35, %v39844_v20  ;;  %v13342_v16 = vcombine.high %v36966_v9, %v39844_v20  ;;  %v36979_v44 = vrot.slane %v13351_v30, %v35778_v29  ;;  %v13440_v46 = vcombine.high %v36970_v34, %v39844_v20 }
 0xace   :  { %v36993_v45 = vrot.slane %v13400_v17, %v35778_v29  ;;  %v13489_v2 = vcombine.high %v36985_v23, %v39844_v20  ;;  %v37004_v60 = vrot.slane %v13449_v31, %v35778_v29  ;;  %v13498_v43 = vrot.slane %v13491_v54, %v35539_v19 }
 0xacf   :  { %13528 = vrot.lane.b32.xlu1 %v13391_v48, %s35394_s21  ;;  %13524 = vrot.lane.b32.xlu0 %v13342_v16, %s35394_s21  ;;  %v13367_v38 = vcombine.high %v36979_v44, %v39844_v20  ;;  %v13341_v8 = vrot.slane %v13327_v5, %v35778_v29  ;;  %v13376_v48 = vcombine.high %v13375_v14, %v39844_v20 }
 0xad0   :  { %v13416_v26 = vcombine.high %v36993_v45, %v39844_v20  ;;  %v13465_v24 = vcombine.high %v37004_v60, %v39844_v20  ;;  %v37013_v4 = vrot.slane %v13498_v43, %v35778_v29 }
 0xad1   :  { %v13390_v54 = vrot.slane %v13376_v48, %v35778_v29 }
 0xad2   :  { %v13514_v16 = vcombine.high %v37013_v4, %v39844_v20 }
 0xad3   :  { %13526 = vrot.lane.b32.xlu1 %v13367_v38, %s35394_s21  ;;  %13532 = vrot.lane.b32.xlu0 %v13440_v46, %s35394_s21  ;;  %v13352_v38 = vcombine.high %v13351_v30, %v39844_v20  ;;  %v13425_v46 = vcombine.high %v13424_v21, %v39844_v20 }
 0xad5   :  { %v13366_v5 = vrot.slane %v13352_v38, %v35778_v29  ;;  %v13439_v14 = vrot.slane %v13425_v46, %v35778_v29  ;;  %v13392_v38 = vcombine.high %v13390_v54, %v39844_v20 }
 0xad7   :  { %13530 = vrot.lane.b32.xlu1 %v13416_v26, %s35394_s21  ;;  %13536 = vrot.lane.b32.xlu0 %v13489_v2, %s35394_s21  ;;  %v13401_v26 = vcombine.high %v13400_v17, %v39844_v20  ;;  %v13474_v2 = vcombine.high %v13473_v0, %v39844_v20  ;;  %v13343_v17 = vcombine.high %v13341_v8, %v39844_v20 }
 0xad8   :  { %v13499_v0 = vcombine.high %v13498_v43, %v39844_v20  ;;  %v13441_v46 = vcombine.high %v13439_v14, %v39844_v20 }
 0xad9   :  { %v13415_v30 = vrot.slane %v13401_v26, %v35778_v29  ;;  %v13488_v21 = vrot.slane %v13474_v2, %v35778_v29  ;;  %v13172_v26 = vcombine.high %v36883_v27, %v39844_v20  ;;  %v13670_v2 = vld [vmem:[#allocation8 + $0xc0] sm:$0xff] }
 0xadb   :  { %13534 = vrot.lane.b32.xlu1 %v13465_v24, %s35394_s21  ;;  %13556 = vrot.lane.b32.xlu0 %v13341_v8, %s35405_s8  ;;  %v13450_v24 = vcombine.high %v13449_v31, %v39844_v20  ;;  %v13368_v31 = vcombine.high %v13366_v5, %v39844_v20  ;;  %v13417_v43 = vcombine.high %v13415_v30, %v39844_v20 }
 0xadc   :  { %v13490_v8 = vcombine.high %v13488_v21, %v39844_v20 }
 0xadd   :  { %v13464_v48 = vrot.slane %v13450_v24, %v35778_v29  ;;  %v13725_v24 = vand.u32 4294901760, %v13670_v2 }
 0xadf   :  { %13538 = vrot.lane.b32.xlu1 %v13514_v16, %s35394_s21  ;;  %13560 = vrot.lane.b32.xlu0 %v13390_v54, %s35405_s8  ;;  %v13513_v16 = vrot.slane %v13499_v0, %v35778_v29  ;;  %v13466_v54 = vcombine.high %v13464_v48, %v39844_v20 }
 0xae3   :  { %13558 = vrot.lane.b32.xlu1 %v13366_v5, %s35405_s8  ;;  %13564 = vrot.lane.b32.xlu0 %v13439_v14, %s35405_s8  ;;  %v13515_v5 = vcombine.high %v13513_v16, %v39844_v20  ;;  %v13197_v14 = vcombine.high %v36887_v59, %v39844_v20 }
 0xae7   :  { %13562 = vrot.lane.b32.xlu1 %v13415_v30, %s35405_s8  ;;  %13568 = vrot.lane.b32.xlu0 %v13488_v21, %s35405_s8  ;;  %v13671_v30 = vld [vmem:[#allocation8 + $0xc8] sm:$0xff]  ;;  %v13672_v21 = vld [vmem:[#allocation8 + $0xd0] sm:$0xff] }
 0xae8   :  { %v13731_v0 = vand.u32 4294901760, %v13672_v21 }
 0xaeb   :  { %13566 = vrot.lane.b32.xlu1 %v13464_v48, %s35405_s8  ;;  %13588 = vrot.lane.b32.xlu0 %v13343_v17, %s35406_s11  ;;  %v13728_v17 = vand.u32 4294901760, %v13671_v30  ;;  %v13673_v48 = vld [vmem:[#allocation8 + $0xd8] sm:$0xff] }
 0xaec   :  { %v13734_v27 = vand.u32 4294901760, %v13673_v48 }
 0xaef   :  { %13570 = vrot.lane.b32.xlu1 %v13513_v16, %s35405_s8  ;;  %13592 = vrot.lane.b32.xlu0 %v13392_v38, %s35406_s11  ;;  %v37063_v38 = vpack.c.bf16 %v13728_v17, %v13725_v24  ;;  %v13815_v16 = vsub.f32 %v13670_v2, %v13725_v24 }
 0xaf1   :  { %39914 = vst [vmem:[#allocation20_spill] sm:$0xff] %v37063_v38  ;;  %34379 = vmatprep.subr.bf16.mxu0 %v37063_v38  ;;  %v13816_v59 = vand.u32 4294901760, %v13815_v16 }
 0xaf2   :  { %34381 = vmatpush3.bf16.msra.mxu0 %v37063_v38 }
 0xaf3   :  { %13590 = vrot.lane.b32.xlu1 %v13368_v31, %s35406_s11  ;;  %13596 = vrot.lane.b32.xlu0 %v13441_v46, %s35406_s11  ;;  %v37065_v31 = vpack.c.bf16 %v13734_v27, %v13731_v0  ;;  %v13822_v46 = vsub.f32 %v13671_v30, %v13728_v17 }
 0xaf5   :  { %39915 = vst [vmem:[#allocation21_spill] sm:$0xff] %v37065_v31  ;;  %34383 = vmatprep.subr.bf16.mxu0 %v37065_v31  ;;  %v37074_v29 = vpack.c.bf16 %v13822_v46, %v13815_v16 }
 0xaf6   :  { %34385 = vmatpush3.bf16.msra.mxu0 %v37065_v31 }
 0xaf7   :  { %13594 = vrot.lane.b32.xlu1 %v13417_v43, %s35406_s11  ;;  %13600 = vrot.lane.b32.xlu0 %v13490_v8, %s35406_s11  ;;  %v13823_v43 = vand.u32 4294901760, %v13822_v46  ;;  %v13817_v8 = vsub.f32 %v13815_v16, %v13816_v59  ;;  %39917 = vst [vmem:[#allocation23_spill] sm:$0xff] %v37074_v29 }
 0xafb   :  { %13598 = vrot.lane.b32.xlu1 %v13466_v54, %s35406_s11  ;;  %13282 = vrot.lane.b32.xlu0 %v13172_v26, %s35406_s11  ;;  %v13824_v54 = vsub.f32 %v13822_v46, %v13823_v43  ;;  %v13829_v26 = vsub.f32 %v13672_v21, %v13731_v0 }
 0xafd   :  { %v13825_v13 = vand.u32 4294901760, %v13824_v54  ;;  %v13830_v12 = vand.u32 4294901760, %v13829_v26 }
 0xaff   :  { %13602 = vrot.lane.b32.xlu1 %v13515_v5, %s35406_s11  ;;  %v13836_v5 = vsub.f32 %v13673_v48, %v13734_v27  ;;  %v13831_v2 = vsub.f32 %v13829_v26, %v13830_v12  ;;  %v37080_v48 = vpack.c.bf16 %v13823_v43, %v13816_v59 }
 0xb01   :  { %v13837_v7 = vand.u32 4294901760, %v13836_v5  ;;  %v13832_v24 = vand.u32 4294901760, %v13831_v2  ;;  %v37078_v21 = vpack.c.bf16 %v13836_v5, %v13829_v26  ;;  %39920 = vst [vmem:[#allocation26_spill] sm:$0xff] %v37080_v48 }
 0xb03   :  { %13284 = vrot.lane.b32.xlu1 %v13197_v14, %s35406_s11  ;;  %v13818_v14 = vand.u32 4294901760, %v13817_v8  ;;  %v13838_v30 = vsub.f32 %v13836_v5, %v13837_v7  ;;  %39919 = vst [vmem:[#allocation25_spill] sm:$0xff] %v37078_v21  ;;  %v37082_v0 = vpack.c.bf16 %v13837_v7, %v13830_v12 }
 0xb05   :  { %v37071_v20 = vpack.c.bf16 %v13825_v13, %v13818_v14  ;;  %v13839_v17 = vand.u32 4294901760, %v13838_v30  ;;  %39921 = vst [vmem:[#allocation27_spill] sm:$0xff] %v37082_v0 }
 0xb07   :  { %39916 = vst [vmem:[#allocation22_spill] sm:$0xff] %v37071_v20  ;;  %34387 = vmatprep.subr.bf16.mxu0 %v37071_v20  ;;  %v37076_v3 = vpack.c.bf16 %v13839_v17, %v13832_v24 }
 0xb09   :  { %39918 = vst [vmem:[#allocation24_spill] sm:$0xff] %v37076_v3 }
 0xb41   :  { %v13529_v27 = vpop.permute.xlu1 %13528  ;;  %v13525_v8 = vpop.permute.xlu0 %13524 }
 0xb42   :  { %v13612_v17 = vsel %vm3105_vm2, %v36966_v9, %v13525_v8  ;;  %v13614_v48 = vsel %vm3105_vm2, %v36963_v35, %v13529_v27  ;;  %v13295_v9 = vsel %vm3105_vm2, %v36818_v63, %v36907_v55  ;;  %v13294_v35 = vsel %vm3105_vm2, %v36803_v62, %v36905_v28 }
 0xb45   :  { %v13527_v13 = vpop.permute.xlu1 %13526  ;;  %v13533_v54 = vpop.permute.xlu0 %13532 }
 0xb46   :  { %v13613_v21 = vsel %vm3105_vm2, %v36979_v44, %v13527_v13  ;;  %v13304_v44 = vsel %vm13302_vm3, %v13295_v9, %v36923_v10  ;;  %v39922_v9 = vld [vmem:[#allocation18_spill] sm:$0xff] }
 0xb47   :  { %v13313_v63 = vsel %vm13311_vm4, %v13304_v44, %v36939_v49 }
 0xb49   :  { %v13531_v14 = vpop.permute.xlu1 %13530  ;;  %v37084_v31 = vpop.permute.xlu0 %13536 }
 0xb4d   :  { %v13535_v38 = vpop.permute.xlu1 %13534  ;;  %v13557_v2 = vpop.permute.xlu0 %13556 }
 0xb4e   :  { %v13620_v0 = vsel %vm13302_vm3, %v13612_v17, %v13557_v2 }
 0xb51   :  { %v37086_v30 = vpop.permute.xlu1 %13538  ;;  %v13561_v16 = vpop.permute.xlu0 %13560 }
 0xb52   :  { %v13622_v3 = vsel %vm13302_vm3, %v13614_v48, %v13561_v16 }
 0xb55   :  { %v13559_v46 = vpop.permute.xlu1 %13558  ;;  %v13565_v24 = vpop.permute.xlu0 %13564 }
 0xb56   :  { %v13621_v20 = vsel %vm13302_vm3, %v13613_v21, %v13559_v46  ;;  %v13296_v21 = vsel %vm3105_vm2, %v36807_v33, %v36909_v47  ;;  %v13297_v33 = vsel %vm3105_vm2, %v36823_v39, %v36911_v50  ;;  %v13616_v50 = vsel %vm3105_vm2, %v36970_v34, %v13533_v54 }
 0xb57   :  { %v13305_v47 = vsel %vm13302_vm3, %v13296_v21, %v36925_v15  ;;  %v13617_v15 = vsel %vm3105_vm2, %v37004_v60, %v13535_v38  ;;  %v13298_v34 = vsel %vm3105_vm2, %v36831_v18, %v36913_v40  ;;  %v13299_v60 = vsel %vm3105_vm2, %v36838_v58, %v36915_v41 }
 0xb58   :  { %v13300_v38 = vsel %vm3105_vm2, %v36847_v32, %v36917_v25  ;;  %v13308_v58 = vsel %vm13302_vm3, %v13299_v60, %v36931_v11  ;;  %v13301_v11 = vsel %vm3105_vm2, %v36853_v61, %v36919_v52  ;;  %v39925_v60 = vld [vmem:[#allocation24_spill] sm:$0xff] }
 0xb59   :  { %v13563_v26 = vpop.permute.xlu1 %13562  ;;  %v37088_v5 = vpop.permute.xlu0 %13568 }
 0xb5d   :  { %v13567_v59 = vpop.permute.xlu1 %13566  ;;  %v13589_v7 = vpop.permute.xlu0 %13588 }
 0xb5e   :  { %v13628_v29 = vsel %vm13311_vm4, %v13620_v0, %v13589_v7 }
 0xb5f   :  { %v13644_v48 = vrot.slane %v13628_v29, 7 }
 0xb61   :  { %v13571_v12 = vpop.permute.xlu1 %13570  ;;  %v13593_v43 = vpop.permute.xlu0 %13592 }
 0xb62   :  { %v13630_v8 = vsel %vm13311_vm4, %v13622_v3, %v13593_v43  ;;  %v13615_v3 = vsel %vm3105_vm2, %v36993_v45, %v13531_v14  ;;  %v13624_v14 = vsel %vm13302_vm3, %v13616_v50, %v13565_v24  ;;  %v13619_v24 = vsel %vm3105_vm2, %v37013_v4, %v37086_v30  ;;  %v110_v50 = vld [vmem:[#allocation5 + $0x4] sm:$0x3] }
 0xb63   :  { %v13623_v62 = vsel %vm13302_vm3, %v13615_v3, %v13563_v26  ;;  %v13646_v28 = vrot.slane %v13630_v8, 7  ;;  %v13627_v32 = vsel %vm13302_vm3, %v13619_v24, %v13571_v12  ;;  %v13309_v12 = vsel %vm13302_vm3, %v13300_v38, %v36933_v51  ;;  %v39923_v8 = vld [vmem:[#allocation19_spill] sm:$0xff]  ;;  %v112_v38 = vld [vmem:[#allocation5 + $0x8] sm:$0x3]  ;;  %v115_v24 = vld [vmem:[#allocation5 + $0xe] sm:$0x3] }
 0xb65   :  { %v13591_v42 = vpop.permute.xlu1 %13590  ;;  %v13597_v53 = vpop.permute.xlu0 %13596 }
 0xb66   :  { %v13629_v2 = vsel %vm13311_vm4, %v13621_v20, %v13591_v42  ;;  %v13303_v20 = vsel %vm13302_vm3, %v13294_v35, %v36921_v6  ;;  %v13306_v6 = vsel %vm13302_vm3, %v13297_v33, %v36927_v1  ;;  %v13314_v42 = vsel %vm13311_vm4, %v13305_v47, %v36941_v37 }
 0xb67   :  { %v13645_v0 = vrot.slane %v13629_v2, 7  ;;  %v13312_v10 = vsel %vm13311_vm4, %v13303_v20, %v36937_v22  ;;  %v13315_v39 = vsel %vm13311_vm4, %v13306_v6, %v36943_v57  ;;  %v13625_v1 = vsel %vm13302_vm3, %v13617_v15, %v13567_v59  ;;  %v111_v15 = vld [vmem:[#allocation5 + $0x6] sm:$0x3] }
 0xb68   :  { %v13661_v45 = vsel %vm13660_vm5, %v13312_v10, %v13644_v48  ;;  %v13663_v37 = vsel %vm13660_vm5, %v13314_v42, %v13646_v28  ;;  %v13632_v26 = vsel %vm13311_vm4, %v13624_v14, %v13597_v53  ;;  %v13618_v53 = vsel %vm3105_vm2, %v36985_v23, %v37084_v31  ;;  %v125_v14 = vld [vmem:[#allocation7 + $0x2] sm:$0x3] }
 0xb69   :  { %v13662_v29 = vsel %vm13660_vm5, %v13313_v63, %v13645_v0  ;;  %v13595_v55 = vpop.permute.xlu1 %13594  ;;  %v13601_v13 = vpop.permute.xlu0 %13600  ;;  %v13626_v40 = vsel %vm13302_vm3, %v13618_v53, %v37088_v5  ;;  %v13648_v41 = vrot.slane %v13632_v26, 7  ;;  %v13317_v23 = vsel %vm13311_vm4, %v13308_v58, %v36947_v36  ;;  %v39924_v26 = vld [vmem:[#allocation22_spill] sm:$0xff]  ;;  %v114_v53 = vld [vmem:[#allocation5 + $0xc] sm:$0x3] }
 0xb6a   :  { %v13631_v49 = vsel %vm13311_vm4, %v13623_v62, %v13595_v55  ;;  %v13686_v22 = vcombine.low %v13661_v45, %v13662_v29  ;;  %v13634_v4 = vsel %vm13311_vm4, %v13626_v40, %v13601_v13  ;;  %v13307_v5 = vsel %vm13302_vm3, %v13298_v34, %v36929_v56  ;;  %v108_v13 = vld [vmem:[#allocation5] sm:$0x3]  ;;  %v130_v58 = vld [vmem:[#allocation7 + $0xc] sm:$0x3] }
 0xb6b   :  { %v13647_v27 = vrot.slane %v13631_v49, 7  ;;  %v13310_v36 = vsel %vm13302_vm3, %v13301_v11, %v39922_v9  ;;  %v13316_v2 = vsel %vm13311_vm4, %v13307_v5, %v39923_v8  ;;  %v13650_v52 = vrot.slane %v13634_v4, 7  ;;  %v119_v4 = vld [vmem:[#allocation5 + $0x16] sm:$0x3]  ;;  %v133_v11 = vld [vmem:[#allocation7 + $0x12] sm:$0x3] }
 0xb6c   :  { %v13694_v59 = vrot.slane %v13686_v22, %v35539_v19  ;;  %v13665_v61 = vsel %vm13660_vm5, %v13316_v2, %v13648_v41  ;;  %v124_v22 = vld [vmem:[#allocation7] sm:$0x3]  ;;  %v131_v41 = vld [vmem:[#allocation7 + $0xe] sm:$0x3]  ;;  %v134_v5 = vld [vmem:[#allocation7 + $0x14] sm:$0x3] }
 0xb6d   :  { %v13664_v16 = vsel %vm13660_vm5, %v13315_v39, %v13647_v27  ;;  %v13599_v46 = vpop.permute.xlu1 %13598  ;;  %v13283_v25 = vpop.permute.xlu0 %13282  ;;  %v109_v39 = vld [vmem:[#allocation5 + $0x2] sm:$0x3]  ;;  %v15235_v8 = vadd.f32 %v131_v41, %v115_v24  ;;  %v120_v2 = vld [vmem:[#allocation5 + $0x18] sm:$0x3]  ;;  %v39930_v24 = vld [vmem:[#allocation26_spill] sm:$0xff] }
 0xb6e   :  { %v13687_v7 = vcombine.low %v13663_v37, %v13664_v16  ;;  %v13633_v57 = vsel %vm13311_vm4, %v13625_v1, %v13599_v46  ;;  %v13318_v35 = vsel %vm13311_vm4, %v13309_v12, %v13283_v25  ;;  %v126_v37 = vld [vmem:[#allocation7 + $0x4] sm:$0x3]  ;;  %v127_v16 = vld [vmem:[#allocation7 + $0x6] sm:$0x3]  ;;  %v15228_v46 = vadd.f32 %v124_v22, %v108_v13  ;;  %v116_v25 = vld [vmem:[#allocation5 + $0x10] sm:$0x3] }
 0xb6f   :  { %v13649_v54 = vrot.slane %v13633_v57, 7  ;;  %v13667_v63 = vsel %vm13660_vm5, %v13318_v35, %v13650_v52  ;;  %v15230_v57 = vadd.f32 %v126_v37, %v110_v50  ;;  %v15231_v34 = vadd.f32 %v127_v16, %v111_v15  ;;  %v135_v12 = vld [vmem:[#allocation7 + $0x16] sm:$0x3]  ;;  %v121_v35 = vld [vmem:[#allocation5 + $0x1a] sm:$0x3]  ;;  %v39928_v50 = vld [vmem:[#allocation20_spill] sm:$0xff] }
 0xb70   :  { %v13701_v18 = vrot.slane %v13687_v7, %v35539_v19  ;;  %v15229_v7 = vadd.f32 %v125_v14, %v109_v39  ;;  %v122_v52 = vld [vmem:[#allocation5 + $0x1c] sm:$0x3] }
 0xb71   :  { %v13603_v43 = vpop.permute.xlu1 %13602  ;;  %v13666_v17 = vsel %vm13660_vm5, %v13317_v23, %v13649_v54  ;;  %v113_v54 = vld [vmem:[#allocation5 + $0xa] sm:$0x3]  ;;  %v39926_v23 = vld [vmem:[#allocation23_spill] sm:$0xff] }
 0xb72   :  { %v13702_v31 = vcombine.low %v13694_v59, %v13701_v18  ;;  %v13635_v30 = vsel %vm13311_vm4, %v13627_v32, %v13603_v43  ;;  %v13703_v51 = vcombine.low %v13665_v61, %v13666_v17  ;;  %v128_v59 = vld [vmem:[#allocation7 + $0x8] sm:$0x3]  ;;  %v129_v18 = vld [vmem:[#allocation7 + $0xa] sm:$0x3]  ;;  %v15269_v40 = vcombine.low %v15228_v46, %v15229_v7  ;;  %v117_v43 = vld [vmem:[#allocation5 + $0x12] sm:$0x3] }
 0xb73   :  { %v13651_v48 = vrot.slane %v13635_v30, 7  ;;  %v15270_v32 = vcombine.low %v15230_v57, %v15231_v34  ;;  %v132_v30 = vld [vmem:[#allocation7 + $0x10] sm:$0x3]  ;;  %v15232_v17 = vadd.f32 %v128_v59, %v112_v38  ;;  %v15233_v9 = vadd.f32 %v129_v18, %v113_v54  ;;  %v15246_v38 = vld [vmem:[#allocation8 + $0x88] sm:$0xff] }
 0xb74   :  { %v13720_v44 = vsel %vm200_vm0, %v13702_v31, 0  ;;  %v13711_v29 = vrot.slane %v13703_v51, %v35539_v19  ;;  %v118_v31 = vld [vmem:[#allocation5 + $0x14] sm:$0x3]  ;;  %v39927_v51 = vld [vmem:[#allocation25_spill] sm:$0xff]  ;;  %v15349_v18 = vand.u32 4294901760, %v15246_v38 }
 0xb75   :  { %v13285_v56 = vpop.permute.xlu1 %13284  ;;  %v37187_v0 = vand.u32 4294901760, %v13720_v44  ;;  %v15284_v61 = vrot.slane %v15270_v32, %v35539_v19  ;;  %v15248_v32 = vld [vmem:[#allocation8 + $0x98] sm:$0xff] }
 0xb76   :  { %v13319_v21 = vsel %vm13311_vm4, %v13310_v36, %v13285_v56  ;;  %v15234_v36 = vadd.f32 %v130_v58, %v114_v53  ;;  %v136_v56 = vld [vmem:[#allocation7 + $0x18] sm:$0x3]  ;;  %v15247_v58 = vld [vmem:[#allocation8 + $0x90] sm:$0xff] }
 0xb77   :  { %v13668_v3 = vsel %vm13660_vm5, %v13319_v21, %v13651_v48  ;;  %v37193_v20 = vsub.f32 %v13720_v44, %v37187_v0  ;;  %v15277_v44 = vrot.slane %v15269_v40, %v35539_v19  ;;  %v123_v48 = vld [vmem:[#allocation5 + $0x1e] sm:$0x3]  ;;  %v15236_v21 = vadd.f32 %v132_v30, %v116_v25 }
 0xb78   :  { %v13704_v62 = vcombine.low %v13667_v63, %v13668_v3  ;;  %v15237_v63 = vadd.f32 %v133_v11, %v117_v43  ;;  %v15238_v3 = vadd.f32 %v134_v5, %v118_v31  ;;  %v15352_v41 = vand.u32 4294901760, %v15247_v58  ;;  %v39931_v31 = vld [vmem:[#allocation27_spill] sm:$0xff] }
 0xb79   :  { %v13795_v28 = vand.u32 4294901760, %v37193_v20  ;;  %v15285_v15 = vcombine.low %v15277_v44, %v15284_v61  ;;  %v37251_v11 = vsub.f32 %v15246_v38, %v15349_v18 }
 0xb7a   :  { %v13718_v55 = vrot.slane %v13704_v62, %v35539_v19  ;;  %v15239_v62 = vadd.f32 %v135_v12, %v119_v4  ;;  %v15303_v22 = vcombine.low %v15236_v21, %v15237_v63  ;;  %v15355_v4 = vand.u32 4294901760, %v15248_v32 }
 0xb7b   :  { %v13796_v33 = vsub.f32 %v37193_v20, %v13795_v28  ;;  %v15337_v7 = vsel %vm200_vm0, %v15285_v15, 0 }
 0xb7c   :  { %v13719_v47 = vcombine.low %v13711_v29, %v13718_v55  ;;  %v137_v29 = vld [vmem:[#allocation7 + $0x1a] sm:$0x3]  ;;  %v138_v55 = vld [vmem:[#allocation7 + $0x1c] sm:$0x3]  ;;  %v15304_v14 = vcombine.low %v15238_v3, %v15239_v62  ;;  %v15311_v57 = vrot.slane %v15303_v22, %v35539_v19  ;;  %v37235_v54 = vand.u32 4294901760, %v15337_v7 }
 0xb7d   :  { %v13797_v10 = vand.u32 4294901760, %v13796_v33  ;;  %v139_v33 = vld [vmem:[#allocation7 + $0x1e] sm:$0x3]  ;;  %v15242_v13 = vadd.f32 %v138_v55, %v122_v52  ;;  %v37296_v62 = vpack.c.bf16 %v15355_v4, %v15352_v41 }
 0xb7e   :  { %v13722_v49 = vsel %vm200_vm0, %v13719_v47, 0  ;;  %v15286_v47 = vcombine.low %v15232_v17, %v15233_v9  ;;  %v15243_v39 = vadd.f32 %v139_v33, %v123_v48  ;;  %v15318_v34 = vrot.slane %v15304_v14, %v35539_v19 }
 0xb7f   :  { %v37202_v6 = vand.u32 4294901760, %v13722_v49  ;;  %33330 = vmatprep.mubr.f32.mxu0 %v13797_v10  ;;  %v15287_v10 = vcombine.low %v15234_v36, %v15235_v8  ;;  %v37245_v25 = vsub.f32 %v15337_v7, %v37235_v54  ;;  %v15464_v36 = vand.u32 4294901760, %v37251_v11 }
 0xb80   :  { %v15321_v46 = vcombine.low %v15242_v13, %v15243_v39  ;;  %v15319_v40 = vcombine.low %v15311_v57, %v15318_v34  ;;  %v37264_v8 = vsub.f32 %v15247_v58, %v15352_v41  ;;  %v39932_v34 = vmov 0.0  }
 0xb81   :  { %v37205_v42 = vsub.f32 %v13722_v49, %v37202_v6  ;;  %v15240_v49 = vadd.f32 %v136_v56, %v120_v2  ;;  %v15301_v37 = vrot.slane %v15287_v10, %v35539_v19  ;;  %v15416_v5 = vand.u32 4294901760, %v37245_v25 }
 0xb82   :  { %v15335_v53 = vrot.slane %v15321_v46, %v35539_v19  ;;  %v37266_v2 = vsub.f32 %v15248_v32, %v15355_v4  ;;  %v35214_v4 = vld [vmem:[#allocation2 + $0x8] sm:$0x3] }
 0xb83   :  { %v13805_v45 = vand.u32 4294901760, %v37205_v42  ;;  %v15417_v52 = vsub.f32 %v37245_v25, %v15416_v5 }
 0xb84   :  { %v15478_v21 = vand.u32 4294901760, %v37266_v2 }
 0xb85   :  { %v13806_v27 = vsub.f32 %v37205_v42, %v13805_v45 }
 0xb87   :  { %v13807_v1 = vand.u32 4294901760, %v13806_v27  ;;  %v15241_v27 = vadd.f32 %v137_v29, %v121_v35  ;;  %v15418_v29 = vand.u32 4294901760, %v15417_v52 }
 0xb89   :  { %33331 = vmatmul.mubr.f32.vlgmr.msra.gmra.mrb[18].mxu0 %v13807_v1  ;;  %v15294_v1 = vrot.slane %v15286_v47, %v35539_v19  ;;  %v15320_v16 = vcombine.low %v15240_v49, %v15241_v27  ;;  %v15479_v49 = vsub.f32 %v37266_v2, %v15478_v21 }
 0xb8a   :  { %34389 = vmatpush3.bf16.msra.mxu0 %v39924_v26  ;;  %33341 = vmatprep.mubr.f32.mxu0 %v37187_v0  ;;  %v39929_v26 = vld [vmem:[#allocation21_spill] sm:$0xff] }
 0xb8b   :  { %34391 = vmatprep.subr.bf16.mxu0 %v39925_v60  ;;  %v15480_v22 = vand.u32 4294901760, %v15479_v49 }
 0xb8e   :  { %34393 = vmatpush3.bf16.msra.mxu0 %v39925_v60  ;;  %v15245_v60 = vld [vmem:[#allocation8 + $0x80] sm:$0xff] }
 0xb8f   :  { %34395 = vmatprep.subr.bf16.mxu0 %v39926_v23  ;;  %v15346_v59 = vand.u32 4294901760, %v15245_v60 }
 0xb91   :  { %33342 = vmatmul.mubr.f32.vlgmr.msra.gmra.mrb[18].mxu0 %v37202_v6  ;;  %v37249_v30 = vsub.f32 %v15245_v60, %v15346_v59  ;;  %v37276_v61 = vpack.c.bf16 %v15349_v18, %v15346_v59  ;;  %v39933_v60 = vld [vmem:[#allocation16_spill] sm:$0xff] }
 0xb92   :  { %34397 = vmatpush3.bf16.msra.mxu0 %v39926_v23  ;;  %33352 = vmatprep.mubr.f32.mxu0 %v37193_v20  ;;  %v15302_v20 = vcombine.low %v15294_v1, %v15301_v37  ;;  %v13676_v38 = vsub.s32 6, %v39933_v60  ;;  %v39860_v49 = vsub.s32 4, %v39933_v60 }
 0xb93   :  { %34399 = vmatprep.subr.bf16.mxu0 %v39927_v51  ;;  %v15457_v9 = vand.u32 4294901760, %v37249_v30  ;;  %v34490_v46 = vpack.c.bf16 %v37251_v11, %v37249_v30 }
 0xb94   :  { %v15339_v43 = vsel %vm200_vm0, %v15302_v20, 0  ;;  %v35213_v20 = vld [vmem:[#allocation10] sm:$0xff] }
 0xb95   :  { %v15458_v56 = vsub.f32 %v37249_v30, %v15457_v9  ;;  %v34506_v7 = vpack.c.bf16 %v15464_v36, %v15457_v9 }
 0xb96   :  { %34401 = vmatpush3.bf16.msra.mxu0 %v39927_v51  ;;  %v15465_v51 = vsub.f32 %v37251_v11, %v15464_v36  ;;  %v35215_v11 = vld [vmem:[#allocation2 + $0xa] sm:$0x3]  ;;  %v35218_v36 = vld [vmem:[#allocation2 + $0xc] sm:$0x3] }
 0xb97   :  { %34403 = vmatprep.subr.bf16.mxu0 %v39928_v50  ;;  %v15459_v33 = vand.u32 4294901760, %v15458_v56 }
 0xb98   :  { %v15466_v47 = vand.u32 4294901760, %v15465_v51 }
 0xb99   :  { %33353 = vmatmul.mubr.f32.vlgmr.msra.gmra.mrb[18].mxu0 %v37205_v42  ;;  %v15341_v42 = vsel %vm200_vm0, %v15319_v40, 0 }
 0xb9a   :  { %34405 = vmatpush3.bf16.msra.mxu0 %v39928_v50  ;;  %33363 = vmatprep.mubr.f32.mxu0 %v13795_v28  ;;  %v15328_v28 = vrot.slane %v15320_v16, %v35539_v19  ;;  %v37258_v12 = vand.u32 4294901760, %v15341_v42 }
 0xb9b   :  { %34407 = vmatprep.subr.bf16.mxu0 %v39929_v26 }
 0xb9c   :  { %v15336_v23 = vcombine.low %v15328_v28, %v15335_v53  ;;  %v37282_v48 = vsub.f32 %v15341_v42, %v37258_v12  ;;  %v13677_v28 = vrot.slane %v35213_v20, %v13676_v38  ;;  %v35410_v38 = vmov 1987475062  }
 0xb9e   :  { %34409 = vmatpush3.bf16.msra.mxu0 %v39929_v26  ;;  %v15343_v17 = vsel %vm200_vm0, %v15336_v23, 0  ;;  %v15436_v55 = vand.u32 4294901760, %v37282_v48 }
 0xb9f   :  { %34411 = vmatprep.subr.bf16.mxu0 %v39930_v24  ;;  %v37272_v44 = vand.u32 4294901760, %v15343_v17 }
 0xba0   :  { %v15437_v39 = vsub.f32 %v37282_v48, %v15436_v55 }
 0xba1   :  { %33364 = vmatmul.mubr.f32.vlgmr.msra.gmra.mrb[18].mxu0 %v13805_v45  ;;  %v37254_v45 = vand.u32 4294901760, %v15339_v43  ;;  %v15445_v3 = vsub.f32 %v15343_v17, %v37272_v44  ;;  %v35217_v17 = vld [vmem:[#allocation2 + $0x2] sm:$0x3] }
 0xba2   :  { %34413 = vmatpush3.bf16.msra.mxu0 %v39930_v24  ;;  %33374 = vmatprep.mubr.f32.mxu0 %v37187_v0  ;;  %v15438_v37 = vand.u32 4294901760, %v15437_v39 }
 0xba3   :  { %34415 = vmatprep.subr.bf16.mxu0 %v39931_v31  ;;  %v37270_v35 = vsub.f32 %v15339_v43, %v37254_v45  ;;  %v15446_v13 = vand.u32 4294901760, %v15445_v3 }
 0xba5   :  { %v15426_v63 = vand.u32 4294901760, %v37270_v35  ;;  %v15447_v1 = vsub.f32 %v15445_v3, %v15446_v13 }
 0xba6   :  { %34417 = vmatpush3.bf16.msra.mxu0 %v39931_v31 }
 0xba7   :  { %34419 = vmatprep.subr.bf16.mxu0 %v39928_v50  ;;  %v15427_v27 = vsub.f32 %v37270_v35, %v15426_v63  ;;  %v15448_v16 = vand.u32 4294901760, %v15447_v1 }
 0xba9   :  { %33375 = vmatmul.mubr.f32.vlgmr.msra.gmra.mrb[18].mxu0 %v37202_v6  ;;  %v15428_v14 = vand.u32 4294901760, %v15427_v27  ;;  %v15252_v27 = vrot.slane %v35213_v20, %v39860_v49  ;;  %v14381_v20 = vunpack.c.l.s4 %v35410_v38  ;;  %v14649_v38 = vld [vmem:[#allocation8 + $0x78] sm:$0xff] }
 0xbaa   :  { %34421 = vmatpush3.bf16.msra.mxu0 %v39928_v50  ;;  %33385 = vmatprep.mubr.f32.mxu0 %v37187_v0  ;;  %v15471_v0 = vand.u32 4294901760, %v37264_v8  ;;  %v34482_v50 = vpack.c.bf16 %v15466_v47, %v15459_v33 }
 0xbab   :  { %34423 = vmatprep.subr.bf16.mxu0 %v39929_v26 }
 0xbac   :  { %v15472_v10 = vsub.f32 %v37264_v8, %v15471_v0  ;;  %v34510_v57 = vpack.c.bf16 %v15478_v21, %v15471_v0 }
 0xbae   :  { %34425 = vmatpush3.bf16.msra.mxu0 %v39929_v26  ;;  %v15473_v15 = vand.u32 4294901760, %v15472_v10  ;;  %v34494_v26 = vpack.c.bf16 %v37266_v2, %v37264_v8  ;;  %v35219_v2 = vld [vmem:[#allocation2 + $0xe] sm:$0x3] }
 0xbaf   :  { %34475 = vmatprep.subr.bf16.mxu0 %v37276_v61 }
 0xbb1   :  { %33386 = vmatmul.mubr.f32.vlgmr.msra.gmra.mrb[18].mxu0 %v37202_v6  ;;  %v34486_v6 = vpack.c.bf16 %v15480_v22, %v15473_v15 }
 0xbb2   :  { %34477 = vmatpush3.bf16.msra.mxu0 %v37276_v61  ;;  %33462 = vmatprep.mubr.f32.mxu0 %v15418_v29 }
 0xbb3   :  { %34479 = vmatprep.subr.bf16.mxu0 %v37296_v62 }
 0xbb6   :  { %34481 = vmatpush3.bf16.msra.mxu0 %v37296_v62 }
 0xbb7   :  { %34483 = vmatprep.subr.bf16.mxu0 %v34482_v50 }
 0xbb9   :  { %33463 = vmatmul.mubr.f32.vlgmr.msra.gmra.mrb[20].mxu0 %v15428_v14 }
 0xbba   :  { %34485 = vmatpush3.bf16.msra.mxu0 %v34482_v50  ;;  %33465 = vmatprep.mubr.f32.mxu0 %v15438_v37 }
 0xbbb   :  { %34487 = vmatprep.subr.bf16.mxu0 %v34486_v6 }
 0xbbd   :  { %33466 = vmatmul.mubr.f32.gmra.mrb[22].mxu0 %v15448_v16 }
 0xbbe   :  { %34489 = vmatpush3.bf16.msra.mxu0 %v34486_v6  ;;  %33476 = vmatprep.mubr.f32.mxu0 %v37235_v54  ;;  %v35407_v6 = vmov 269488144  }
 0xbbf   :  { %34491 = vmatprep.subr.bf16.mxu0 %v34490_v46  ;;  %v14360_v16 = vunpack.c.l.s4 %v35407_v6  ;;  %v14646_v6 = vld [vmem:[#allocation8 + $0x60] sm:$0xff] }
 0xbc1   :  { %33477 = vmatmul.mubr.f32.vlgmr.msra.gmra.mrb[20].mxu0 %v37254_v45 }
 0xbc2   :  { %34493 = vmatpush3.bf16.msra.mxu0 %v34490_v46  ;;  %33479 = vmatprep.mubr.f32.mxu0 %v37258_v12  ;;  %v35408_v46 = vmov 842150450  }
 0xbc3   :  { %34495 = vmatprep.subr.bf16.mxu0 %v34494_v26 }
 0xbc5   :  { %33480 = vmatmul.mubr.f32.gmra.mrb[22].mxu0 %v37272_v44 }
 0xbc6   :  { %34497 = vmatpush3.bf16.msra.mxu0 %v34494_v26  ;;  %33490 = vmatprep.mubr.f32.mxu0 %v37245_v25  ;;  %v14367_v26 = vunpack.c.l.s4 %v35408_v46  ;;  %v14701_v46 = vand.u32 4294901760, %v14646_v6 }
 0xbc7   :  { %34499 = vmatprep.subr.bf16.mxu0 %v37276_v61 }
 0xbc9   :  { %33491 = vmatmul.mubr.f32.vlgmr.msra.gmra.mrb[20].mxu0 %v37270_v35 }
 0xbca   :  { %34501 = vmatpush3.bf16.msra.mxu0 %v37276_v61  ;;  %33493 = vmatprep.mubr.f32.mxu0 %v37282_v48  ;;  %v35221_v48 = vld [vmem:[#allocation2 + $0x6] sm:$0x3] }
 0xbcb   :  { %34503 = vmatprep.subr.bf16.mxu0 %v37296_v62 }
 0xbcd   :  { %33494 = vmatmul.mubr.f32.gmra.mrb[22].mxu0 %v15445_v3 }
 0xbce   :  { %34505 = vmatpush3.bf16.msra.mxu0 %v37296_v62  ;;  %33504 = vmatprep.mubr.f32.mxu0 %v15416_v5  ;;  %v35216_v5 = vld [vmem:[#allocation2] sm:$0x3] }
 0xbcf   :  { %34507 = vmatprep.subr.bf16.mxu0 %v34506_v7 }
 0xbd1   :  { %33505 = vmatmul.mubr.f32.vlgmr.msra.gmra.mrb[20].mxu0 %v15426_v63 }
 0xbd2   :  { %34509 = vmatpush3.bf16.msra.mxu0 %v34506_v7  ;;  %33507 = vmatprep.mubr.f32.mxu0 %v15436_v55  ;;  %v35409_v7 = vmov 1414812756  }
 0xbd3   :  { %34511 = vmatprep.subr.bf16.mxu0 %v34510_v57 }
 0xbd5   :  { %33508 = vmatmul.mubr.f32.gmra.mrb[22].mxu0 %v15446_v13 }
 0xbd6   :  { %34513 = vmatpush3.bf16.msra.mxu0 %v34510_v57  ;;  %33518 = vmatprep.mubr.f32.mxu0 %v37235_v54  ;;  %v14374_v57 = vunpack.c.l.s4 %v35409_v7 }
 0xbd7   :  { %34515 = vmatprep.subr.bf16.mxu0 %v37276_v61 }
 0xbd9   :  { %33519 = vmatmul.mubr.f32.vlgmr.msra.gmra.mrb[20].mxu0 %v37254_v45 }
 0xbda   :  { %34517 = vmatpush3.bf16.msra.mxu0 %v37276_v61  ;;  %33521 = vmatprep.mubr.f32.mxu0 %v37258_v12  ;;  %v35220_v61 = vld [vmem:[#allocation2 + $0x4] sm:$0x3] }
 0xbdb   :  { %34519 = vmatprep.subr.bf16.mxu0 %v37296_v62 }
 0xbdd   :  { %33522 = vmatmul.mubr.f32.gmra.mrb[22].mxu0 %v37272_v44 }
 0xbde   :  { %34521 = vmatpush3.bf16.msra.mxu0 %v37296_v62  ;;  %33532 = vmatprep.mubr.f32.mxu0 %v37235_v54 }
 0xbdf   :  { %33622 = vmatprep.subr.mxu0 %v39932_v34 }
 0xbe1   :  { %33533 = vmatmul.mubr.f32.vlgmr.msra.gmra.mrb[20].mxu0 %v37254_v45 }
 0xbe2   :  { %33535 = vmatprep.mubr.f32.mxu0 %v37258_v12 }
 0xbe5   :  { %33536 = vmatmul.mubr.f32.gmra.mrb[22].mxu0 %v37272_v44 }
 0xbe6   :  { %33624 = vmatprep.mubr.msk.f32.mxu0 %vm35404_vm1, %v39932_v34 }
 0xc84   :  { %v33387_v53 = vpop.f32.mrb[18].mxu0 }
 0xc85   :  { %v34672_v24 = vadd.f32 %v33387_v53, %v13677_v28  ;;  %v14242_v59 = vpop.f32.mrb[19].mxu0  ;;  %v14368_v53 = vunpack.c.0.s8 %v14367_v26 }
 0xc86   :  { %v34673_v18 = vadd.f32 %v14242_v59, %v13677_v28  ;;  %v14361_v28 = vunpack.c.0.s8 %v14360_v16  ;;  %v14382_v59 = vunpack.c.0.s8 %v14381_v20  ;;  %v14647_v16 = vld [vmem:[#allocation8 + $0x68] sm:$0xff] }
 0xc87   :  { %v14271_v54 = vcombine.high %v34672_v24, %v34672_v24  ;;  %v14278_v58 = vrot.slane %v34672_v24, %v35539_v19  ;;  %v14375_v24 = vunpack.c.0.s8 %v14374_v57  ;;  %v14704_v26 = vand.u32 4294901760, %v14647_v16  ;;  %v14648_v57 = vld [vmem:[#allocation8 + $0x70] sm:$0xff] }
 0xc88   :  { %v14254_v40 = vcombine.high %v34673_v18, %v34673_v18  ;;  %v14261_v32 = vrot.slane %v34673_v18, %v35539_v19  ;;  %v37405_v18 = vsub.s32 %v14361_v28, %v39933_v60  ;;  %v14707_v20 = vand.u32 4294901760, %v14648_v57 }
 0xc89   :  { %v14285_v41 = vrot.slane %v14271_v54, %v35539_v19  ;;  %v14286_v25 = vcombine.high %v14278_v58, %v14278_v58  ;;  %v37349_v30 = vadd.f32 %v35214_v4, %v14278_v58  ;;  %v37408_v54 = vsub.s32 %v14368_v53, %v39933_v60 }
 0xc8a   :  { %v14268_v43 = vrot.slane %v14254_v40, %v35539_v19  ;;  %v14269_v23 = vcombine.high %v14261_v32, %v14261_v32  ;;  %v37353_v12 = vadd.f32 %v35216_v5, %v14261_v32  ;;  %39934 = vst [vmem:[#allocation18_spill] sm:$0xff] %v37405_v18  ;;  %v37411_v58 = vsub.s32 %v14375_v24, %v39933_v60 }
 0xc8b   :  { %v14287_v31 = vcombine.high %v14285_v41, %v14285_v41  ;;  %v37351_v42 = vadd.f32 %v35215_v11, %v14286_v25  ;;  %v37357_v8 = vadd.f32 %v35218_v36, %v14285_v41  ;;  %39935 = vst [vmem:[#allocation19_spill] sm:$0xff] %v37408_v54  ;;  %v37414_v40 = vsub.s32 %v14382_v59, %v39933_v60 }
 0xc8c   :  { %v14270_v45 = vcombine.high %v14268_v43, %v14268_v43  ;;  %v37355_v9 = vadd.f32 %v35217_v17, %v14269_v23  ;;  %v37363_v52 = vadd.f32 %v35220_v61, %v14268_v43  ;;  %39936 = vst [vmem:[#allocation22_spill] sm:$0xff] %v37411_v58  ;;  %v37480_v7 = vpack.c.bf16 %v14704_v26, %v14701_v46 }
 0xc8d   :  { %v37359_v35 = vadd.f32 %v35219_v2, %v14287_v31  ;;  %v14329_v44 = vcombine.low %v37349_v30, %v37351_v42  ;;  %39937 = vst [vmem:[#allocation24_spill] sm:$0xff] %v37414_v40  ;;  %v14710_v28 = vand.u32 4294901760, %v14649_v38  ;;  %v14791_v24 = vsub.f32 %v14646_v6, %v14701_v46 }
 0xc8e   :  { %v37365_v56 = vadd.f32 %v35221_v48, %v14270_v45  ;;  %v14312_v51 = vcombine.low %v37353_v12, %v37355_v9  ;;  %34427 = vmatprep.subr.bf16.mxu1 %v37480_v7  ;;  %v14798_v59 = vsub.f32 %v14647_v16, %v14704_v26 }
 0xc8f   :  { %v14330_v0 = vcombine.low %v37357_v8, %v37359_v35  ;;  %v14337_v63 = vrot.slane %v14329_v44, %v35539_v19  ;;  %34429 = vmatpush3.bf16.msra.mxu1 %v37480_v7  ;;  %v37484_v53 = vpack.c.bf16 %v14710_v28, %v14707_v20 }
 0xc90   :  { %v14313_v21 = vcombine.low %v37363_v52, %v37365_v56  ;;  %v14320_v62 = vrot.slane %v14312_v51, %v35539_v19 }
 0xc91   :  { %v14344_v3 = vrot.slane %v14330_v0, %v35539_v19  ;;  %34431 = vmatprep.subr.bf16.mxu1 %v37484_v53 }
 0xc92   :  { %v14327_v29 = vrot.slane %v14313_v21, %v35539_v19 }
 0xc93   :  { %v14345_v55 = vcombine.low %v14337_v63, %v14344_v3  ;;  %34433 = vmatpush3.bf16.msra.mxu1 %v37484_v53 }
 0xc94   :  { %v14328_v33 = vcombine.low %v14320_v62, %v14327_v29 }
 0xc95   :  { %v14351_v47 = vsel %vm200_vm0, %v14345_v55, 0.0 }
 0xc96   :  { %14352 = vadd.xlane.f32.xlu1 %v14351_v47  ;;  %v14348_v10 = vsel %vm200_vm0, %v14328_v33, 0.0 }
 0xc97   :  { %14349 = vadd.xlane.f32.xlu0 %v14348_v10 }
 0xcb4   :  { %v33534_v13 = vpop.f32.mrb[20].mxu0 }
 0xcb5   :  { %v15937_v39 = vpop.f32.mrb[21].mxu0  ;;  %v37386_v22 = vadd.f32 %v33534_v13, %v15252_v27 }
 0xcb6   :  { %v37382_v50 = vadd.f32 %v15937_v39, %v15252_v27 }
 0xcb8   :  { %16834 = vrot.lane.b32.xlu1 %v37382_v50, %s35401_s30  ;;  %v33537_v15 = vpop.f32.mrb[22].mxu0 }
 0xcb9   :  { %v37394_v14 = vadd.f32 %v33537_v15, %v15252_v27  ;;  %v15949_v1 = vpop.f32.mrb[23].mxu0 }
 0xcba   :  { %v37402_v37 = vadd.f32 %v15949_v1, %v15252_v27 }
 0xcbc   :  { %16846 = vrot.lane.b32.xlu1 %v37382_v50, %s35400_s29 }
 0xcc0   :  { %16848 = vrot.lane.b32.xlu1 %v37386_v22, %s35400_s29 }
 0xcc4   :  { %16860 = vrot.lane.b32.xlu1 %v37386_v22, %s35402_s7 }
 0xcc8   :  { %16840 = vrot.lane.b32.xlu1 %v37394_v14, %s35401_s30 }
 0xccc   :  { %16852 = vrot.lane.b32.xlu1 %v37394_v14, %s35400_s29 }
 0xcd0   :  { %16864 = vrot.lane.b32.xlu1 %v37394_v14, %s35402_s7 }
 0xd23   :  { %v14353_v32 = vpop.xlane.xlu1 %14352 }
 0xd24   :  { %v14356_v41 = vmul.f32 0.03125, %v14353_v32  ;;  %v14350_v25 = vpop.xlane.xlu0 %14349  ;;  %v14792_v32 = vand.u32 4294901760, %v14791_v24 }
 0xd25   :  { %v14355_v43 = vmul.f32 0.03125, %v14350_v25 }
 0xd26   :  { %v14393_v23 = vrot.slane %v14356_v41, %v37405_v18  ;;  %v14400_v31 = vrot.slane %v14356_v41, %v37408_v54  ;;  %v14407_v4 = vrot.slane %v14356_v41, %v37411_v58  ;;  %v14414_v11 = vrot.slane %v14356_v41, %v37414_v40 }
 0xd27   :  { %v14365_v45 = vrot.slane %v14355_v43, %v37405_v18  ;;  %v14372_v5 = vrot.slane %v14355_v43, %v37408_v54  ;;  %v14379_v17 = vrot.slane %v14355_v43, %v37411_v58  ;;  %v14386_v36 = vrot.slane %v14355_v43, %v37414_v40 }
 0xd28   :  { %v37425_v2 = vsub.f32 %v37349_v30, %v14393_v23  ;;  %v37428_v44 = vsub.f32 %v37351_v42, %v14400_v31  ;;  %v37431_v61 = vsub.f32 %v37357_v8, %v14407_v4  ;;  %v37434_v48 = vsub.f32 %v37359_v35, %v14414_v11 }
 0xd29   :  { %v37437_v51 = vsub.f32 %v37353_v12, %v14365_v45  ;;  %v37440_v0 = vsub.f32 %v37355_v9, %v14372_v5  ;;  %v37443_v21 = vsub.f32 %v37363_v52, %v14379_v17  ;;  %v37446_v30 = vsub.f32 %v37365_v56, %v14386_v36 }
 0xd2a   :  { %v14435_v42 = vmul.f32 %v37425_v2, %v37425_v2  ;;  %v14436_v8 = vmul.f32 %v37428_v44, %v37428_v44  ;;  %v14437_v35 = vmul.f32 %v37431_v61, %v37431_v61  ;;  %v14438_v12 = vmul.f32 %v37434_v48, %v37434_v48 }
 0xd2b   :  { %v14431_v9 = vmul.f32 %v37437_v51, %v37437_v51  ;;  %v14432_v52 = vmul.f32 %v37440_v0, %v37440_v0  ;;  %v14433_v56 = vmul.f32 %v37443_v21, %v37443_v21  ;;  %v14434_v63 = vmul.f32 %v37446_v30, %v37446_v30 }
 0xd2c   :  { %v14464_v3 = vcombine.low %v14435_v42, %v14436_v8  ;;  %v14465_v62 = vcombine.low %v14437_v35, %v14438_v12  ;;  %v14799_v41 = vand.u32 4294901760, %v14798_v59  ;;  %v14793_v25 = vsub.f32 %v14791_v24, %v14792_v32 }
 0xd2d   :  { %v14447_v29 = vcombine.low %v14431_v9, %v14432_v52  ;;  %v14448_v55 = vcombine.low %v14433_v56, %v14434_v63  ;;  %v14805_v23 = vsub.f32 %v14648_v57, %v14707_v20  ;;  %v14812_v31 = vsub.f32 %v14649_v38, %v14710_v28 }
 0xd2e   :  { %v14472_v10 = vrot.slane %v14464_v3, %v35539_v19  ;;  %v14479_v27 = vrot.slane %v14465_v62, %v35539_v19  ;;  %v14800_v43 = vsub.f32 %v14798_v59, %v14799_v41  ;;  %v14794_v4 = vand.u32 4294901760, %v14793_v25  ;;  %v16835_v3 = vpop.permute.xlu1 %16834 }
 0xd2f   :  { %v14455_v33 = vrot.slane %v14447_v29, %v35539_v19  ;;  %v14462_v47 = vrot.slane %v14448_v55, %v35539_v19  ;;  %v14806_v45 = vand.u32 4294901760, %v14805_v23  ;;  %v14813_v5 = vand.u32 4294901760, %v14812_v31 }
 0xd30   :  { %v14480_v15 = vcombine.low %v14472_v10, %v14479_v27  ;;  %v14801_v11 = vand.u32 4294901760, %v14800_v43  ;;  %v37493_v9 = vpack.c.bf16 %v14798_v59, %v14791_v24  ;;  %v37495_v52 = vpack.c.bf16 %v14812_v31, %v14805_v23 }
 0xd31   :  { %v14463_v13 = vcombine.low %v14455_v33, %v14462_v47  ;;  %v14807_v36 = vsub.f32 %v14805_v23, %v14806_v45  ;;  %v14814_v42 = vsub.f32 %v14812_v31, %v14813_v5  ;;  %v37497_v56 = vpack.c.bf16 %v14799_v41, %v14792_v32  ;;  %v141_v47 = vld [vmem:[#allocation10 + $0x8] sm:$0x1f] }
 0xd32   :  { %v14486_v1 = vsel %vm200_vm0, %v14480_v15, 0.0  ;;  %v37488_v17 = vpack.c.bf16 %v14801_v11, %v14794_v4  ;;  %v37499_v63 = vpack.c.bf16 %v14813_v5, %v14806_v45  ;;  %v16847_v62 = vpop.permute.xlu1 %16846  ;;  %v39938_v27 = vsub.s32 1, %v39933_v60 }
 0xd33   :  { %v14483_v39 = vsel %vm200_vm0, %v14463_v13, 0.0  ;;  %v14808_v8 = vand.u32 4294901760, %v14807_v36  ;;  %v14815_v35 = vand.u32 4294901760, %v14814_v42  ;;  %v16870_v45 = vcombine.low %v37382_v50, %v16847_v62 }
 0xd34   :  { %14484 = vadd.xlane.f32.xlu0 %v14483_v39  ;;  %34435 = vmatprep.subr.bf16.mxu1 %v37488_v17  ;;  %v14572_v13 = vrot.slane %v141_v47, %v39938_v27  ;;  %v16871_v5 = vcombine.high %v37382_v50, %v16847_v62 }
 0xd35   :  { %v37491_v12 = vpack.c.bf16 %v14815_v35, %v14808_v8 }
 0xd36   :  { %v16849_v29 = vpop.permute.xlu1 %16848  ;;  %v14574_v46 = vcombine.high %v14572_v13, %v14572_v13  ;;  %v37506_v28 = vrot.slane %v14572_v13, %v35539_v19 }
 0xd37   :  { %v16938_v36 = vcombine.low %v37386_v22, %v16849_v29  ;;  %v16939_v8 = vcombine.high %v37386_v22, %v16849_v29 }
 0xd38   :  { %14487 = vadd.xlane.f32.xlu0 %v14486_v1  ;;  %v39939_v1 = vsub.s32 2, %v39933_v60  ;;  %v37510_v41 = vrot.slane %v14574_v46, %v35539_v19  ;;  %v37524_v42 = vcombine.high %v37506_v28, %v37506_v28 }
 0xd3a   :  { %v16861_v55 = vpop.permute.xlu1 %16860  ;;  %v14606_v6 = vrot.slane %v141_v47, %v39939_v1  ;;  %v37556_v1 = vrot.slane %v16871_v5, %v35539_v19 }
 0xd3c   :  { %v14608_v20 = vcombine.high %v14606_v6, %v14606_v6  ;;  %v37513_v25 = vrot.slane %v14606_v6, %v35539_v19  ;;  %v37559_v6 = vrot.slane %v16938_v36, %v35539_v19 }
 0xd3e   :  { %v16841_v33 = vpop.permute.xlu1 %16840  ;;  %v37517_v11 = vrot.slane %v14608_v20, %v35539_v19 }
 0xd42   :  { %v16853_v10 = vpop.permute.xlu1 %16852 }
 0xd43   :  { %v17074_v24 = vcombine.low %v37394_v14, %v16853_v10  ;;  %v17075_v43 = vcombine.high %v37394_v14, %v16853_v10 }
 0xd45   :  { %v37528_v14 = vrot.slane %v17074_v24, %v35539_v19  ;;  %v37542_v62 = vrot.slane %v17075_v43, %v35539_v19 }
 0xd46   :  { %v16865_v26 = vpop.permute.xlu1 %16864 }
 0xd47   :  { %v17090_v59 = vcombine.low %v16841_v33, %v16865_v26  ;;  %v17091_v23 = vcombine.high %v16841_v33, %v16865_v26  ;;  %v37535_v33 = vcombine.high %v37510_v41, %v37510_v41 }
 0xd49   :  { %v37531_v35 = vrot.slane %v17090_v59, %v35539_v19  ;;  %v37545_v47 = vrot.slane %v17091_v23, %v35539_v19 }
 0xd4b   :  { %v17107_v26 = vcombine.high %v37528_v14, %v37531_v35 }
 0xd4e   :  { %16836 = vrot.lane.b32.xlu0 %v37386_v22, %s35401_s30 }
 0xd52   :  { %16858 = vrot.lane.b32.xlu0 %v37382_v50, %s35402_s7  ;;  %v37539_v50 = vcombine.high %v37513_v25, %v37513_v25 }
 0xd56   :  { %16838 = vrot.lane.b32.xlu0 %v37402_v37, %s35401_s30 }
 0xd5a   :  { %16850 = vrot.lane.b32.xlu0 %v37402_v37, %s35400_s29 }
 0xd5e   :  { %16862 = vrot.lane.b32.xlu0 %v37402_v37, %s35402_s7 }
 0xdc1   :  { %v14485_v39 = vpop.xlane.xlu0 %14484 }
 0xdc2   :  { %v14489_v15 = vmul.f32 0.03125, %v14485_v39  ;;  %v37552_v39 = vcombine.high %v37517_v11, %v37517_v11 }
 0xdc4   :  { %v14491_v16 = vadd.f32 1e-05, %v14489_v15  ;;  %v16878_v15 = vrot.slane %v16870_v45, %v35539_v19 }
 0xdc5   :  { %v14488_v57 = vpop.xlane.xlu0 %14487 }
 0xdc6   :  { %35173 = vrsqrt.f32 %v14491_v16  ;;  %v14490_v38 = vmul.f32 0.03125, %v14488_v57 }
 0xdc8   :  { %v14492_v32 = vadd.f32 1e-05, %v14490_v38 }
 0xdc9   :  { %v16837_v31 = vpop.permute.xlu0 %16836 }
 0xdca   :  { %35175 = vrsqrt.f32 %v14492_v32  ;;  %v16954_v4 = vcombine.low %v16837_v31, %v16861_v55  ;;  %v16955_v29 = vcombine.high %v16837_v31, %v16861_v55  ;;  %v37562_v55 = vrot.slane %v16939_v8, %v35539_v19 }
 0xdcc   :  { %v37548_v10 = vrot.slane %v16954_v4, %v35539_v19  ;;  %v37577_v32 = vrot.slane %v16955_v29, %v35539_v19 }
 0xdcd   :  { %v16859_v22 = vpop.permute.xlu0 %16858 }
 0xdce   :  { %v16886_v27 = vcombine.low %v16835_v3, %v16859_v22  ;;  %v16887_v13 = vcombine.high %v16835_v3, %v16859_v22  ;;  %v16971_v31 = vcombine.high %v37559_v6, %v37548_v10  ;;  %v39940_v22 = vld [vmem:[#allocation17_spill] sm:$0xff] }
 0xdd0   :  { %v35174_v16 = vpop.eup %35173  ;;  %v16894_v46 = vrot.slane %v16886_v27, %v35539_v19  ;;  %v16901_v3 = vrot.slane %v16887_v13, %v35539_v19 }
 0xdd1   :  { %v37568_v57 = vpop.permute.xlu0 %16838  ;;  %v14503_v24 = vrot.slane %v35174_v16, %v37405_v18  ;;  %v14510_v59 = vrot.slane %v35174_v16, %v37408_v54  ;;  %v14517_v4 = vrot.slane %v35174_v16, %v37411_v58  ;;  %v14524_v45 = vrot.slane %v35174_v16, %v37414_v40 }
 0xdd2   :  { %v16902_v43 = vcombine.low %v16878_v15, %v16894_v46  ;;  %v16903_v23 = vcombine.high %v16878_v15, %v16894_v46  ;;  %v16918_v13 = vcombine.low %v37556_v1, %v16901_v3  ;;  %v37593_v15 = vrot.slane %v17107_v26, %v39940_v22 }
 0xdd3   :  { %v14561_v5 = vmul.f32 %v14503_v24, %v37437_v51  ;;  %v14562_v36 = vmul.f32 %v14510_v59, %v37440_v0  ;;  %v14563_v16 = vmul.f32 %v14517_v4, %v37443_v21  ;;  %v14564_v51 = vmul.f32 %v14524_v45, %v37446_v30 }
 0xdd4   :  { %v35176_v8 = vpop.eup %35175  ;;  %v37586_v27 = vrot.slane %v16903_v23, %v39940_v22  ;;  %v37589_v29 = vrot.slane %v16902_v43, %v39940_v22  ;;  %v37604_v59 = vrot.slane %v16971_v31, %v39940_v22  ;;  %v16987_v26 = vcombine.high %v37562_v55, %v37577_v32 }
 0xdd5   :  { %v37595_v46 = vpop.permute.xlu0 %16850  ;;  %v14595_v0 = vmul.f32 %v37506_v28, %v14561_v5  ;;  %v14596_v24 = vmul.f32 %v37524_v42, %v14562_v36  ;;  %v14531_v43 = vrot.slane %v35176_v8, %v37405_v18  ;;  %v14597_v21 = vmul.f32 %v37510_v41, %v14563_v16 }
 0xdd6   :  { %17554 = vxpose.xlu1.b32.start.end [1/1] (short) (narrow) %v37586_v27, 8  ;;  %17522 = vxpose.xlu0.b32.start.end [1/1] (short) (narrow) %v37589_v29, 8  ;;  %v14598_v30 = vmul.f32 %v37535_v33, %v14564_v51  ;;  %v37618_v45 = vrot.slane %v16918_v13, %v39940_v22  ;;  %v16919_v31 = vcombine.high %v37556_v1, %v16901_v3  ;;  %v35223_v1 = vld [vmem:[%s39837_s3 + $0x2] sm:$0x3] }
 0xdd7   :  { %v37612_v23 = vadd.f32 %v37513_v25, %v14595_v0  ;;  %v37615_v4 = vadd.f32 %v37539_v50, %v14596_v24  ;;  %v14538_v5 = vrot.slane %v35176_v8, %v37408_v54  ;;  %v14545_v36 = vrot.slane %v35176_v8, %v37411_v58  ;;  %v35222_v0 = vld [vmem:[%s39837_s3] sm:$0x3] }
 0xdd8   :  { %v37624_v16 = vadd.f32 %v37517_v11, %v14597_v21  ;;  %v37627_v51 = vadd.f32 %v37552_v39, %v14598_v30  ;;  %v37640_v24 = vrot.slane %v16987_v26, %v39940_v22  ;;  %v16970_v21 = vcombine.low %v37559_v6, %v37548_v10 }
 0xdd9   :  { %39941 = vst [vmem:[#allocation23_spill] sm:$0xff] %v37612_v23  ;;  %39942 = vst [vmem:[#allocation25_spill] sm:$0xff] %v37615_v4  ;;  %v16863_v49 = vpop.permute.xlu0 %16862  ;;  %v14637_v13 = vadd.f32 %v35222_v0, %v37612_v23  ;;  %v14638_v3 = vadd.f32 %v35223_v1, %v37615_v4  ;;  %v14552_v30 = vrot.slane %v35176_v8, %v37414_v40  ;;  %v35224_v0 = vld [vmem:[%s39837_s3 + $0x4] sm:$0x3]  ;;  %v35225_v1 = vld [vmem:[%s39837_s3 + $0x6] sm:$0x3] }
 0xdda   :  { %39943 = vst [vmem:[#allocation20_spill] sm:$0xff] %v37624_v16  ;;  %39944 = vst [vmem:[#allocation21_spill] sm:$0xff] %v37627_v51  ;;  %17682 = vxpose.xlu1.b32.start.end [1/1] (short) (narrow) %v37604_v59, 8  ;;  %17586 = vxpose.xlu0.b32.start.end [1/1] (short) (narrow) %v37618_v45, 8  ;;  %v14639_v20 = vadd.f32 %v35224_v0, %v37624_v16  ;;  %v14640_v38 = vadd.f32 %v35225_v1, %v37627_v51 }
 0xddb   :  { %v14662_v58 = vcombine.low %v14637_v13, %v14638_v3  ;;  %v14565_v26 = vmul.f32 %v14531_v43, %v37425_v2  ;;  %v17022_v54 = vcombine.low %v37568_v57, %v16863_v49  ;;  %v37656_v10 = vrot.slane %v16919_v31, %v39940_v22 }
 0xddc   :  { %v14566_v6 = vmul.f32 %v14538_v5, %v37428_v44  ;;  %v14567_v8 = vmul.f32 %v14545_v36, %v37431_v61  ;;  %v14663_v40 = vcombine.low %v14639_v20, %v14640_v38  ;;  %v14568_v18 = vmul.f32 %v14552_v30, %v37434_v48  ;;  %v35229_v5 = vld [vmem:[%s39837_s3 + $0xe] sm:$0x3] }
 0xddd   :  { %v14670_v0 = vrot.slane %v14662_v58, %v35539_v19  ;;  %v14599_v16 = vmul.f32 %v37506_v28, %v14565_v26  ;;  %v17006_v13 = vcombine.low %v37402_v37, %v37595_v46  ;;  %v16986_v2 = vcombine.low %v37562_v55, %v37577_v32  ;;  %v35228_v32 = vld [vmem:[%s39837_s3 + $0xc] sm:$0x3] }
 0xdde   :  { %17746 = vxpose.xlu1.b32.start.end [1/1] (short) (narrow) %v37640_v24, 8  ;;  %17618 = vxpose.xlu0.b32.start.end [1/1] (short) (narrow) %v37656_v10, 8  ;;  %v14600_v44 = vmul.f32 %v37524_v42, %v14566_v6  ;;  %v14677_v61 = vrot.slane %v14663_v40, %v35539_v19  ;;  %v14601_v58 = vmul.f32 %v37510_v41, %v14567_v8 }
 0xddf   :  { %v14602_v48 = vmul.f32 %v37535_v33, %v14568_v18  ;;  %v37674_v28 = vadd.f32 %v37513_v25, %v14599_v16  ;;  %v17023_v38 = vcombine.high %v37568_v57, %v16863_v49  ;;  %v17030_v20 = vrot.slane %v17022_v54, %v35539_v19  ;;  %v35226_v18 = vld [vmem:[%s39837_s3 + $0x8] sm:$0x3]  ;;  %v35227_v33 = vld [vmem:[%s39837_s3 + $0xa] sm:$0x3]  ;;  %s35411_s3 = smov [#allocation11]  }
 0xde0   :  { %v37679_v43 = vrot.slane %v16970_v21, %v39940_v22  ;;  %v37682_v55 = vadd.f32 %v37539_v50, %v14600_v44  ;;  %v14678_v42 = vcombine.low %v14670_v0, %v14677_v61  ;;  %v37685_v40 = vadd.f32 %v37517_v11, %v14601_v58 }
 0xde1   :  { %39945 = vst [vmem:[#allocation26_spill] sm:$0xff] %v37674_v28  ;;  %v37688_v41 = vadd.f32 %v37552_v39, %v14602_v48  ;;  %v14641_v49 = vadd.f32 %v35226_v18, %v37674_v28  ;;  %v17014_v54 = vrot.slane %v17006_v13, %v35539_v19  ;;  %v39949_v25 = vcombine.high %v37542_v62, %v37545_v47 }
 0xde2   :  { %39946 = vst [vmem:[#allocation27_spill] sm:$0xff] %v37682_v55  ;;  %39947 = vst [vmem:[#allocation17_spill] sm:$0xff] %v37685_v40  ;;  %17938 = vxpose.xlu1.b32.start.end [1/1] (short) (narrow) %v37593_v15, 8  ;;  %17650 = vxpose.xlu0.b32.start.end [1/1] (short) (narrow) %v37679_v43, 8  ;;  %v14642_v50 = vadd.f32 %v35227_v33, %v37682_v55  ;;  %v17007_v39 = vcombine.high %v37402_v37, %v37595_v46  ;;  %v14696_v57 = vsel %vm200_vm0, %v14678_v42, 0 }
 0xde3   :  { %39948 = vst [vmem:[#allocation28_spill] sm:$0xff] %v37688_v41  ;;  %v37701_v11 = vrot.slane %v39949_v25, %v39940_v22  ;;  %v14643_v31 = vadd.f32 %v35228_v32, %v37685_v40  ;;  %v14644_v36 = vadd.f32 %v35229_v5, %v37688_v41  ;;  %v37719_v16 = vrot.slane %v16986_v2, %v39940_v22  ;;  %v35231_v32 = vld [vmem:[#allocation5 + $0x2] sm:$0x3]  ;;  %v35232_v5 = vld [vmem:[#allocation5 + $0x4] sm:$0x3] }
 0xde4   :  { %v17039_v3 = vcombine.high %v17014_v54, %v17030_v20  ;;  %v37721_v21 = vand.u32 4294901760, %v14696_v57  ;;  %v14679_v37 = vcombine.low %v14641_v49, %v14642_v50  ;;  %v17037_v46 = vrot.slane %v17023_v38, %v35539_v19 }
 0xde5   :  { %v14680_v30 = vcombine.low %v14643_v31, %v14644_v36  ;;  %v17021_v6 = vrot.slane %v17007_v39, %v35539_v19  ;;  %v39950_v0 = vcombine.low %v37528_v14, %v37531_v35  ;;  %v17122_v61 = vcombine.low %v37542_v62, %v37545_v47  ;;  %v35233_v36 = vld [vmem:[#allocation5 + $0x6] sm:$0x3] }
 0xde6   :  { %18002 = vxpose.xlu1.b32.start.end [1/1] (short) (narrow) %v37701_v11, 8  ;;  %17714 = vxpose.xlu0.b32.start.end [1/1] (short) (narrow) %v37719_v16, 8  ;;  %v37727_v1 = vsub.f32 %v14696_v57, %v37721_v21  ;;  %v14687_v26 = vrot.slane %v14679_v37, %v35539_v19  ;;  %v37739_v2 = vrot.slane %v17039_v3, %v39940_v22  ;;  %v35230_v57 = vld [vmem:[#allocation5] sm:$0x3]  ;;  %v35234_v37 = vld [vmem:[#allocation5 + $0x8] sm:$0x3] }
 0xde7   :  { %v14694_v8 = vrot.slane %v14680_v30, %v35539_v19  ;;  %v37736_v13 = vrot.slane %v39950_v0, %v39940_v22  ;;  %v17055_v58 = vcombine.high %v17021_v6, %v17037_v46  ;;  %v37749_v42 = vrot.slane %v17122_v61, %v39940_v22  ;;  %v35239_v61 = vld [vmem:[#allocation5 + $0x12] sm:$0x3] }
 0xde8   :  { %v14771_v44 = vand.u32 4294901760, %v37727_v1  ;;  %v17038_v49 = vcombine.low %v17014_v54, %v17030_v20  ;;  %v17054_v50 = vcombine.low %v17021_v6, %v17037_v46  ;;  %v15984_v31 = vcombine.low %v35230_v57, %v35231_v32  ;;  %v35235_v46 = vld [vmem:[#allocation5 + $0xa] sm:$0x3]  ;;  %v35237_v6 = vld [vmem:[#allocation5 + $0xe] sm:$0x3] }
 0xde9   :  { %v14695_v48 = vcombine.low %v14687_v26, %v14694_v8  ;;  %v37754_v25 = vrot.slane %v17055_v58, %v39940_v22  ;;  %v15985_v3 = vcombine.low %v35232_v5, %v35233_v36  ;;  %v16001_v30 = vcombine.low %v35234_v37, %v35235_v46  ;;  %v35236_v26 = vld [vmem:[#allocation5 + $0xc] sm:$0x3]  ;;  %v35240_v58 = vld [vmem:[#allocation5 + $0x14] sm:$0x3]  ;;  %v15960_v36 = vld [vmem:[#allocation8 + $0xa0] sm:$0xff] }
 0xdea   :  { %17906 = vxpose.xlu0.b32.start.end [1/1] (short) (narrow) %v37736_v13, 8  ;;  %17810 = vxpose.xlu1.b32.start.end [1/1] (short) (narrow) %v37739_v2, 8  ;;  %v14772_v38 = vsub.f32 %v37727_v1, %v14771_v44  ;;  %v37763_v33 = vrot.slane %v17038_v49, %v39940_v22  ;;  %v37770_v39 = vrot.slane %v17054_v50, %v39940_v22  ;;  %v35243_v49 = vld [vmem:[#allocation5 + $0x1a] sm:$0x3]  ;;  %v16061_v46 = vand.u32 4294901760, %v15960_v36 }
 0xdeb   :  { %v14698_v14 = vsel %vm200_vm0, %v14695_v48, 0  ;;  %v16002_v8 = vcombine.low %v35236_v26, %v35237_v6  ;;  %v35241_v48 = vld [vmem:[#allocation5 + $0x16] sm:$0x3] }
 0xdec   :  { %v14773_v35 = vand.u32 4294901760, %v14772_v38  ;;  %v37751_v18 = vand.u32 4294901760, %v14698_v14  ;;  %v16019_v38 = vcombine.low %v35240_v58, %v35241_v48  ;;  %v15962_v26 = vld [vmem:[#allocation8 + $0xb0] sm:$0xff]  ;;  %v37809_v48 = vsub.f32 %v15960_v36, %v16061_v46 }
 0xdee   :  { %33396 = vmatprep.mubr.f32.mxu1 %v14773_v35  ;;  %17970 = vxpose.xlu0.b32.start.end [1/1] (short) (narrow) %v37749_v42, 8  ;;  %v37758_v62 = vsub.f32 %v14698_v14, %v37751_v18  ;;  %v16009_v14 = vrot.slane %v16001_v30, %v35539_v19  ;;  %v35242_v35 = vld [vmem:[#allocation5 + $0x18] sm:$0x3]  ;;  %v16033_v5 = vrot.slane %v16019_v38, %v35539_v19 }
 0xdef   :  { %17874 = vxpose.xlu1.b32.start.end [1/1] (short) (narrow) %v37754_v25, 8  ;;  %v16035_v50 = vcombine.low %v35242_v35, %v35243_v49  ;;  %v16172_v35 = vand.u32 4294901760, %v37809_v48 }
 0xdf0   :  { %v14781_v47 = vand.u32 4294901760, %v37758_v62 }
 0xdf2   :  { %v14782_v20 = vsub.f32 %v37758_v62, %v14781_v47  ;;  %17778 = vxpose.xlu0.b32.start.end [1/1] (short) (narrow) %v37763_v33, 8 }
 0xdf4   :  { %v14783_v54 = vand.u32 4294901760, %v14782_v20  ;;  %v35244_v20 = vld [vmem:[#allocation5 + $0x1c] sm:$0x3] }
 0xdf6   :  { %33397 = vmatmul.mubr.f32.vlgmr.msra.gmra.mrb[20].mxu1 %v14783_v54  ;;  %17842 = vxpose.xlu0.b32.start.end [1/1] (short) (narrow) %v37770_v39, 8  ;;  %v35245_v54 = vld [vmem:[#allocation5 + $0x1e] sm:$0x3] }
 0xdf7   :  { %34437 = vmatpush3.bf16.msra.mxu1 %v37488_v17  ;;  %33407 = vmatprep.mubr.f32.mxu1 %v37721_v21  ;;  %v15992_v17 = vrot.slane %v15984_v31, %v35539_v19  ;;  %v16036_v57 = vcombine.low %v35244_v20, %v35245_v54 }
 0xdf8   :  { %34439 = vmatprep.subr.bf16.mxu1 %v37491_v12 }
 0xdf9   :  { %v16050_v37 = vrot.slane %v16036_v57, %v35539_v19 }
 0xdfb   :  { %34441 = vmatpush3.bf16.msra.mxu1 %v37491_v12  ;;  %v15999_v12 = vrot.slane %v15985_v3, %v35539_v19  ;;  %v15961_v3 = vld [vmem:[#allocation8 + $0xa8] sm:$0xff] }
 0xdfc   :  { %34443 = vmatprep.subr.bf16.mxu1 %v37493_v9  ;;  %v16064_v30 = vand.u32 4294901760, %v15961_v3 }
 0xdfd   :  { %v16000_v0 = vcombine.low %v15992_v17, %v15999_v12  ;;  %v16043_v12 = vrot.slane %v16035_v50, %v35539_v19 }
 0xdfe   :  { %33408 = vmatmul.mubr.f32.vlgmr.msra.gmra.mrb[20].mxu1 %v37751_v18  ;;  %v37811_v38 = vsub.f32 %v15961_v3, %v16064_v30  ;;  %v37836_v57 = vpack.c.bf16 %v16064_v30, %v16061_v46 }
 0xdff   :  { %34445 = vmatpush3.bf16.msra.mxu1 %v37493_v9  ;;  %33418 = vmatprep.mubr.f32.mxu1 %v37727_v1  ;;  %v35238_v9 = vld [vmem:[#allocation5 + $0x10] sm:$0x3]  ;;  %v16052_v32 = vsel %vm200_vm0, %v16000_v0, 0  ;;  %v16067_v0 = vand.u32 4294901760, %v15962_v26 }
 0xe00   :  { %34447 = vmatprep.subr.bf16.mxu1 %v37495_v52  ;;  %v16018_v1 = vcombine.low %v35238_v9, %v35239_v61  ;;  %v16179_v49 = vand.u32 4294901760, %v37811_v38 }
 0xe01   :  { %v37824_v50 = vsub.f32 %v15962_v26, %v16067_v0 }
 0xe02   :  { %v16026_v31 = vrot.slane %v16018_v1, %v35539_v19  ;;  %v16051_v1 = vcombine.low %v16043_v12, %v16050_v37 }
 0xe03   :  { %34449 = vmatpush3.bf16.msra.mxu1 %v37495_v52  ;;  %v16016_v52 = vrot.slane %v16002_v8, %v35539_v19  ;;  %v15963_v8 = vld [vmem:[#allocation8 + $0xb8] sm:$0xff] }
 0xe04   :  { %34451 = vmatprep.subr.bf16.mxu1 %v37480_v7  ;;  %v16034_v6 = vcombine.low %v16026_v31, %v16033_v5  ;;  %v16070_v58 = vand.u32 4294901760, %v15963_v8  ;;  %v16173_v5 = vsub.f32 %v37809_v48, %v16172_v35 }
 0xe05   :  { %v16017_v17 = vcombine.low %v16009_v14, %v16016_v52  ;;  %v16058_v52 = vsel %vm200_vm0, %v16051_v1, 0 }
 0xe06   :  { %33419 = vmatmul.mubr.f32.vlgmr.msra.gmra.mrb[20].mxu1 %v37758_v62  ;;  %v16056_v62 = vsel %vm200_vm0, %v16034_v6, 0  ;;  %v37826_v20 = vsub.f32 %v15963_v8, %v16070_v58  ;;  %v37832_v54 = vand.u32 4294901760, %v16058_v52  ;;  %v37856_v12 = vpack.c.bf16 %v16070_v58, %v16067_v0 }
 0xe07   :  { %34453 = vmatpush3.bf16.msra.mxu1 %v37480_v7  ;;  %33429 = vmatprep.mubr.f32.mxu1 %v14771_v44  ;;  %v37795_v44 = vand.u32 4294901760, %v16052_v32  ;;  %v16054_v61 = vsel %vm200_vm0, %v16017_v17, 0  ;;  %v37818_v14 = vand.u32 4294901760, %v16056_v62  ;;  %v16174_v30 = vand.u32 4294901760, %v16173_v5 }
 0xe08   :  { %34455 = vmatprep.subr.bf16.mxu1 %v37484_v53  ;;  %v16193_v36 = vand.u32 4294901760, %v37826_v20  ;;  %v16160_v17 = vsub.f32 %v16058_v52, %v37832_v54 }
 0xe09   :  { %v37805_v9 = vsub.f32 %v16052_v32, %v37795_v44  ;;  %v37842_v31 = vsub.f32 %v16056_v62, %v37818_v14 }
 0xe0a   :  { %v16194_v8 = vsub.f32 %v37826_v20, %v16193_v36  ;;  %v16161_v1 = vand.u32 4294901760, %v16160_v17 }
 0xe0b   :  { %34457 = vmatpush3.bf16.msra.mxu1 %v37484_v53  ;;  %v16151_v46 = vand.u32 4294901760, %v37842_v31 }
 0xe0c   :  { %34459 = vmatprep.subr.bf16.mxu1 %v37497_v56  ;;  %v16195_v62 = vand.u32 4294901760, %v16194_v8 }
 0xe0e   :  { %33430 = vmatmul.mubr.f32.vlgmr.msra.gmra.mrb[20].mxu1 %v14781_v47  ;;  %v37814_v47 = vand.u32 4294901760, %v16054_v61 }
 0xe0f   :  { %34461 = vmatpush3.bf16.msra.mxu1 %v37497_v56  ;;  %33440 = vmatprep.mubr.f32.mxu1 %v37721_v21  ;;  %v16131_v56 = vand.u32 4294901760, %v37805_v9 }
 0xe10   :  { %34463 = vmatprep.subr.bf16.mxu1 %v37499_v63 }
 0xe11   :  { %v16132_v32 = vsub.f32 %v37805_v9, %v16131_v56 }
 0xe13   :  { %34465 = vmatpush3.bf16.msra.mxu1 %v37499_v63  ;;  %v37830_v63 = vsub.f32 %v16054_v61, %v37814_v47  ;;  %v16133_v37 = vand.u32 4294901760, %v16132_v32  ;;  %v16162_v32 = vsub.f32 %v16160_v17, %v16161_v1 }
 0xe14   :  { %34467 = vmatprep.subr.bf16.mxu1 %v37480_v7 }
 0xe15   :  { %v16141_v3 = vand.u32 4294901760, %v37830_v63 }
 0xe16   :  { %33441 = vmatmul.mubr.f32.vlgmr.msra.gmra.mrb[20].mxu1 %v37751_v18 }
 0xe17   :  { %34469 = vmatpush3.bf16.msra.mxu1 %v37480_v7  ;;  %33451 = vmatprep.mubr.f32.mxu1 %v37721_v21  ;;  %v16180_v7 = vsub.f32 %v37811_v38, %v16179_v49  ;;  %v16186_v21 = vand.u32 4294901760, %v37824_v50  ;;  %v16142_v61 = vsub.f32 %v37830_v63, %v16141_v3 }
 0xe18   :  { %34471 = vmatprep.subr.bf16.mxu1 %v37484_v53 }
 0xe19   :  { %v16181_v26 = vand.u32 4294901760, %v16180_v7  ;;  %v16187_v6 = vsub.f32 %v37824_v50, %v16186_v21  ;;  %v16143_v52 = vand.u32 4294901760, %v16142_v61  ;;  %v16163_v7 = vand.u32 4294901760, %v16162_v32 }
 0xe1b   :  { %34473 = vmatpush3.bf16.msra.mxu1 %v37484_v53  ;;  %v16152_v53 = vsub.f32 %v37842_v31, %v16151_v46  ;;  %v34530_v0 = vpack.c.bf16 %v16181_v26, %v16174_v30  ;;  %v16188_v58 = vand.u32 4294901760, %v16187_v6  ;;  %v34542_v30 = vpack.c.bf16 %v37826_v20, %v37824_v50 }
 0xe1c   :  { %34523 = vmatprep.subr.bf16.mxu1 %v37836_v57  ;;  %v34554_v50 = vpack.c.bf16 %v16179_v49, %v16172_v35  ;;  %v34558_v20 = vpack.c.bf16 %v16193_v36, %v16186_v21 }
 0xe1d   :  { %v16153_v5 = vand.u32 4294901760, %v16152_v53 }
 0xe1e   :  { %33452 = vmatmul.mubr.f32.vlgmr.msra.gmra.mrb[20].mxu1 %v37751_v18  ;;  %v34534_v18 = vpack.c.bf16 %v16195_v62, %v16188_v58 }
 0xe1f   :  { %34525 = vmatpush3.bf16.msra.mxu1 %v37836_v57  ;;  %33546 = vmatprep.mubr.f32.mxu1 %v16133_v37  ;;  %v34538_v37 = vpack.c.bf16 %v37811_v38, %v37809_v48 }
 0xe20   :  { %34527 = vmatprep.subr.bf16.mxu1 %v37856_v12 }
 0xe23   :  { %34529 = vmatpush3.bf16.msra.mxu1 %v37856_v12 }
 0xe24   :  { %34531 = vmatprep.subr.bf16.mxu1 %v34530_v0 }
 0xe26   :  { %33547 = vmatmul.mubr.f32.vlgmr.msra.gmra.mrb[22].mxu1 %v16143_v52 }
 0xe27   :  { %34533 = vmatpush3.bf16.msra.mxu1 %v34530_v0  ;;  %33549 = vmatprep.mubr.f32.mxu1 %v16153_v5 }
 0xe28   :  { %34535 = vmatprep.subr.bf16.mxu1 %v34534_v18 }
 0xe2a   :  { %33550 = vmatmul.mubr.f32.gmra.mrb[24].mxu1 %v16163_v7 }
 0xe2b   :  { %34537 = vmatpush3.bf16.msra.mxu1 %v34534_v18  ;;  %33560 = vmatprep.mubr.f32.mxu1 %v37795_v44 }
 0xe2c   :  { %34539 = vmatprep.subr.bf16.mxu1 %v34538_v37 }
 0xe2e   :  { %33561 = vmatmul.mubr.f32.vlgmr.msra.gmra.mrb[22].mxu1 %v37814_v47 }
 0xe2f   :  { %34541 = vmatpush3.bf16.msra.mxu1 %v34538_v37  ;;  %33563 = vmatprep.mubr.f32.mxu1 %v37818_v14 }
 0xe30   :  { %34543 = vmatprep.subr.bf16.mxu1 %v34542_v30 }
 0xe32   :  { %33564 = vmatmul.mubr.f32.gmra.mrb[24].mxu1 %v37832_v54 }
 0xe33   :  { %34545 = vmatpush3.bf16.msra.mxu1 %v34542_v30  ;;  %33574 = vmatprep.mubr.f32.mxu1 %v37805_v9 }
 0xe34   :  { %34547 = vmatprep.subr.bf16.mxu1 %v37836_v57 }
 0xe36   :  { %33575 = vmatmul.mubr.f32.vlgmr.msra.gmra.mrb[22].mxu1 %v37830_v63 }
 0xe37   :  { %34549 = vmatpush3.bf16.msra.mxu1 %v37836_v57  ;;  %33577 = vmatprep.mubr.f32.mxu1 %v37842_v31 }
 0xe38   :  { %34551 = vmatprep.subr.bf16.mxu1 %v37856_v12 }
 0xe3a   :  { %33578 = vmatmul.mubr.f32.gmra.mrb[24].mxu1 %v16160_v17 }
 0xe3b   :  { %34553 = vmatpush3.bf16.msra.mxu1 %v37856_v12  ;;  %33588 = vmatprep.mubr.f32.mxu1 %v16131_v56 }
 0xe3c   :  { %34555 = vmatprep.subr.bf16.mxu1 %v34554_v50 }
 0xe3e   :  { %33589 = vmatmul.mubr.f32.vlgmr.msra.gmra.mrb[22].mxu1 %v16141_v3 }
 0xe3f   :  { %34557 = vmatpush3.bf16.msra.mxu1 %v34554_v50  ;;  %33591 = vmatprep.mubr.f32.mxu1 %v16151_v46 }
 0xe40   :  { %34559 = vmatprep.subr.bf16.mxu1 %v34558_v20 }
 0xe42   :  { %33592 = vmatmul.mubr.f32.gmra.mrb[24].mxu1 %v16161_v1 }
 0xe43   :  { %34561 = vmatpush3.bf16.msra.mxu1 %v34558_v20  ;;  %33602 = vmatprep.mubr.f32.mxu1 %v37795_v44 }
 0xe44   :  { %34563 = vmatprep.subr.bf16.mxu1 %v37836_v57 }
 0xe46   :  { %33603 = vmatmul.mubr.f32.vlgmr.msra.gmra.mrb[22].mxu1 %v37814_v47 }
 0xe47   :  { %34565 = vmatpush3.bf16.msra.mxu1 %v37836_v57  ;;  %33605 = vmatprep.mubr.f32.mxu1 %v37818_v14 }
 0xe48   :  { %34567 = vmatprep.subr.bf16.mxu1 %v37856_v12 }
 0xe4a   :  { %33606 = vmatmul.mubr.f32.gmra.mrb[24].mxu1 %v37832_v54 }
 0xe4b   :  { %34569 = vmatpush3.bf16.msra.mxu1 %v37856_v12  ;;  %33616 = vmatprep.mubr.f32.mxu1 %v37795_v44 }
 0xe4c   :  { %33652 = vmatprep.subr.mxu1 %v39932_v34 }
 0xe4e   :  { %33617 = vmatmul.mubr.f32.vlgmr.msra.gmra.mrb[22].mxu1 %v37814_v47 }
 0xe4f   :  { %33619 = vmatprep.mubr.f32.mxu1 %v37818_v14 }
 0xe52   :  { %33620 = vmatmul.mubr.f32.gmra.mrb[24].mxu1 %v37832_v54 }
 0xe53   :  { %33654 = vmatprep.mubr.msk.f32.mxu1 %vm35404_vm1, %v39932_v34 }
 0xe56   :  { %v17538_v9 = vpop.trf.xlu0  ;;  %v17570_v48 = vpop.trf.xlu1 }
 0xe5a   :  { %v17602_v38 = vpop.trf.xlu0  ;;  %v17698_v56 = vpop.trf.xlu1 }
 0xe5b   :  { %v18035_v35 = vcombine.high %v17538_v9, %v17602_v38  ;;  %v18034_v57 = vcombine.low %v17538_v9, %v17602_v38 }
 0xe5d   :  { %v18049_v44 = vrot.slane %v18035_v35, %v35539_v19  ;;  %v18042_v3 = vrot.slane %v18034_v57, %v35539_v19 }
 0xe5e   :  { %v17634_v49 = vpop.trf.xlu0  ;;  %v17762_v63 = vpop.trf.xlu1 }
 0xe5f   :  { %v18050_v31 = vcombine.low %v17570_v48, %v17634_v49  ;;  %v18051_v21 = vcombine.high %v17570_v48, %v17634_v49  ;;  %v18082_v36 = vcombine.low %v17698_v56, %v17762_v63  ;;  %v18083_v46 = vcombine.high %v17698_v56, %v17762_v63 }
 0xe61   :  { %v18065_v47 = vrot.slane %v18051_v21, %v35539_v19  ;;  %v18058_v17 = vrot.slane %v18050_v31, %v35539_v19  ;;  %v18090_v26 = vrot.slane %v18082_v36, %v35539_v19  ;;  %v18097_v1 = vrot.slane %v18083_v46, %v35539_v19 }
 0xe62   :  { %v17666_v14 = vpop.trf.xlu0  ;;  %v17954_v54 = vpop.trf.xlu1 }
 0xe63   :  { %v18115_v12 = vcombine.high %v18049_v44, %v18065_v47  ;;  %v18098_v61 = vcombine.low %v18042_v3, %v18058_v17  ;;  %v18114_v52 = vcombine.low %v18049_v44, %v18065_v47 }
 0xe65   :  { %v18106_v50 = vrot.slane %v18098_v61, %v39940_v22  ;;  %v37916_v56 = vrot.slane %v18114_v52, %v39940_v22  ;;  %v37922_v21 = vrot.slane %v18115_v12, %v39940_v22 }
 0xe66   :  { %v17730_v6 = vpop.trf.xlu0  ;;  %v18018_v8 = vpop.trf.xlu1 }
 0xe67   :  { %v18066_v53 = vcombine.low %v17666_v14, %v17730_v6  ;;  %v18067_v0 = vcombine.high %v17666_v14, %v17730_v6  ;;  %v18219_v5 = vcombine.high %v17954_v54, %v18018_v8  ;;  %v18218_v9 = vcombine.low %v17954_v54, %v18018_v8 }
 0xe69   :  { %v18074_v58 = vrot.slane %v18066_v53, %v35539_v19  ;;  %v18081_v62 = vrot.slane %v18067_v0, %v35539_v19  ;;  %v18233_v48 = vrot.slane %v18219_v5, %v35539_v19  ;;  %v18226_v6 = vrot.slane %v18218_v9, %v35539_v19 }
 0xe6a   :  { %v17922_v32 = vpop.trf.xlu0  ;;  %v17826_v18 = vpop.trf.xlu1  ;;  %v18099_v0 = vcombine.high %v18042_v3, %v18058_v17 }
 0xe6b   :  { %v18130_v7 = vcombine.low %v18074_v58, %v18090_v26  ;;  %v18146_v37 = vcombine.low %v18081_v62, %v18097_v1  ;;  %v18147_v30 = vcombine.high %v18081_v62, %v18097_v1 }
 0xe6c   :  { %v18113_v9 = vrot.slane %v18099_v0, %v39940_v22 }
 0xe6d   :  { %v18138_v20 = vrot.slane %v18130_v7, %v39940_v22  ;;  %v37919_v35 = vrot.slane %v18146_v37, %v39940_v22  ;;  %v37925_v47 = vrot.slane %v18147_v30, %v39940_v22  ;;  %v18131_v30 = vcombine.high %v18074_v58, %v18090_v26 }
 0xe6e   :  { %v17986_v38 = vpop.trf.xlu0 }
 0xe6f   :  { %v18202_v49 = vcombine.low %v17922_v32, %v17986_v38  ;;  %v18203_v63 = vcombine.high %v17922_v32, %v17986_v38  ;;  %v17890_v57 = vpop.trf.xlu1  ;;  %v18162_v44 = vcombine.low %v18106_v50, %v18138_v20  ;;  %v18163_v31 = vcombine.high %v18106_v50, %v18138_v20 }
 0xe70   :  { %v18186_v54 = vcombine.low %v17826_v18, %v17890_v57  ;;  %v18167_v46 = vcombine.high %v37916_v56, %v37919_v35  ;;  %v18187_v1 = vcombine.high %v17826_v18, %v17890_v57  ;;  %v18169_v12 = vcombine.high %v37922_v21, %v37925_v47 }
 0xe71   :  { %v18217_v14 = vrot.slane %v18203_v63, %v35539_v19  ;;  %18306 = vxpose.xlu0.b32.start [1/2] (short) (narrow) %v18162_v44, 8  ;;  %18338 = vxpose.xlu1.b32.start [1/2] (short) (narrow) %v18163_v31, 8  ;;  %v18210_v8 = vrot.slane %v18202_v49, %v35539_v19  ;;  %v18168_v53 = vcombine.low %v37922_v21, %v37925_v47  ;;  %v15966_v47 = vsub.s32 5, %v39933_v60 }
 0xe72   :  { %v17794_v36 = vpop.trf.xlu0  ;;  %v18194_v62 = vrot.slane %v18186_v54, %v35539_v19  ;;  %v18201_v5 = vrot.slane %v18187_v1, %v35539_v19  ;;  %v18145_v57 = vrot.slane %v18131_v30, %v39940_v22  ;;  %v39870_v30 = vsub.s32 3, %v39933_v60 }
 0xe73   :  { %v18283_v61 = vcombine.high %v18217_v14, %v18233_v48  ;;  %v18266_v32 = vcombine.low %v18210_v8, %v18226_v6  ;;  %v18282_v50 = vcombine.low %v18217_v14, %v18233_v48  ;;  %v18267_v17 = vcombine.high %v18210_v8, %v18226_v6 }
 0xe74   :  { %v18164_v1 = vcombine.low %v18113_v9, %v18145_v57  ;;  %v16937_v21 = vcombine.high %v37656_v10, %v39932_v34 }
 0xe75   :  { %v18274_v3 = vrot.slane %v18266_v32, %v39940_v22  ;;  %v18290_v44 = vrot.slane %v18282_v50, %v39940_v22  ;;  %v18297_v31 = vrot.slane %v18283_v61, %v39940_v22  ;;  %v18281_v8 = vrot.slane %v18267_v17, %v39940_v22  ;;  %v35246_v50 = vld [vmem:[#allocation10] sm:$0xff] }
 0xe76   :  { %v17858_v52 = vpop.trf.xlu0  ;;  %v18166_v61 = vcombine.low %v37916_v56, %v37919_v35  ;;  %v16935_v17 = vcombine.high %v37586_v27, %v39932_v34  ;;  %v17002_v56 = vcombine.high %v37679_v43, %v39932_v34  ;;  %v16934_v35 = vcombine.high %v37589_v29, %v39932_v34 }
 0xe77   :  { %v18170_v7 = vcombine.low %v17794_v36, %v17858_v52  ;;  %v18171_v37 = vcombine.high %v17794_v36, %v17858_v52  ;;  %v17004_v27 = vcombine.high %v37719_v16, %v39932_v34  ;;  %v17003_v43 = vcombine.high %v37604_v59, %v39932_v34 }
 0xe78   :  { %v17005_v29 = vcombine.high %v37640_v24, %v39932_v34  ;;  %v17071_v16 = vcombine.high %v37739_v2, %v39932_v34 }
 0xe79   :  { %v18178_v20 = vrot.slane %v18170_v7, %v35539_v19  ;;  %v18185_v18 = vrot.slane %v18171_v37, %v35539_v19  ;;  %v18165_v7 = vcombine.high %v18113_v9, %v18145_v57 }
 0xe7b   :  { %v18234_v38 = vcombine.low %v18178_v20, %v18194_v62  ;;  %v18250_v49 = vcombine.low %v18185_v18, %v18201_v5  ;;  %v18251_v63 = vcombine.high %v18185_v18, %v18201_v5  ;;  %v18235_v26 = vcombine.high %v18178_v20, %v18194_v62 }
 0xe7c   :  { %v14653_v20 = vrot.slane %v35246_v50, %v39870_v30 }
 0xe7d   :  { %v18242_v58 = vrot.slane %v18234_v38, %v39940_v22  ;;  %v18258_v48 = vrot.slane %v18250_v49, %v39940_v22  ;;  %v18265_v14 = vrot.slane %v18251_v63, %v39940_v22  ;;  %v18249_v6 = vrot.slane %v18235_v26, %v39940_v22 }
 0xe7f   :  { %v18298_v36 = vcombine.low %v18242_v58, %v18274_v3  ;;  %v18299_v54 = vcombine.high %v18242_v58, %v18274_v3  ;;  %v18303_v0 = vcombine.high %v18258_v48, %v18290_v44  ;;  %v18305_v52 = vcombine.high %v18265_v14, %v18297_v31 }
 0xe80   :  { %v18304_v32 = vcombine.low %v18265_v14, %v18297_v31  ;;  %v18300_v62 = vcombine.low %v18249_v6, %v18281_v8  ;;  %v18302_v5 = vcombine.low %v18258_v48, %v18290_v44  ;;  %v18301_v37 = vcombine.high %v18249_v6, %v18281_v8 }
 0xe81   :  { %18307 = vxpose.xlu0.b32.end [2/2] (short) (narrow) %v18298_v36, 8  ;;  %18339 = vxpose.xlu1.b32.end [2/2] (short) (narrow) %v18299_v54, 8  ;;  %v16936_v31 = vcombine.high %v37618_v45, %v39932_v34  ;;  %v17070_v45 = vcombine.high %v37763_v33, %v39932_v34 }
 0xe85   :  { %18370 = vxpose.xlu0.b32.start [1/2] (short) (narrow) %v18164_v1, 8  ;;  %18434 = vxpose.xlu1.b32.start [1/2] (short) (narrow) %v18166_v61, 8 }
 0xe89   :  { %18371 = vxpose.xlu0.b32.end [2/2] (short) (narrow) %v18300_v62, 8  ;;  %18435 = vxpose.xlu1.b32.end [2/2] (short) (narrow) %v18302_v5, 8 }
 0xe8d   :  { %18402 = vxpose.xlu0.b32.start [1/2] (short) (narrow) %v18165_v7, 8 }
 0xe91   :  { %18403 = vxpose.xlu0.b32.end [2/2] (short) (narrow) %v18301_v37, 8 }
 0xef1   :  { %v33453_v18 = vpop.f32.mrb[20].mxu1 }
 0xef2   :  { %v37955_v38 = vadd.f32 %v33453_v18, %v14653_v20  ;;  %v15218_v49 = vpop.f32.mrb[21].mxu1 }
 0xef3   :  { %v37957_v63 = vadd.f32 %v15218_v49, %v14653_v20 }
 0xef4   :  { %16678 = vrot.lane.b32.xlu1 %v37955_v38, %s35401_s30 }
 0xef5   :  { %16676 = vrot.lane.b32.xlu0 %v37957_v63, %s35401_s30 }
 0xef8   :  { %16684 = vrot.lane.b32.xlu1 %v37955_v38, %s35400_s29 }
 0xef9   :  { %16688 = vrot.lane.b32.xlu0 %v37957_v63, %s35402_s7 }
 0xefc   :  { %16690 = vrot.lane.b32.xlu1 %v37955_v38, %s35402_s7 }
 0xefd   :  { %v37998_v10 = vpop.trf.xlu0 }
 0xf00   :  { %16682 = vrot.lane.b32.xlu1 %v37957_v63, %s35400_s29 }
 0xf17   :  { %18466 = vxpose.xlu0.b32.start [1/2] (short) (narrow) %v18167_v46, 8  ;;  %v15967_v46 = vrot.slane %v35246_v50, %v15966_v47 }
 0xf1b   :  { %18467 = vxpose.xlu0.b32.end [2/2] (short) (narrow) %v18303_v0, 8 }
 0xf1f   :  { %18530 = vxpose.xlu0.b32.start [1/2] (short) (narrow) %v18169_v12, 8  ;;  %v38000_v12 = vpop.trf.xlu1 }
 0xf21   :  { %v33618_v9 = vpop.f32.mrb[22].mxu1 }
 0xf22   :  { %v16652_v3 = vpop.f32.mrb[23].mxu1  ;;  %v38002_v33 = vadd.f32 %v33618_v9, %v15967_v46 }
 0xf23   :  { %18531 = vxpose.xlu0.b32.end [2/2] (short) (narrow) %v18305_v52, 8  ;;  %v38010_v59 = vpop.trf.xlu1  ;;  %v38020_v26 = vadd.f32 %v16652_v3, %v15967_v46 }
 0xf25   :  { %v33621_v57 = vpop.f32.mrb[24].mxu1 }
 0xf26   :  { %v16664_v44 = vpop.f32.mrb[25].mxu1  ;;  %v38034_v6 = vadd.f32 %v33621_v57, %v15967_v46 }
 0xf27   :  { %23678 = vxpose.xlu0.b32.start.end [1/1] (short) (narrow) %v16935_v17, 8  ;;  %v38012_v24 = vadd.f32 %v16664_v44, %v15967_v46 }
 0xf29   :  { %18498 = vxpose.xlu1.b32.start [1/2] (short) (narrow) %v18168_v53, 8  ;;  %v38004_v53 = vpop.trf.xlu0 }
 0xf2b   :  { %23710 = vxpose.xlu0.b32.start.end [1/1] (short) (narrow) %v16936_v31, 8 }
 0xf2d   :  { %18499 = vxpose.xlu1.b32.end [2/2] (short) (narrow) %v18304_v32, 8  ;;  %v38016_v2 = vpop.trf.xlu0 }
 0xf2f   :  { %23774 = vxpose.xlu0.b32.start.end [1/1] (short) (narrow) %v17002_v56, 8 }
 0xf31   :  { %23646 = vxpose.xlu1.b32.start.end [1/1] (short) (narrow) %v16934_v35, 8 }
 0xf33   :  { %23838 = vxpose.xlu0.b32.start.end [1/1] (short) (narrow) %v17004_v27, 8 }
 0xf35   :  { %23742 = vxpose.xlu1.b32.start.end [1/1] (short) (narrow) %v16937_v21, 8 }
 0xf37   :  { %23902 = vxpose.xlu0.b32.start.end [1/1] (short) (narrow) %v17070_v45, 8 }
 0xf39   :  { %23806 = vxpose.xlu1.b32.start.end [1/1] (short) (narrow) %v17003_v43, 8 }
 0xf3d   :  { %23870 = vxpose.xlu1.b32.start.end [1/1] (short) (narrow) %v17005_v29, 8 }
 0xf41   :  { %23934 = vxpose.xlu1.b32.start.end [1/1] (short) (narrow) %v17071_v16, 8 }
 0xf5f   :  { %17160 = vrot.lane.b32.xlu1 %v38002_v33, %s35400_s29 }
 0xf60   :  { %17148 = vrot.lane.b32.xlu0 %v38002_v33, %s35401_s30 }
 0xf63   :  { %17172 = vrot.lane.b32.xlu1 %v38002_v33, %s35402_s7 }
 0xf64   :  { %17150 = vrot.lane.b32.xlu0 %v38012_v24, %s35401_s30 }
 0xf66   :  { %v16679_v58 = vpop.permute.xlu1 %16678 }
 0xf67   :  { %17146 = vrot.lane.b32.xlu1 %v38020_v26, %s35401_s30  ;;  %v16677_v48 = vpop.permute.xlu0 %16676 }
 0xf68   :  { %17162 = vrot.lane.b32.xlu0 %v38012_v24, %s35400_s29 }
 0xf6a   :  { %v16685_v14 = vpop.permute.xlu1 %16684 }
 0xf6b   :  { %17158 = vrot.lane.b32.xlu1 %v38020_v26, %s35400_s29  ;;  %v16762_v36 = vcombine.low %v37955_v38, %v16685_v14  ;;  %v16763_v54 = vcombine.high %v37955_v38, %v16685_v14  ;;  %v16689_v0 = vpop.permute.xlu0 %16688 }
 0xf6c   :  { %17174 = vrot.lane.b32.xlu0 %v38012_v24, %s35402_s7  ;;  %v16710_v7 = vcombine.low %v16677_v48, %v16689_v0  ;;  %v16711_v37 = vcombine.high %v16677_v48, %v16689_v0 }
 0xf6d   :  { %v16770_v8 = vrot.slane %v16762_v36, %v35539_v19  ;;  %v16777_v61 = vrot.slane %v16763_v54, %v35539_v19 }
 0xf6e   :  { %v16691_v1 = vpop.permute.xlu1 %16690  ;;  %v16718_v56 = vrot.slane %v16710_v7, %v35539_v19  ;;  %v16725_v35 = vrot.slane %v16711_v37, %v35539_v19 }
 0xf6f   :  { %v16778_v52 = vcombine.low %v16679_v58, %v16691_v1  ;;  %v16779_v32 = vcombine.high %v16679_v58, %v16691_v1  ;;  %17170 = vrot.lane.b32.xlu1 %v38020_v26, %s35402_s7 }
 0xf71   :  { %v16786_v62 = vrot.slane %v16778_v52, %v35539_v19  ;;  %v16793_v5 = vrot.slane %v16779_v32, %v35539_v19 }
 0xf72   :  { %v16683_v50 = vpop.permute.xlu1 %16682 }
 0xf73   :  { %v16794_v20 = vcombine.low %v16770_v8, %v16786_v62  ;;  %v16795_v18 = vcombine.high %v16770_v8, %v16786_v62  ;;  %v16810_v38 = vcombine.low %v16777_v61, %v16793_v5  ;;  %v16811_v49 = vcombine.high %v16777_v61, %v16793_v5  ;;  %17152 = vrot.lane.b32.xlu1 %v38034_v6, %s35401_s30 }
 0xf74   :  { %v16694_v9 = vcombine.low %v37957_v63, %v16683_v50  ;;  %v16695_v3 = vcombine.high %v37957_v63, %v16683_v50 }
 0xf75   :  { %v16802_v17 = vrot.slane %v16794_v20, %v39940_v22  ;;  %v16809_v57 = vrot.slane %v16795_v18, %v39940_v22  ;;  %v16818_v44 = vrot.slane %v16810_v38, %v39940_v22  ;;  %v16825_v31 = vrot.slane %v16811_v49, %v39940_v22 }
 0xf76   :  { %v16702_v27 = vrot.slane %v16694_v9, %v35539_v19  ;;  %v16709_v21 = vrot.slane %v16695_v3, %v35539_v19 }
 0xf77   :  { %v31910_v45 = vcombine.high %v16802_v17, %v16818_v44  ;;  %v31911_v43 = vcombine.high %v16809_v57, %v16825_v31  ;;  %17164 = vrot.lane.b32.xlu1 %v38034_v6, %s35400_s29 }
 0xf78   :  { %v16726_v63 = vcombine.low %v16702_v27, %v16718_v56  ;;  %v16727_v29 = vcombine.high %v16702_v27, %v16718_v56  ;;  %v16742_v16 = vcombine.low %v16709_v21, %v16725_v35  ;;  %v16743_v47 = vcombine.high %v16709_v21, %v16725_v35 }
 0xf79   :  { %v23601_v46 = vrot.slane %v31910_v45, %v35539_v19  ;;  %v23609_v58 = vrot.slane %v31911_v43, %v35539_v19  ;;  %v17470_v35 = vcombine.low %v16802_v17, %v16818_v44  ;;  %v17478_v27 = vcombine.low %v16809_v57, %v16825_v31 }
 0xf7a   :  { %v16734_v48 = vrot.slane %v16726_v63, %v39940_v22  ;;  %v16741_v14 = vrot.slane %v16727_v29, %v39940_v22  ;;  %v16750_v36 = vrot.slane %v16742_v16, %v39940_v22  ;;  %v16757_v54 = vrot.slane %v16743_v47, %v39940_v22 }
 0xf7b   :  { %v23626_v1 = vcombine.low %v23601_v46, %v23609_v58  ;;  %v23627_v0 = vcombine.high %v23601_v46, %v23609_v58  ;;  %17176 = vrot.lane.b32.xlu1 %v38034_v6, %s35402_s7  ;;  %v38091_v43 = vrot.slane %v17470_v35, %v35539_v19  ;;  %v38094_v63 = vrot.slane %v17478_v27, %v35539_v19 }
 0xf7c   :  { %v31908_v52 = vcombine.high %v16734_v48, %v16750_v36  ;;  %v31909_v32 = vcombine.high %v16741_v14, %v16757_v54  ;;  %v17454_v3 = vcombine.low %v16734_v48, %v16750_v36  ;;  %v17462_v56 = vcombine.low %v16741_v14, %v16757_v54 }
 0xf7d   :  { %v38071_v50 = vrot.slane %v23626_v1, %v39940_v22  ;;  %v38074_v20 = vrot.slane %v23627_v0, %v39940_v22  ;;  %v17502_v16 = vcombine.low %v38091_v43, %v38094_v63  ;;  %v18562_v14 = vcombine.low %v37998_v10, %v38004_v53 }
 0xf7e   :  { %v23585_v8 = vrot.slane %v31908_v52, %v35539_v19  ;;  %v23593_v61 = vrot.slane %v31909_v32, %v35539_v19  ;;  %v38085_v21 = vrot.slane %v17454_v3, %v35539_v19  ;;  %v38088_v45 = vrot.slane %v17462_v56, %v35539_v19 }
 0xf7f   :  { %39953 = vst [vmem:[#allocation31_spill] sm:$0xff] %v38071_v50  ;;  %39954 = vst [vmem:[#allocation32_spill] sm:$0xff] %v38074_v20  ;;  %v17510_v57 = vrot.slane %v17502_v16, %v39940_v22  ;;  %v18570_v36 = vcombine.low %v38000_v12, %v38016_v2  ;;  %v38115_v32 = vrot.slane %v18562_v14, %v35539_v19 }
 0xf80   :  { %v23610_v62 = vcombine.low %v23585_v8, %v23593_v61  ;;  %v23611_v5 = vcombine.high %v23585_v8, %v23593_v61  ;;  %v17486_v29 = vcombine.low %v38085_v21, %v38088_v45 }
 0xf81   :  { %v38118_v8 = vrot.slane %v18570_v36, %v35539_v19 }
 0xf82   :  { %v38065_v7 = vrot.slane %v23610_v62, %v39940_v22  ;;  %v38068_v37 = vrot.slane %v23611_v5, %v39940_v22  ;;  %v17494_v17 = vrot.slane %v17486_v29, %v39940_v22 }
 0xf83   :  { %v18594_v5 = vcombine.low %v38115_v32, %v38118_v8 }
 0xf84   :  { %39951 = vst [vmem:[#allocation29_spill] sm:$0xff] %v38065_v7  ;;  %39952 = vst [vmem:[#allocation30_spill] sm:$0xff] %v38068_v37  ;;  %v17518_v31 = vcombine.low %v17494_v17, %v17510_v57  ;;  %v17519_v47 = vcombine.high %v17494_v17, %v17510_v57 }
 0xf86   :  { %v18631_v46 = vsel %vm3105_vm2, %v17518_v31, 0  ;;  %v19080_v58 = vsel %vm3105_vm2, %v17519_v47, 0 }
 0xf87   :  { %v38108_v54 = vand.u32 4294901760, %v18631_v46  ;;  %v38110_v1 = vand.u32 4294901760, %v19080_v58 }
 0xf89   :  { %v38121_v62 = vsub.f32 %v18631_v46, %v38108_v54  ;;  %v38124_v10 = vsub.f32 %v19080_v58, %v38110_v1 }
 0xf8b   :  { %v18701_v56 = vand.u32 4294901760, %v38121_v62  ;;  %v19150_v35 = vand.u32 4294901760, %v38124_v10 }
 0xf8d   :  { %v18702_v17 = vsub.f32 %v38121_v62, %v18701_v56  ;;  %v19151_v57 = vsub.f32 %v38124_v10, %v19150_v35 }
 0xf8f   :  { %v18703_v36 = vand.u32 4294901760, %v18702_v17 }
 0xf97   :  { %v18482_v44 = vpop.trf.xlu0 }
 0xf9f   :  { %v18546_v48 = vpop.trf.xlu0 }
 0xfa0   :  { %v18586_v0 = vcombine.low %v18482_v44, %v18546_v48 }
 0xfa2   :  { %v38128_v53 = vrot.slane %v18586_v0, %v35539_v19  ;;  %v19152_v0 = vand.u32 4294901760, %v19151_v57 }
 0xfa7   :  { %v38112_v52 = vpop.trf.xlu0 }
 0xfa9   :  { %v18514_v61 = vpop.trf.xlu1 }
 0xfaa   :  { %v18578_v12 = vcombine.low %v38010_v59, %v18514_v61  ;;  %v18602_v59 = vrot.slane %v18594_v5, %v39940_v22 }
 0xfab   :  { %v38130_v2 = vpop.trf.xlu0 }
 0xfac   :  { %v38135_v3 = vrot.slane %v18578_v12, %v35539_v19 }
 0xfae   :  { %v18610_v27 = vcombine.low %v38135_v3, %v38128_v53 }
 0xfaf   :  { %v38151_v44 = vpop.trf.xlu0 }
 0xfb0   :  { %v18618_v29 = vrot.slane %v18610_v27, %v39940_v22 }
 0xfb1   :  { %v38143_v16 = vpop.trf.xlu1 }
 0xfb2   :  { %v24158_v31 = vcombine.low %v38143_v16, %v38130_v2  ;;  %v18626_v47 = vcombine.low %v18602_v59, %v18618_v29  ;;  %v18627_v46 = vcombine.high %v18602_v59, %v18618_v29 }
 0xfb3   :  { %v38174_v59 = vpop.trf.xlu0 }
 0xfb4   :  { %v38155_v58 = vand.u32 4294901760, %v18626_v47  ;;  %v38157_v48 = vand.u32 4294901760, %v18627_v46  ;;  %v38164_v12 = vrot.slane %v24158_v31, %v35539_v19 }
 0xfb5   :  { %v38159_v14 = vpop.trf.xlu1 }
 0xfb6   :  { %v24174_v61 = vcombine.low %v38112_v52, %v38159_v14  ;;  %33623 = vmatpush3.msra.mxu0 %v38155_v58  ;;  %v38168_v5 = vsub.f32 %v18626_v47, %v38155_v58  ;;  %33653 = vmatpush3.msra.mxu1 %v38157_v48  ;;  %v38172_v27 = vsub.f32 %v18627_v46, %v38157_v48 }
 0xfb7   :  { %33625 = vmatmul.mubr.f32.vlgmr.msra.gmra.mrb[24].mxu0 %v18703_v36  ;;  %33655 = vmatmul.mubr.f32.vlgmr.msra.gmra.mrb[26].mxu1 %v19152_v0  ;;  %v24190_v46 = vcombine.low %v38151_v44, %v38174_v59 }
 0xfb8   :  { %v38177_v29 = vrot.slane %v24174_v61, %v35539_v19  ;;  %33627 = vmatprep.subr.mxu0 %v39932_v34  ;;  %33657 = vmatprep.subr.mxu1 %v39932_v34  ;;  %v18712_v17 = vand.u32 4294901760, %v38168_v5  ;;  %v19161_v31 = vand.u32 4294901760, %v38172_v27 }
 0xfb9   :  { %v38182_v57 = vpop.trf.xlu1  ;;  %33629 = vmatprep.mubr.msk.f32.mxu0 %vm35404_vm1, %v39932_v34  ;;  %33659 = vmatprep.mubr.msk.f32.mxu1 %vm35404_vm1, %v39932_v34  ;;  %v38200_v38 = vrot.slane %v24190_v46, %v35539_v19 }
 0xfba   :  { %v24223_v47 = vcombine.high %v38164_v12, %v38177_v29  ;;  %v18713_v36 = vsub.f32 %v38168_v5, %v18712_v17  ;;  %v19162_v0 = vsub.f32 %v38172_v27, %v19161_v31 }
 0xfbc   :  { %v18714_v30 = vand.u32 4294901760, %v18713_v36  ;;  %v19163_v9 = vand.u32 4294901760, %v19162_v0  ;;  %v38213_v46 = vrot.slane %v24223_v47, %v39940_v22  ;;  %v38253_v0 = vpop.trf.xlu0 }
 0xfbd   :  { %v38195_v61 = vpop.trf.xlu1 }
 0xfbe   :  { %v24206_v49 = vcombine.low %v38182_v57, %v38195_v61  ;;  %33628 = vmatpush3.msra.mxu0 %v18714_v30  ;;  %33658 = vmatpush3.msra.mxu1 %v19163_v9  ;;  %39955 = vst [vmem:[#allocation33_spill] sm:$0xff] %v38213_v46  ;;  %v17487_v30 = vcombine.high %v38085_v21, %v38088_v45 }
 0xfbf   :  { %33630 = vmatmul.mubr.f32.vlgmr.msra.gmra.mrb[24].mxu0 %v38108_v54  ;;  %33632 = vmatprep.subr.mxu0 %v39932_v34  ;;  %v17503_v9 = vcombine.high %v38091_v43, %v38094_v63  ;;  %v18611_v21 = vcombine.high %v38135_v3, %v38128_v53  ;;  %v18595_v43 = vcombine.high %v38115_v32, %v38118_v8 }
 0xfc0   :  { %v38203_v18 = vrot.slane %v24206_v49, %v35539_v19  ;;  %33660 = vmatmul.mubr.f32.vlgmr.msra.gmra.mrb[26].mxu1 %v38110_v1  ;;  %33662 = vmatprep.subr.mxu1 %v39932_v34  ;;  %v17501_v45 = vrot.slane %v17487_v30, %v39940_v22 }
 0xfc1   :  { %33633 = vmatpush3.msra.mxu0 %v38168_v5  ;;  %33663 = vmatpush3.msra.mxu1 %v38172_v27  ;;  %v17517_v63 = vrot.slane %v17503_v9, %v39940_v22  ;;  %v38245_v47 = vpop.trf.xlu1  ;;  %v18625_v53 = vrot.slane %v18611_v21, %v39940_v22  ;;  %v18609_v8 = vrot.slane %v18595_v43, %v39940_v22 }
 0xfc2   :  { %v24255_v36 = vcombine.high %v38200_v38, %v38203_v18  ;;  %33634 = vmatprep.mubr.msk.f32.mxu0 %vm35404_vm1, %v39932_v34  ;;  %33637 = vmatprep.subr.mxu0 %v39932_v34 }
 0xfc3   :  { %33664 = vmatprep.mubr.msk.f32.mxu1 %vm35404_vm1, %v39932_v34  ;;  %33667 = vmatprep.subr.mxu1 %v39932_v34  ;;  %v17520_v3 = vcombine.low %v17501_v45, %v17517_v63  ;;  %v17521_v32 = vcombine.high %v17501_v45, %v17517_v63  ;;  %v18629_v27 = vcombine.high %v18609_v8, %v18625_v53 }
 0xfc4   :  { %v38224_v49 = vrot.slane %v24255_v36, %v39940_v22  ;;  %v18628_v36 = vcombine.low %v18609_v8, %v18625_v53 }
 0xfc5   :  { %v19529_v30 = vsel %vm3105_vm2, %v17520_v3, 0  ;;  %v19978_v9 = vsel %vm3105_vm2, %v17521_v32, 0  ;;  %v38274_v45 = vand.u32 4294901760, %v18629_v27 }
 0xfc6   :  { %39956 = vst [vmem:[#allocation34_spill] sm:$0xff] %v38224_v49 }
 0xfc7   :  { %33635 = vmatmul.mubr.f32.vlgmr.msra.gmra.mrb[24].mxu0 %v38121_v62  ;;  %v38266_v62 = vand.u32 4294901760, %v19529_v30 }
 0xfc8   :  { %33638 = vmatpush3.msra.mxu0 %v38155_v58  ;;  %33665 = vmatmul.mubr.f32.vlgmr.msra.gmra.mrb[26].mxu1 %v38124_v10  ;;  %v38272_v10 = vand.u32 4294901760, %v18628_v36 }
 0xfc9   :  { %33668 = vmatpush3.msra.mxu1 %v38157_v48  ;;  %33639 = vmatprep.mubr.msk.f32.mxu0 %vm35404_vm1, %v39932_v34  ;;  %v38277_v53 = vsub.f32 %v19529_v30, %v38266_v62 }
 0xfca   :  { %33642 = vmatprep.subr.mxu0 %v39932_v34  ;;  %33669 = vmatprep.mubr.msk.f32.mxu1 %vm35404_vm1, %v39932_v34  ;;  %v38287_v51 = vsub.f32 %v18628_v36, %v38272_v10 }
 0xfcb   :  { %33672 = vmatprep.subr.mxu1 %v39932_v34 }
 0xfcf   :  { %33640 = vmatmul.mubr.f32.vlgmr.msra.gmra.mrb[24].mxu0 %v18701_v56  ;;  %v38268_v56 = vand.u32 4294901760, %v19978_v9 }
 0xfd0   :  { %33643 = vmatpush3.msra.mxu0 %v18712_v17  ;;  %33670 = vmatmul.mubr.f32.vlgmr.msra.gmra.mrb[26].mxu1 %v19150_v35 }
 0xfd1   :  { %v17161_v21 = vpop.permute.xlu1 %17160  ;;  %33673 = vmatpush3.msra.mxu1 %v19161_v31  ;;  %33644 = vmatprep.mubr.msk.f32.mxu0 %vm35404_vm1, %v39932_v34  ;;  %v38280_v3 = vsub.f32 %v19978_v9, %v38268_v56 }
 0xfd2   :  { %33647 = vmatprep.subr.mxu0 %v39932_v34  ;;  %33674 = vmatprep.mubr.msk.f32.mxu1 %vm35404_vm1, %v39932_v34  ;;  %v17250_v17 = vcombine.low %v38002_v33, %v17161_v21  ;;  %v17149_v35 = vpop.permute.xlu0 %17148  ;;  %v17251_v32 = vcombine.high %v38002_v33, %v17161_v21 }
 0xfd3   :  { %33677 = vmatprep.subr.mxu1 %v39932_v34  ;;  %v39875_v36 = vand.u32 4294901760, %v38280_v3 }
 0xfd4   :  { %v17258_v8 = vrot.slane %v17250_v17, %v35539_v19  ;;  %v39876_v17 = vand.u32 4294901760, %v38287_v51 }
 0xfd5   :  { %v17173_v31 = vpop.permute.xlu1 %17172 }
 0xfd6   :  { %v17266_v43 = vcombine.low %v17149_v35, %v17173_v31  ;;  %v17267_v63 = vcombine.high %v17149_v35, %v17173_v31  ;;  %v38292_v35 = vsub.f32 %v18629_v27, %v38274_v45  ;;  %v17265_v27 = vrot.slane %v17251_v32, %v35539_v19  ;;  %v38331_v41 = vpop.permute.xlu0 %17150 }
 0xfd7   :  { %33645 = vmatmul.mubr.f32.vlgmr.msra.gmra.mrb[24].mxu0 %v38108_v54 }
 0xfd8   :  { %v17274_v5 = vrot.slane %v17266_v43, %v35539_v19  ;;  %33648 = vmatpush3.msra.mxu0 %v38155_v58  ;;  %33675 = vmatmul.mubr.f32.vlgmr.msra.gmra.mrb[26].mxu1 %v38110_v1  ;;  %v17281_v9 = vrot.slane %v17267_v63, %v35539_v19  ;;  %v39872_v58 = vand.u32 4294901760, %v38277_v53  ;;  %v20049_v43 = vsub.f32 %v38280_v3, %v39875_v36 }
 0xfd9   :  { %v17147_v30 = vpop.permute.xlu1 %17146  ;;  %33678 = vmatpush3.msra.mxu1 %v38157_v48  ;;  %33649 = vmatprep.mubr.msk.f32.mxu0 %vm35404_vm1, %v39932_v34 }
 0xfda   :  { %v17282_v33 = vcombine.low %v17258_v8, %v17274_v5  ;;  %v17283_v21 = vcombine.high %v17258_v8, %v17274_v5  ;;  %33679 = vmatprep.mubr.msk.f32.mxu1 %vm35404_vm1, %v39932_v34  ;;  %33682 = vmatprep.subr.mxu0 %v39932_v34  ;;  %v17299_v63 = vcombine.high %v17265_v27, %v17281_v9 }
 0xfdb   :  { %33712 = vmatprep.subr.mxu1 %v39932_v34  ;;  %v17298_v8 = vcombine.low %v17265_v27, %v17281_v9  ;;  %v19600_v32 = vsub.f32 %v38277_v53, %v39872_v58  ;;  %v39959_v27 = vand.u32 4294901760, %v38292_v35 }
 0xfdc   :  { %v38306_v5 = vrot.slane %v17283_v21, %v39940_v22  ;;  %v38309_v48 = vrot.slane %v17282_v33, %v39940_v22  ;;  %v19611_v33 = vsub.f32 %v38287_v51, %v39876_v17  ;;  %v38337_v36 = vrot.slane %v17299_v63, %v39940_v22 }
 0xfdd   :  { %v17159_v31 = vpop.permute.xlu1 %17158  ;;  %v20060_v58 = vsub.f32 %v38292_v35, %v39959_v27  ;;  %v38344_v27 = vrot.slane %v17298_v8, %v39940_v22  ;;  %v19601_v17 = vand.u32 4294901760, %v19600_v32 }
 0xfde   :  { %39957 = vst [vmem:[#allocation35_spill] sm:$0xff] %v38306_v5  ;;  %39958 = vst [vmem:[#allocation36_spill] sm:$0xff] %v38309_v48  ;;  %20630 = vxpose.xlu1.b32.start.end [1/1] (short) (narrow) %v38306_v5, 8  ;;  %20598 = vxpose.xlu0.b32.start.end [1/1] (short) (narrow) %v38309_v48, 8  ;;  %v17182_v21 = vcombine.low %v38020_v26, %v17159_v31  ;;  %v19612_v63 = vand.u32 4294901760, %v19611_v33 }
 0xfdf   :  { %33650 = vmatmul.mubr.f32.vlgmr.msra.gmra.mrb[24].mxu0 %v38108_v54  ;;  %39960 = vst [vmem:[#allocation37_spill] sm:$0xff] %v38337_v36  ;;  %39961 = vst [vmem:[#allocation38_spill] sm:$0xff] %v38344_v27 }
 0xfe0   :  { %33680 = vmatmul.mubr.f32.vlgmr.msra.gmra.mrb[26].mxu1 %v38110_v1  ;;  %33683 = vmatpush3.msra.mxu0 %v38272_v10  ;;  %v17183_v1 = vcombine.high %v38020_v26, %v17159_v31  ;;  %v17190_v4 = vrot.slane %v17182_v21, %v35539_v19  ;;  %v20061_v31 = vand.u32 4294901760, %v20060_v58 }
 0xfe1   :  { %v17171_v9 = vpop.permute.xlu1 %17170  ;;  %33713 = vmatpush3.msra.mxu1 %v38274_v45  ;;  %33684 = vmatprep.mubr.msk.f32.mxu0 %vm35404_vm1, %v39932_v34 }
 0xfe2   :  { %v17198_v54 = vcombine.low %v17147_v30, %v17171_v9  ;;  %v17199_v40 = vcombine.high %v17147_v30, %v17171_v9  ;;  %33687 = vmatprep.subr.mxu0 %v39932_v34  ;;  %33714 = vmatprep.mubr.msk.f32.mxu1 %vm35404_vm1, %v39932_v34  ;;  %v20050_v9 = vand.u32 4294901760, %v20049_v43  ;;  %v17197_v21 = vrot.slane %v17183_v1, %v35539_v19 }
 0xfe3   :  { %33717 = vmatprep.subr.mxu1 %v39932_v34  ;;  %20694 = vxpose.xlu1.b32.start.end [1/1] (short) (narrow) %v38337_v36, 8 }
 0xfe4   :  { %v17206_v30 = vrot.slane %v17198_v54, %v35539_v19  ;;  %v17213_v26 = vrot.slane %v17199_v40, %v35539_v19  ;;  %20662 = vxpose.xlu0.b32.start.end [1/1] (short) (narrow) %v38344_v27, 8  ;;  %33685 = vmatmul.mubr.f32.vlgmr.msra.gmra.mrb[26].mxu0 %v19601_v17  ;;  %v17163_v54 = vpop.permute.xlu0 %17162 }
 0xfe5   :  { %v17153_v23 = vpop.permute.xlu1 %17152  ;;  %33688 = vmatpush3.msra.mxu0 %v19612_v63  ;;  %33715 = vmatmul.mubr.f32.vlgmr.msra.gmra.mrb[28].mxu1 %v20050_v9 }
 0xfe6   :  { %v17215_v8 = vcombine.high %v17190_v4, %v17206_v30  ;;  %v17214_v32 = vcombine.low %v17190_v4, %v17206_v30  ;;  %33718 = vmatpush3.msra.mxu1 %v20061_v31  ;;  %33689 = vmatprep.mubr.msk.f32.mxu0 %vm35404_vm1, %v39932_v34  ;;  %v17230_v4 = vcombine.low %v17197_v21, %v17213_v26 }
 0xfe7   :  { %33692 = vmatprep.subr.mxu0 %v39932_v34  ;;  %33719 = vmatprep.mubr.msk.f32.mxu1 %vm35404_vm1, %v39932_v34  ;;  %v17231_v30 = vcombine.high %v17197_v21, %v17213_v26 }
 0xfe8   :  { %v38359_v40 = vrot.slane %v17215_v8, %v39940_v22  ;;  %v38362_v58 = vrot.slane %v17214_v32, %v39940_v22  ;;  %33722 = vmatprep.subr.mxu1 %v39932_v34  ;;  %v38370_v1 = vrot.slane %v17230_v4, %v39940_v22  ;;  %v17175_v63 = vpop.permute.xlu0 %17174  ;;  %v17318_v4 = vcombine.low %v38012_v24, %v17163_v54 }
 0xfe9   :  { %v17165_v17 = vpop.permute.xlu1 %17164  ;;  %v17334_v26 = vcombine.low %v38331_v41, %v17175_v63 }
 0xfea   :  { %39962 = vst [vmem:[#allocation39_spill] sm:$0xff] %v38359_v40  ;;  %39963 = vst [vmem:[#allocation40_spill] sm:$0xff] %v38362_v58  ;;  %20502 = vxpose.xlu1.b32.start.end [1/1] (short) (narrow) %v38359_v40, 8  ;;  %20470 = vxpose.xlu0.b32.start.end [1/1] (short) (narrow) %v38362_v58, 8  ;;  %v17386_v43 = vcombine.low %v38034_v6, %v17165_v17  ;;  %v17387_v8 = vcombine.high %v38034_v6, %v17165_v17 }
 0xfeb   :  { %39964 = vst [vmem:[#allocation41_spill] sm:$0xff] %v38370_v1  ;;  %v17342_v28 = vrot.slane %v17334_v26, %v35539_v19 }
 0xfec   :  { %33690 = vmatmul.mubr.f32.vlgmr.msra.gmra.mrb[26].mxu0 %v38266_v62  ;;  %v17394_v32 = vrot.slane %v17386_v43, %v35539_v19  ;;  %v17401_v43 = vrot.slane %v17387_v8, %v35539_v19  ;;  %v17319_v8 = vcombine.high %v38012_v24, %v17163_v54 }
 0xfed   :  { %v17177_v33 = vpop.permute.xlu1 %17176  ;;  %33693 = vmatpush3.msra.mxu0 %v38287_v51  ;;  %33720 = vmatmul.mubr.f32.vlgmr.msra.gmra.mrb[28].mxu1 %v38268_v56 }
 0xfee   :  { %v17402_v9 = vcombine.low %v17153_v23, %v17177_v33  ;;  %v17403_v31 = vcombine.high %v17153_v23, %v17177_v33  ;;  %33723 = vmatpush3.msra.mxu1 %v38292_v35  ;;  %20534 = vxpose.xlu0.b32.start.end [1/1] (short) (narrow) %v38370_v1, 8  ;;  %v38388_v23 = vrot.slane %v17231_v30, %v39940_v22 }
 0xfef   :  { %33694 = vmatprep.mubr.msk.f32.mxu0 %vm35404_vm1, %v39932_v34  ;;  %33697 = vmatprep.subr.mxu0 %v39932_v34 }
 0xff0   :  { %v17410_v55 = vrot.slane %v17402_v9, %v35539_v19  ;;  %v17417_v21 = vrot.slane %v17403_v31, %v35539_v19  ;;  %33724 = vmatprep.mubr.msk.f32.mxu1 %vm35404_vm1, %v39932_v34  ;;  %33727 = vmatprep.subr.mxu1 %v39932_v34  ;;  %39965 = vst [vmem:[#allocation42_spill] sm:$0xff] %v38388_v23 }
 0xff1   :  { %v17335_v31 = vcombine.high %v38331_v41, %v17175_v63 }
 0xff2   :  { %v17419_v6 = vcombine.high %v17394_v32, %v17410_v55  ;;  %v17418_v17 = vcombine.low %v17394_v32, %v17410_v55  ;;  %20566 = vxpose.xlu0.b32.start.end [1/1] (short) (narrow) %v38388_v23, 8  ;;  %v17435_v30 = vcombine.high %v17401_v43, %v17417_v21  ;;  %v17434_v55 = vcombine.low %v17401_v43, %v17417_v21 }
 0xff3   :  { %v17326_v32 = vrot.slane %v17318_v4, %v35539_v19  ;;  %v17349_v41 = vrot.slane %v17335_v31, %v35539_v19  ;;  %v17333_v21 = vrot.slane %v17319_v8, %v35539_v19  ;;  %v39972_v43 = vand.u32 4294901760, %v38287_v51 }
 0xff4   :  { %v38394_v33 = vrot.slane %v17419_v6, %v39940_v22  ;;  %v38397_v9 = vrot.slane %v17418_v17, %v39940_v22  ;;  %33695 = vmatmul.mubr.f32.vlgmr.msra.gmra.mrb[26].mxu0 %v38277_v53  ;;  %v38416_v24 = vrot.slane %v17435_v30, %v39940_v22  ;;  %v38420_v63 = vrot.slane %v17434_v55, %v39940_v22 }
 0xff5   :  { %33698 = vmatpush3.msra.mxu0 %v38272_v10  ;;  %33725 = vmatmul.mubr.f32.vlgmr.msra.gmra.mrb[28].mxu1 %v38280_v3  ;;  %v17351_v54 = vcombine.high %v17326_v32, %v17342_v28  ;;  %v17350_v26 = vcombine.low %v17326_v32, %v17342_v28  ;;  %v39970_v6 = vand.u32 4294901760, %v38277_v53  ;;  %v17367_v4 = vcombine.high %v17333_v21, %v17349_v41 }
 0xff6   :  { %39966 = vst [vmem:[#allocation43_spill] sm:$0xff] %v38394_v33  ;;  %39967 = vst [vmem:[#allocation44_spill] sm:$0xff] %v38397_v9  ;;  %33728 = vmatpush3.msra.mxu1 %v38274_v45  ;;  %20886 = vxpose.xlu1.b32.start.end [1/1] (short) (narrow) %v38394_v33, 8  ;;  %v39973_v31 = vand.u32 4294901760, %v38280_v3  ;;  %v17366_v30 = vcombine.low %v17333_v21, %v17349_v41  ;;  %v39975_v55 = vand.u32 4294901760, %v38292_v35 }
 0xff7   :  { %20854 = vxpose.xlu0.b32.start.end [1/1] (short) (narrow) %v38397_v9, 8  ;;  %33699 = vmatprep.mubr.msk.f32.mxu0 %vm35404_vm1, %v39932_v34  ;;  %39968 = vst [vmem:[#allocation45_spill] sm:$0xff] %v38416_v24  ;;  %39969 = vst [vmem:[#allocation46_spill] sm:$0xff] %v38420_v63  ;;  %v38428_v17 = vrot.slane %v17351_v54, %v39940_v22  ;;  %v38435_v28 = vrot.slane %v17350_v26, %v39940_v22 }
 0xff8   :  { %33702 = vmatprep.subr.mxu0 %v39932_v34  ;;  %33729 = vmatprep.mubr.msk.f32.mxu1 %vm35404_vm1, %v39932_v34  ;;  %v38447_v51 = vrot.slane %v17367_v4, %v39940_v22  ;;  %v38451_v53 = vrot.slane %v17366_v30, %v39940_v22 }
 0xff9   :  { %33732 = vmatprep.subr.mxu1 %v39932_v34  ;;  %39971 = vst [vmem:[#allocation47_spill] sm:$0xff] %v38428_v17  ;;  %39974 = vst [vmem:[#allocation48_spill] sm:$0xff] %v38435_v28 }
 0xffa   :  { %20950 = vxpose.xlu1.b32.start.end [1/1] (short) (narrow) %v38416_v24, 8  ;;  %39976 = vst [vmem:[#allocation49_spill] sm:$0xff] %v38447_v51  ;;  %39977 = vst [vmem:[#allocation50_spill] sm:$0xff] %v38451_v53 }
 0xffb   :  { %20918 = vxpose.xlu0.b32.start.end [1/1] (short) (narrow) %v38420_v63, 8 }
 0xffc   :  { %33700 = vmatmul.mubr.f32.vlgmr.msra.gmra.mrb[26].mxu0 %v39970_v6 }
 0xffd   :  { %33703 = vmatpush3.msra.mxu0 %v39972_v43  ;;  %33730 = vmatmul.mubr.f32.vlgmr.msra.gmra.mrb[28].mxu1 %v39973_v31 }
 0xffe   :  { %33733 = vmatpush3.msra.mxu1 %v39975_v55  ;;  %20758 = vxpose.xlu1.b32.start.end [1/1] (short) (narrow) %v38428_v17, 8 }
 0xfff   :  { %20726 = vxpose.xlu0.b32.start.end [1/1] (short) (narrow) %v38435_v28, 8  ;;  %33704 = vmatprep.mubr.msk.f32.mxu0 %vm35404_vm1, %v39932_v34 }
0x1000   :  { %33707 = vmatprep.subr.mxu0 %v39932_v34  ;;  %33734 = vmatprep.mubr.msk.f32.mxu1 %vm35404_vm1, %v39932_v34 }
0x1001   :  { %33737 = vmatprep.subr.mxu1 %v39932_v34 }
0x1002   :  { %20822 = vxpose.xlu1.b32.start.end [1/1] (short) (narrow) %v38447_v51, 8 }
0x1003   :  { %20790 = vxpose.xlu0.b32.start.end [1/1] (short) (narrow) %v38451_v53, 8 }
0x1004   :  { %33705 = vmatmul.mubr.f32.vlgmr.msra.gmra.mrb[26].mxu0 %v38266_v62 }
0x1005   :  { %33708 = vmatpush3.msra.mxu0 %v38272_v10  ;;  %33735 = vmatmul.mubr.f32.vlgmr.msra.gmra.mrb[28].mxu1 %v38268_v56 }
0x1006   :  { %33738 = vmatpush3.msra.mxu1 %v38274_v45  ;;  %33709 = vmatprep.mubr.msk.f32.mxu0 %vm35404_vm1, %v39932_v34 }
0x1007   :  { %33739 = vmatprep.mubr.msk.f32.mxu1 %vm35404_vm1, %v39932_v34  ;;  %33742 = vmatprep.subr.mxu0 %v39932_v34 }
0x1008   :  { %33772 = vmatprep.subr.mxu1 %v39932_v34 }
0x100c   :  { %33710 = vmatmul.mubr.f32.vlgmr.msra.gmra.mrb[26].mxu0 %v38266_v62 }
0x100d   :  { %33740 = vmatmul.mubr.f32.vlgmr.msra.gmra.mrb[28].mxu1 %v38268_v56  ;;  %33744 = vmatprep.mubr.msk.f32.mxu0 %vm35404_vm1, %v39932_v34 }
0x100e   :  { %33774 = vmatprep.mubr.msk.f32.mxu1 %vm35404_vm1, %v39932_v34 }
0x105e   :  { %v20614_v10 = vpop.trf.xlu0  ;;  %v20646_v45 = vpop.trf.xlu1 }
0x1063   :  { %v20710_v8 = vpop.trf.xlu1 }
0x1064   :  { %v20678_v3 = vpop.trf.xlu0  ;;  %v21030_v32 = vcombine.low %v20646_v45, %v20710_v8 }
0x1065   :  { %v21014_v41 = vcombine.low %v20614_v10, %v20678_v3  ;;  %v21015_v48 = vcombine.high %v20614_v10, %v20678_v3 }
0x1066   :  { %v21038_v21 = vrot.slane %v21030_v32, %v35539_v19 }
0x1067   :  { %v21022_v62 = vrot.slane %v21014_v41, %v35539_v19 }
0x1069   :  { %v21078_v43 = vcombine.low %v21022_v62, %v21038_v21  ;;  %v21079_v5 = vcombine.high %v21022_v62, %v21038_v21 }
0x106a   :  { %v20486_v35 = vpop.trf.xlu0  ;;  %v20518_v26 = vpop.trf.xlu1 }
0x106b   :  { %v21086_v50 = vrot.slane %v21078_v43, %v39940_v22  ;;  %v21093_v3 = vrot.slane %v21079_v5, %v39940_v22 }
0x106e   :  { %v20550_v54 = vpop.trf.xlu0 }
0x106f   :  { %v20982_v56 = vcombine.low %v20486_v35, %v20550_v54  ;;  %v20983_v1 = vcombine.high %v20486_v35, %v20550_v54 }
0x1071   :  { %v20990_v31 = vrot.slane %v20982_v56, %v35539_v19  ;;  %v20997_v10 = vrot.slane %v20983_v1, %v35539_v19 }
0x1072   :  { %v20582_v6 = vpop.trf.xlu0 }
0x1073   :  { %v20998_v4 = vcombine.low %v20518_v26, %v20582_v6 }
0x1075   :  { %v21006_v30 = vrot.slane %v20998_v4, %v35539_v19 }
0x1076   :  { %v20902_v55 = vpop.trf.xlu1 }
0x1077   :  { %v21046_v60 = vcombine.low %v20990_v31, %v21006_v30  ;;  %v20870_v20 = vpop.trf.xlu0 }
0x1079   :  { %v21054_v37 = vrot.slane %v21046_v60, %v39940_v22 }
0x107a   :  { %v20966_v7 = vpop.trf.xlu1 }
0x107b   :  { %v20934_v63 = vpop.trf.xlu0  ;;  %v21111_v32 = vcombine.high %v21054_v37, %v21086_v50  ;;  %v21110_v24 = vcombine.low %v21054_v37, %v21086_v50  ;;  %v21166_v41 = vcombine.low %v20902_v55, %v20966_v7  ;;  %v20999_v37 = vcombine.high %v20518_v26, %v20582_v6 }
0x107c   :  { %v21150_v9 = vcombine.low %v20870_v20, %v20934_v63  ;;  %v21047_v50 = vcombine.high %v20990_v31, %v21006_v30  ;;  %v21167_v35 = vcombine.high %v20902_v55, %v20966_v7 }
0x107d   :  { %21286 = vxpose.xlu0.b32.start [1/2] (short) (narrow) %v21111_v32, 8  ;;  %21254 = vxpose.xlu1.b32.start [1/2] (short) (narrow) %v21110_v24, 8  ;;  %v21174_v56 = vrot.slane %v21166_v41, %v35539_v19  ;;  %v21031_v32 = vcombine.high %v20646_v45, %v20710_v8  ;;  %v21013_v23 = vrot.slane %v20999_v37, %v35539_v19 }
0x107e   :  { %v20774_v33 = vpop.trf.xlu1  ;;  %v21158_v4 = vrot.slane %v21150_v9, %v35539_v19  ;;  %v21061_v58 = vrot.slane %v21047_v50, %v39940_v22  ;;  %v21029_v45 = vrot.slane %v21015_v48, %v35539_v19  ;;  %v21151_v8 = vcombine.high %v20870_v20, %v20934_v63 }
0x107f   :  { %v20742_v53 = vpop.trf.xlu0  ;;  %v21045_v26 = vrot.slane %v21031_v32, %v35539_v19  ;;  %v21181_v48 = vrot.slane %v21167_v35, %v35539_v19 }
0x1080   :  { %v21214_v27 = vcombine.low %v21158_v4, %v21174_v56  ;;  %v21165_v1 = vrot.slane %v21151_v8, %v35539_v19 }
0x1081   :  { %v21094_v21 = vcombine.low %v21029_v45, %v21045_v26  ;;  %v21095_v30 = vcombine.high %v21029_v45, %v21045_v26 }
0x1082   :  { %v20838_v51 = vpop.trf.xlu1  ;;  %v21222_v9 = vrot.slane %v21214_v27, %v39940_v22  ;;  %v21215_v27 = vcombine.high %v21158_v4, %v21174_v56  ;;  %v21231_v50 = vcombine.high %v21165_v1, %v21181_v48 }
0x1083   :  { %v21134_v28 = vcombine.low %v20774_v33, %v20838_v51  ;;  %v20806_v17 = vpop.trf.xlu0  ;;  %v21135_v40 = vcombine.high %v20774_v33, %v20838_v51  ;;  %v21062_v33 = vcombine.low %v20997_v10, %v21013_v23  ;;  %v21112_v51 = vcombine.low %v21061_v58, %v21093_v3 }
0x1084   :  { %v21118_v60 = vcombine.low %v20742_v53, %v20806_v17  ;;  %v21229_v7 = vrot.slane %v21215_v27, %v39940_v22 }
0x1085   :  { %v21142_v43 = vrot.slane %v21134_v28, %v35539_v19  ;;  %v21119_v28 = vcombine.high %v20742_v53, %v20806_v17  ;;  %v21149_v17 = vrot.slane %v21135_v40, %v35539_v19  ;;  %v21113_v53 = vcombine.high %v21061_v58, %v21093_v3 }
0x1086   :  { %v21126_v36 = vrot.slane %v21118_v60, %v35539_v19  ;;  %v21070_v63 = vrot.slane %v21062_v33, %v39940_v22  ;;  %v21230_v40 = vcombine.low %v21165_v1, %v21181_v48  ;;  %v21102_v58 = vrot.slane %v21094_v21, %v39940_v22 }
0x1088   :  { %v21182_v24 = vcombine.low %v21126_v36, %v21142_v43  ;;  %v21183_v49 = vcombine.high %v21126_v36, %v21142_v43  ;;  %v21133_v36 = vrot.slane %v21119_v28, %v35539_v19  ;;  %v21114_v62 = vcombine.low %v21070_v63, %v21102_v58 }
0x1089   :  { %v21115_v6 = vcombine.high %v21070_v63, %v21102_v58  ;;  %v21238_v55 = vrot.slane %v21230_v40, %v39940_v22 }
0x108a   :  { %v21190_v41 = vrot.slane %v21182_v24, %v39940_v22  ;;  %v21197_v54 = vrot.slane %v21183_v49, %v39940_v22  ;;  %v21198_v20 = vcombine.low %v21133_v36, %v21149_v17  ;;  %v21063_v49 = vcombine.high %v20997_v10, %v21013_v23 }
0x108b   :  { %v21199_v56 = vcombine.high %v21133_v36, %v21149_v17  ;;  %v21109_v24 = vrot.slane %v21095_v30, %v39940_v22  ;;  %v17073_v36 = vcombine.high %v37754_v25, %v39932_v34 }
0x108c   :  { %v21247_v46 = vcombine.high %v21190_v41, %v21222_v9  ;;  %v21246_v60 = vcombine.low %v21190_v41, %v21222_v9  ;;  %v21249_v5 = vcombine.high %v21197_v54, %v21229_v7  ;;  %v21206_v31 = vrot.slane %v21198_v20, %v39940_v22 }
0x108d   :  { %v21077_v37 = vrot.slane %v21063_v49, %v39940_v22  ;;  %v21213_v41 = vrot.slane %v21199_v56, %v39940_v22  ;;  %v21245_v9 = vrot.slane %v21231_v50, %v39940_v22 }
0x108e   :  { %21287 = vxpose.xlu0.b32.end [2/2] (short) (narrow) %v21247_v46, 8  ;;  %21255 = vxpose.xlu1.b32.end [2/2] (short) (narrow) %v21246_v60, 8  ;;  %v21248_v46 = vcombine.low %v21197_v54, %v21229_v7  ;;  %v21250_v4 = vcombine.low %v21206_v31, %v21238_v55  ;;  %v21251_v43 = vcombine.high %v21206_v31, %v21238_v55 }
0x108f   :  { %v21116_v23 = vcombine.low %v21077_v37, %v21109_v24  ;;  %v21117_v32 = vcombine.high %v21077_v37, %v21109_v24  ;;  %v21252_v28 = vcombine.low %v21213_v41, %v21245_v9  ;;  %v21253_v60 = vcombine.high %v21213_v41, %v21245_v9 }
0x1092   :  { %21318 = vxpose.xlu0.b32.start [1/2] (short) (narrow) %v21112_v51, 8  ;;  %21350 = vxpose.xlu1.b32.start [1/2] (short) (narrow) %v21113_v53, 8  ;;  %v17072_v53 = vcombine.high %v37770_v39, %v39932_v34 }
0x1096   :  { %21319 = vxpose.xlu0.b32.end [2/2] (short) (narrow) %v21248_v46, 8  ;;  %21351 = vxpose.xlu1.b32.end [2/2] (short) (narrow) %v21249_v5, 8 }
0x109a   :  { %21382 = vxpose.xlu0.b32.start [1/2] (short) (narrow) %v21114_v62, 8  ;;  %21414 = vxpose.xlu1.b32.start [1/2] (short) (narrow) %v21115_v6, 8 }
0x109e   :  { %21383 = vxpose.xlu0.b32.end [2/2] (short) (narrow) %v21250_v4, 8  ;;  %21415 = vxpose.xlu1.b32.end [2/2] (short) (narrow) %v21251_v43, 8 }
0x10a2   :  { %21446 = vxpose.xlu0.b32.start [1/2] (short) (narrow) %v21116_v23, 8  ;;  %21478 = vxpose.xlu1.b32.start [1/2] (short) (narrow) %v21117_v32, 8 }
0x10a6   :  { %21447 = vxpose.xlu0.b32.end [2/2] (short) (narrow) %v21252_v28, 8  ;;  %21479 = vxpose.xlu1.b32.end [2/2] (short) (narrow) %v21253_v60, 8 }
0x10b2   :  { %v19075_v26 = vpop.f32.mrb[24].mxu0 }
0x10b3   :  { %v19524_v45 = vpop.f32.mrb[26].mxu1  ;;  %v33651_v10 = vpop.f32.mrb[25].mxu0  ;;  %v20426_v35 = vsel %vm13302_vm3, %v19075_v26, -inf }
0x10b4   :  { %v33681_v3 = vpop.f32.mrb[27].mxu1  ;;  %v20429_v8 = vsel %vm13302_vm3, %v19524_v45, -inf }
0x10cd   :  { %20427 = vmax.xlane.f32.xlu1 %v20426_v35 }
0x10d3   :  { %20430 = vmax.xlane.f32.xlu0 %v20429_v8  ;;  %v17138_v8 = vcombine.high %v37736_v13, %v39932_v34 }
0x10df   :  { %v19973_v27 = vpop.f32.mrb[26].mxu0 }
0x10e0   :  { %v20422_v33 = vpop.f32.mrb[28].mxu1  ;;  %v33711_v51 = vpop.f32.mrb[27].mxu0  ;;  %v20432_v50 = vsel %vm13302_vm3, %v19973_v27, -inf }
0x10e1   :  { %v33741_v17 = vpop.f32.mrb[29].mxu1  ;;  %v20435_v30 = vsel %vm13302_vm3, %v20422_v33, -inf }
0x1100   :  { %23966 = vxpose.xlu0.b32.start.end [1/1] (short) (narrow) %v17072_v53, 8  ;;  %23998 = vxpose.xlu1.b32.start.end [1/1] (short) (narrow) %v17073_v36, 8 }
0x110a   :  { %v21302_v54 = vpop.trf.xlu0  ;;  %v21270_v21 = vpop.trf.xlu1 }
0x1112   :  { %v21334_v48 = vpop.trf.xlu0  ;;  %v21366_v1 = vpop.trf.xlu1 }
0x1113   :  { %v21510_v7 = vcombine.low %v21270_v21, %v21334_v48  ;;  %v21518_v20 = vcombine.low %v21302_v54, %v21366_v1 }
0x1115   :  { %v21517_v46 = vrot.slane %v21510_v7, %v35539_v19  ;;  %v21525_v5 = vrot.slane %v21518_v20, %v35539_v19 }
0x1117   :  { %v21543_v63 = vcombine.high %v21517_v46, %v21525_v5 }
0x1119   :  { %v38515_v55 = vrot.slane %v21543_v63, %v39940_v22 }
0x111a   :  { %v21398_v40 = vpop.trf.xlu0  ;;  %v21430_v58 = vpop.trf.xlu1 }
0x1122   :  { %v21462_v49 = vpop.trf.xlu0  ;;  %v21494_v25 = vpop.trf.xlu1 }
0x1123   :  { %v21526_v62 = vcombine.low %v21398_v40, %v21462_v49  ;;  %v21534_v6 = vcombine.low %v21430_v58, %v21494_v25  ;;  %v24222_v40 = vcombine.low %v38164_v12, %v38177_v29  ;;  %v24254_v58 = vcombine.low %v38200_v38, %v38203_v18 }
0x1124   :  { %v17140_v25 = vcombine.high %v37749_v42, %v39932_v34  ;;  %v17141_v18 = vcombine.high %v37701_v11, %v39932_v34 }
0x1125   :  { %v21533_v39 = vrot.slane %v21526_v62, %v35539_v19  ;;  %v21541_v31 = vrot.slane %v21534_v6, %v35539_v19  ;;  %v24230_v62 = vrot.slane %v24222_v40, %v39940_v22  ;;  %v24262_v6 = vrot.slane %v24254_v58, %v39940_v22 }
0x1127   :  { %20436 = vmax.xlane.f32.xlu1 %v20435_v30  ;;  %v21559_v56 = vcombine.high %v21533_v39, %v21541_v31  ;;  %v21558_v20 = vcombine.low %v21533_v39, %v21541_v31  ;;  %v24286_v12 = vcombine.low %v24230_v62, %v24262_v6 }
0x1129   :  { %v38518_v4 = vrot.slane %v21559_v56, %v39940_v22  ;;  %v24287_v56 = vcombine.high %v24230_v62, %v24262_v6 }
0x112b   :  { %v21576_v43 = vcombine.low %v38515_v55, %v38518_v4  ;;  %v21577_v37 = vcombine.high %v38515_v55, %v38518_v4 }
0x112d   :  { %20433 = vmax.xlane.f32.xlu0 %v20432_v50  ;;  %v22935_v40 = vsel %vm13302_vm3, %v21577_v37, 0 }
0x112e   :  { %v38621_v62 = vand.u32 4294901760, %v22935_v40 }
0x115a   :  { %v20428_v24 = vpop.xlane.xlu1 %20427 }
0x115b   :  { %v20438_v23 = vsub.f32 %v19075_v26, %v20428_v24  ;;  %v17139_v26 = vcombine.high %v37593_v15, %v39932_v34 }
0x115d   :  { %v20442_v32 = vmul.f32 1.442695, %v20438_v23 }
0x115f   :  { %35177 = vpow2.f32 %v20442_v32 }
0x1160   :  { %v20431_v41 = vpop.xlane.xlu0 %20430 }
0x1161   :  { %v20439_v9 = vsub.f32 %v19524_v45, %v20431_v41 }
0x1163   :  { %v20444_v28 = vmul.f32 1.442695, %v20439_v9 }
0x1165   :  { %35179 = vpow2.f32 %v20444_v28 }
0x1169   :  { %v35178_v60 = vpop.eup %35177 }
0x116a   :  { %v20450_v10 = vsel %vm13302_vm3, %v35178_v60, 0.0 }
0x116b   :  { %20451 = vadd.xlane.f32.xlu0 %v20450_v10 }
0x116f   :  { %v35180_v3 = vpop.eup %35179 }
0x1170   :  { %v20453_v35 = vsel %vm13302_vm3, %v35180_v3, 0.0 }
0x1171   :  { %20454 = vadd.xlane.f32.xlu1 %v20453_v35 }
0x1180   :  { %v38531_v51 = vpop.trf.xlu1  ;;  %v38533_v36 = vpop.trf.xlu0 }
0x1198   :  { %24030 = vxpose.xlu0.b32.start.end [1/1] (short) (narrow) %v17138_v8, 8 }
0x11a4   :  { %24062 = vxpose.xlu1.b32.start.end [1/1] (short) (narrow) %v17139_v26, 8 }
0x11b4   :  { %v20437_v45 = vpop.xlane.xlu1 %20436 }
0x11b5   :  { %v20441_v17 = vsub.f32 %v20422_v33, %v20437_v45  ;;  %v21542_v33 = vcombine.low %v21517_v46, %v21525_v5 }
0x11b7   :  { %v20448_v53 = vmul.f32 1.442695, %v20441_v17  ;;  %v21550_v63 = vrot.slane %v21542_v33, %v39940_v22 }
0x11b9   :  { %35181 = vpow2.f32 %v20448_v53 }
0x11ba   :  { %v20434_v54 = vpop.xlane.xlu0 %20433 }
0x11bb   :  { %v20440_v21 = vsub.f32 %v19973_v27, %v20434_v54  ;;  %v21566_v27 = vrot.slane %v21558_v20, %v39940_v22 }
0x11bd   :  { %v20446_v48 = vmul.f32 1.442695, %v20440_v21  ;;  %v21574_v49 = vcombine.low %v21550_v63, %v21566_v27  ;;  %v21575_v39 = vcombine.high %v21550_v63, %v21566_v27  ;;  %v22483_v27 = vsel %vm13302_vm3, %v21576_v43, 0 }
0x11bf   :  { %35183 = vpow2.f32 %v20446_v48  ;;  %v21579_v46 = vsel %vm13302_vm3, %v21574_v49, 0  ;;  %v22031_v38 = vsel %vm13302_vm3, %v21575_v39, 0 }
0x11c0   :  { %v38554_v31 = vand.u32 4294901760, %v21579_v46  ;;  %v38560_v30 = vand.u32 4294901760, %v22031_v38 }
0x11c2   :  { %v21651_v29 = vsub.f32 %v21579_v46, %v38554_v31  ;;  %v22103_v32 = vsub.f32 %v22031_v38, %v38560_v30  ;;  %v38627_v46 = vsub.f32 %v22935_v40, %v38621_v62  ;;  %v24295_v40 = vcombine.high %v38253_v0, %v38533_v36 }
0x11c3   :  { %v38535_v1 = vpop.eup %35181 }
0x11c4   :  { %v20459_v7 = vsel %vm13302_vm3, %v38535_v1, 0.0  ;;  %v21652_v50 = vand.u32 4294901760, %v21651_v29  ;;  %v22104_v28 = vand.u32 4294901760, %v22103_v32  ;;  %v23008_v55 = vand.u32 4294901760, %v38627_v46 }
0x11c6   :  { %v21653_v11 = vsub.f32 %v21651_v29, %v21652_v50  ;;  %v22105_v53 = vsub.f32 %v22103_v32, %v22104_v28 }
0x11c8   :  { %v21654_v8 = vand.u32 4294901760, %v21653_v11 }
0x11c9   :  { %v38537_v13 = vpop.eup %35183 }
0x11ca   :  { %v20456_v15 = vsel %vm13302_vm3, %v38537_v13, 0.0 }
0x11cb   :  { %20457 = vadd.xlane.f32.xlu0 %v20456_v15  ;;  %20460 = vadd.xlane.f32.xlu1 %v20459_v7  ;;  %v22106_v15 = vand.u32 4294901760, %v22105_v53 }
0x11f8   :  { %24094 = vxpose.xlu0.b32.start.end [1/1] (short) (narrow) %v17140_v25, 8  ;;  %v20452_v5 = vpop.xlane.xlu0 %20451  ;;  %v38619_v25 = vand.u32 4294901760, %v22483_v27 }
0x11f9   :  { %35185 = vrcp.f32 %v20452_v5 }
0x11fa   :  { %v38624_v6 = vsub.f32 %v22483_v27, %v38619_v25 }
0x11fc   :  { %24430 = vxpose.xlu0.b32.start [1/2] (short) (narrow) %v24286_v12, 8  ;;  %v22556_v43 = vand.u32 4294901760, %v38624_v6 }
0x11fe   :  { %24126 = vxpose.xlu1.b32.start.end [1/1] (short) (narrow) %v17141_v18, 8  ;;  %v20455_v42 = vpop.xlane.xlu1 %20454  ;;  %v22557_v12 = vsub.f32 %v38624_v6, %v22556_v43 }
0x11ff   :  { %35187 = vrcp.f32 %v20455_v42  ;;  %v23009_v42 = vsub.f32 %v38627_v46, %v23008_v55 }
0x1202   :  { %24462 = vxpose.xlu1.b32.start [1/2] (short) (narrow) %v24287_v56, 8  ;;  %v23010_v56 = vand.u32 4294901760, %v23009_v42 }
0x1203   :  { %v35186_v24 = vpop.eup %35185 }
0x1204   :  { %v20463_v23 = vmul.f32 %v35186_v24, %v35178_v60 }
0x1206   :  { %v21582_v41 = vsel %vm13302_vm3, %v20463_v23, 0 }
0x1207   :  { %v21585_v9 = vand.u32 4294901760, %v21582_v41 }
0x1209   :  { %v35188_v10 = vpop.eup %35187  ;;  %33743 = vmatpush3.xpose.msra.mxu0 %v21585_v9  ;;  %v21662_v35 = vsub.f32 %v21582_v41, %v21585_v9 }
0x120a   :  { %v20465_v26 = vmul.f32 %v35188_v10, %v35180_v3  ;;  %33747 = vmatprep.subr.mxu0 %v39932_v34 }
0x120b   :  { %v21663_v45 = vand.u32 4294901760, %v21662_v35 }
0x120c   :  { %33745 = vmatmul.mubr.f32.vlgmr.msra.gmra.mrb[28].mxu0 %v21654_v8  ;;  %v22034_v17 = vsel %vm13302_vm3, %v20465_v26, 0 }
0x120d   :  { %v22037_v60 = vand.u32 4294901760, %v22034_v17  ;;  %v21664_v54 = vsub.f32 %v21662_v35, %v21663_v45  ;;  %33749 = vmatprep.mubr.msk.f32.mxu0 %vm35404_vm1, %v39932_v34 }
0x120f   :  { %33773 = vmatpush3.xpose.msra.mxu1 %v22037_v60  ;;  %v22114_v21 = vsub.f32 %v22034_v17, %v22037_v60  ;;  %v21665_v48 = vand.u32 4294901760, %v21664_v54 }
0x1210   :  { %33777 = vmatprep.subr.mxu1 %v39932_v34 }
0x1211   :  { %33748 = vmatpush3.xpose.msra.mxu0 %v21665_v48  ;;  %v22115_v3 = vand.u32 4294901760, %v22114_v21  ;;  %v24175_v48 = vcombine.high %v38112_v52, %v38159_v14 }
0x1212   :  { %33775 = vmatmul.mubr.f32.vlgmr.msra.gmra.mrb[30].mxu1 %v22106_v15  ;;  %33752 = vmatprep.subr.mxu0 %v39932_v34 }
0x1213   :  { %v22116_v7 = vsub.f32 %v22114_v21, %v22115_v3  ;;  %33779 = vmatprep.mubr.msk.f32.mxu1 %vm35404_vm1, %v39932_v34 }
0x1214   :  { %33750 = vmatmul.mubr.f32.vlgmr.msra.gmra.mrb[28].mxu0 %v38554_v31 }
0x1215   :  { %33753 = vmatpush3.xpose.msra.mxu0 %v21662_v35  ;;  %v22117_v33 = vand.u32 4294901760, %v22116_v7  ;;  %33754 = vmatprep.mubr.msk.f32.mxu0 %vm35404_vm1, %v39932_v34  ;;  %v24191_v7 = vcombine.high %v38151_v44, %v38174_v59 }
0x1216   :  { %33757 = vmatprep.subr.mxu0 %v39932_v34 }
0x1217   :  { %33778 = vmatpush3.xpose.msra.mxu1 %v22117_v33 }
0x1218   :  { %33782 = vmatprep.subr.mxu1 %v39932_v34  ;;  %v38607_v20 = vpop.trf.xlu0 }
0x121a   :  { %33780 = vmatmul.mubr.f32.vlgmr.msra.gmra.mrb[30].mxu1 %v38560_v30 }
0x121b   :  { %33783 = vmatpush3.xpose.msra.mxu1 %v22114_v21  ;;  %33784 = vmatprep.mubr.msk.f32.mxu1 %vm35404_vm1, %v39932_v34  ;;  %v24159_v21 = vcombine.high %v38143_v16, %v38130_v2  ;;  %v24189_v16 = vrot.slane %v24175_v48, %v35539_v19 }
0x121c   :  { %33755 = vmatmul.mubr.f32.vlgmr.msra.gmra.mrb[28].mxu0 %v21651_v29  ;;  %33787 = vmatprep.subr.mxu1 %v39932_v34 }
0x121d   :  { %33758 = vmatpush3.xpose.msra.mxu0 %v21585_v9  ;;  %33759 = vmatprep.mubr.msk.f32.mxu0 %vm35404_vm1, %v39932_v34  ;;  %v24173_v52 = vrot.slane %v24159_v21, %v35539_v19  ;;  %v39985_v21 = vld [vmem:[#allocation41_spill] sm:$0xff] }
0x121e   :  { %33762 = vmatprep.subr.mxu0 %v39932_v34  ;;  %v17248_v48 = vcombine.high %v39985_v21, %v39932_v34 }
0x1222   :  { %33785 = vmatmul.mubr.f32.vlgmr.msra.gmra.mrb[30].mxu1 %v22103_v32 }
0x1223   :  { %33788 = vmatpush3.xpose.msra.mxu1 %v22037_v60  ;;  %33789 = vmatprep.mubr.msk.f32.mxu1 %vm35404_vm1, %v39932_v34 }
0x1224   :  { %33760 = vmatmul.mubr.f32.vlgmr.msra.gmra.mrb[28].mxu0 %v21652_v50  ;;  %33792 = vmatprep.subr.mxu1 %v39932_v34  ;;  %v38609_v63 = vpop.trf.xlu1 }
0x1225   :  { %33763 = vmatpush3.xpose.msra.mxu0 %v21663_v45  ;;  %33764 = vmatprep.mubr.msk.f32.mxu0 %vm35404_vm1, %v39932_v34 }
0x1226   :  { %33767 = vmatprep.subr.mxu0 %v39932_v34 }
0x122a   :  { %33790 = vmatmul.mubr.f32.vlgmr.msra.gmra.mrb[30].mxu1 %v22104_v28  ;;  %v24310_v28 = vcombine.low %v38245_v47, %v38531_v51 }
0x122b   :  { %33793 = vmatpush3.xpose.msra.mxu1 %v22115_v3  ;;  %33794 = vmatprep.mubr.msk.f32.mxu1 %vm35404_vm1, %v39932_v34  ;;  %v24207_v3 = vcombine.high %v38182_v57, %v38195_v61  ;;  %v24205_v57 = vrot.slane %v24191_v7, %v35539_v19  ;;  %v39987_v7 = vld [vmem:[#allocation36_spill] sm:$0xff] }
0x122c   :  { %33765 = vmatmul.mubr.f32.vlgmr.msra.gmra.mrb[28].mxu0 %v38554_v31  ;;  %33797 = vmatprep.subr.mxu1 %v39932_v34  ;;  %v24318_v8 = vrot.slane %v24310_v28, %v35539_v19 }
0x122d   :  { %33768 = vmatpush3.xpose.msra.mxu0 %v21585_v9  ;;  %33769 = vmatprep.mubr.msk.f32.mxu0 %vm35404_vm1, %v39932_v34  ;;  %v24294_v9 = vcombine.low %v38253_v0, %v38533_v36  ;;  %v24221_v59 = vrot.slane %v24207_v3, %v35539_v19  ;;  %v39979_v36 = vld [vmem:[#allocation34_spill] sm:$0xff] }
0x122e   :  { %33802 = vmatprep.subr.mxu0 %v39932_v34 }
0x122f   :  { %v24302_v35 = vrot.slane %v24294_v9, %v35539_v19 }
0x1231   :  { %v24358_v53 = vcombine.low %v24302_v35, %v24318_v8 }
0x1232   :  { %33795 = vmatmul.mubr.f32.vlgmr.msra.gmra.mrb[30].mxu1 %v38560_v30 }
0x1233   :  { %33798 = vmatpush3.xpose.msra.mxu1 %v22037_v60  ;;  %33799 = vmatprep.mubr.msk.f32.mxu1 %vm35404_vm1, %v39932_v34  ;;  %v24366_v33 = vrot.slane %v24358_v53, %v39940_v22 }
0x1234   :  { %33770 = vmatmul.mubr.f32.vlgmr.msra.gmra.mrb[28].mxu0 %v38554_v31  ;;  %33832 = vmatprep.subr.mxu1 %v39932_v34 }
0x1235   :  { %33804 = vmatprep.mubr.msk.f32.mxu0 %vm35404_vm1, %v39932_v34 }
0x123a   :  { %33800 = vmatmul.mubr.f32.vlgmr.msra.gmra.mrb[30].mxu1 %v38560_v30  ;;  %v22558_v30 = vand.u32 4294901760, %v22557_v12 }
0x123b   :  { %33834 = vmatprep.mubr.msk.f32.mxu1 %vm35404_vm1, %v39932_v34 }
0x1258   :  { %v20458_v58 = vpop.xlane.xlu0 %20457  ;;  %v20461_v49 = vpop.xlane.xlu1 %20460 }
0x1259   :  { %35189 = vrcp.f32 %v20458_v58  ;;  %v24311_v58 = vcombine.high %v38245_v47, %v38531_v51  ;;  %v39978_v51 = vld [vmem:[#allocation33_spill] sm:$0xff] }
0x125a   :  { %35191 = vrcp.f32 %v20461_v49  ;;  %v24359_v49 = vcombine.high %v24302_v35, %v24318_v8 }
0x125b   :  { %v24325_v0 = vrot.slane %v24311_v58, %v35539_v19  ;;  %v39993_v58 = vld [vmem:[#allocation50_spill] sm:$0xff] }
0x1263   :  { %v35190_v5 = vpop.eup %35189 }
0x1264   :  { %v35192_v4 = vpop.eup %35191  ;;  %v20467_v37 = vmul.f32 %v35190_v5, %v38537_v13 }
0x1265   :  { %v20469_v39 = vmul.f32 %v35192_v4, %v38535_v1  ;;  %v24373_v4 = vrot.slane %v24359_v49, %v39940_v22  ;;  %v17384_v49 = vcombine.high %v39993_v58, %v39932_v34 }
0x1266   :  { %v22486_v31 = vsel %vm13302_vm3, %v20467_v37, 0  ;;  %v39981_v37 = vcombine.low %v39978_v51, %v39979_v36 }
0x1267   :  { %v38637_v18 = vand.u32 4294901760, %v22486_v31  ;;  %v22938_v38 = vsel %vm13302_vm3, %v20469_v39, 0 }
0x1268   :  { %v38643_v29 = vand.u32 4294901760, %v22938_v38 }
0x1269   :  { %33803 = vmatpush3.xpose.msra.mxu0 %v38637_v18  ;;  %v22566_v1 = vsub.f32 %v22486_v31, %v38637_v18 }
0x126a   :  { %33833 = vmatpush3.xpose.msra.mxu1 %v38643_v29  ;;  %v23018_v13 = vsub.f32 %v22938_v38, %v38643_v29  ;;  %33807 = vmatprep.subr.mxu0 %v39932_v34 }
0x126b   :  { %33837 = vmatprep.subr.mxu1 %v39932_v34  ;;  %v22567_v50 = vand.u32 4294901760, %v22566_v1 }
0x126c   :  { %33805 = vmatmul.mubr.f32.vlgmr.msra.gmra.mrb[30].mxu0 %v22558_v30  ;;  %v23019_v24 = vand.u32 4294901760, %v23018_v13 }
0x126d   :  { %33835 = vmatmul.mubr.f32.vlgmr.msra.gmra.mrb[32].mxu1 %v23010_v56  ;;  %v22568_v23 = vsub.f32 %v22566_v1, %v22567_v50  ;;  %33809 = vmatprep.mubr.msk.f32.mxu0 %vm35404_vm1, %v39932_v34 }
0x126e   :  { %v23020_v32 = vsub.f32 %v23018_v13, %v23019_v24  ;;  %33839 = vmatprep.mubr.msk.f32.mxu1 %vm35404_vm1, %v39932_v34 }
0x126f   :  { %v22569_v41 = vand.u32 4294901760, %v22568_v23 }
0x1270   :  { %v23021_v11 = vand.u32 4294901760, %v23020_v32 }
0x1271   :  { %33808 = vmatpush3.xpose.msra.mxu0 %v22569_v41 }
0x1272   :  { %33838 = vmatpush3.xpose.msra.mxu1 %v23021_v11  ;;  %33812 = vmatprep.subr.mxu0 %v39932_v34 }
0x1273   :  { %33842 = vmatprep.subr.mxu1 %v39932_v34 }
0x1274   :  { %33810 = vmatmul.mubr.f32.vlgmr.msra.gmra.mrb[30].mxu0 %v38619_v25 }
0x1275   :  { %33840 = vmatmul.mubr.f32.vlgmr.msra.gmra.mrb[32].mxu1 %v38621_v62  ;;  %33813 = vmatpush3.xpose.msra.mxu0 %v22566_v1  ;;  %v24271_v1 = vcombine.high %v24205_v57, %v24221_v59 }
0x1276   :  { %33843 = vmatpush3.xpose.msra.mxu1 %v23018_v13  ;;  %33814 = vmatprep.mubr.msk.f32.mxu0 %vm35404_vm1, %v39932_v34 }
0x1277   :  { %33817 = vmatprep.subr.mxu0 %v39932_v34  ;;  %33844 = vmatprep.mubr.msk.f32.mxu1 %vm35404_vm1, %v39932_v34  ;;  %v24285_v32 = vrot.slane %v24271_v1, %v39940_v22 }
0x1278   :  { %33847 = vmatprep.subr.mxu1 %v39932_v34  ;;  %v24110_v10 = vpop.trf.xlu0 }
0x1279   :  { %v24326_v26 = vcombine.low %v38607_v20, %v24110_v10 }
0x127b   :  { %v24334_v60 = vrot.slane %v24326_v26, %v35539_v19  ;;  %v39982_v26 = vld [vmem:[#allocation40_spill] sm:$0xff] }
0x127c   :  { %33815 = vmatmul.mubr.f32.vlgmr.msra.gmra.mrb[30].mxu0 %v38624_v6  ;;  %v24327_v6 = vcombine.high %v38607_v20, %v24110_v10  ;;  %v39980_v20 = vcombine.high %v39978_v51, %v39979_v36 }
0x127d   :  { %33818 = vmatpush3.xpose.msra.mxu0 %v38637_v18  ;;  %33845 = vmatmul.mubr.f32.vlgmr.msra.gmra.mrb[32].mxu1 %v38627_v46  ;;  %v24238_v46 = vcombine.low %v24173_v52, %v24189_v16 }
0x127e   :  { %33848 = vmatpush3.xpose.msra.mxu1 %v38643_v29  ;;  %v24142_v45 = vpop.trf.xlu1  ;;  %33819 = vmatprep.mubr.msk.f32.mxu0 %vm35404_vm1, %v39932_v34  ;;  %v24341_v47 = vrot.slane %v24327_v6, %v35539_v19  ;;  %v39994_v6 = vld [vmem:[#allocation43_spill] sm:$0xff] }
0x127f   :  { %v24342_v17 = vcombine.low %v38609_v63, %v24142_v45  ;;  %33822 = vmatprep.subr.mxu0 %v39932_v34  ;;  %33849 = vmatprep.mubr.msk.f32.mxu1 %vm35404_vm1, %v39932_v34  ;;  %v24343_v61 = vcombine.high %v38609_v63, %v24142_v45  ;;  %v24246_v39 = vrot.slane %v24238_v46, %v39940_v22 }
0x1280   :  { %33852 = vmatprep.subr.mxu1 %v39932_v34  ;;  %v17246_v45 = vcombine.high %v39982_v26, %v39932_v34  ;;  %v17451_v46 = vcombine.high %v39994_v6, %v39932_v34 }
0x1281   :  { %v24350_v54 = vrot.slane %v24342_v17, %v35539_v19  ;;  %v24357_v5 = vrot.slane %v24343_v61, %v35539_v19  ;;  %v39983_v17 = vld [vmem:[#allocation39_spill] sm:$0xff] }
0x1282   :  { %v17247_v53 = vcombine.high %v39983_v17, %v39932_v34 }
0x1283   :  { %v24390_v15 = vcombine.low %v24334_v60, %v24350_v54  ;;  %v24391_v27 = vcombine.high %v24334_v60, %v24350_v54  ;;  %v24406_v31 = vcombine.low %v24341_v47, %v24357_v5  ;;  %v39984_v60 = vld [vmem:[#allocation42_spill] sm:$0xff] }
0x1284   :  { %33820 = vmatmul.mubr.f32.vlgmr.msra.gmra.mrb[30].mxu0 %v22556_v43  ;;  %v24270_v43 = vcombine.low %v24205_v57, %v24221_v59  ;;  %v17249_v54 = vcombine.high %v39984_v60, %v39932_v34  ;;  %v39991_v57 = vld [vmem:[#allocation48_spill] sm:$0xff] }
0x1285   :  { %33823 = vmatpush3.xpose.msra.mxu0 %v22567_v50  ;;  %33850 = vmatmul.mubr.f32.vlgmr.msra.gmra.mrb[32].mxu1 %v23008_v55  ;;  %v24398_v2 = vrot.slane %v24390_v15, %v39940_v22  ;;  %v24405_v63 = vrot.slane %v24391_v27, %v39940_v22  ;;  %v24309_v55 = vrot.slane %v24295_v40, %v35539_v19  ;;  %v39986_v15 = vld [vmem:[#allocation35_spill] sm:$0xff]  ;;  %v39992_v27 = vld [vmem:[#allocation49_spill] sm:$0xff] }
0x1286   :  { %33853 = vmatpush3.xpose.msra.mxu1 %v23019_v24  ;;  %33824 = vmatprep.mubr.msk.f32.mxu0 %vm35404_vm1, %v39932_v34  ;;  %v24414_v30 = vrot.slane %v24406_v31, %v39940_v22  ;;  %v24407_v24 = vcombine.high %v24341_v47, %v24357_v5  ;;  %v17315_v3 = vcombine.high %v39986_v15, %v39932_v34 }
0x1287   :  { %v24423_v44 = vcombine.high %v24366_v33, %v24398_v2  ;;  %v24422_v14 = vcombine.low %v24366_v33, %v24398_v2  ;;  %33827 = vmatprep.subr.mxu0 %v39932_v34  ;;  %33854 = vmatprep.mubr.msk.f32.mxu1 %vm35404_vm1, %v39932_v34  ;;  %v24425_v12 = vcombine.high %v24373_v4, %v24405_v63  ;;  %v39988_v2 = vld [vmem:[#allocation37_spill] sm:$0xff] }
0x1288   :  { %33857 = vmatprep.subr.mxu1 %v39932_v34  ;;  %v24424_v38 = vcombine.low %v24373_v4, %v24405_v63  ;;  %v24374_v42 = vcombine.low %v24309_v55, %v24325_v0  ;;  %v24375_v11 = vcombine.high %v24309_v55, %v24325_v0  ;;  %v24421_v9 = vrot.slane %v24407_v24, %v39940_v22  ;;  %v39996_v63 = vld [vmem:[#allocation45_spill] sm:$0xff]  ;;  %v39997_v0 = vld [vmem:[#allocation46_spill] sm:$0xff] }
0x1289   :  { %24463 = vxpose.xlu1.b32.end [2/2] (short) (narrow) %v24423_v44, 8  ;;  %24431 = vxpose.xlu0.b32.end [2/2] (short) (narrow) %v24422_v14, 8  ;;  %v17314_v33 = vcombine.high %v39987_v7, %v39932_v34  ;;  %v39990_v14 = vld [vmem:[#allocation47_spill] sm:$0xff]  ;;  %v17382_v61 = vcombine.high %v39991_v57, %v39932_v34  ;;  %v17385_v40 = vcombine.high %v39992_v27, %v39932_v34 }
0x128a   :  { %v24382_v50 = vrot.slane %v24374_v42, %v39940_v22  ;;  %v24389_v10 = vrot.slane %v24375_v11, %v39940_v22  ;;  %v17383_v59 = vcombine.high %v39990_v14, %v39932_v34  ;;  %v17453_v55 = vcombine.high %v39996_v63, %v39932_v34  ;;  %v39999_v42 = vld [vmem:[#allocation31_spill] sm:$0xff] }
0x128b   :  { %v17452_v47 = vcombine.high %v39997_v0, %v39932_v34 }
0x128c   :  { %33825 = vmatmul.mubr.f32.vlgmr.msra.gmra.mrb[30].mxu0 %v38619_v25  ;;  %v24427_v23 = vcombine.high %v24382_v50, %v24414_v30  ;;  %v24426_v41 = vcombine.low %v24382_v50, %v24414_v30  ;;  %v24429_v35 = vcombine.high %v24389_v10, %v24421_v9  ;;  %v24428_v8 = vcombine.low %v24389_v10, %v24421_v9 }
0x128d   :  { %33828 = vmatpush3.xpose.msra.mxu0 %v38637_v18  ;;  %33855 = vmatmul.mubr.f32.vlgmr.msra.gmra.mrb[32].mxu1 %v38621_v62  ;;  %v24278_v18 = vrot.slane %v24270_v43, %v39940_v22  ;;  %v39995_v43 = vld [vmem:[#allocation44_spill] sm:$0xff] }
0x128e   :  { %33858 = vmatpush3.xpose.msra.mxu1 %v38643_v29  ;;  %24526 = vxpose.xlu1.b32.start [1/2] (short) (narrow) %v39980_v20, 8  ;;  %v24239_v29 = vcombine.high %v24173_v52, %v24189_v16  ;;  %v17317_v52 = vcombine.high %v39988_v2, %v39932_v34  ;;  %v39989_v16 = vld [vmem:[#allocation38_spill] sm:$0xff]  ;;  %v17450_v5 = vcombine.high %v39995_v43, %v39932_v34 }
0x128f   :  { %24494 = vxpose.xlu0.b32.start [1/2] (short) (narrow) %v39981_v37, 8  ;;  %33829 = vmatprep.mubr.msk.f32.mxu0 %vm35404_vm1, %v39932_v34  ;;  %v24291_v13 = vcombine.high %v24246_v39, %v24278_v18  ;;  %v24290_v56 = vcombine.low %v24246_v39, %v24278_v18  ;;  %v17316_v44 = vcombine.high %v39989_v16, %v39932_v34 }
0x1290   :  { %33859 = vmatprep.mubr.msk.f32.mxu1 %vm35404_vm1, %v39932_v34  ;;  %33862 = vmatprep.subr.mxu0 %v39932_v34 }
0x1291   :  { %33892 = vmatprep.subr.mxu1 %v39932_v34 }
0x1292   :  { %24527 = vxpose.xlu1.b32.end [2/2] (short) (narrow) %v24425_v12, 8 }
0x1293   :  { %24495 = vxpose.xlu0.b32.end [2/2] (short) (narrow) %v24424_v38, 8  ;;  %v39998_v38 = vld [vmem:[#allocation29_spill] sm:$0xff] }
0x1294   :  { %33830 = vmatmul.mubr.f32.vlgmr.msra.gmra.mrb[30].mxu0 %v38619_v25  ;;  %v24253_v25 = vrot.slane %v24239_v29, %v39940_v22  ;;  %v40000_v29 = vcombine.low %v39998_v38, %v39999_v42 }
0x1295   :  { %33860 = vmatmul.mubr.f32.vlgmr.msra.gmra.mrb[32].mxu1 %v38621_v62  ;;  %33864 = vmatprep.mubr.msk.f32.mxu0 %vm35404_vm1, %v39932_v34 }
0x1296   :  { %24590 = vxpose.xlu1.b32.start [1/2] (short) (narrow) %v24291_v13, 8  ;;  %33894 = vmatprep.mubr.msk.f32.mxu1 %vm35404_vm1, %v39932_v34  ;;  %v24293_v62 = vcombine.high %v24253_v25, %v24285_v32  ;;  %v24292_v28 = vcombine.low %v24253_v25, %v24285_v32  ;;  %v24755_v1 = vsel %vm3105_vm2, %v40000_v29, 0  ;;  %v40001_v13 = vcombine.high %v39998_v38, %v39999_v42 }
0x1297   :  { %24558 = vxpose.xlu0.b32.start [1/2] (short) (narrow) %v24290_v56, 8 }
0x1298   :  { %v25204_v30 = vsel %vm3105_vm2, %v40001_v13, 0 }
0x1299   :  { %v38797_v25 = vand.u32 4294901760, %v25204_v30 }
0x129a   :  { %24591 = vxpose.xlu1.b32.end [2/2] (short) (narrow) %v24427_v23, 8  ;;  %v38795_v23 = vand.u32 4294901760, %v24755_v1 }
0x129b   :  { %24559 = vxpose.xlu0.b32.end [2/2] (short) (narrow) %v24426_v41, 8  ;;  %v38809_v10 = vsub.f32 %v25204_v30, %v38797_v25 }
0x129e   :  { %24654 = vxpose.xlu1.b32.start [1/2] (short) (narrow) %v24293_v62, 8 }
0x129f   :  { %24622 = vxpose.xlu0.b32.start [1/2] (short) (narrow) %v24292_v28, 8  ;;  %v38806_v28 = vsub.f32 %v24755_v1, %v38795_v23 }
0x12a1   :  { %v24825_v17 = vand.u32 4294901760, %v38806_v28 }
0x12a2   :  { %24655 = vxpose.xlu1.b32.end [2/2] (short) (narrow) %v24429_v35, 8 }
0x12a3   :  { %24623 = vxpose.xlu0.b32.end [2/2] (short) (narrow) %v24428_v8, 8  ;;  %v24826_v15 = vsub.f32 %v38806_v28, %v24825_v17 }
0x12a5   :  { %v24827_v14 = vand.u32 4294901760, %v24826_v15 }
0x12a6   :  { %26594 = vxpose.xlu1.b32.start.end [1/1] (short) (narrow) %v17246_v45, 8 }
0x12a7   :  { %26626 = vxpose.xlu0.b32.start.end [1/1] (short) (narrow) %v17247_v53, 8  ;;  %v25274_v53 = vand.u32 4294901760, %v38809_v10 }
0x12aa   :  { %26690 = vxpose.xlu1.b32.start.end [1/1] (short) (narrow) %v17249_v54, 8 }
0x12ab   :  { %26658 = vxpose.xlu0.b32.start.end [1/1] (short) (narrow) %v17248_v48, 8 }
0x12ae   :  { %26754 = vxpose.xlu1.b32.start.end [1/1] (short) (narrow) %v17315_v3, 8  ;;  %v25275_v3 = vsub.f32 %v38809_v10, %v25274_v53 }
0x12af   :  { %26722 = vxpose.xlu0.b32.start.end [1/1] (short) (narrow) %v17314_v33, 8 }
0x12b2   :  { %26818 = vxpose.xlu1.b32.start.end [1/1] (short) (narrow) %v17317_v52, 8 }
0x12b3   :  { %26786 = vxpose.xlu0.b32.start.end [1/1] (short) (narrow) %v17316_v44, 8 }
0x12b6   :  { %26882 = vxpose.xlu1.b32.start.end [1/1] (short) (narrow) %v17383_v59, 8  ;;  %v25276_v59 = vand.u32 4294901760, %v25275_v3 }
0x12b7   :  { %26850 = vxpose.xlu0.b32.start.end [1/1] (short) (narrow) %v17382_v61, 8 }
0x12ba   :  { %26946 = vxpose.xlu1.b32.start.end [1/1] (short) (narrow) %v17385_v40, 8 }
0x12bb   :  { %26914 = vxpose.xlu0.b32.start.end [1/1] (short) (narrow) %v17384_v49, 8 }
0x12be   :  { %27010 = vxpose.xlu1.b32.start.end [1/1] (short) (narrow) %v17451_v46, 8 }
0x12bf   :  { %26978 = vxpose.xlu0.b32.start.end [1/1] (short) (narrow) %v17450_v5, 8 }
0x12c2   :  { %27074 = vxpose.xlu1.b32.start.end [1/1] (short) (narrow) %v17453_v55, 8 }
0x12c3   :  { %27042 = vxpose.xlu0.b32.start.end [1/1] (short) (narrow) %v17452_v47, 8 }
0x1305   :  { %v24478_v4 = vpop.trf.xlu1  ;;  %v24446_v39 = vpop.trf.xlu0 }
0x1307   :  { %v38783_v51 = vpop.f32.mrb[28].mxu0 }
0x1308   :  { %v33771_v36 = vpop.f32.mrb[29].mxu0 }
0x130d   :  { %v38785_v20 = vpop.f32.mrb[30].mxu1 }
0x130e   :  { %v33801_v37 = vpop.f32.mrb[31].mxu1  ;;  %v24542_v31 = vpop.trf.xlu1 }
0x130f   :  { %v24510_v12 = vpop.trf.xlu0  ;;  %v24694_v50 = vcombine.low %v24478_v4, %v24542_v31 }
0x1310   :  { %v24686_v24 = vcombine.low %v24446_v39, %v24510_v12 }
0x1311   :  { %v38800_v32 = vrot.slane %v24694_v50, %v35539_v19 }
0x1312   :  { %v38803_v41 = vrot.slane %v24686_v24, %v35539_v19 }
0x1314   :  { %v24718_v26 = vcombine.low %v38803_v41, %v38800_v32 }
0x1316   :  { %v24606_v18 = vpop.trf.xlu1  ;;  %v24726_v54 = vrot.slane %v24718_v26, %v39940_v22 }
0x1317   :  { %v24574_v56 = vpop.trf.xlu0 }
0x131e   :  { %v24670_v11 = vpop.trf.xlu1 }
0x131f   :  { %v24710_v62 = vcombine.low %v24606_v18, %v24670_v11  ;;  %v24638_v9 = vpop.trf.xlu0 }
0x1320   :  { %v24702_v35 = vcombine.low %v24574_v56, %v24638_v9 }
0x1321   :  { %v38812_v8 = vrot.slane %v24710_v62, %v35539_v19 }
0x1322   :  { %v38817_v45 = vrot.slane %v24702_v35, %v35539_v19 }
0x1324   :  { %v24734_v60 = vcombine.low %v38817_v45, %v38812_v8 }
0x1326   :  { %v24742_v21 = vrot.slane %v24734_v60, %v39940_v22  ;;  %v26610_v48 = vpop.trf.xlu1 }
0x1327   :  { %v26642_v7 = vpop.trf.xlu0 }
0x1328   :  { %v24750_v33 = vcombine.low %v24726_v54, %v24742_v21  ;;  %v24751_v2 = vcombine.high %v24726_v54, %v24742_v21 }
0x132a   :  { %v38831_v52 = vand.u32 4294901760, %v24750_v33  ;;  %v38833_v16 = vand.u32 4294901760, %v24751_v2  ;;  %v26706_v44 = vpop.trf.xlu1 }
0x132b   :  { %v27123_v57 = vcombine.high %v26642_v7, %v26706_v44  ;;  %v26674_v61 = vpop.trf.xlu0  ;;  %v27122_v58 = vcombine.low %v26642_v7, %v26706_v44 }
0x132c   :  { %33863 = vmatpush3.msra.mxu0 %v38831_v52  ;;  %33893 = vmatpush3.msra.mxu1 %v38833_v16  ;;  %v38838_v27 = vsub.f32 %v24750_v33, %v38831_v52  ;;  %v38841_v40 = vsub.f32 %v24751_v2, %v38833_v16  ;;  %v27106_v46 = vcombine.low %v26610_v48, %v26674_v61 }
0x132d   :  { %33865 = vmatmul.mubr.f32.vlgmr.msra.gmra.mrb[32].mxu0 %v24827_v14  ;;  %33895 = vmatmul.mubr.f32.vlgmr.msra.gmra.mrb[34].mxu1 %v25276_v59  ;;  %v38852_v5 = vrot.slane %v27123_v57, %v35539_v19  ;;  %v27107_v63 = vcombine.high %v26610_v48, %v26674_v61  ;;  %v38861_v36 = vrot.slane %v27122_v58, %v35539_v19 }
0x132e   :  { %33867 = vmatprep.subr.mxu0 %v39932_v34  ;;  %33897 = vmatprep.subr.mxu1 %v39932_v34  ;;  %v24836_v49 = vand.u32 4294901760, %v38838_v27  ;;  %v25285_v6 = vand.u32 4294901760, %v38841_v40  ;;  %v26770_v43 = vpop.trf.xlu1  ;;  %v38864_v4 = vrot.slane %v27106_v46, %v35539_v19  ;;  %v24735_v33 = vcombine.high %v38817_v45, %v38812_v8 }
0x132f   :  { %33869 = vmatprep.mubr.msk.f32.mxu0 %vm35404_vm1, %v39932_v34  ;;  %33899 = vmatprep.mubr.msk.f32.mxu1 %vm35404_vm1, %v39932_v34  ;;  %v26738_v55 = vpop.trf.xlu0  ;;  %v38867_v37 = vrot.slane %v27107_v63, %v35539_v19  ;;  %v24719_v61 = vcombine.high %v38803_v41, %v38800_v32 }
0x1330   :  { %v24837_v0 = vsub.f32 %v38838_v27, %v24836_v49  ;;  %v25286_v47 = vsub.f32 %v38841_v40, %v25285_v6  ;;  %v27170_v30 = vcombine.low %v38864_v4, %v38861_v36 }
0x1331   :  { %v27186_v18 = vcombine.low %v38867_v37, %v38852_v5  ;;  %v27187_v38 = vcombine.high %v38867_v37, %v38852_v5 }
0x1332   :  { %v24838_v39 = vand.u32 4294901760, %v24837_v0  ;;  %v25287_v31 = vand.u32 4294901760, %v25286_v47  ;;  %v26834_v12 = vpop.trf.xlu1  ;;  %v27178_v21 = vrot.slane %v27170_v30, %v39940_v22  ;;  %v24733_v0 = vrot.slane %v24719_v61, %v39940_v22 }
0x1333   :  { %v26802_v42 = vpop.trf.xlu0  ;;  %v27154_v29 = vcombine.low %v26770_v43, %v26834_v12  ;;  %v27155_v1 = vcombine.high %v26770_v43, %v26834_v12  ;;  %v24749_v43 = vrot.slane %v24735_v33, %v39940_v22 }
0x1334   :  { %33868 = vmatpush3.msra.mxu0 %v24838_v39  ;;  %33898 = vmatpush3.msra.mxu1 %v25287_v31  ;;  %v27138_v13 = vcombine.low %v26738_v55, %v26802_v42  ;;  %v27139_v56 = vcombine.high %v26738_v55, %v26802_v42  ;;  %v40002_v39 = vld [vmem:[#allocation30_spill] sm:$0xff]  ;;  %v40003_v31 = vld [vmem:[#allocation32_spill] sm:$0xff] }
0x1335   :  { %33870 = vmatmul.mubr.f32.vlgmr.msra.gmra.mrb[32].mxu0 %v38795_v23  ;;  %33872 = vmatprep.subr.mxu0 %v39932_v34  ;;  %v38880_v50 = vrot.slane %v27154_v29, %v35539_v19  ;;  %v38883_v24 = vrot.slane %v27155_v1, %v35539_v19  ;;  %v40004_v12 = vcombine.low %v40002_v39, %v40003_v31 }
0x1336   :  { %33900 = vmatmul.mubr.f32.vlgmr.msra.gmra.mrb[34].mxu1 %v38797_v25  ;;  %33902 = vmatprep.subr.mxu1 %v39932_v34  ;;  %v38886_v11 = vrot.slane %v27138_v13, %v35539_v19  ;;  %v26898_v62 = vpop.trf.xlu1  ;;  %v38891_v9 = vrot.slane %v27139_v56, %v35539_v19  ;;  %v40005_v29 = vcombine.high %v40002_v39, %v40003_v31 }
0x1337   :  { %33873 = vmatpush3.msra.mxu0 %v38838_v27  ;;  %33903 = vmatpush3.msra.mxu1 %v38841_v40  ;;  %v26866_v35 = vpop.trf.xlu0  ;;  %v25653_v42 = vsel %vm3105_vm2, %v40004_v12, 0 }
0x1338   :  { %33874 = vmatprep.mubr.msk.f32.mxu0 %vm35404_vm1, %v39932_v34  ;;  %33877 = vmatprep.subr.mxu0 %v39932_v34  ;;  %v27202_v26 = vcombine.low %v38886_v11, %v38880_v50  ;;  %v27218_v60 = vcombine.low %v38891_v9, %v38883_v24  ;;  %v27219_v54 = vcombine.high %v38891_v9, %v38883_v24  ;;  %v26102_v1 = vsel %vm3105_vm2, %v40005_v29, 0 }
0x1339   :  { %33904 = vmatprep.mubr.msk.f32.mxu1 %vm35404_vm1, %v39932_v34  ;;  %33907 = vmatprep.subr.mxu1 %v39932_v34 }
0x133a   :  { %v26962_v48 = vpop.trf.xlu1  ;;  %v27210_v15 = vrot.slane %v27202_v26, %v39940_v22 }
0x133b   :  { %v27259_v3 = vcombine.high %v26898_v62, %v26962_v48  ;;  %v26930_v7 = vpop.trf.xlu0  ;;  %v27258_v44 = vcombine.low %v26898_v62, %v26962_v48  ;;  %v24752_v62 = vcombine.low %v24733_v0, %v24749_v43 }
0x133c   :  { %v27243_v2 = vcombine.high %v26866_v35, %v26930_v7  ;;  %v27242_v59 = vcombine.low %v26866_v35, %v26930_v7  ;;  %v27235_v57 = vcombine.high %v27178_v21, %v27210_v15  ;;  %v27234_v45 = vcombine.low %v27178_v21, %v27210_v15 }
0x133d   :  { %33875 = vmatmul.mubr.f32.vlgmr.msra.gmra.mrb[32].mxu0 %v38806_v28  ;;  %v38911_v14 = vrot.slane %v27259_v3, %v35539_v19  ;;  %v38931_v41 = vrot.slane %v27258_v44, %v35539_v19  ;;  %v24753_v35 = vcombine.high %v24733_v0, %v24749_v43  ;;  %v38967_v28 = vand.u32 4294901760, %v25653_v42 }
0x133e   :  { %33878 = vmatpush3.msra.mxu0 %v38831_v52  ;;  %33905 = vmatmul.mubr.f32.vlgmr.msra.gmra.mrb[34].mxu1 %v38809_v10  ;;  %v38918_v58 = vrot.slane %v27243_v2, %v35539_v19  ;;  %v27026_v8 = vpop.trf.xlu1  ;;  %v38934_v63 = vrot.slane %v27242_v59, %v35539_v19  ;;  %v38974_v10 = vand.u32 4294901760, %v24752_v62 }
0x133f   :  { %33908 = vmatpush3.msra.mxu1 %v38833_v16  ;;  %33879 = vmatprep.mubr.msk.f32.mxu0 %vm35404_vm1, %v39932_v34  ;;  %v26994_v46 = vpop.trf.xlu0 }
0x1340   :  { %33882 = vmatprep.subr.mxu0 %v39932_v34  ;;  %33909 = vmatprep.mubr.msk.f32.mxu1 %vm35404_vm1, %v39932_v34  ;;  %v27322_v32 = vcombine.low %v38918_v58, %v38911_v14  ;;  %v27323_v55 = vcombine.high %v38918_v58, %v38911_v14  ;;  %v27306_v48 = vcombine.low %v38934_v63, %v38931_v41 }
0x1341   :  { %33912 = vmatprep.subr.mxu1 %v39932_v34  ;;  %27410 = vxpose.xlu0.b32.start [1/2] (short) (narrow) %v27235_v57, 8  ;;  %v38990_v57 = vsub.f32 %v25653_v42, %v38967_v28  ;;  %v38993_v61 = vsub.f32 %v24752_v62, %v38974_v10 }
0x1342   :  { %v27090_v47 = vpop.trf.xlu1  ;;  %27378 = vxpose.xlu1.b32.start [1/2] (short) (narrow) %v27234_v45, 8  ;;  %v27314_v44 = vrot.slane %v27306_v48, %v39940_v22  ;;  %v39071_v48 = vrot.slane %v27219_v54, %v39940_v22 }
0x1343   :  { %v27290_v13 = vcombine.low %v27026_v8, %v27090_v47  ;;  %v27291_v30 = vcombine.high %v27026_v8, %v27090_v47  ;;  %v27058_v56 = vpop.trf.xlu0  ;;  %v25734_v43 = vand.u32 4294901760, %v38993_v61  ;;  %v27307_v47 = vcombine.high %v38934_v63, %v38931_v41 }
0x1344   :  { %v27274_v26 = vcombine.low %v26994_v46, %v27058_v56  ;;  %v27275_v21 = vcombine.high %v26994_v46, %v27058_v56  ;;  %v25723_v46 = vand.u32 4294901760, %v38990_v57 }
0x1345   :  { %33880 = vmatmul.mubr.f32.vlgmr.msra.gmra.mrb[32].mxu0 %v24825_v17  ;;  %v27298_v15 = vrot.slane %v27290_v13, %v35539_v19  ;;  %v38953_v3 = vrot.slane %v27291_v30, %v35539_v19  ;;  %v38969_v17 = vand.u32 4294901760, %v26102_v1  ;;  %v25735_v12 = vsub.f32 %v38993_v61, %v25734_v43 }
0x1346   :  { %33883 = vmatpush3.msra.mxu0 %v24836_v49  ;;  %33910 = vmatmul.mubr.f32.vlgmr.msra.gmra.mrb[34].mxu1 %v25274_v53  ;;  %v27282_v7 = vrot.slane %v27274_v26, %v35539_v19  ;;  %v38961_v33 = vrot.slane %v27275_v21, %v35539_v19  ;;  %v38976_v53 = vand.u32 4294901760, %v24753_v35  ;;  %v27171_v49 = vcombine.high %v38864_v4, %v38861_v36 }
0x1347   :  { %33913 = vmatpush3.msra.mxu1 %v25285_v6  ;;  %33884 = vmatprep.mubr.msk.f32.mxu0 %vm35404_vm1, %v39932_v34  ;;  %v27203_v6 = vcombine.high %v38886_v11, %v38880_v50  ;;  %v38996_v8 = vsub.f32 %v26102_v1, %v38969_v17  ;;  %v25724_v31 = vsub.f32 %v38990_v57, %v25723_v46 }
0x1348   :  { %33887 = vmatprep.subr.mxu0 %v39932_v34  ;;  %33914 = vmatprep.mubr.msk.f32.mxu1 %vm35404_vm1, %v39932_v34  ;;  %v27338_v27 = vcombine.low %v27282_v7, %v27298_v15  ;;  %v27354_v40 = vcombine.low %v38961_v33, %v38953_v3  ;;  %v27355_v2 = vcombine.high %v38961_v33, %v38953_v3 }
0x1349   :  { %33917 = vmatprep.subr.mxu1 %v39932_v34  ;;  %v39000_v36 = vsub.f32 %v24753_v35, %v38976_v53  ;;  %v27185_v50 = vrot.slane %v27171_v49, %v39940_v22  ;;  %v27217_v11 = vrot.slane %v27203_v6, %v39940_v22  ;;  %v26172_v0 = vand.u32 4294901760, %v38996_v8 }
0x134a   :  { %v27346_v59 = vrot.slane %v27338_v27, %v39940_v22  ;;  %v27339_v39 = vcombine.high %v27282_v7, %v27298_v15  ;;  %v27321_v63 = vrot.slane %v27307_v47, %v39940_v22  ;;  %v25725_v1 = vand.u32 4294901760, %v25724_v31 }
0x134b   :  { %v26173_v42 = vsub.f32 %v38996_v8, %v26172_v0  ;;  %v27237_v30 = vcombine.high %v27185_v50, %v27217_v11  ;;  %v39053_v35 = vrot.slane %v27186_v18, %v39940_v22  ;;  %v39059_v26 = vrot.slane %v27187_v38, %v39940_v22 }
0x134c   :  { %v27371_v4 = vcombine.high %v27314_v44, %v27346_v59  ;;  %v27370_v45 = vcombine.low %v27314_v44, %v27346_v59  ;;  %v27353_v29 = vrot.slane %v27339_v39, %v39940_v22  ;;  %v39065_v21 = vrot.slane %v27218_v60, %v39940_v22 }
0x134d   :  { %33885 = vmatmul.mubr.f32.vlgmr.msra.gmra.mrb[32].mxu0 %v38795_v23  ;;  %v26174_v13 = vand.u32 4294901760, %v26173_v42  ;;  %v27240_v18 = vcombine.low %v39059_v26, %v39071_v48  ;;  %v27241_v38 = vcombine.high %v39059_v26, %v39071_v48  ;;  %v27330_v15 = vrot.slane %v27322_v32, %v39940_v22 }
0x134e   :  { %33888 = vmatpush3.msra.mxu0 %v38831_v52  ;;  %33915 = vmatmul.mubr.f32.vlgmr.msra.gmra.mrb[34].mxu1 %v38797_v25  ;;  %v26183_v52 = vand.u32 4294901760, %v39000_v36  ;;  %v27372_v56 = vcombine.low %v27321_v63, %v27353_v29  ;;  %v27373_v62 = vcombine.high %v27321_v63, %v27353_v29  ;;  %v27238_v5 = vcombine.low %v39053_v35, %v39065_v21 }
0x134f   :  { %33918 = vmatpush3.msra.mxu1 %v38833_v16  ;;  %33889 = vmatprep.mubr.msk.f32.mxu0 %vm35404_vm1, %v39932_v34  ;;  %v27236_v16 = vcombine.low %v27185_v50, %v27217_v11  ;;  %v27239_v37 = vcombine.high %v39053_v35, %v39065_v21  ;;  %v39113_v7 = vrot.slane %v27323_v55, %v39940_v22 }
0x1350   :  { %33919 = vmatprep.mubr.msk.f32.mxu1 %vm35404_vm1, %v39932_v34  ;;  %33922 = vmatprep.subr.mxu0 %v39932_v34  ;;  %v26184_v41 = vsub.f32 %v39000_v36, %v26183_v52  ;;  %v27362_v27 = vrot.slane %v27354_v40, %v39940_v22  ;;  %v39123_v49 = vrot.slane %v27355_v2, %v39940_v22 }
0x1351   :  { %33952 = vmatprep.subr.mxu1 %v39932_v34  ;;  %27411 = vxpose.xlu0.b32.end [2/2] (short) (narrow) %v27371_v4, 8 }
0x1352   :  { %27379 = vxpose.xlu1.b32.end [2/2] (short) (narrow) %v27370_v45, 8  ;;  %v27374_v14 = vcombine.low %v27330_v15, %v27362_v27  ;;  %v27375_v58 = vcombine.high %v27330_v15, %v27362_v27  ;;  %v27376_v32 = vcombine.low %v39113_v7, %v39123_v49  ;;  %v27377_v55 = vcombine.high %v39113_v7, %v39123_v49 }
0x1355   :  { %33890 = vmatmul.mubr.f32.vlgmr.msra.gmra.mrb[32].mxu0 %v38795_v23  ;;  %27442 = vxpose.xlu0.b32.start [1/2] (short) (narrow) %v27236_v16, 8  ;;  %v25736_v23 = vand.u32 4294901760, %v25735_v12 }
0x1356   :  { %33920 = vmatmul.mubr.f32.vlgmr.msra.gmra.mrb[34].mxu1 %v38797_v25  ;;  %33923 = vmatpush3.msra.mxu0 %v38974_v10  ;;  %v26185_v25 = vand.u32 4294901760, %v26184_v41 }
0x1357   :  { %33953 = vmatpush3.msra.mxu1 %v38976_v53  ;;  %33924 = vmatprep.mubr.msk.f32.mxu0 %vm35404_vm1, %v39932_v34 }
0x1358   :  { %33927 = vmatprep.subr.mxu0 %v39932_v34  ;;  %33954 = vmatprep.mubr.msk.f32.mxu1 %vm35404_vm1, %v39932_v34 }
0x1359   :  { %33957 = vmatprep.subr.mxu1 %v39932_v34  ;;  %33925 = vmatmul.mubr.f32.vlgmr.msra.gmra.mrb[34].mxu0 %v25725_v1 }
0x135a   :  { %33928 = vmatpush3.msra.mxu0 %v25736_v23  ;;  %33955 = vmatmul.mubr.f32.vlgmr.msra.gmra.mrb[36].mxu1 %v26174_v13 }
0x135b   :  { %33958 = vmatpush3.msra.mxu1 %v26185_v25  ;;  %33929 = vmatprep.mubr.msk.f32.mxu0 %vm35404_vm1, %v39932_v34 }
0x135c   :  { %33932 = vmatprep.subr.mxu0 %v39932_v34  ;;  %33959 = vmatprep.mubr.msk.f32.mxu1 %vm35404_vm1, %v39932_v34 }
0x135d   :  { %33962 = vmatprep.subr.mxu1 %v39932_v34  ;;  %27474 = vxpose.xlu1.b32.start [1/2] (short) (narrow) %v27237_v30, 8 }
0x135e   :  { %27443 = vxpose.xlu0.b32.end [2/2] (short) (narrow) %v27372_v56, 8 }
0x1361   :  { %33930 = vmatmul.mubr.f32.vlgmr.msra.gmra.mrb[34].mxu0 %v38967_v28  ;;  %27475 = vxpose.xlu1.b32.end [2/2] (short) (narrow) %v27373_v62, 8 }
0x1362   :  { %33933 = vmatpush3.msra.mxu0 %v38993_v61  ;;  %33960 = vmatmul.mubr.f32.vlgmr.msra.gmra.mrb[36].mxu1 %v38969_v17 }
0x1363   :  { %33963 = vmatpush3.msra.mxu1 %v39000_v36  ;;  %33934 = vmatprep.mubr.msk.f32.mxu0 %vm35404_vm1, %v39932_v34 }
0x1364   :  { %33937 = vmatprep.subr.mxu0 %v39932_v34  ;;  %33964 = vmatprep.mubr.msk.f32.mxu1 %vm35404_vm1, %v39932_v34 }
0x1365   :  { %33967 = vmatprep.subr.mxu1 %v39932_v34 }
0x1367   :  { %v39091_v24 = vpop.f32.mrb[30].mxu0 }
0x1368   :  { %v39093_v9 = vpop.f32.mrb[32].mxu1  ;;  %v33831_v60 = vpop.f32.mrb[31].mxu0 }
0x1369   :  { %33935 = vmatmul.mubr.f32.vlgmr.msra.gmra.mrb[34].mxu0 %v38990_v57  ;;  %v33861_v54 = vpop.f32.mrb[33].mxu1 }
0x136a   :  { %33938 = vmatpush3.msra.mxu0 %v38974_v10  ;;  %33965 = vmatmul.mubr.f32.vlgmr.msra.gmra.mrb[36].mxu1 %v38996_v8 }
0x136b   :  { %33968 = vmatpush3.msra.mxu1 %v38976_v53  ;;  %33939 = vmatprep.mubr.msk.f32.mxu0 %vm35404_vm1, %v39932_v34 }
0x136c   :  { %33942 = vmatprep.subr.mxu0 %v39932_v34  ;;  %33969 = vmatprep.mubr.msk.f32.mxu1 %vm35404_vm1, %v39932_v34 }
0x136d   :  { %33972 = vmatprep.subr.mxu1 %v39932_v34 }
0x1371   :  { %33940 = vmatmul.mubr.f32.vlgmr.msra.gmra.mrb[34].mxu0 %v25723_v46 }
0x1372   :  { %33943 = vmatpush3.msra.mxu0 %v25734_v43  ;;  %33970 = vmatmul.mubr.f32.vlgmr.msra.gmra.mrb[36].mxu1 %v26172_v0 }
0x1373   :  { %33973 = vmatpush3.msra.mxu1 %v26183_v52  ;;  %33944 = vmatprep.mubr.msk.f32.mxu0 %vm35404_vm1, %v39932_v34 }
0x1374   :  { %33947 = vmatprep.subr.mxu0 %v39932_v34  ;;  %33974 = vmatprep.mubr.msk.f32.mxu1 %vm35404_vm1, %v39932_v34 }
0x1375   :  { %33977 = vmatprep.subr.mxu1 %v39932_v34 }
0x1379   :  { %33945 = vmatmul.mubr.f32.vlgmr.msra.gmra.mrb[34].mxu0 %v38967_v28 }
0x137a   :  { %33948 = vmatpush3.msra.mxu0 %v38974_v10  ;;  %33975 = vmatmul.mubr.f32.vlgmr.msra.gmra.mrb[36].mxu1 %v38969_v17 }
0x137b   :  { %33978 = vmatpush3.msra.mxu1 %v38976_v53  ;;  %33949 = vmatprep.mubr.msk.f32.mxu0 %vm35404_vm1, %v39932_v34 }
0x137c   :  { %33979 = vmatprep.mubr.msk.f32.mxu1 %vm35404_vm1, %v39932_v34  ;;  %33982 = vmatprep.subr.mxu0 %v39932_v34 }
0x137d   :  { %34012 = vmatprep.subr.mxu1 %v39932_v34 }
0x1381   :  { %33950 = vmatmul.mubr.f32.vlgmr.msra.gmra.mrb[34].mxu0 %v38967_v28 }
0x1382   :  { %33980 = vmatmul.mubr.f32.vlgmr.msra.gmra.mrb[36].mxu1 %v38969_v17  ;;  %33984 = vmatprep.mubr.msk.f32.mxu0 %vm35404_vm1, %v39932_v34 }
0x1383   :  { %34014 = vmatprep.mubr.msk.f32.mxu1 %vm35404_vm1, %v39932_v34 }
0x13cd   :  { %v27426_v3 = vpop.trf.xlu0 }
0x13ce   :  { %v27394_v33 = vpop.trf.xlu1 }
0x13da   :  { %v27458_v10 = vpop.trf.xlu0 }
0x13db   :  { %v27634_v40 = vcombine.low %v27394_v33, %v27458_v10 }
0x13dd   :  { %v27490_v53 = vpop.trf.xlu1  ;;  %v39160_v2 = vrot.slane %v27634_v40, %v35539_v19 }
0x13de   :  { %v27642_v6 = vcombine.low %v27426_v3, %v27490_v53 }
0x13e0   :  { %v39163_v44 = vrot.slane %v27642_v6, %v35539_v19 }
0x13e2   :  { %v27666_v28 = vcombine.low %v39160_v2, %v39163_v44  ;;  %v27667_v17 = vcombine.high %v39160_v2, %v39163_v44 }
0x13e4   :  { %v27674_v3 = vrot.slane %v27666_v28, %v39940_v22 }
0x1428   :  { %v25199_v59 = vpop.f32.mrb[32].mxu0 }
0x1429   :  { %v25648_v57 = vpop.f32.mrb[34].mxu1  ;;  %v33891_v61 = vpop.f32.mrb[33].mxu0  ;;  %v26550_v8 = vsel %vm13302_vm3, %v25199_v59, -inf }
0x142a   :  { %v33921_v36 = vpop.f32.mrb[35].mxu1  ;;  %26551 = vmax.xlane.f32.xlu0 %v26550_v8  ;;  %v26553_v4 = vsel %vm13302_vm3, %v25648_v57, -inf }
0x142b   :  { %26554 = vmax.xlane.f32.xlu1 %v26553_v4 }
0x1454   :  { %v26097_v50 = vpop.f32.mrb[34].mxu0 }
0x1455   :  { %v26546_v11 = vpop.f32.mrb[36].mxu1  ;;  %v33951_v45 = vpop.f32.mrb[35].mxu0  ;;  %v26556_v0 = vsel %vm13302_vm3, %v26097_v50, -inf }
0x1456   :  { %v33981_v46 = vpop.f32.mrb[37].mxu1  ;;  %v26559_v43 = vsel %vm13302_vm3, %v26546_v11, -inf }
0x1457   :  { %27506 = vxpose.xlu0.b32.start [1/2] (short) (narrow) %v27238_v5, 8 }
0x145b   :  { %27507 = vxpose.xlu0.b32.end [2/2] (short) (narrow) %v27374_v14, 8 }
0x145e   :  { %27538 = vxpose.xlu1.b32.start [1/2] (short) (narrow) %v27239_v37, 8 }
0x1462   :  { %27539 = vxpose.xlu1.b32.end [2/2] (short) (narrow) %v27375_v58, 8 }
0x1488   :  { %26560 = vmax.xlane.f32.xlu0 %v26559_v43 }
0x1489   :  { %26557 = vmax.xlane.f32.xlu1 %v26556_v0 }
0x14b7   :  { %v26552_v52 = vpop.xlane.xlu0 %26551 }
0x14b8   :  { %v26562_v16 = vsub.f32 %v25199_v59, %v26552_v52  ;;  %v26555_v47 = vpop.xlane.xlu1 %26554 }
0x14b9   :  { %v26563_v39 = vsub.f32 %v25648_v57, %v26555_v47 }
0x14ba   :  { %v26566_v31 = vmul.f32 1.442695, %v26562_v16 }
0x14bb   :  { %v26568_v12 = vmul.f32 1.442695, %v26563_v39 }
0x14bc   :  { %35193 = vpow2.f32 %v26566_v31 }
0x14bd   :  { %35195 = vpow2.f32 %v26568_v12 }
0x14c6   :  { %v35194_v42 = vpop.eup %35193 }
0x14c7   :  { %v35196_v41 = vpop.eup %35195  ;;  %v26574_v63 = vsel %vm13302_vm3, %v35194_v42, 0.0 }
0x14c8   :  { %26575 = vadd.xlane.f32.xlu0 %v26574_v63  ;;  %v26577_v29 = vsel %vm13302_vm3, %v35196_v41, 0.0 }
0x14c9   :  { %26578 = vadd.xlane.f32.xlu1 %v26577_v29 }
0x14d7   :  { %v27522_v1 = vpop.trf.xlu0 }
0x14de   :  { %v27554_v23 = vpop.trf.xlu1 }
0x14f5   :  { %27570 = vxpose.xlu0.b32.start [1/2] (short) (narrow) %v27240_v18, 8 }
0x14f9   :  { %27571 = vxpose.xlu0.b32.end [2/2] (short) (narrow) %v27376_v32, 8 }
0x14fc   :  { %27602 = vxpose.xlu1.b32.start [1/2] (short) (narrow) %v27241_v38, 8 }
0x1500   :  { %27603 = vxpose.xlu1.b32.end [2/2] (short) (narrow) %v27377_v55, 8 }
0x1515   :  { %v26561_v13 = vpop.xlane.xlu0 %26560 }
0x1516   :  { %v26565_v25 = vsub.f32 %v26546_v11, %v26561_v13  ;;  %v26558_v30 = vpop.xlane.xlu1 %26557 }
0x1517   :  { %v26564_v56 = vsub.f32 %v26097_v50, %v26558_v30 }
0x1518   :  { %v26572_v62 = vmul.f32 1.442695, %v26565_v25 }
0x1519   :  { %v26570_v35 = vmul.f32 1.442695, %v26564_v56 }
0x151a   :  { %35197 = vpow2.f32 %v26572_v62 }
0x151b   :  { %35199 = vpow2.f32 %v26570_v35 }
0x1524   :  { %v39187_v21 = vpop.eup %35197 }
0x1525   :  { %v39189_v5 = vpop.eup %35199  ;;  %v26583_v37 = vsel %vm13302_vm3, %v39187_v21, 0.0 }
0x1526   :  { %v26580_v26 = vsel %vm13302_vm3, %v39189_v5, 0.0 }
0x1527   :  { %26584 = vadd.xlane.f32.xlu1 %v26583_v37  ;;  %26581 = vadd.xlane.f32.xlu0 %v26580_v26 }
0x1554   :  { %23386 = vxpose.xlu0.b32.start.end [1/1] (short) (narrow) %v38783_v51, 8 }
0x1555   :  { %v26576_v48 = vpop.xlane.xlu0 %26575 }
0x1556   :  { %35201 = vrcp.f32 %v26576_v48  ;;  %v26579_v18 = vpop.xlane.xlu1 %26578 }
0x1557   :  { %35203 = vrcp.f32 %v26579_v18 }
0x1558   :  { %23450 = vxpose.xlu0.b32.start.end [1/1] (short) (narrow) %v39091_v24, 8 }
0x155a   :  { %23418 = vxpose.xlu1.b32.start.end [1/1] (short) (narrow) %v38785_v20, 8 }
0x155e   :  { %23482 = vxpose.xlu1.b32.start.end [1/1] (short) (narrow) %v39093_v9, 8 }
0x1560   :  { %v35202_v38 = vpop.eup %35201 }
0x1561   :  { %v35204_v60 = vpop.eup %35203  ;;  %v26587_v54 = vmul.f32 %v35202_v38, %v35194_v42 }
0x1562   :  { %v26589_v15 = vmul.f32 %v35204_v60, %v35196_v41  ;;  %v27681_v41 = vrot.slane %v27667_v17, %v39940_v22 }
0x1563   :  { %v27706_v7 = vsel %vm13302_vm3, %v26587_v54, 0 }
0x1564   :  { %v39200_v27 = vand.u32 4294901760, %v27706_v7  ;;  %v28158_v51 = vsel %vm13302_vm3, %v26589_v15, 0 }
0x1565   :  { %v39203_v49 = vand.u32 4294901760, %v28158_v51 }
0x1566   :  { %33983 = vmatpush3.xpose.msra.mxu0 %v39200_v27  ;;  %v27786_v10 = vsub.f32 %v27706_v7, %v39200_v27 }
0x1567   :  { %34013 = vmatpush3.xpose.msra.mxu1 %v39203_v49  ;;  %33987 = vmatprep.subr.mxu0 %v39932_v34  ;;  %v28238_v53 = vsub.f32 %v28158_v51, %v39203_v49 }
0x1568   :  { %34017 = vmatprep.subr.mxu1 %v39932_v34  ;;  %v27787_v36 = vand.u32 4294901760, %v27786_v10 }
0x1569   :  { %v28239_v4 = vand.u32 4294901760, %v28238_v53 }
0x156a   :  { %v27788_v46 = vsub.f32 %v27786_v10, %v27787_v36 }
0x156b   :  { %v28240_v43 = vsub.f32 %v28238_v53, %v28239_v4 }
0x156c   :  { %v27789_v39 = vand.u32 4294901760, %v27788_v46 }
0x156d   :  { %v28241_v31 = vand.u32 4294901760, %v28240_v43 }
0x1575   :  { %v27586_v20 = vpop.trf.xlu0 }
0x1576   :  { %v27650_v24 = vcombine.low %v27522_v1, %v27586_v20 }
0x1578   :  { %v27657_v58 = vrot.slane %v27650_v24, %v35539_v19 }
0x157c   :  { %v27618_v9 = vpop.trf.xlu1 }
0x157d   :  { %v27658_v14 = vcombine.low %v27554_v23, %v27618_v9 }
0x157f   :  { %v27665_v32 = vrot.slane %v27658_v14, %v35539_v19 }
0x1581   :  { %v27682_v55 = vcombine.low %v27657_v58, %v27665_v32  ;;  %v27683_v12 = vcombine.high %v27657_v58, %v27665_v32 }
0x1583   :  { %v27690_v33 = vrot.slane %v27682_v55, %v39940_v22  ;;  %v27697_v42 = vrot.slane %v27683_v12, %v39940_v22 }
0x1585   :  { %v27698_v40 = vcombine.low %v27674_v3, %v27690_v33  ;;  %v27699_v6 = vcombine.high %v27674_v3, %v27690_v33  ;;  %v27700_v63 = vcombine.low %v27681_v41, %v27697_v42  ;;  %v27701_v29 = vcombine.high %v27681_v41, %v27697_v42 }
0x1587   :  { %v27703_v59 = vsel %vm13302_vm3, %v27698_v40, 0  ;;  %v28155_v57 = vsel %vm13302_vm3, %v27699_v6, 0  ;;  %v28607_v1 = vsel %vm13302_vm3, %v27700_v63, 0  ;;  %v29059_v2 = vsel %vm13302_vm3, %v27701_v29, 0 }
0x1588   :  { %v39220_v61 = vand.u32 4294901760, %v27703_v59  ;;  %v39222_v8 = vand.u32 4294901760, %v28155_v57  ;;  %v39271_v23 = vand.u32 4294901760, %v28607_v1  ;;  %v39273_v13 = vand.u32 4294901760, %v29059_v2 }
0x158a   :  { %v27775_v28 = vsub.f32 %v27703_v59, %v39220_v61  ;;  %v28227_v50 = vsub.f32 %v28155_v57, %v39222_v8  ;;  %v39276_v25 = vsub.f32 %v28607_v1, %v39271_v23  ;;  %v39281_v30 = vsub.f32 %v29059_v2, %v39273_v13 }
0x158c   :  { %v27776_v11 = vand.u32 4294901760, %v27775_v28  ;;  %v28228_v45 = vand.u32 4294901760, %v28227_v50  ;;  %v28680_v56 = vand.u32 4294901760, %v39276_v25  ;;  %v29132_v35 = vand.u32 4294901760, %v39281_v30 }
0x158e   :  { %v27777_v0 = vsub.f32 %v27775_v28, %v27776_v11  ;;  %v28229_v52 = vsub.f32 %v28227_v50, %v28228_v45  ;;  %v28681_v38 = vsub.f32 %v39276_v25, %v28680_v56  ;;  %v29133_v15 = vsub.f32 %v39281_v30, %v29132_v35 }
0x1590   :  { %v27778_v16 = vand.u32 4294901760, %v27777_v0  ;;  %v28230_v47 = vand.u32 4294901760, %v28229_v52  ;;  %v29134_v51 = vand.u32 4294901760, %v29133_v15 }
0x1592   :  { %33985 = vmatmul.mubr.f32.vlgmr.msra.gmra.mrb[36].mxu0 %v27778_v16  ;;  %34015 = vmatmul.mubr.f32.vlgmr.msra.gmra.mrb[38].mxu1 %v28230_v47 }
0x1593   :  { %33988 = vmatpush3.xpose.msra.mxu0 %v27789_v39  ;;  %34018 = vmatpush3.xpose.msra.mxu1 %v28241_v31 }
0x1594   :  { %33989 = vmatprep.mubr.msk.f32.mxu0 %vm35404_vm1, %v39932_v34  ;;  %33992 = vmatprep.subr.mxu0 %v39932_v34 }
0x1595   :  { %34019 = vmatprep.mubr.msk.f32.mxu1 %vm35404_vm1, %v39932_v34  ;;  %34022 = vmatprep.subr.mxu1 %v39932_v34 }
0x159a   :  { %33990 = vmatmul.mubr.f32.vlgmr.msra.gmra.mrb[36].mxu0 %v39220_v61  ;;  %34020 = vmatmul.mubr.f32.vlgmr.msra.gmra.mrb[38].mxu1 %v39222_v8 }
0x159b   :  { %33993 = vmatpush3.xpose.msra.mxu0 %v27786_v10  ;;  %34023 = vmatpush3.xpose.msra.mxu1 %v28238_v53 }
0x159c   :  { %33994 = vmatprep.mubr.msk.f32.mxu0 %vm35404_vm1, %v39932_v34  ;;  %33997 = vmatprep.subr.mxu0 %v39932_v34 }
0x159d   :  { %34024 = vmatprep.mubr.msk.f32.mxu1 %vm35404_vm1, %v39932_v34  ;;  %34027 = vmatprep.subr.mxu1 %v39932_v34 }
0x15a2   :  { %33995 = vmatmul.mubr.f32.vlgmr.msra.gmra.mrb[36].mxu0 %v27775_v28  ;;  %34025 = vmatmul.mubr.f32.vlgmr.msra.gmra.mrb[38].mxu1 %v28227_v50 }
0x15a3   :  { %33998 = vmatpush3.xpose.msra.mxu0 %v39200_v27  ;;  %34028 = vmatpush3.xpose.msra.mxu1 %v39203_v49 }
0x15a4   :  { %33999 = vmatprep.mubr.msk.f32.mxu0 %vm35404_vm1, %v39932_v34  ;;  %34002 = vmatprep.subr.mxu0 %v39932_v34 }
0x15a5   :  { %34029 = vmatprep.mubr.msk.f32.mxu1 %vm35404_vm1, %v39932_v34  ;;  %34032 = vmatprep.subr.mxu1 %v39932_v34 }
0x15aa   :  { %34000 = vmatmul.mubr.f32.vlgmr.msra.gmra.mrb[36].mxu0 %v27776_v11  ;;  %34030 = vmatmul.mubr.f32.vlgmr.msra.gmra.mrb[38].mxu1 %v28228_v45 }
0x15ab   :  { %34003 = vmatpush3.xpose.msra.mxu0 %v27787_v36  ;;  %34033 = vmatpush3.xpose.msra.mxu1 %v28239_v4 }
0x15ac   :  { %34004 = vmatprep.mubr.msk.f32.mxu0 %vm35404_vm1, %v39932_v34  ;;  %34007 = vmatprep.subr.mxu0 %v39932_v34 }
0x15ad   :  { %34034 = vmatprep.mubr.msk.f32.mxu1 %vm35404_vm1, %v39932_v34  ;;  %34037 = vmatprep.subr.mxu1 %v39932_v34 }
0x15b2   :  { %34005 = vmatmul.mubr.f32.vlgmr.msra.gmra.mrb[36].mxu0 %v39220_v61  ;;  %34035 = vmatmul.mubr.f32.vlgmr.msra.gmra.mrb[38].mxu1 %v39222_v8 }
0x15b3   :  { %34008 = vmatpush3.xpose.msra.mxu0 %v39200_v27  ;;  %34038 = vmatpush3.xpose.msra.mxu1 %v39203_v49 }
0x15b4   :  { %v26582_v44 = vpop.xlane.xlu0 %26581  ;;  %v26585_v17 = vpop.xlane.xlu1 %26584  ;;  %34009 = vmatprep.mubr.msk.f32.mxu0 %vm35404_vm1, %v39932_v34  ;;  %34039 = vmatprep.mubr.msk.f32.mxu1 %vm35404_vm1, %v39932_v34 }
0x15b5   :  { %35205 = vrcp.f32 %v26582_v44  ;;  %34042 = vmatprep.subr.mxu0 %v39932_v34  ;;  %34072 = vmatprep.subr.mxu1 %v39932_v34 }
0x15b6   :  { %35207 = vrcp.f32 %v26585_v17 }
0x15ba   :  { %34010 = vmatmul.mubr.f32.vlgmr.msra.gmra.mrb[36].mxu0 %v39220_v61  ;;  %34040 = vmatmul.mubr.f32.vlgmr.msra.gmra.mrb[38].mxu1 %v39222_v8 }
0x15bb   :  { %34044 = vmatprep.mubr.msk.f32.mxu0 %vm35404_vm1, %v39932_v34  ;;  %34074 = vmatprep.mubr.msk.f32.mxu1 %vm35404_vm1, %v39932_v34 }
0x15bf   :  { %v35206_v62 = vpop.eup %35205 }
0x15c0   :  { %v35208_v37 = vpop.eup %35207  ;;  %v26591_v26 = vmul.f32 %v35206_v62, %v39189_v5  ;;  %v28682_v5 = vand.u32 4294901760, %v28681_v38 }
0x15c1   :  { %v26593_v48 = vmul.f32 %v35208_v37, %v39187_v21 }
0x15c2   :  { %v28610_v18 = vsel %vm13302_vm3, %v26591_v26, 0 }
0x15c3   :  { %v39293_v60 = vand.u32 4294901760, %v28610_v18  ;;  %v29062_v54 = vsel %vm13302_vm3, %v26593_v48, 0 }
0x15c4   :  { %v39297_v7 = vand.u32 4294901760, %v29062_v54 }
0x15c5   :  { %34043 = vmatpush3.xpose.msra.mxu0 %v39293_v60  ;;  %v28690_v27 = vsub.f32 %v28610_v18, %v39293_v60 }
0x15c6   :  { %34073 = vmatpush3.xpose.msra.mxu1 %v39297_v7  ;;  %v29142_v21 = vsub.f32 %v29062_v54, %v39297_v7  ;;  %34047 = vmatprep.subr.mxu0 %v39932_v34 }
0x15c7   :  { %34077 = vmatprep.subr.mxu1 %v39932_v34  ;;  %v28691_v49 = vand.u32 4294901760, %v28690_v27 }
0x15c8   :  { %34045 = vmatmul.mubr.f32.vlgmr.msra.gmra.mrb[38].mxu0 %v28682_v5  ;;  %v29143_v20 = vand.u32 4294901760, %v29142_v21 }
0x15c9   :  { %34075 = vmatmul.mubr.f32.vlgmr.msra.gmra.mrb[40].mxu1 %v29134_v51  ;;  %v28692_v24 = vsub.f32 %v28690_v27, %v28691_v49  ;;  %34049 = vmatprep.mubr.msk.f32.mxu0 %vm35404_vm1, %v39932_v34 }
0x15ca   :  { %v29144_v9 = vsub.f32 %v29142_v21, %v29143_v20  ;;  %34079 = vmatprep.mubr.msk.f32.mxu1 %vm35404_vm1, %v39932_v34 }
0x15cb   :  { %v28693_v14 = vand.u32 4294901760, %v28692_v24 }
0x15cc   :  { %v29145_v58 = vand.u32 4294901760, %v29144_v9 }
0x15cd   :  { %34048 = vmatpush3.xpose.msra.mxu0 %v28693_v14 }
0x15ce   :  { %34078 = vmatpush3.xpose.msra.mxu1 %v29145_v58  ;;  %34052 = vmatprep.subr.mxu0 %v39932_v34 }
0x15cf   :  { %34082 = vmatprep.subr.mxu1 %v39932_v34 }
0x15d0   :  { %34050 = vmatmul.mubr.f32.vlgmr.msra.gmra.mrb[38].mxu0 %v39271_v23 }
0x15d1   :  { %34080 = vmatmul.mubr.f32.vlgmr.msra.gmra.mrb[40].mxu1 %v39273_v13  ;;  %34053 = vmatpush3.xpose.msra.mxu0 %v28690_v27 }
0x15d2   :  { %34083 = vmatpush3.xpose.msra.mxu1 %v29142_v21  ;;  %34054 = vmatprep.mubr.msk.f32.mxu0 %vm35404_vm1, %v39932_v34 }
0x15d3   :  { %34057 = vmatprep.subr.mxu0 %v39932_v34  ;;  %34084 = vmatprep.mubr.msk.f32.mxu1 %vm35404_vm1, %v39932_v34 }
0x15d4   :  { %34087 = vmatprep.subr.mxu1 %v39932_v34  ;;  %v23402_v32 = vpop.trf.xlu0 }
0x15d8   :  { %34055 = vmatmul.mubr.f32.vlgmr.msra.gmra.mrb[38].mxu0 %v39276_v25  ;;  %v23466_v55 = vpop.trf.xlu0 }
0x15d9   :  { %34058 = vmatpush3.xpose.msra.mxu0 %v39293_v60  ;;  %34085 = vmatmul.mubr.f32.vlgmr.msra.gmra.mrb[40].mxu1 %v39281_v30  ;;  %v23514_v33 = vcombine.low %v23402_v32, %v23466_v55  ;;  %v23515_v10 = vcombine.high %v23402_v32, %v23466_v55 }
0x15da   :  { %34088 = vmatpush3.xpose.msra.mxu1 %v39297_v7  ;;  %v23434_v3 = vpop.trf.xlu1  ;;  %34059 = vmatprep.mubr.msk.f32.mxu0 %vm35404_vm1, %v39932_v34 }
0x15db   :  { %34062 = vmatprep.subr.mxu0 %v39932_v34  ;;  %34089 = vmatprep.mubr.msk.f32.mxu1 %vm35404_vm1, %v39932_v34  ;;  %v23522_v40 = vrot.slane %v23514_v33, %v35539_v19  ;;  %v23529_v6 = vrot.slane %v23515_v10, %v35539_v19 }
0x15dc   :  { %34092 = vmatprep.subr.mxu1 %v39932_v34 }
0x15de   :  { %v23498_v53 = vpop.trf.xlu1 }
0x15df   :  { %v23530_v59 = vcombine.low %v23434_v3, %v23498_v53  ;;  %v23531_v57 = vcombine.high %v23434_v3, %v23498_v53 }
0x15e0   :  { %34060 = vmatmul.mubr.f32.vlgmr.msra.gmra.mrb[38].mxu0 %v28680_v56 }
0x15e1   :  { %v23538_v61 = vrot.slane %v23530_v59, %v35539_v19  ;;  %v23545_v8 = vrot.slane %v23531_v57, %v35539_v19  ;;  %34063 = vmatpush3.xpose.msra.mxu0 %v28691_v49  ;;  %34090 = vmatmul.mubr.f32.vlgmr.msra.gmra.mrb[40].mxu1 %v29132_v35 }
0x15e2   :  { %34093 = vmatpush3.xpose.msra.mxu1 %v29143_v20  ;;  %34064 = vmatprep.mubr.msk.f32.mxu0 %vm35404_vm1, %v39932_v34 }
0x15e3   :  { %v23546_v36 = vcombine.low %v23522_v40, %v23538_v61  ;;  %v23547_v4 = vcombine.high %v23522_v40, %v23538_v61  ;;  %v23562_v28 = vcombine.low %v23529_v6, %v23545_v8  ;;  %v23563_v50 = vcombine.high %v23529_v6, %v23545_v8  ;;  %34067 = vmatprep.subr.mxu0 %v39932_v34 }
0x15e4   :  { %34094 = vmatprep.mubr.msk.f32.mxu1 %vm35404_vm1, %v39932_v34  ;;  %34097 = vmatprep.subr.mxu1 %v39932_v34 }
0x15e5   :  { %v23554_v11 = vrot.slane %v23546_v36, %v39940_v22  ;;  %v23561_v45 = vrot.slane %v23547_v4, %v39940_v22  ;;  %v23570_v46 = vrot.slane %v23562_v28, %v39940_v22  ;;  %v23577_v43 = vrot.slane %v23563_v50, %v39940_v22 }
0x15e7   :  { %v29726_v0 = vcombine.high %v23554_v11, %v39932_v34  ;;  %v29775_v52 = vcombine.high %v23561_v45, %v39932_v34  ;;  %v29824_v16 = vcombine.high %v23570_v46, %v39932_v34  ;;  %v29708_v47 = vrot.slane %v23554_v11, %v35539_v19 }
0x15e8   :  { %34065 = vmatmul.mubr.f32.vlgmr.msra.gmra.mrb[38].mxu0 %v39271_v23  ;;  %v29757_v39 = vrot.slane %v23561_v45, %v35539_v19  ;;  %v29806_v63 = vrot.slane %v23570_v46, %v35539_v19  ;;  %v29873_v29 = vcombine.high %v23577_v43, %v39932_v34  ;;  %v29855_v62 = vrot.slane %v23577_v43, %v35539_v19 }
0x15e9   :  { %34068 = vmatpush3.xpose.msra.mxu0 %v39293_v60  ;;  %34095 = vmatmul.mubr.f32.vlgmr.msra.gmra.mrb[40].mxu1 %v39273_v13  ;;  %v29733_v31 = vrot.slane %v29726_v0, %v35539_v19  ;;  %v29782_v12 = vrot.slane %v29775_v52, %v35539_v19  ;;  %v39355_v42 = vrot.slane %v29708_v47, %v39940_v22 }
0x15ea   :  { %34098 = vmatpush3.xpose.msra.mxu1 %v39297_v7  ;;  %34069 = vmatprep.mubr.msk.f32.mxu0 %vm35404_vm1, %v39932_v34  ;;  %v39360_v41 = vrot.slane %v29757_v39, %v39940_v22  ;;  %v29831_v44 = vrot.slane %v29824_v16, %v35539_v19  ;;  %v39381_v56 = vrot.slane %v29806_v63, %v39940_v22 }
0x15eb   :  { %34099 = vmatprep.mubr.msk.f32.mxu1 %vm35404_vm1, %v39932_v34  ;;  %v39367_v1 = vrot.slane %v29733_v31, %v39940_v22  ;;  %v39370_v2 = vrot.slane %v29782_v12, %v39940_v22  ;;  %v29724_v17 = vcombine.high %v39355_v42, %v39932_v34  ;;  %v29880_v26 = vrot.slane %v29873_v29, %v35539_v19 }
0x15ec   :  { %v29773_v30 = vcombine.high %v39360_v41, %v39932_v34  ;;  %v39388_v37 = vrot.slane %v29831_v44, %v39940_v22  ;;  %v29822_v48 = vcombine.high %v39381_v56, %v39932_v34  ;;  %v39397_v18 = vrot.slane %v29855_v62, %v39940_v22 }
0x15ed   :  { %v29749_v25 = vcombine.high %v39367_v1, %v39932_v34  ;;  %29906 = vrot.lane.b32.xlu0 %v29724_v17, %s35394_s21  ;;  %v29798_v35 = vcombine.high %v39370_v2, %v39932_v34  ;;  %v39403_v60 = vrot.slane %v29880_v26, %v39940_v22  ;;  %v29734_v15 = vcombine.high %v29733_v31, %v39932_v34 }
0x15ee   :  { %v29847_v38 = vcombine.high %v39388_v37, %v39932_v34  ;;  %v29758_v27 = vcombine.high %v29757_v39, %v39932_v34  ;;  %v29783_v5 = vcombine.high %v29782_v12, %v39932_v34  ;;  %v29807_v49 = vcombine.high %v29806_v63, %v39932_v34 }
0x15ef   :  { %29908 = vrot.lane.b32.xlu1 %v29749_v25, %s35394_s21  ;;  %v29896_v54 = vcombine.high %v39403_v60, %v39932_v34  ;;  %v29748_v21 = vrot.slane %v29734_v15, %v39940_v22  ;;  %v29832_v24 = vcombine.high %v29831_v44, %v39932_v34  ;;  %v29856_v14 = vcombine.high %v29855_v62, %v39932_v34 }
0x15f0   :  { %34070 = vmatmul.mubr.f32.vlgmr.msra.gmra.mrb[38].mxu0 %v39271_v23  ;;  %v29871_v23 = vcombine.high %v39397_v18, %v39932_v34  ;;  %v29772_v51 = vrot.slane %v29758_v27, %v39940_v22  ;;  %v29797_v20 = vrot.slane %v29783_v5, %v39940_v22  ;;  %v29821_v9 = vrot.slane %v29807_v49, %v39940_v22 }
0x15f1   :  { %34100 = vmatmul.mubr.f32.vlgmr.msra.gmra.mrb[40].mxu1 %v39273_v13  ;;  %29910 = vrot.lane.b32.xlu0 %v29773_v30, %s35394_s21  ;;  %v29709_v13 = vcombine.high %v29708_v47, %v39932_v34  ;;  %v29846_v58 = vrot.slane %v29832_v24, %v39940_v22  ;;  %v29881_v32 = vcombine.high %v29880_v26, %v39932_v34 }
0x15f2   :  { %v39433_v55 = vrot.slane %v29856_v14, %v39940_v22  ;;  %v29750_v10 = vcombine.high %v29748_v21, %v39932_v34  ;;  %v29774_v53 = vcombine.high %v29772_v51, %v39932_v34  ;;  %v29799_v40 = vcombine.high %v29797_v20, %v39932_v34 }
0x15f3   :  { %29912 = vrot.lane.b32.xlu1 %v29798_v35, %s35394_s21  ;;  %v29723_v7 = vrot.slane %v29709_v13, %v39940_v22  ;;  %v39437_v3 = vrot.slane %v29881_v32, %v39940_v22  ;;  %v29823_v6 = vcombine.high %v29821_v9, %v39932_v34  ;;  %v29848_v59 = vcombine.high %v29846_v58, %v39932_v34 }
0x15f5   :  { %29914 = vrot.lane.b32.xlu0 %v29822_v48, %s35394_s21  ;;  %v29725_v33 = vcombine.high %v29723_v7, %v39932_v34 }
0x15f7   :  { %29916 = vrot.lane.b32.xlu1 %v29847_v38, %s35394_s21 }
0x15f9   :  { %29918 = vrot.lane.b32.xlu0 %v29871_v23, %s35394_s21 }
0x15fb   :  { %29920 = vrot.lane.b32.xlu1 %v29896_v54, %s35394_s21 }
0x15fd   :  { %29938 = vrot.lane.b32.xlu0 %v29723_v7, %s35405_s8 }
0x15ff   :  { %29940 = vrot.lane.b32.xlu1 %v29748_v21, %s35405_s8 }
0x1601   :  { %29942 = vrot.lane.b32.xlu0 %v29772_v51, %s35405_s8 }
0x1603   :  { %29944 = vrot.lane.b32.xlu1 %v29797_v20, %s35405_s8 }
0x1605   :  { %29946 = vrot.lane.b32.xlu0 %v29821_v9, %s35405_s8 }
0x1607   :  { %29948 = vrot.lane.b32.xlu1 %v29846_v58, %s35405_s8 }
0x1609   :  { %29950 = vrot.lane.b32.xlu0 %v39433_v55, %s35405_s8 }
0x160b   :  { %29952 = vrot.lane.b32.xlu1 %v39437_v3, %s35405_s8 }
0x160d   :  { %29970 = vrot.lane.b32.xlu0 %v29725_v33, %s35406_s11 }
0x160f   :  { %29972 = vrot.lane.b32.xlu1 %v29750_v10, %s35406_s11 }
0x1611   :  { %29974 = vrot.lane.b32.xlu0 %v29774_v53, %s35406_s11 }
0x1613   :  { %29976 = vrot.lane.b32.xlu1 %v29799_v40, %s35406_s11 }
0x1615   :  { %29978 = vrot.lane.b32.xlu0 %v29823_v6, %s35406_s11 }
0x1617   :  { %29980 = vrot.lane.b32.xlu1 %v29848_v59, %s35406_s11 }
0x165f   :  { %v29907_v57 = vpop.permute.xlu0 %29906 }
0x1660   :  { %v29994_v45 = vsel %vm3105_vm2, %v39355_v42, %v29907_v57 }
0x1661   :  { %v29909_v61 = vpop.permute.xlu1 %29908 }
0x1662   :  { %v29995_v43 = vsel %vm3105_vm2, %v39367_v1, %v29909_v61 }
0x1663   :  { %v29911_v8 = vpop.permute.xlu0 %29910 }
0x1664   :  { %v29996_v47 = vsel %vm3105_vm2, %v39360_v41, %v29911_v8 }
0x1665   :  { %v29913_v36 = vpop.permute.xlu1 %29912 }
0x1666   :  { %v29997_v31 = vsel %vm3105_vm2, %v39370_v2, %v29913_v36 }
0x1667   :  { %v29915_v4 = vpop.permute.xlu0 %29914 }
0x1668   :  { %v29998_v29 = vsel %vm3105_vm2, %v39381_v56, %v29915_v4 }
0x1669   :  { %v29917_v28 = vpop.permute.xlu1 %29916 }
0x166a   :  { %v29999_v44 = vsel %vm3105_vm2, %v39388_v37, %v29917_v28 }
0x166b   :  { %v29919_v50 = vpop.permute.xlu0 %29918 }
0x166c   :  { %v30000_v2 = vsel %vm3105_vm2, %v39397_v18, %v29919_v50 }
0x166d   :  { %v29921_v11 = vpop.permute.xlu1 %29920 }
0x166e   :  { %v30001_v62 = vsel %vm3105_vm2, %v39403_v60, %v29921_v11 }
0x166f   :  { %v29939_v46 = vpop.permute.xlu0 %29938 }
0x1670   :  { %v30002_v0 = vsel %vm13302_vm3, %v29994_v45, %v29939_v46 }
0x1671   :  { %v29941_v52 = vpop.permute.xlu1 %29940 }
0x1672   :  { %v30003_v16 = vsel %vm13302_vm3, %v29995_v43, %v29941_v52 }
0x1673   :  { %v29943_v39 = vpop.permute.xlu0 %29942 }
0x1674   :  { %v30004_v12 = vsel %vm13302_vm3, %v29996_v47, %v29943_v39 }
0x1675   :  { %v29945_v63 = vpop.permute.xlu1 %29944 }
0x1676   :  { %v30005_v42 = vsel %vm13302_vm3, %v29997_v31, %v29945_v63 }
0x1677   :  { %v29947_v1 = vpop.permute.xlu0 %29946 }
0x1678   :  { %v39472_v17 = vsel %vm13302_vm3, %v29998_v29, %v29947_v1 }
0x1679   :  { %v29949_v41 = vpop.permute.xlu1 %29948 }
0x167a   :  { %v39475_v25 = vsel %vm13302_vm3, %v29999_v44, %v29949_v41 }
0x167b   :  { %v29951_v30 = vpop.permute.xlu0 %29950 }
0x167c   :  { %v39482_v56 = vsel %vm13302_vm3, %v30000_v2, %v29951_v30 }
0x167d   :  { %v29953_v35 = vpop.permute.xlu1 %29952 }
0x167e   :  { %v39485_v37 = vsel %vm13302_vm3, %v30001_v62, %v29953_v35 }
0x167f   :  { %v29971_v26 = vpop.permute.xlu0 %29970 }
0x1680   :  { %v39488_v48 = vsel %vm13311_vm4, %v30002_v0, %v29971_v26 }
0x1681   :  { %v29973_v38 = vpop.permute.xlu1 %29972 }
0x1682   :  { %v39491_v23 = vsel %vm13311_vm4, %v30003_v16, %v29973_v38 }
0x1683   :  { %v29975_v18 = vpop.permute.xlu0 %29974 }
0x1684   :  { %v39494_v13 = vsel %vm13311_vm4, %v30004_v12, %v29975_v18 }
0x1685   :  { %v29977_v60 = vpop.permute.xlu1 %29976 }
0x1686   :  { %v39497_v54 = vsel %vm13311_vm4, %v30005_v42, %v29977_v60 }
0x1687   :  { %v39499_v24 = vpop.permute.xlu0 %29978 }
0x1689   :  { %v39501_v9 = vpop.permute.xlu1 %29980 }
0x168d   :  { %v28150_v15 = vpop.f32.mrb[36].mxu0  ;;  %v28602_v7 = vpop.f32.mrb[38].mxu1 }
0x168e   :  { %v34011_v27 = vpop.f32.mrb[37].mxu0  ;;  %v34041_v21 = vpop.f32.mrb[39].mxu1  ;;  %29510 = vxpose.xlu1.b32.start.end [1/1] (short) (narrow) %v28150_v15, 8  ;;  %29542 = vxpose.xlu0.b32.start.end [1/1] (short) (narrow) %v28602_v7, 8 }
0x16c3   :  { %v29054_v5 = vpop.f32.mrb[38].mxu0 }
0x16c4   :  { %v29506_v51 = vpop.f32.mrb[40].mxu1  ;;  %v34071_v49 = vpop.f32.mrb[39].mxu0  ;;  %29574 = vxpose.xlu0.b32.start.end [1/1] (short) (narrow) %v29054_v5, 8 }
0x16c5   :  { %v34101_v20 = vpop.f32.mrb[41].mxu1  ;;  %29606 = vxpose.xlu1.b32.start.end [1/1] (short) (narrow) %v29506_v51, 8 }
0x170e   :  { %v29558_v14 = vpop.trf.xlu0  ;;  %v29526_v58 = vpop.trf.xlu1 }
0x1744   :  { %v29590_v32 = vpop.trf.xlu0 }
0x1745   :  { %v29622_v33 = vpop.trf.xlu1  ;;  %v29638_v10 = vcombine.low %v29526_v58, %v29590_v32  ;;  %v29639_v53 = vcombine.high %v29526_v58, %v29590_v32 }
0x1746   :  { %v29654_v40 = vcombine.low %v29558_v14, %v29622_v33  ;;  %v29655_v6 = vcombine.high %v29558_v14, %v29622_v33 }
0x1747   :  { %v29646_v59 = vrot.slane %v29638_v10, %v35539_v19  ;;  %v29653_v57 = vrot.slane %v29639_v53, %v35539_v19 }
0x1748   :  { %v29662_v61 = vrot.slane %v29654_v40, %v35539_v19  ;;  %v29669_v8 = vrot.slane %v29655_v6, %v35539_v19 }
0x174a   :  { %v29670_v36 = vcombine.low %v29646_v59, %v29662_v61  ;;  %v29671_v4 = vcombine.high %v29646_v59, %v29662_v61  ;;  %v29686_v28 = vcombine.low %v29653_v57, %v29669_v8  ;;  %v29687_v50 = vcombine.high %v29653_v57, %v29669_v8 }
0x174c   :  { %v29678_v11 = vrot.slane %v29670_v36, %v39940_v22  ;;  %v29685_v45 = vrot.slane %v29671_v4, %v39940_v22  ;;  %v29694_v46 = vrot.slane %v29686_v28, %v39940_v22  ;;  %v29701_v43 = vrot.slane %v29687_v50, %v39940_v22 }
0x174e   :  { %v30042_v0 = vcombine.high %v29678_v11, %v39932_v34  ;;  %v30091_v52 = vcombine.high %v29685_v45, %v39932_v34  ;;  %v30073_v16 = vrot.slane %v29685_v45, %v35539_v19  ;;  %v30024_v47 = vrot.slane %v29678_v11, %v35539_v19 }
0x174f   :  { %v30122_v39 = vrot.slane %v29694_v46, %v35539_v19  ;;  %v30140_v42 = vcombine.high %v29694_v46, %v39932_v34  ;;  %v30171_v1 = vrot.slane %v29701_v43, %v35539_v19  ;;  %v30189_v62 = vcombine.high %v29701_v43, %v39932_v34 }
0x1750   :  { %v30049_v31 = vrot.slane %v30042_v0, %v35539_v19  ;;  %v39518_v12 = vrot.slane %v30073_v16, %v39940_v22  ;;  %v39521_v63 = vrot.slane %v30024_v47, %v39940_v22  ;;  %v30098_v29 = vrot.slane %v30091_v52, %v35539_v19 }
0x1751   :  { %v39534_v30 = vrot.slane %v30122_v39, %v39940_v22  ;;  %v30147_v35 = vrot.slane %v30140_v42, %v35539_v19  ;;  %v39548_v60 = vrot.slane %v30171_v1, %v39940_v22  ;;  %v30196_v15 = vrot.slane %v30189_v62, %v35539_v19  ;;  %v30369_v42 = vld [vmem:[#allocation8 + $0xf0] sm:$0xff] }
0x1752   :  { %v30089_v44 = vcombine.high %v39518_v12, %v39932_v34  ;;  %v30040_v41 = vcombine.high %v39521_v63, %v39932_v34  ;;  %v39531_v2 = vrot.slane %v30049_v31, %v39940_v22  ;;  %v39545_v18 = vrot.slane %v30098_v29, %v39940_v22 }
0x1753   :  { %v30138_v38 = vcombine.high %v39534_v30, %v39932_v34  ;;  %v30187_v27 = vcombine.high %v39548_v60, %v39932_v34  ;;  %v39558_v21 = vrot.slane %v30147_v35, %v39940_v22  ;;  %v30025_v5 = vcombine.high %v30024_v47, %v39932_v34 }
0x1754   :  { %30226 = vrot.lane.b32.xlu1 %v30089_v44, %s35394_s21  ;;  %30222 = vrot.lane.b32.xlu0 %v30040_v41, %s35394_s21  ;;  %v30065_v26 = vcombine.high %v39531_v2, %v39932_v34  ;;  %v30114_v7 = vcombine.high %v39545_v18, %v39932_v34  ;;  %v39567_v20 = vrot.slane %v30196_v15, %v39940_v22  ;;  %v30370_v44 = vld [vmem:[#allocation8 + $0xf8] sm:$0xff]  ;;  %v30428_v41 = vand.u32 4294901760, %v30369_v42 }
0x1755   :  { %v30163_v51 = vcombine.high %v39558_v21, %v39932_v34  ;;  %v30039_v49 = vrot.slane %v30025_v5, %v39940_v22  ;;  %v30074_v14 = vcombine.high %v30073_v16, %v39932_v34  ;;  %v30050_v33 = vcombine.high %v30049_v31, %v39932_v34  ;;  %v30368_v31 = vld [vmem:[#allocation8 + $0xe8] sm:$0xff] }
0x1756   :  { %v30212_v58 = vcombine.high %v39567_v20, %v39932_v34  ;;  %v30123_v10 = vcombine.high %v30122_v39, %v39932_v34  ;;  %v30099_v6 = vcombine.high %v30098_v29, %v39932_v34  ;;  %v30172_v59 = vcombine.high %v30171_v1, %v39932_v34  ;;  %v30367_v39 = vld [vmem:[#allocation8 + $0xe0] sm:$0xff] }
0x1757   :  { %v30088_v32 = vrot.slane %v30074_v14, %v39940_v22  ;;  %v30064_v53 = vrot.slane %v30050_v33, %v39940_v22  ;;  %v30148_v8 = vcombine.high %v30147_v35, %v39932_v34  ;;  %v30041_v4 = vcombine.high %v30039_v49, %v39932_v34 }
0x1758   :  { %30224 = vrot.lane.b32.xlu1 %v30065_v26, %s35394_s21  ;;  %30230 = vrot.lane.b32.xlu0 %v30138_v38, %s35394_s21  ;;  %v30137_v40 = vrot.slane %v30123_v10, %v39940_v22  ;;  %v30113_v57 = vrot.slane %v30099_v6, %v39940_v22  ;;  %v30186_v61 = vrot.slane %v30172_v59, %v39940_v22  ;;  %v30422_v29 = vand.u32 4294901760, %v30367_v39 }
0x1759   :  { %v30162_v36 = vrot.slane %v30148_v8, %v39940_v22  ;;  %v30197_v28 = vcombine.high %v30196_v15, %v39932_v34  ;;  %v30090_v11 = vcombine.high %v30088_v32, %v39932_v34  ;;  %v30066_v45 = vcombine.high %v30064_v53, %v39932_v34 }
0x175a   :  { %v30139_v46 = vcombine.high %v30137_v40, %v39932_v34  ;;  %v30115_v43 = vcombine.high %v30113_v57, %v39932_v34  ;;  %v30188_v0 = vcombine.high %v30186_v61, %v39932_v34  ;;  %v29872_v52 = vcombine.high %v39433_v55, %v39932_v34 }
0x175b   :  { %v30211_v50 = vrot.slane %v30197_v28, %v39940_v22  ;;  %v30164_v22 = vcombine.high %v30162_v36, %v39932_v34  ;;  %v29897_v47 = vcombine.high %v39437_v3, %v39932_v34  ;;  %v30425_v1 = vand.u32 4294901760, %v30368_v31 }
0x175c   :  { %30228 = vrot.lane.b32.xlu1 %v30114_v7, %s35394_s21  ;;  %30234 = vrot.lane.b32.xlu0 %v30187_v27, %s35394_s21  ;;  %v30431_v55 = vand.u32 4294901760, %v30370_v44  ;;  %v30526_v15 = vsub.f32 %v30369_v42, %v30428_v41 }
0x175d   :  { %v30213_v16 = vcombine.high %v30211_v50, %v39932_v34  ;;  %v39617_v62 = vpack.c.bf16 %v30425_v1, %v30422_v29  ;;  %v30512_v34 = vsub.f32 %v30367_v39, %v30422_v29  ;;  %v30519_v3 = vsub.f32 %v30368_v31, %v30425_v1 }
0x175e   :  { %v39619_v35 = vpack.c.bf16 %v30431_v55, %v30428_v41  ;;  %v30533_v7 = vsub.f32 %v30370_v44, %v30431_v55 }
0x175f   :  { %34571 = vmatprep.subr.bf16.mxu0 %v39617_v62  ;;  %v30513_v26 = vand.u32 4294901760, %v30512_v34  ;;  %v30520_v38 = vand.u32 4294901760, %v30519_v3  ;;  %v39627_v6 = vpack.c.bf16 %v30519_v3, %v30512_v34 }
0x1760   :  { %30232 = vrot.lane.b32.xlu1 %v30163_v51, %s35394_s21  ;;  %30254 = vrot.lane.b32.xlu0 %v30039_v49, %s35405_s8  ;;  %v30527_v51 = vand.u32 4294901760, %v30526_v15  ;;  %v30534_v49 = vand.u32 4294901760, %v30533_v7 }
0x1761   :  { %34573 = vmatpush3.bf16.msra.mxu0 %v39617_v62  ;;  %v30514_v27 = vsub.f32 %v30512_v34, %v30513_v26  ;;  %v30521_v5 = vsub.f32 %v30519_v3, %v30520_v38 }
0x1762   :  { %34575 = vmatprep.subr.bf16.mxu0 %v39619_v35  ;;  %v30535_v33 = vsub.f32 %v30533_v7, %v30534_v49  ;;  %v39636_v8 = vpack.c.bf16 %v30534_v49, %v30527_v51 }
0x1763   :  { %v30515_v14 = vand.u32 4294901760, %v30514_v27 }
0x1764   :  { %30236 = vrot.lane.b32.xlu1 %v30212_v58, %s35394_s21  ;;  %30258 = vrot.lane.b32.xlu0 %v30088_v32, %s35405_s8  ;;  %v30522_v58 = vand.u32 4294901760, %v30521_v5  ;;  %v30528_v32 = vsub.f32 %v30526_v15, %v30527_v51  ;;  %s31890_s21 = sshll.u32 %s35411_s3, 4  ;;  %s31891_s21 = int_to_ptr.vmem [resolvable:$true] %s31890_s21 }
0x1765   :  { %34577 = vmatpush3.bf16.msra.mxu0 %v39619_v35  ;;  %s35359_s23 = scalar_lea.vmem %s31891_s21, 256  ;;  %p35364_p13 = scmp.lt.s32.totalorder %s31891_s21, %s31891_s21 }
0x1766   :  { %v39625_v10 = vpack.c.bf16 %v30522_v58, %v30515_v14  ;;  %p35360_p12 = scmp.ne.s32.totalorder %s31891_s21, %s35359_s23  ;;  %p35365_p0 = scmp.lt.s32.totalorder %s35359_s23, %s35359_s23 }
0x1768   :  { %30256 = vrot.lane.b32.xlu1 %v30064_v53, %s35405_s8  ;;  %30262 = vrot.lane.b32.xlu0 %v30137_v40, %s35405_s8  ;;  %v30529_v53 = vand.u32 4294901760, %v30528_v32  ;;  %v30536_v40 = vand.u32 4294901760, %v30535_v33  ;;  %p35366_p1 = por %p35365_p0, %p35364_p13 }
0x1769   :  { %34579 = vmatprep.subr.bf16.mxu0 %v39625_v10 }
0x176a   :  { %v39630_v59 = vpack.c.bf16 %v30536_v40, %v30529_v53  ;;  %p35367_p2 = pnand %p35366_p1, %p35360_p12 }
0x176c   :  { %30260 = vrot.lane.b32.xlu1 %v30113_v57, %s35405_s8  ;;  %30266 = vrot.lane.b32.xlu0 %v30186_v61, %s35405_s8  ;;  %v39632_v57 = vpack.c.bf16 %v30533_v7, %v30526_v15  ;;  %v39634_v61 = vpack.c.bf16 %v30520_v38, %v30513_v26 }
0x1770   :  { %30264 = vrot.lane.b32.xlu1 %v30162_v36, %s35405_s8  ;;  %30286 = vrot.lane.b32.xlu0 %v30041_v4, %s35406_s11 }
0x1774   :  { %30268 = vrot.lane.b32.xlu1 %v30211_v50, %s35405_s8  ;;  %30290 = vrot.lane.b32.xlu0 %v30090_v11, %s35406_s11 }
0x1778   :  { %30288 = vrot.lane.b32.xlu1 %v30066_v45, %s35406_s11  ;;  %30294 = vrot.lane.b32.xlu0 %v30139_v46, %s35406_s11 }
0x177c   :  { %30292 = vrot.lane.b32.xlu1 %v30115_v43, %s35406_s11  ;;  %30298 = vrot.lane.b32.xlu0 %v30188_v0, %s35406_s11 }
0x1780   :  { %30296 = vrot.lane.b32.xlu1 %v30164_v22, %s35406_s11  ;;  %29982 = vrot.lane.b32.xlu0 %v29872_v52, %s35406_s11 }
0x1784   :  { %30300 = vrot.lane.b32.xlu1 %v30213_v16, %s35406_s11 }
0x1788   :  { %29984 = vrot.lane.b32.xlu1 %v29897_v47, %s35406_s11 }
0x17c6   :  { %v30227_v36 = vpop.permute.xlu1 %30226  ;;  %v30223_v4 = vpop.permute.xlu0 %30222 }
0x17c7   :  { %v30310_v29 = vsel %vm3105_vm2, %v39521_v63, %v30223_v4  ;;  %v30312_v34 = vsel %vm3105_vm2, %v39518_v12, %v30227_v36 }
0x17ca   :  { %v30225_v28 = vpop.permute.xlu1 %30224  ;;  %v30231_v50 = vpop.permute.xlu0 %30230 }
0x17cb   :  { %v30311_v3 = vsel %vm3105_vm2, %v39531_v2, %v30225_v28  ;;  %v30314_v51 = vsel %vm3105_vm2, %v39534_v30, %v30231_v50 }
0x17ce   :  { %v30229_v11 = vpop.permute.xlu1 %30228  ;;  %v30235_v45 = vpop.permute.xlu0 %30234 }
0x17cf   :  { %v30313_v12 = vsel %vm3105_vm2, %v39545_v18, %v30229_v11 }
0x17d2   :  { %v30233_v46 = vpop.permute.xlu1 %30232  ;;  %v30255_v43 = vpop.permute.xlu0 %30254 }
0x17d3   :  { %v30318_v1 = vsel %vm13302_vm3, %v30310_v29, %v30255_v43  ;;  %v30315_v18 = vsel %vm3105_vm2, %v39558_v21, %v30233_v46  ;;  %v30015_v21 = vsel %vm13311_vm4, %v39475_v25, %v39501_v9 }
0x17d6   :  { %v30237_v0 = vpop.permute.xlu1 %30236  ;;  %v30259_v22 = vpop.permute.xlu0 %30258 }
0x17d7   :  { %v30320_v26 = vsel %vm13302_vm3, %v30312_v34, %v30259_v22 }
0x17da   :  { %v30257_v52 = vpop.permute.xlu1 %30256  ;;  %v30263_v16 = vpop.permute.xlu0 %30262 }
0x17db   :  { %v30319_v38 = vsel %vm13302_vm3, %v30311_v3, %v30257_v52  ;;  %v30322_v2 = vsel %vm13302_vm3, %v30314_v51, %v30263_v16  ;;  %v30014_v16 = vsel %vm13311_vm4, %v39472_v17, %v39499_v24 }
0x17de   :  { %v30261_v47 = vpop.permute.xlu1 %30260  ;;  %v30267_v39 = vpop.permute.xlu0 %30266 }
0x17df   :  { %v30321_v14 = vsel %vm13302_vm3, %v30313_v12, %v30261_v47  ;;  %v30317_v47 = vsel %vm3105_vm2, %v39567_v20, %v30237_v0 }
0x17e2   :  { %v30265_v31 = vpop.permute.xlu1 %30264  ;;  %v30287_v42 = vpop.permute.xlu0 %30286 }
0x17e3   :  { %v30326_v55 = vsel %vm13311_vm4, %v30318_v1, %v30287_v42  ;;  %v30323_v50 = vsel %vm13302_vm3, %v30315_v18, %v30265_v31 }
0x17e4   :  { %v30342_v15 = vrot.slane %v30326_v55, 7 }
0x17e6   :  { %v30269_v44 = vpop.permute.xlu1 %30268  ;;  %v30291_v41 = vpop.permute.xlu0 %30290  ;;  %v30358_v58 = vsel %vm13660_vm5, %v39488_v48, %v30342_v15 }
0x17e7   :  { %v30328_v63 = vsel %vm13311_vm4, %v30320_v26, %v30291_v41  ;;  %v30325_v29 = vsel %vm13302_vm3, %v30317_v47, %v30269_v44 }
0x17e8   :  { %v30344_v32 = vrot.slane %v30328_v63, 7 }
0x17ea   :  { %v30289_v7 = vpop.permute.xlu1 %30288  ;;  %v30295_v27 = vpop.permute.xlu0 %30294  ;;  %v30360_v48 = vsel %vm13660_vm5, %v39494_v13, %v30344_v32  ;;  %v30316_v13 = vsel %vm3105_vm2, %v39548_v60, %v30235_v45 }
0x17eb   :  { %v30327_v5 = vsel %vm13311_vm4, %v30319_v38, %v30289_v7  ;;  %v30330_v36 = vsel %vm13311_vm4, %v30322_v2, %v30295_v27  ;;  %v30324_v42 = vsel %vm13302_vm3, %v30316_v13, %v30267_v39 }
0x17ec   :  { %v30343_v49 = vrot.slane %v30327_v5, 7  ;;  %v30346_v11 = vrot.slane %v30330_v36, 7 }
0x17ee   :  { %v30359_v33 = vsel %vm13660_vm5, %v39491_v23, %v30343_v49  ;;  %v30293_v53 = vpop.permute.xlu1 %30292  ;;  %v30299_v28 = vpop.permute.xlu0 %30298  ;;  %v30362_v17 = vsel %vm13660_vm5, %v30014_v16, %v30346_v11 }
0x17ef   :  { %v30383_v40 = vcombine.low %v30358_v58, %v30359_v33  ;;  %v30329_v30 = vsel %vm13311_vm4, %v30321_v14, %v30293_v53  ;;  %v30332_v60 = vsel %vm13311_vm4, %v30324_v42, %v30299_v28  ;;  %v30953_v33 = vld [vmem:[#allocation8 + $0x118] sm:$0xff] }
0x17f0   :  { %v30345_v4 = vrot.slane %v30329_v30, 7  ;;  %v30348_v39 = vrot.slane %v30332_v60, 7 }
0x17f2   :  { %v30361_v23 = vsel %vm13660_vm5, %v39497_v54, %v30345_v4  ;;  %v30297_v43 = vpop.permute.xlu1 %30296  ;;  %v30391_v54 = vrot.slane %v30383_v40, %v35539_v19  ;;  %v29983_v25 = vpop.permute.xlu0 %29982  ;;  %v30974_v40 = vand.u32 4294901760, %v30953_v33 }
0x17f3   :  { %v30384_v22 = vcombine.low %v30360_v48, %v30361_v23  ;;  %v30331_v52 = vsel %vm13311_vm4, %v30323_v50, %v30297_v43  ;;  %v30016_v0 = vsel %vm13311_vm4, %v39482_v56, %v29983_v25  ;;  %v35247_v25 = vld [vmem:[#allocation10] sm:$0xff] }
0x17f4   :  { %v30347_v46 = vrot.slane %v30331_v52, 7  ;;  %v30364_v26 = vsel %vm13660_vm5, %v30016_v0, %v30348_v39  ;;  %v31076_v18 = vsub.f32 %v30953_v33, %v30974_v40  ;;  %v40008_v33 = vld [vmem:[#allocation26_spill] sm:$0xff] }
0x17f5   :  { %v30398_v31 = vrot.slane %v30384_v22, %v35539_v19 }
0x17f6   :  { %v30363_v24 = vsel %vm13660_vm5, %v30015_v21, %v30347_v46  ;;  %v30301_v9 = vpop.permute.xlu1 %30300  ;;  %v31077_v23 = vand.u32 4294901760, %v31076_v18 }
0x17f7   :  { %v30399_v1 = vcombine.low %v30391_v54, %v30398_v31  ;;  %v30400_v45 = vcombine.low %v30362_v17, %v30363_v24  ;;  %v30333_v20 = vsel %vm13311_vm4, %v30325_v29, %v30301_v9  ;;  %v40006_v17 = vld [vmem:[#allocation16_spill] sm:$0xff] }
0x17f8   :  { %v30349_v55 = vrot.slane %v30333_v20, 7  ;;  %v31078_v16 = vsub.f32 %v31076_v18, %v31077_v23  ;;  %v30373_v24 = vsub.s32 7, %v40006_v17 }
0x17f9   :  { %v30417_v41 = vsel %vm200_vm0, %v30399_v1, 0  ;;  %v30408_v63 = vrot.slane %v30400_v45, %v35539_v19 }
0x17fa   :  { %v29985_v44 = vpop.permute.xlu1 %29984  ;;  %v30490_v34 = vand.u32 4294901760, %v30417_v41  ;;  %v31079_v13 = vand.u32 4294901760, %v31078_v16  ;;  %v30374_v9 = vrot.slane %v35247_v25, %v30373_v24 }
0x17fb   :  { %v30017_v3 = vsel %vm13311_vm4, %v39485_v37, %v29985_v44 }
0x17fc   :  { %v30365_v38 = vsel %vm13660_vm5, %v30017_v3, %v30349_v55  ;;  %v30491_v15 = vsub.f32 %v30417_v41, %v30490_v34 }
0x17fd   :  { %v30401_v7 = vcombine.low %v30364_v26, %v30365_v38 }
0x17fe   :  { %v30492_v27 = vand.u32 4294901760, %v30491_v15 }
0x17ff   :  { %v30415_v56 = vrot.slane %v30401_v7, %v35539_v19 }
0x1800   :  { %v30493_v5 = vsub.f32 %v30491_v15, %v30492_v27 }
0x1801   :  { %v30416_v51 = vcombine.low %v30408_v63, %v30415_v56  ;;  %v39736_v63 = vld [vmem:[#allocation10 + $0x8] sm:$0x1f]  ;;  %v40007_v56 = vsub.s32 0, %v40006_v17 }
0x1802   :  { %v30494_v49 = vand.u32 4294901760, %v30493_v5 }
0x1803   :  { %v30419_v12 = vsel %vm200_vm0, %v30416_v51, 0  ;;  %v30957_v5 = vrot.slane %v39736_v63, %v40007_v56 }
0x1804   :  { %v30500_v2 = vand.u32 4294901760, %v30419_v12  ;;  %34110 = vmatprep.mubr.f32.mxu0 %v30494_v49 }
0x1806   :  { %v30501_v14 = vsub.f32 %v30419_v12, %v30500_v2 }
0x1808   :  { %v30502_v37 = vand.u32 4294901760, %v30501_v14 }
0x180a   :  { %v30503_v58 = vsub.f32 %v30501_v14, %v30502_v37 }
0x180c   :  { %v30504_v32 = vand.u32 4294901760, %v30503_v58 }
0x180e   :  { %34111 = vmatmul.mubr.f32.vlgmr.msra.gmra.mrb[40].mxu0 %v30504_v32 }
0x180f   :  { %34581 = vmatpush3.bf16.msra.mxu0 %v39625_v10  ;;  %34121 = vmatprep.mubr.f32.mxu0 %v30490_v34  ;;  %v30950_v10 = vld [vmem:[#allocation8 + $0x100] sm:$0xff] }
0x1810   :  { %34583 = vmatprep.subr.bf16.mxu0 %v39630_v59 }
0x1813   :  { %34585 = vmatpush3.bf16.msra.mxu0 %v39630_v59  ;;  %v30952_v59 = vld [vmem:[#allocation8 + $0x110] sm:$0xff] }
0x1814   :  { %34587 = vmatprep.subr.bf16.mxu0 %v39627_v6  ;;  %v30971_v53 = vand.u32 4294901760, %v30952_v59 }
0x1816   :  { %34122 = vmatmul.mubr.f32.vlgmr.msra.gmra.mrb[40].mxu0 %v30500_v2  ;;  %v39719_v36 = vpack.c.bf16 %v30974_v40, %v30971_v53  ;;  %v31069_v28 = vsub.f32 %v30952_v59, %v30971_v53  ;;  %v40009_v40 = vld [vmem:[#allocation27_spill] sm:$0xff] }
0x1817   :  { %34589 = vmatpush3.bf16.msra.mxu0 %v39627_v6  ;;  %34132 = vmatprep.mubr.f32.mxu0 %v30491_v15  ;;  %v30951_v6 = vld [vmem:[#allocation8 + $0x108] sm:$0xff] }
0x1818   :  { %34591 = vmatprep.subr.bf16.mxu0 %v39632_v57  ;;  %v31070_v11 = vand.u32 4294901760, %v31069_v28  ;;  %v34638_v31 = vpack.c.bf16 %v31076_v18, %v31069_v28 }
0x181a   :  { %v31071_v52 = vsub.f32 %v31069_v28, %v31070_v11  ;;  %v34654_v29 = vpack.c.bf16 %v31077_v23, %v31070_v11  ;;  %v40012_v28 = vld [vmem:[#allocation17_spill] sm:$0xff]  ;;  %v40014_v23 = vld [vmem:[#allocation20_spill] sm:$0xff] }
0x181b   :  { %34593 = vmatpush3.bf16.msra.mxu0 %v39632_v57  ;;  %v30965_v57 = vand.u32 4294901760, %v30950_v10 }
0x181c   :  { %34595 = vmatprep.subr.bf16.mxu0 %v39617_v62  ;;  %v31072_v46 = vand.u32 4294901760, %v31071_v52 }
0x181e   :  { %34133 = vmatmul.mubr.f32.vlgmr.msra.gmra.mrb[40].mxu0 %v30501_v14  ;;  %v34630_v54 = vpack.c.bf16 %v31079_v13, %v31072_v46 }
0x181f   :  { %34597 = vmatpush3.bf16.msra.mxu0 %v39617_v62  ;;  %34143 = vmatprep.mubr.f32.mxu0 %v30492_v27 }
0x1820   :  { %34599 = vmatprep.subr.bf16.mxu0 %v39619_v35 }
0x1823   :  { %34601 = vmatpush3.bf16.msra.mxu0 %v39619_v35 }
0x1824   :  { %34603 = vmatprep.subr.bf16.mxu0 %v39634_v61 }
0x1826   :  { %34144 = vmatmul.mubr.f32.vlgmr.msra.gmra.mrb[40].mxu0 %v30502_v37 }
0x1827   :  { %34605 = vmatpush3.bf16.msra.mxu0 %v39634_v61  ;;  %34154 = vmatprep.mubr.f32.mxu0 %v30490_v34  ;;  %v30968_v61 = vand.u32 4294901760, %v30951_v6 }
0x1828   :  { %34607 = vmatprep.subr.bf16.mxu0 %v39636_v8 }
0x182b   :  { %34609 = vmatpush3.bf16.msra.mxu0 %v39636_v8  ;;  %v39717_v8 = vpack.c.bf16 %v30968_v61, %v30965_v57 }
0x182c   :  { %34611 = vmatprep.subr.bf16.mxu0 %v39617_v62 }
0x182d   :  { %34619 = vmatprep.subr.bf16.mxu1 %v39717_v8 }
0x182e   :  { %34155 = vmatmul.mubr.f32.vlgmr.msra.gmra.mrb[40].mxu0 %v30500_v2  ;;  %34621 = vmatpush3.bf16.msra.mxu1 %v39717_v8 }
0x182f   :  { %34613 = vmatpush3.bf16.msra.mxu0 %v39617_v62  ;;  %34165 = vmatprep.mubr.f32.mxu0 %v30490_v34  ;;  %v31055_v62 = vsub.f32 %v30950_v10, %v30965_v57 }
0x1830   :  { %34615 = vmatprep.subr.bf16.mxu0 %v39619_v35  ;;  %34623 = vmatprep.subr.bf16.mxu1 %v39719_v36 }
0x1831   :  { %v31056_v30 = vand.u32 4294901760, %v31055_v62 }
0x1832   :  { %34625 = vmatpush3.bf16.msra.mxu1 %v39719_v36 }
0x1833   :  { %34617 = vmatpush3.bf16.msra.mxu0 %v39619_v35  ;;  %v31062_v35 = vsub.f32 %v30951_v6, %v30968_v61  ;;  %v31057_v50 = vsub.f32 %v31055_v62, %v31056_v30 }
0x1835   :  { %v31063_v4 = vand.u32 4294901760, %v31062_v35  ;;  %v31058_v43 = vand.u32 4294901760, %v31057_v50  ;;  %v34634_v47 = vpack.c.bf16 %v31062_v35, %v31055_v62  ;;  %v40010_v62 = vld [vmem:[#allocation23_spill] sm:$0xff]  ;;  %v40013_v50 = vld [vmem:[#allocation28_spill] sm:$0xff] }
0x1836   :  { %34166 = vmatmul.mubr.f32.vlgmr.msra.gmra.mrb[40].mxu0 %v30500_v2 }
0x1837   :  { %v31064_v48 = vsub.f32 %v31062_v35, %v31063_v4  ;;  %v34650_v42 = vpack.c.bf16 %v31063_v4, %v31056_v30  ;;  %v40011_v30 = vld [vmem:[#allocation25_spill] sm:$0xff] }
0x1839   :  { %v31065_v22 = vand.u32 4294901760, %v31064_v48 }
0x183b   :  { %v34626_v21 = vpack.c.bf16 %v31065_v22, %v31058_v43  ;;  %v40015_v22 = vld [vmem:[#allocation21_spill] sm:$0xff] }
0x183d   :  { %34627 = vmatprep.subr.bf16.mxu1 %v34626_v21 }
0x1909   :  { %v34167_v1 = vpop.f32.mrb[40].mxu0 }
0x190a   :  { %v34684_v60 = vadd.f32 %v34167_v1, %v30374_v9  ;;  %v30939_v45 = vpop.f32.mrb[41].mxu0 }
0x190b   :  { %v34685_v20 = vadd.f32 %v30939_v45, %v30374_v9 }
0x190c   :  { %v30962_v0 = vsel %vm200_vm0, %v34684_v60, 0 }
0x190d   :  { %v31043_v41 = vand.u32 4294901760, %v30962_v0  ;;  %v30959_v39 = vsel %vm200_vm0, %v34685_v20, 0  ;;  %v40016_v20 = vld [vmem:[#allocation18_spill] sm:$0xff] }
0x190e   :  { %v31033_v55 = vand.u32 4294901760, %v30959_v39 }
0x190f   :  { %v31044_v44 = vsub.f32 %v30962_v0, %v31043_v41 }
0x1910   :  { %v31034_v34 = vsub.f32 %v30959_v39, %v31033_v55 }
0x1911   :  { %v31045_v3 = vand.u32 4294901760, %v31044_v44 }
0x1912   :  { %v31035_v26 = vand.u32 4294901760, %v31034_v34 }
0x1913   :  { %v31046_v38 = vsub.f32 %v31044_v44, %v31045_v3 }
0x1914   :  { %v31036_v15 = vsub.f32 %v31034_v34, %v31035_v26 }
0x1915   :  { %v31047_v27 = vand.u32 4294901760, %v31046_v38 }
0x1916   :  { %v31037_v7 = vand.u32 4294901760, %v31036_v15 }
0x1918   :  { %34176 = vmatprep.mubr.f32.mxu1 %v31037_v7 }
0x1919   :  { %34177 = vmatmul.mubr.f32.vlgmr.msra.gmra.mrb[42].mxu1 %v31047_v27 }
0x191a   :  { %34629 = vmatpush3.bf16.msra.mxu1 %v34626_v21  ;;  %34187 = vmatprep.mubr.f32.mxu1 %v31033_v55 }
0x191b   :  { %34631 = vmatprep.subr.bf16.mxu1 %v34630_v54 }
0x191e   :  { %34633 = vmatpush3.bf16.msra.mxu1 %v34630_v54 }
0x191f   :  { %34635 = vmatprep.subr.bf16.mxu1 %v34634_v47 }
0x1921   :  { %34188 = vmatmul.mubr.f32.vlgmr.msra.gmra.mrb[42].mxu1 %v31043_v41 }
0x1922   :  { %34637 = vmatpush3.bf16.msra.mxu1 %v34634_v47  ;;  %34198 = vmatprep.mubr.f32.mxu1 %v31034_v34  ;;  %v40019_v34 = vld [vmem:[#allocation24_spill] sm:$0xff] }
0x1923   :  { %34639 = vmatprep.subr.bf16.mxu1 %v34638_v31 }
0x1926   :  { %34641 = vmatpush3.bf16.msra.mxu1 %v34638_v31 }
0x1927   :  { %34643 = vmatprep.subr.bf16.mxu1 %v39717_v8 }
0x1929   :  { %34199 = vmatmul.mubr.f32.vlgmr.msra.gmra.mrb[42].mxu1 %v31044_v44 }
0x192a   :  { %34645 = vmatpush3.bf16.msra.mxu1 %v39717_v8  ;;  %34209 = vmatprep.mubr.f32.mxu1 %v31035_v26 }
0x192b   :  { %34647 = vmatprep.subr.bf16.mxu1 %v39719_v36 }
0x192e   :  { %34649 = vmatpush3.bf16.msra.mxu1 %v39719_v36 }
0x192f   :  { %34651 = vmatprep.subr.bf16.mxu1 %v34650_v42 }
0x1931   :  { %34210 = vmatmul.mubr.f32.vlgmr.msra.gmra.mrb[42].mxu1 %v31045_v3 }
0x1932   :  { %34653 = vmatpush3.bf16.msra.mxu1 %v34650_v42  ;;  %34220 = vmatprep.mubr.f32.mxu1 %v31033_v55 }
0x1933   :  { %34655 = vmatprep.subr.bf16.mxu1 %v34654_v29 }
0x1936   :  { %34657 = vmatpush3.bf16.msra.mxu1 %v34654_v29 }
0x1937   :  { %34659 = vmatprep.subr.bf16.mxu1 %v39717_v8 }
0x1939   :  { %34221 = vmatmul.mubr.f32.vlgmr.msra.gmra.mrb[42].mxu1 %v31043_v41 }
0x193a   :  { %34661 = vmatpush3.bf16.msra.mxu1 %v39717_v8  ;;  %34231 = vmatprep.mubr.f32.mxu1 %v31033_v55  ;;  %v40018_v55 = vld [vmem:[#allocation22_spill] sm:$0xff] }
0x193b   :  { %34663 = vmatprep.subr.bf16.mxu1 %v39719_v36 }
0x193e   :  { %34665 = vmatpush3.bf16.msra.mxu1 %v39719_v36 }
0x1941   :  { %34232 = vmatmul.mubr.f32.vlgmr.msra.gmra.mrb[42].mxu1 %v31043_v41  ;;  %v40017_v41 = vld [vmem:[#allocation19_spill] sm:$0xff] }
0x1a14   :  { %v34233_v51 = vpop.f32.mrb[42].mxu1 }
0x1a15   :  { %v34686_v49 = vadd.f32 %v34233_v51, %v30957_v5  ;;  %v31482_v12 = vpop.f32.mrb[43].mxu1 }
0x1a16   :  { %v34687_v2 = vadd.f32 %v31482_v12, %v30957_v5 }
0x1a17   :  { %v31511_v14 = vcombine.high %v34686_v49, %v34686_v49  ;;  %v31518_v37 = vrot.slane %v34686_v49, %v35539_v19 }
0x1a18   :  { %v31494_v58 = vcombine.high %v34687_v2, %v34687_v2  ;;  %v31501_v32 = vrot.slane %v34687_v2, %v35539_v19 }
0x1a19   :  { %v31525_v10 = vrot.slane %v31511_v14, %v35539_v19  ;;  %v31526_v6 = vcombine.high %v31518_v37, %v31518_v37  ;;  %v31540_v53 = vadd.f32 %v31518_v37, %v40008_v33 }
0x1a1a   :  { %v31508_v59 = vrot.slane %v31494_v58, %v35539_v19  ;;  %v31509_v57 = vcombine.high %v31501_v32, %v31501_v32  ;;  %v31536_v35 = vadd.f32 %v31501_v32, %v40010_v62 }
0x1a1b   :  { %v31527_v61 = vcombine.high %v31525_v10, %v31525_v10  ;;  %v31541_v8 = vadd.f32 %v31526_v6, %v40009_v40  ;;  %v31542_v18 = vadd.f32 %v31525_v10, %v40012_v28 }
0x1a1c   :  { %v31510_v36 = vcombine.high %v31508_v59, %v31508_v59  ;;  %v31537_v4 = vadd.f32 %v31509_v57, %v40011_v30  ;;  %v31538_v43 = vadd.f32 %v31508_v59, %v40014_v23 }
0x1a1d   :  { %v31543_v48 = vadd.f32 %v31527_v61, %v40013_v50  ;;  %v31569_v11 = vcombine.low %v31540_v53, %v31541_v8 }
0x1a1e   :  { %v31539_v52 = vadd.f32 %v31510_v36, %v40015_v22  ;;  %v31552_v16 = vcombine.low %v31536_v35, %v31537_v4  ;;  %v40020_v22 = vsub.s32 3, %v40006_v17 }
0x1a1f   :  { %v31570_v21 = vcombine.low %v31542_v18, %v31543_v48  ;;  %v31577_v13 = vrot.slane %v31569_v11, %v35539_v19 }
0x1a20   :  { %v31553_v46 = vcombine.low %v31538_v43, %v31539_v52  ;;  %v31560_v54 = vrot.slane %v31552_v16, %v35539_v19 }
0x1a21   :  { %v31584_v47 = vrot.slane %v31570_v21, %v35539_v19  ;;  %v40021_v21 = vsub.s32 4, %v40006_v17 }
0x1a22   :  { %v31567_v31 = vrot.slane %v31553_v46, %v35539_v19 }
0x1a23   :  { %v31585_v42 = vcombine.low %v31577_v13, %v31584_v47  ;;  %v31845_v46 = vrot.slane %v39736_v63, %v40021_v21 }
0x1a24   :  { %v31568_v29 = vcombine.low %v31560_v54, %v31567_v31 }
0x1a25   :  { %v31591_v24 = vsel %vm200_vm0, %v31585_v42, 0.0  ;;  %v31847_v54 = vcombine.high %v31845_v46, %v31845_v46 }
0x1a26   :  { %31592 = vadd.xlane.f32.xlu1 %v31591_v24  ;;  %v31588_v25 = vsel %vm200_vm0, %v31568_v29, 0.0  ;;  %v31854_v24 = vrot.slane %v31845_v46, %v35539_v19 }
0x1a27   :  { %31589 = vadd.xlane.f32.xlu0 %v31588_v25  ;;  %v31861_v25 = vrot.slane %v31847_v54, %v35539_v19 }
0x1ab3   :  { %v31593_v9 = vpop.xlane.xlu1 %31592 }
0x1ab4   :  { %v31595_v1 = vmul.f32 0.03125, %v31593_v9  ;;  %v31590_v60 = vpop.xlane.xlu0 %31589 }
0x1ab5   :  { %v31594_v45 = vmul.f32 0.03125, %v31590_v60 }
0x1ab6   :  { %v31632_v0 = vrot.slane %v31595_v1, %v40016_v20  ;;  %v31639_v39 = vrot.slane %v31595_v1, %v40017_v41  ;;  %v31646_v44 = vrot.slane %v31595_v1, %v40018_v55  ;;  %v31653_v3 = vrot.slane %v31595_v1, %v40019_v34 }
0x1ab7   :  { %v31604_v26 = vrot.slane %v31594_v45, %v40016_v20  ;;  %v31611_v38 = vrot.slane %v31594_v45, %v40017_v41  ;;  %v31618_v15 = vrot.slane %v31594_v45, %v40018_v55  ;;  %v31625_v7 = vrot.slane %v31594_v45, %v40019_v34 }
0x1ab8   :  { %v39767_v27 = vsub.f32 %v31540_v53, %v31632_v0  ;;  %v39769_v56 = vsub.f32 %v31541_v8, %v31639_v39  ;;  %v39771_v5 = vsub.f32 %v31542_v18, %v31646_v44  ;;  %v39773_v51 = vsub.f32 %v31543_v48, %v31653_v3 }
0x1ab9   :  { %v31662_v49 = vsub.f32 %v31536_v35, %v31604_v26  ;;  %v31663_v12 = vsub.f32 %v31537_v4, %v31611_v38  ;;  %v31664_v2 = vsub.f32 %v31538_v43, %v31618_v15  ;;  %v31665_v14 = vsub.f32 %v31539_v52, %v31625_v7 }
0x1aba   :  { %v31674_v37 = vmul.f32 %v39767_v27, %v39767_v27  ;;  %v31675_v58 = vmul.f32 %v39769_v56, %v39769_v56  ;;  %v31676_v32 = vmul.f32 %v39771_v5, %v39771_v5  ;;  %v31677_v10 = vmul.f32 %v39773_v51, %v39773_v51 }
0x1abb   :  { %v31670_v6 = vmul.f32 %v31662_v49, %v31662_v49  ;;  %v31671_v59 = vmul.f32 %v31663_v12, %v31663_v12  ;;  %v31672_v57 = vmul.f32 %v31664_v2, %v31664_v2  ;;  %v31673_v61 = vmul.f32 %v31665_v14, %v31665_v14 }
0x1abc   :  { %v31703_v33 = vcombine.low %v31674_v37, %v31675_v58  ;;  %v31704_v53 = vcombine.low %v31676_v32, %v31677_v10  ;;  %v31811_v52 = vrot.slane %v39736_v63, %v40020_v22  ;;  %v31862_v38 = vcombine.high %v31854_v24, %v31854_v24 }
0x1abd   :  { %v31686_v40 = vcombine.low %v31670_v6, %v31671_v59  ;;  %v31687_v8 = vcombine.low %v31672_v57, %v31673_v61  ;;  %v31863_v15 = vcombine.high %v31861_v25, %v31861_v25 }
0x1abe   :  { %v31711_v35 = vrot.slane %v31703_v33, %v35539_v19  ;;  %v31718_v30 = vrot.slane %v31704_v53, %v35539_v19  ;;  %v31813_v47 = vcombine.high %v31811_v52, %v31811_v52  ;;  %v31820_v31 = vrot.slane %v31811_v52, %v35539_v19 }
0x1abf   :  { %v31694_v36 = vrot.slane %v31686_v40, %v35539_v19  ;;  %v31701_v62 = vrot.slane %v31687_v8, %v35539_v19 }
0x1ac0   :  { %v31719_v18 = vcombine.low %v31711_v35, %v31718_v30  ;;  %v31827_v42 = vrot.slane %v31813_v47, %v35539_v19  ;;  %v31828_v60 = vcombine.high %v31820_v31, %v31820_v31 }
0x1ac1   :  { %v31702_v4 = vcombine.low %v31694_v36, %v31701_v62 }
0x1ac2   :  { %v31725_v50 = vsel %vm200_vm0, %v31719_v18, 0.0  ;;  %v31829_v45 = vcombine.high %v31827_v42, %v31827_v42 }
0x1ac3   :  { %v31722_v28 = vsel %vm200_vm0, %v31702_v4, 0.0 }
0x1ac4   :  { %31723 = vadd.xlane.f32.xlu0 %v31722_v28 }
0x1ac8   :  { %31726 = vadd.xlane.f32.xlu0 %v31725_v50 }
0x1b51   :  { %v31724_v48 = vpop.xlane.xlu0 %31723 }
0x1b52   :  { %v31728_v11 = vmul.f32 0.03125, %v31724_v48 }
0x1b54   :  { %v31730_v23 = vadd.f32 1e-05, %v31728_v11 }
0x1b55   :  { %v31727_v43 = vpop.xlane.xlu0 %31726 }
0x1b56   :  { %35209 = vrsqrt.f32 %v31730_v23  ;;  %v31729_v16 = vmul.f32 0.03125, %v31727_v43 }
0x1b58   :  { %v31731_v13 = vadd.f32 1e-05, %v31729_v16 }
0x1b5a   :  { %35211 = vrsqrt.f32 %v31731_v13 }
0x1b60   :  { %v35210_v29 = vpop.eup %35209 }
0x1b61   :  { %v31742_v9 = vrot.slane %v35210_v29, %v40016_v20  ;;  %v31749_v1 = vrot.slane %v35210_v29, %v40017_v41  ;;  %v31756_v17 = vrot.slane %v35210_v29, %v40018_v55  ;;  %v31763_v63 = vrot.slane %v35210_v29, %v40019_v34 }
0x1b63   :  { %v31800_v0 = vmul.f32 %v31742_v9, %v31662_v49  ;;  %v31801_v39 = vmul.f32 %v31749_v1, %v31663_v12  ;;  %v31802_v44 = vmul.f32 %v31756_v17, %v31664_v2  ;;  %v31803_v3 = vmul.f32 %v31763_v63, %v31665_v14 }
0x1b64   :  { %v35212_v26 = vpop.eup %35211 }
0x1b65   :  { %v31770_v19 = vrot.slane %v35212_v26, %v40016_v20  ;;  %v31777_v7 = vrot.slane %v35212_v26, %v40017_v41  ;;  %v31784_v37 = vrot.slane %v35212_v26, %v40018_v55  ;;  %v31791_v58 = vrot.slane %v35212_v26, %v40019_v34 }
0x1b66   :  { %v31834_v32 = vmul.f32 %v31820_v31, %v31800_v0  ;;  %v31835_v10 = vmul.f32 %v31828_v60, %v31801_v39  ;;  %v31836_v6 = vmul.f32 %v31827_v42, %v31802_v44  ;;  %v31837_v59 = vmul.f32 %v31829_v45, %v31803_v3 }
0x1b67   :  { %v31804_v49 = vmul.f32 %v31770_v19, %v39767_v27  ;;  %v31805_v12 = vmul.f32 %v31777_v7, %v39769_v56  ;;  %v31806_v2 = vmul.f32 %v31784_v37, %v39771_v5  ;;  %v31807_v14 = vmul.f32 %v31791_v58, %v39773_v51 }
0x1b68   :  { %v31868_v57 = vadd.f32 %v31854_v24, %v31834_v32  ;;  %v31869_v20 = vadd.f32 %v31862_v38, %v31835_v10  ;;  %v31870_v61 = vadd.f32 %v31861_v25, %v31836_v6  ;;  %v31871_v41 = vadd.f32 %v31863_v15, %v31837_v59 }
0x1b69   :  { %v31838_v55 = vmul.f32 %v31820_v31, %v31804_v49  ;;  %v31839_v34 = vmul.f32 %v31828_v60, %v31805_v12  ;;  %v31840_v33 = vmul.f32 %v31827_v42, %v31806_v2  ;;  %v31841_v53 = vmul.f32 %v31829_v45, %v31807_v14 }
0x1b6a   :  { %31877 = vst.msk [vmem:[#allocation11] sm:$0x3] %vm31876_vm6, %v31868_v57  ;;  %31878 = vst.msk [vmem:[#allocation11 + $0x2] sm:$0x3] %vm31876_vm6, %v31869_v20 }
0x1b6b   :  { %31879 = vst.msk [vmem:[#allocation11 + $0x4] sm:$0x3] %vm31876_vm6, %v31870_v61  ;;  %31880 = vst.msk [vmem:[#allocation11 + $0x6] sm:$0x3] %vm31876_vm6, %v31871_v41  ;;  %v31872_v27 = vadd.f32 %v31854_v24, %v31838_v55  ;;  %v31873_v56 = vadd.f32 %v31862_v38, %v31839_v34  ;;  %v31874_v5 = vadd.f32 %v31861_v25, %v31840_v33 }
0x1b6c   :  { %v31875_v51 = vadd.f32 %v31863_v15, %v31841_v53 }
0x1b6d   :  { %31881 = vst.msk [vmem:[#allocation11 + $0x8] sm:$0x3] %vm31876_vm6, %v31872_v27  ;;  %31882 = vst.msk [vmem:[#allocation11 + $0xa] sm:$0x3] %vm31876_vm6, %v31873_v56 }
0x1b6e   :  { %31883 = vst.msk [vmem:[#allocation11 + $0xc] sm:$0x3] %vm31876_vm6, %v31874_v5  ;;  %31884 = vst.msk [vmem:[#allocation11 + $0xe] sm:$0x3] %vm31876_vm6, %v31875_v51 }
0x1b6f   :  { %35370 = shalt.err (!%p35367_p2)
}
0x1b70   :  { %s35371_s26 = scalar_lea.hbm %s39840_s6, 256 }
0x1b71   :  { %p35372_p3 = scmp.ne.s32.totalorder %s39840_s6, %s35371_s26  ;;  %p35375_p4 = scmp.lt.u32.totalorder %s35371_s26, %s39840_s6 }
0x1b73   :  { %p35377_p5 = pnand %p35375_p4, %p35372_p3 }
0x1b75   :  { %35380 = shalt.err (!%p35377_p5)
}
0x1b76   :  { %31896 = dma.vmem_to_hbm [thread:$0]  %s31891_s21, 256, %s39840_s6, [#allocation4], %s35391_s9, %s35391_s9, %s35392_s10  }
0x1b77   :  { %35387 = dma.done.wait [#allocation4], 256  }
0x1b78   :  { %35388 = vsyncadd [#allocation4], 4294967040 }
0x1b79   :  { %31900 = vsyncpa [#allocation3], 1 }
0x1b7a   :  { %31901 = vsyncpa [#allocation6], 1 }
0x1b7b   :  { %31902 = vsyncpa [#allocation9], 1 }
0x1b7c   :  { %31903 = vsyncpa [#allocation4], 1 }

</bundles_post_ra>
